<compile_context>
chip_gen: v7x
topology: tpu7x:2x2x1
jax: 0.10.0
libtpu: 0.0.40
codegen_flags: <defaults>
</compile_context>

<pallas_src>
import numpy as np
import jax
import jax.numpy as jnp
from jax import lax
from jax.experimental import pallas as pl
from jax.experimental.pallas import tpu as pltpu

CHANNELS = 1
IMG_SIZE = 64
BN_EPS = 0.8          # nn.BatchNorm2d(out_filters, 0.8) -> eps = 0.8
LRELU_SLOPE = 0.2

# (Cin, Cout, has_bn); spatial size halves each layer: 64 -> 32 -> 16 -> 8 -> 4.
LAYER_PLAN = [(CHANNELS, 16, False), (16, 32, True), (32, 64, True), (64, 128, True)]


# ----------------------------------------------------------------------------
# Fused Pallas kernel: 4 conv blocks + linear head, one grid step per batch elem
# ----------------------------------------------------------------------------
def fused_disc_kernel(x_ref,
                      s1_ref, m1_ref, e1_ref,
                      s2_ref, m2_ref, e2_ref,
                      s3_ref, m3_ref, e3_ref,
                      s4_ref, m4_ref, e4_ref,
                      hd_ref, o_ref):
    # x_ref: (1, H, W*Cin) f32 block for this batch element.
    x = x_ref[0].astype(jnp.bfloat16)                       # (H, W*Cin)

    y = None
    for s_ref, m_ref, e_ref in ((s1_ref, m1_ref, e1_ref),
                                (s2_ref, m2_ref, e2_ref),
                                (s3_ref, m3_ref, e3_ref),
                                (s4_ref, m4_ref, e4_ref)):
        acc = None
        for kh in range(3):
            # Row selection (folds zero-padding along H), done on the MXU with an exact 0/1 matrix.
            rows = jnp.dot(s_ref[kh], x, preferred_element_type=jnp.float32)
            rows = rows.astype(jnp.bfloat16)                 # (Ho, W*Cin)
            # kw taps + W zero-padding + (Cin,Cout) weights folded into one matrix.
            part = jnp.dot(rows, m_ref[kh], preferred_element_type=jnp.float32)
            acc = part if acc is None else acc + part        # (Ho, Wo*Cout) f32, 512 lanes
        y = acc + e_ref[0:1, :]                              # conv bias
        y = jnp.where(y > 0, y, LRELU_SLOPE * y)             # LeakyReLU(0.2)
        y = y * e_ref[1:2, :] + e_ref[2:3, :]                # folded BatchNorm (identity for L1)
        x = y.astype(jnp.bfloat16)                           # next layer's input (Ho, Wo*Cout)

    # Head: Linear(2048 -> 1) + Sigmoid as a VPU row-reduction (avoids an N=1 MXU matmul).
    prod = y * hd_ref[0:4, :]                                # (4, 512) f32
    logit = jnp.sum(jnp.sum(prod, axis=1, keepdims=True), axis=0, keepdims=True)  # (1, 1)
    logit = logit + hd_ref[4:5, 0:1]                         # + linear bias
    # numerically-stable sigmoid
    pos = 1.0 / (1.0 + jnp.exp(-logit))
    ez = jnp.exp(logit)
    neg = ez / (1.0 + ez)
    val = jnp.where(logit >= 0.0, pos, neg)                  # (1, 1)
    o_ref[...] = jnp.broadcast_to(val, (8, 128))             # lane-dense store; wrapper picks [0,0]


# ----------------------------------------------------------------------------
# Parameter construction (PyTorch layout) and one-time host-side repacking
# ----------------------------------------------------------------------------
def init_params(key):
    params = {"blocks": []}
    for cin, cout, bn in LAYER_PLAN:
        key, kw, kb, kg, kbeta, km, kv = jax.random.split(key, 7)
        blk = {
            "w": 0.1 * jax.random.normal(kw, (cout, cin, 3, 3), jnp.float32),
            "b": 0.05 * jax.random.normal(kb, (cout,), jnp.float32),
        }
        if bn:
            gamma = 1.0 + 0.1 * jax.random.normal(kg, (cout,), jnp.float32)
            beta = 0.05 * jax.random.normal(kbeta, (cout,), jnp.float32)
            rmean = 0.05 * jax.random.normal(km, (cout,), jnp.float32)
            rvar = 1.0 + 0.1 * jax.random.uniform(kv, (cout,), jnp.float32)
            inv_std = 1.0 / jnp.sqrt(rvar + BN_EPS)
            blk["scale"] = gamma * inv_std
            blk["shift"] = beta - gamma * rmean * inv_std
        else:
            blk["scale"] = jnp.ones((cout,), jnp.float32)
            blk["shift"] = jnp.zeros((cout,), jnp.float32)
        params["blocks"].append(blk)

    ds = IMG_SIZE // (2 ** 4)
    d_in = 128 * ds * ds
    key, kw, kb = jax.random.split(key, 3)
    params["lin_w"] = 0.02 * jax.random.normal(kw, (d_in, 1), jnp.float32)
    params["lin_b"] = 0.02 * jax.random.normal(kb, (1,), jnp.float32)
    return params


def pack_params(params):
    """Repack PyTorch-layout params into the kernel's matmul operands (host-side, once)."""
    packed = {"layers": []}
    h = IMG_SIZE
    for (cin, cout, _), blk in zip(LAYER_PLAN, params["blocks"]):
        H = W = h
        Ho, Wo = H // 2, W // 2
        w = np.asarray(blk["w"], np.float32)                  # (Cout, Cin, 3, 3)

        # S[kh]: (Ho, H) 0/1 row selection; row i picks input row 2i-1+kh (all-zero row = padding).
        S = np.zeros((3, Ho, H), np.float32)
        for kh in range(3):
            for i in range(Ho):
                r = 2 * i - 1 + kh
                if 0 <= r < H:
                    S[kh, i, r] = 1.0

        # M[kh]: (W*Cin, Wo*Cout); output column block j gathers input column 2j-1+kw for kw=0..2.
        M = np.zeros((3, W * cin, Wo * cout), np.float32)
        for kh in range(3):
            for j in range(Wo):
                for kw_ in range(3):
                    c = 2 * j - 1 + kw_
                    if 0 <= c < W:
                        M[kh, c * cin:(c + 1) * cin, j * cout:(j + 1) * cout] = w[:, :, kh, kw_].T

        # Epilogue pack: row0 = bias, row1 = BN scale, row2 = BN shift, tiled to (w, c) lane layout.
        eps = np.zeros((8, Wo * cout), np.float32)
        eps[0] = np.tile(np.asarray(blk["b"], np.float32), Wo)
        eps[1] = np.tile(np.asarray(blk["scale"], np.float32), Wo)
        eps[2] = np.tile(np.asarray(blk["shift"], np.float32), Wo)

        packed["layers"].append({
            "s": jnp.asarray(S, jnp.bfloat16),
            "m": jnp.asarray(M, jnp.bfloat16),
            "eps": jnp.asarray(eps, jnp.float32),
        })
        h = Ho

    # Head: permute Linear rows from NCHW flatten order (c*16 + h*4 + w) to the kernel's
    # (h, w*128 + c) layout; stash the bias in row 4, lane 0.
    ds = IMG_SIZE // (2 ** 4)                                 # 4
    lin_w = np.asarray(params["lin_w"], np.float32).reshape(128, ds, ds)   # (c, h, w)
    wl = np.transpose(lin_w, (1, 2, 0)).reshape(ds, ds * 128)              # (h, w*128 + c)
    hd = np.zeros((8, ds * 128), np.float32)
    hd[0:ds] = wl
    hd[ds, 0] = float(np.asarray(params["lin_b"], np.float32)[0])
    packed["head"] = jnp.asarray(hd, jnp.float32)
    return packed


# ----------------------------------------------------------------------------
# Forward wrapper
# ----------------------------------------------------------------------------
def _const_index_map(ndim):
    def imap(b):
        return (0,) * ndim
    return imap


@jax.jit
def discriminator_forward(img_nchw, packed):
    """img_nchw: (B, C, H, W) float -> validity (B, 1) in [0, 1]."""
    B, C, H, W = img_nchw.shape
    # NCHW -> (B, H, W*C) rows/lanes layout consumed by the kernel (tiny one-time transform).
    x0 = jnp.transpose(img_nchw, (0, 2, 3, 1)).reshape(B, H, W * C).astype(jnp.float32)

    operands = [x0]
    in_specs = [pl.BlockSpec((1, H, W * C), lambda b: (b, 0, 0))]
    for lyr in packed["layers"]:
        for name in ("s", "m", "eps"):
            arr = lyr[name]
            operands.append(arr)
            in_specs.append(pl.BlockSpec(arr.shape, _const_index_map(arr.ndim)))
    hd = packed["head"]
    operands.append(hd)
    in_specs.append(pl.BlockSpec(hd.shape, _const_index_map(hd.ndim)))

    out = pl.pallas_call(
        fused_disc_kernel,
        out_shape=jax.ShapeDtypeStruct((B * 8, 128), jnp.float32),
        grid=(B,),
        in_specs=in_specs,
        out_specs=pl.BlockSpec((8, 128), lambda b: (b, 0)),
        compiler_params=pltpu.CompilerParams(
            dimension_semantics=("parallel",),          # v7x: one batch element per TensorCore
            vmem_limit_bytes=32 * 1024 * 1024,
        ),
    )(*operands)
    # Each batch element wrote its sigmoid broadcast over an (8, 128) block; take element [0, 0].
    return out.reshape(B, 8, 128)[:, 0, 0:1]


# ----------------------------------------------------------------------------
# Pure-JAX reference (eval-mode PyTorch semantics) for a correctness check
# ----------------------------------------------------------------------------
def reference_forward(img_nchw, params):
    x = img_nchw.astype(jnp.float32)
    for blk in params["blocks"]:
        x = lax.conv_general_dilated(
            x, blk["w"], window_strides=(2, 2), padding=((1, 1), (1, 1)),
            dimension_numbers=("NCHW", "OIHW", "NCHW"))
        x = x + blk["b"].reshape(1, -1, 1, 1)
        x = jnp.where(x > 0, x, LRELU_SLOPE * x)
        x = x * blk["scale"].reshape(1, -1, 1, 1) + blk["shift"].reshape(1, -1, 1, 1)
    flat = x.reshape(x.shape[0], -1)
    return jax.nn.sigmoid(flat @ params["lin_w"] + params["lin_b"])


if __name__ == "__main__":
    key = jax.random.PRNGKey(0)
    k_img, k_par = jax.random.split(key)
    img = jax.random.normal(k_img, (2, CHANNELS, IMG_SIZE, IMG_SIZE), jnp.float32)
    params = init_params(k_par)
    packed = pack_params(params)

    validity = discriminator_forward(img, packed)
    jax.block_until_ready(validity)

    assert validity.shape == (2, 1)
    assert bool(jnp.all(jnp.isfinite(validity)))
    assert bool(jnp.all((validity >= 0.0) & (validity <= 1.0)))

    # correctness vs pure-JAX reference (bf16-packed conv weights -> loose tolerance)
    ref = reference_forward(img, params)
    np.testing.assert_allclose(np.asarray(validity), np.asarray(ref), atol=8e-2, rtol=0)

    print("KERNEL_OK")
</pallas_src>

<mosaic_0001>
module attributes {stable_mosaic.version = 11 : i64} {
  func.func @fused_disc_kernel(%arg0: i32, %arg1: memref<1x64x64xf32, #tpu.memory_space<vmem>>, %arg2: memref<3x32x64xbf16, #tpu.memory_space<vmem>>, %arg3: memref<3x64x512xbf16, #tpu.memory_space<vmem>>, %arg4: memref<8x512xf32, #tpu.memory_space<vmem>>, %arg5: memref<3x16x32xbf16, #tpu.memory_space<vmem>>, %arg6: memref<3x512x512xbf16, #tpu.memory_space<vmem>>, %arg7: memref<8x512xf32, #tpu.memory_space<vmem>>, %arg8: memref<3x8x16xbf16, #tpu.memory_space<vmem>>, %arg9: memref<3x512x512xbf16, #tpu.memory_space<vmem>>, %arg10: memref<8x512xf32, #tpu.memory_space<vmem>>, %arg11: memref<3x4x8xbf16, #tpu.memory_space<vmem>>, %arg12: memref<3x512x512xbf16, #tpu.memory_space<vmem>>, %arg13: memref<8x512xf32, #tpu.memory_space<vmem>>, %arg14: memref<8x512xf32, #tpu.memory_space<vmem>>, %arg15: memref<8x128xf32, #tpu.memory_space<vmem>>) attributes {dimension_semantics = [#tpu.dimension_semantics<parallel>], iteration_bounds = array<i64: 2>, scalar_prefetch = 0 : i64, scratch_operands = 0 : i64, tpu.core_type = #tpu.core_type<tc>, window_params = [{transform_indices = @transform_0, window_bounds = array<i64: 1, 64, 64>}, {pipeline_mode = #tpu.pipeline_mode<synchronous>, transform_indices = @transform_1, window_bounds = array<i64: 3, 32, 64>}, {pipeline_mode = #tpu.pipeline_mode<synchronous>, transform_indices = @transform_2, window_bounds = array<i64: 3, 64, 512>}, {pipeline_mode = #tpu.pipeline_mode<synchronous>, transform_indices = @transform_3, window_bounds = array<i64: 8, 512>}, {pipeline_mode = #tpu.pipeline_mode<synchronous>, transform_indices = @transform_4, window_bounds = array<i64: 3, 16, 32>}, {pipeline_mode = #tpu.pipeline_mode<synchronous>, transform_indices = @transform_5, window_bounds = array<i64: 3, 512, 512>}, {pipeline_mode = #tpu.pipeline_mode<synchronous>, transform_indices = @transform_6, window_bounds = array<i64: 8, 512>}, {pipeline_mode = #tpu.pipeline_mode<synchronous>, transform_indices = @transform_7, window_bounds = array<i64: 3, 8, 16>}, {pipeline_mode = #tpu.pipeline_mode<synchronous>, transform_indices = @transform_8, window_bounds = array<i64: 3, 512, 512>}, {pipeline_mode = #tpu.pipeline_mode<synchronous>, transform_indices = @transform_9, window_bounds = array<i64: 8, 512>}, {pipeline_mode = #tpu.pipeline_mode<synchronous>, transform_indices = @transform_10, window_bounds = array<i64: 3, 4, 8>}, {pipeline_mode = #tpu.pipeline_mode<synchronous>, transform_indices = @transform_11, window_bounds = array<i64: 3, 512, 512>}, {pipeline_mode = #tpu.pipeline_mode<synchronous>, transform_indices = @transform_12, window_bounds = array<i64: 8, 512>}, {pipeline_mode = #tpu.pipeline_mode<synchronous>, transform_indices = @transform_13, window_bounds = array<i64: 8, 512>}, {transform_indices = @transform_14, window_bounds = array<i64: 8, 128>}]} {
    %c0 = arith.constant 0 : index
    %c0_0 = arith.constant 0 : index
    %c0_1 = arith.constant 0 : index
    %0 = vector.load %arg1[%c0, %c0_0, %c0_1] : memref<1x64x64xf32, #tpu.memory_space<vmem>>, vector<1x64x64xf32>
    %1 = vector.shape_cast %0 : vector<1x64x64xf32> to vector<64x64xf32>
    %2 = arith.truncf %1 : vector<64x64xf32> to vector<64x64xbf16>
    %c0_2 = arith.constant 0 : index
    %c0_3 = arith.constant 0 : index
    %c0_4 = arith.constant 0 : index
    %3 = vector.load %arg2[%c0_2, %c0_3, %c0_4] : memref<3x32x64xbf16, #tpu.memory_space<vmem>>, vector<1x32x64xbf16>
    %4 = vector.shape_cast %3 : vector<1x32x64xbf16> to vector<32x64xbf16>
    %cst = arith.constant dense<0.000000e+00> : vector<32x64xf32>
    %5 = tpu.matmul %4, %2, %cst {dimension_numbers = #tpu.dot_dimension_numbers<[1], [0], [0], [1], [0, 0, 1, 1], [], []>} : vector<32x64xbf16>, vector<64x64xbf16>, vector<32x64xf32> -> vector<32x64xf32>
    %6 = arith.truncf %5 : vector<32x64xf32> to vector<32x64xbf16>
    %c0_5 = arith.constant 0 : index
    %c0_6 = arith.constant 0 : index
    %c0_7 = arith.constant 0 : index
    %7 = vector.load %arg3[%c0_5, %c0_6, %c0_7] : memref<3x64x512xbf16, #tpu.memory_space<vmem>>, vector<1x64x512xbf16>
    %8 = vector.shape_cast %7 : vector<1x64x512xbf16> to vector<64x512xbf16>
    %cst_8 = arith.constant dense<0.000000e+00> : vector<32x512xf32>
    %9 = tpu.matmul %6, %8, %cst_8 {dimension_numbers = #tpu.dot_dimension_numbers<[1], [0], [0], [1], [0, 0, 1, 1], [], []>} : vector<32x64xbf16>, vector<64x512xbf16>, vector<32x512xf32> -> vector<32x512xf32>
    %c1 = arith.constant 1 : index
    %c0_9 = arith.constant 0 : index
    %c0_10 = arith.constant 0 : index
    %10 = vector.load %arg2[%c1, %c0_9, %c0_10] : memref<3x32x64xbf16, #tpu.memory_space<vmem>>, vector<1x32x64xbf16>
    %11 = vector.shape_cast %10 : vector<1x32x64xbf16> to vector<32x64xbf16>
    %cst_11 = arith.constant dense<0.000000e+00> : vector<32x64xf32>
    %12 = tpu.matmul %11, %2, %cst_11 {dimension_numbers = #tpu.dot_dimension_numbers<[1], [0], [0], [1], [0, 0, 1, 1], [], []>} : vector<32x64xbf16>, vector<64x64xbf16>, vector<32x64xf32> -> vector<32x64xf32>
    %13 = arith.truncf %12 : vector<32x64xf32> to vector<32x64xbf16>
    %c1_12 = arith.constant 1 : index
    %c0_13 = arith.constant 0 : index
    %c0_14 = arith.constant 0 : index
    %14 = vector.load %arg3[%c1_12, %c0_13, %c0_14] : memref<3x64x512xbf16, #tpu.memory_space<vmem>>, vector<1x64x512xbf16>
    %15 = vector.shape_cast %14 : vector<1x64x512xbf16> to vector<64x512xbf16>
    %cst_15 = arith.constant dense<0.000000e+00> : vector<32x512xf32>
    %16 = tpu.matmul %13, %15, %cst_15 {dimension_numbers = #tpu.dot_dimension_numbers<[1], [0], [0], [1], [0, 0, 1, 1], [], []>} : vector<32x64xbf16>, vector<64x512xbf16>, vector<32x512xf32> -> vector<32x512xf32>
    %17 = arith.addf %9, %16 : vector<32x512xf32>
    %c2 = arith.constant 2 : index
    %c0_16 = arith.constant 0 : index
    %c0_17 = arith.constant 0 : index
    %18 = vector.load %arg2[%c2, %c0_16, %c0_17] : memref<3x32x64xbf16, #tpu.memory_space<vmem>>, vector<1x32x64xbf16>
    %19 = vector.shape_cast %18 : vector<1x32x64xbf16> to vector<32x64xbf16>
    %cst_18 = arith.constant dense<0.000000e+00> : vector<32x64xf32>
    %20 = tpu.matmul %19, %2, %cst_18 {dimension_numbers = #tpu.dot_dimension_numbers<[1], [0], [0], [1], [0, 0, 1, 1], [], []>} : vector<32x64xbf16>, vector<64x64xbf16>, vector<32x64xf32> -> vector<32x64xf32>
    %21 = arith.truncf %20 : vector<32x64xf32> to vector<32x64xbf16>
    %c2_19 = arith.constant 2 : index
    %c0_20 = arith.constant 0 : index
    %c0_21 = arith.constant 0 : index
    %22 = vector.load %arg3[%c2_19, %c0_20, %c0_21] : memref<3x64x512xbf16, #tpu.memory_space<vmem>>, vector<1x64x512xbf16>
    %23 = vector.shape_cast %22 : vector<1x64x512xbf16> to vector<64x512xbf16>
    %cst_22 = arith.constant dense<0.000000e+00> : vector<32x512xf32>
    %24 = tpu.matmul %21, %23, %cst_22 {dimension_numbers = #tpu.dot_dimension_numbers<[1], [0], [0], [1], [0, 0, 1, 1], [], []>} : vector<32x64xbf16>, vector<64x512xbf16>, vector<32x512xf32> -> vector<32x512xf32>
    %25 = arith.addf %17, %24 : vector<32x512xf32>
    %c0_23 = arith.constant 0 : index
    %c0_24 = arith.constant 0 : index
    %26 = vector.load %arg4[%c0_23, %c0_24] : memref<8x512xf32, #tpu.memory_space<vmem>>, vector<1x512xf32>
    %27 = vector.broadcast %26 : vector<1x512xf32> to vector<32x512xf32>
    %28 = arith.addf %25, %27 : vector<32x512xf32>
    %cst_25 = arith.constant 0.000000e+00 : f32
    %29 = vector.broadcast %cst_25 : f32 to vector<32x512xf32>
    %30 = arith.cmpf ogt, %28, %29 : vector<32x512xf32>
    %cst_26 = arith.constant 2.000000e-01 : f32
    %31 = vector.broadcast %cst_26 : f32 to vector<32x512xf32>
    %32 = arith.mulf %31, %28 : vector<32x512xf32>
    %33 = arith.select %30, %28, %32 : vector<32x512xi1>, vector<32x512xf32>
    %c1_27 = arith.constant 1 : index
    %c0_28 = arith.constant 0 : index
    %34 = vector.load %arg4[%c1_27, %c0_28] : memref<8x512xf32, #tpu.memory_space<vmem>>, vector<1x512xf32>
    %35 = vector.broadcast %34 : vector<1x512xf32> to vector<32x512xf32>
    %36 = arith.mulf %33, %35 : vector<32x512xf32>
    %c2_29 = arith.constant 2 : index
    %c0_30 = arith.constant 0 : index
    %37 = vector.load %arg4[%c2_29, %c0_30] : memref<8x512xf32, #tpu.memory_space<vmem>>, vector<1x512xf32>
    %38 = vector.broadcast %37 : vector<1x512xf32> to vector<32x512xf32>
    %39 = arith.addf %36, %38 : vector<32x512xf32>
    %40 = arith.truncf %39 : vector<32x512xf32> to vector<32x512xbf16>
    %c0_31 = arith.constant 0 : index
    %c0_32 = arith.constant 0 : index
    %c0_33 = arith.constant 0 : index
    %41 = vector.load %arg5[%c0_31, %c0_32, %c0_33] : memref<3x16x32xbf16, #tpu.memory_space<vmem>>, vector<1x16x32xbf16>
    %42 = vector.shape_cast %41 : vector<1x16x32xbf16> to vector<16x32xbf16>
    %cst_34 = arith.constant dense<0.000000e+00> : vector<16x512xf32>
    %43 = tpu.matmul %42, %40, %cst_34 {dimension_numbers = #tpu.dot_dimension_numbers<[1], [0], [0], [1], [0, 0, 1, 1], [], []>} : vector<16x32xbf16>, vector<32x512xbf16>, vector<16x512xf32> -> vector<16x512xf32>
    %44 = arith.truncf %43 : vector<16x512xf32> to vector<16x512xbf16>
    %c0_35 = arith.constant 0 : index
    %c0_36 = arith.constant 0 : index
    %c0_37 = arith.constant 0 : index
    %45 = vector.load %arg6[%c0_35, %c0_36, %c0_37] : memref<3x512x512xbf16, #tpu.memory_space<vmem>>, vector<1x512x512xbf16>
    %46 = vector.shape_cast %45 : vector<1x512x512xbf16> to vector<512x512xbf16>
    %cst_38 = arith.constant dense<0.000000e+00> : vector<16x512xf32>
    %47 = tpu.matmul %44, %46, %cst_38 {dimension_numbers = #tpu.dot_dimension_numbers<[1], [0], [0], [1], [0, 0, 1, 1], [], []>} : vector<16x512xbf16>, vector<512x512xbf16>, vector<16x512xf32> -> vector<16x512xf32>
    %c1_39 = arith.constant 1 : index
    %c0_40 = arith.constant 0 : index
    %c0_41 = arith.constant 0 : index
    %48 = vector.load %arg5[%c1_39, %c0_40, %c0_41] : memref<3x16x32xbf16, #tpu.memory_space<vmem>>, vector<1x16x32xbf16>
    %49 = vector.shape_cast %48 : vector<1x16x32xbf16> to vector<16x32xbf16>
    %cst_42 = arith.constant dense<0.000000e+00> : vector<16x512xf32>
    %50 = tpu.matmul %49, %40, %cst_42 {dimension_numbers = #tpu.dot_dimension_numbers<[1], [0], [0], [1], [0, 0, 1, 1], [], []>} : vector<16x32xbf16>, vector<32x512xbf16>, vector<16x512xf32> -> vector<16x512xf32>
    %51 = arith.truncf %50 : vector<16x512xf32> to vector<16x512xbf16>
    %c1_43 = arith.constant 1 : index
    %c0_44 = arith.constant 0 : index
    %c0_45 = arith.constant 0 : index
    %52 = vector.load %arg6[%c1_43, %c0_44, %c0_45] : memref<3x512x512xbf16, #tpu.memory_space<vmem>>, vector<1x512x512xbf16>
    %53 = vector.shape_cast %52 : vector<1x512x512xbf16> to vector<512x512xbf16>
    %cst_46 = arith.constant dense<0.000000e+00> : vector<16x512xf32>
    %54 = tpu.matmul %51, %53, %cst_46 {dimension_numbers = #tpu.dot_dimension_numbers<[1], [0], [0], [1], [0, 0, 1, 1], [], []>} : vector<16x512xbf16>, vector<512x512xbf16>, vector<16x512xf32> -> vector<16x512xf32>
    %55 = arith.addf %47, %54 : vector<16x512xf32>
    %c2_47 = arith.constant 2 : index
    %c0_48 = arith.constant 0 : index
    %c0_49 = arith.constant 0 : index
    %56 = vector.load %arg5[%c2_47, %c0_48, %c0_49] : memref<3x16x32xbf16, #tpu.memory_space<vmem>>, vector<1x16x32xbf16>
    %57 = vector.shape_cast %56 : vector<1x16x32xbf16> to vector<16x32xbf16>
    %cst_50 = arith.constant dense<0.000000e+00> : vector<16x512xf32>
    %58 = tpu.matmul %57, %40, %cst_50 {dimension_numbers = #tpu.dot_dimension_numbers<[1], [0], [0], [1], [0, 0, 1, 1], [], []>} : vector<16x32xbf16>, vector<32x512xbf16>, vector<16x512xf32> -> vector<16x512xf32>
    %59 = arith.truncf %58 : vector<16x512xf32> to vector<16x512xbf16>
    %c2_51 = arith.constant 2 : index
    %c0_52 = arith.constant 0 : index
    %c0_53 = arith.constant 0 : index
    %60 = vector.load %arg6[%c2_51, %c0_52, %c0_53] : memref<3x512x512xbf16, #tpu.memory_space<vmem>>, vector<1x512x512xbf16>
    %61 = vector.shape_cast %60 : vector<1x512x512xbf16> to vector<512x512xbf16>
    %cst_54 = arith.constant dense<0.000000e+00> : vector<16x512xf32>
    %62 = tpu.matmul %59, %61, %cst_54 {dimension_numbers = #tpu.dot_dimension_numbers<[1], [0], [0], [1], [0, 0, 1, 1], [], []>} : vector<16x512xbf16>, vector<512x512xbf16>, vector<16x512xf32> -> vector<16x512xf32>
    %63 = arith.addf %55, %62 : vector<16x512xf32>
    %c0_55 = arith.constant 0 : index
    %c0_56 = arith.constant 0 : index
    %64 = vector.load %arg7[%c0_55, %c0_56] : memref<8x512xf32, #tpu.memory_space<vmem>>, vector<1x512xf32>
    %65 = vector.broadcast %64 : vector<1x512xf32> to vector<16x512xf32>
    %66 = arith.addf %63, %65 : vector<16x512xf32>
    %cst_57 = arith.constant 0.000000e+00 : f32
    %67 = vector.broadcast %cst_57 : f32 to vector<16x512xf32>
    %68 = arith.cmpf ogt, %66, %67 : vector<16x512xf32>
    %cst_58 = arith.constant 2.000000e-01 : f32
    %69 = vector.broadcast %cst_58 : f32 to vector<16x512xf32>
    %70 = arith.mulf %69, %66 : vector<16x512xf32>
    %71 = arith.select %68, %66, %70 : vector<16x512xi1>, vector<16x512xf32>
    %c1_59 = arith.constant 1 : index
    %c0_60 = arith.constant 0 : index
    %72 = vector.load %arg7[%c1_59, %c0_60] : memref<8x512xf32, #tpu.memory_space<vmem>>, vector<1x512xf32>
    %73 = vector.broadcast %72 : vector<1x512xf32> to vector<16x512xf32>
    %74 = arith.mulf %71, %73 : vector<16x512xf32>
    %c2_61 = arith.constant 2 : index
    %c0_62 = arith.constant 0 : index
    %75 = vector.load %arg7[%c2_61, %c0_62] : memref<8x512xf32, #tpu.memory_space<vmem>>, vector<1x512xf32>
    %76 = vector.broadcast %75 : vector<1x512xf32> to vector<16x512xf32>
    %77 = arith.addf %74, %76 : vector<16x512xf32>
    %78 = arith.truncf %77 : vector<16x512xf32> to vector<16x512xbf16>
    %c0_63 = arith.constant 0 : index
    %c0_64 = arith.constant 0 : index
    %c0_65 = arith.constant 0 : index
    %79 = vector.load %arg8[%c0_63, %c0_64, %c0_65] : memref<3x8x16xbf16, #tpu.memory_space<vmem>>, vector<1x8x16xbf16>
    %80 = vector.shape_cast %79 : vector<1x8x16xbf16> to vector<8x16xbf16>
    %cst_66 = arith.constant dense<0.000000e+00> : vector<8x512xf32>
    %81 = tpu.matmul %80, %78, %cst_66 {dimension_numbers = #tpu.dot_dimension_numbers<[1], [0], [0], [1], [0, 0, 1, 1], [], []>} : vector<8x16xbf16>, vector<16x512xbf16>, vector<8x512xf32> -> vector<8x512xf32>
    %82 = arith.truncf %81 : vector<8x512xf32> to vector<8x512xbf16>
    %c0_67 = arith.constant 0 : index
    %c0_68 = arith.constant 0 : index
    %c0_69 = arith.constant 0 : index
    %83 = vector.load %arg9[%c0_67, %c0_68, %c0_69] : memref<3x512x512xbf16, #tpu.memory_space<vmem>>, vector<1x512x512xbf16>
    %84 = vector.shape_cast %83 : vector<1x512x512xbf16> to vector<512x512xbf16>
    %cst_70 = arith.constant dense<0.000000e+00> : vector<8x512xf32>
    %85 = tpu.matmul %82, %84, %cst_70 {dimension_numbers = #tpu.dot_dimension_numbers<[1], [0], [0], [1], [0, 0, 1, 1], [], []>} : vector<8x512xbf16>, vector<512x512xbf16>, vector<8x512xf32> -> vector<8x512xf32>
    %c1_71 = arith.constant 1 : index
    %c0_72 = arith.constant 0 : index
    %c0_73 = arith.constant 0 : index
    %86 = vector.load %arg8[%c1_71, %c0_72, %c0_73] : memref<3x8x16xbf16, #tpu.memory_space<vmem>>, vector<1x8x16xbf16>
    %87 = vector.shape_cast %86 : vector<1x8x16xbf16> to vector<8x16xbf16>
    %cst_74 = arith.constant dense<0.000000e+00> : vector<8x512xf32>
    %88 = tpu.matmul %87, %78, %cst_74 {dimension_numbers = #tpu.dot_dimension_numbers<[1], [0], [0], [1], [0, 0, 1, 1], [], []>} : vector<8x16xbf16>, vector<16x512xbf16>, vector<8x512xf32> -> vector<8x512xf32>
    %89 = arith.truncf %88 : vector<8x512xf32> to vector<8x512xbf16>
    %c1_75 = arith.constant 1 : index
    %c0_76 = arith.constant 0 : index
    %c0_77 = arith.constant 0 : index
    %90 = vector.load %arg9[%c1_75, %c0_76, %c0_77] : memref<3x512x512xbf16, #tpu.memory_space<vmem>>, vector<1x512x512xbf16>
    %91 = vector.shape_cast %90 : vector<1x512x512xbf16> to vector<512x512xbf16>
    %cst_78 = arith.constant dense<0.000000e+00> : vector<8x512xf32>
    %92 = tpu.matmul %89, %91, %cst_78 {dimension_numbers = #tpu.dot_dimension_numbers<[1], [0], [0], [1], [0, 0, 1, 1], [], []>} : vector<8x512xbf16>, vector<512x512xbf16>, vector<8x512xf32> -> vector<8x512xf32>
    %93 = arith.addf %85, %92 : vector<8x512xf32>
    %c2_79 = arith.constant 2 : index
    %c0_80 = arith.constant 0 : index
    %c0_81 = arith.constant 0 : index
    %94 = vector.load %arg8[%c2_79, %c0_80, %c0_81] : memref<3x8x16xbf16, #tpu.memory_space<vmem>>, vector<1x8x16xbf16>
    %95 = vector.shape_cast %94 : vector<1x8x16xbf16> to vector<8x16xbf16>
    %cst_82 = arith.constant dense<0.000000e+00> : vector<8x512xf32>
    %96 = tpu.matmul %95, %78, %cst_82 {dimension_numbers = #tpu.dot_dimension_numbers<[1], [0], [0], [1], [0, 0, 1, 1], [], []>} : vector<8x16xbf16>, vector<16x512xbf16>, vector<8x512xf32> -> vector<8x512xf32>
    %97 = arith.truncf %96 : vector<8x512xf32> to vector<8x512xbf16>
    %c2_83 = arith.constant 2 : index
    %c0_84 = arith.constant 0 : index
    %c0_85 = arith.constant 0 : index
    %98 = vector.load %arg9[%c2_83, %c0_84, %c0_85] : memref<3x512x512xbf16, #tpu.memory_space<vmem>>, vector<1x512x512xbf16>
    %99 = vector.shape_cast %98 : vector<1x512x512xbf16> to vector<512x512xbf16>
    %cst_86 = arith.constant dense<0.000000e+00> : vector<8x512xf32>
    %100 = tpu.matmul %97, %99, %cst_86 {dimension_numbers = #tpu.dot_dimension_numbers<[1], [0], [0], [1], [0, 0, 1, 1], [], []>} : vector<8x512xbf16>, vector<512x512xbf16>, vector<8x512xf32> -> vector<8x512xf32>
    %101 = arith.addf %93, %100 : vector<8x512xf32>
    %c0_87 = arith.constant 0 : index
    %c0_88 = arith.constant 0 : index
    %102 = vector.load %arg10[%c0_87, %c0_88] : memref<8x512xf32, #tpu.memory_space<vmem>>, vector<1x512xf32>
    %103 = vector.broadcast %102 : vector<1x512xf32> to vector<8x512xf32>
    %104 = arith.addf %101, %103 : vector<8x512xf32>
    %cst_89 = arith.constant 0.000000e+00 : f32
    %105 = vector.broadcast %cst_89 : f32 to vector<8x512xf32>
    %106 = arith.cmpf ogt, %104, %105 : vector<8x512xf32>
    %cst_90 = arith.constant 2.000000e-01 : f32
    %107 = vector.broadcast %cst_90 : f32 to vector<8x512xf32>
    %108 = arith.mulf %107, %104 : vector<8x512xf32>
    %109 = arith.select %106, %104, %108 : vector<8x512xi1>, vector<8x512xf32>
    %c1_91 = arith.constant 1 : index
    %c0_92 = arith.constant 0 : index
    %110 = vector.load %arg10[%c1_91, %c0_92] : memref<8x512xf32, #tpu.memory_space<vmem>>, vector<1x512xf32>
    %111 = vector.broadcast %110 : vector<1x512xf32> to vector<8x512xf32>
    %112 = arith.mulf %109, %111 : vector<8x512xf32>
    %c2_93 = arith.constant 2 : index
    %c0_94 = arith.constant 0 : index
    %113 = vector.load %arg10[%c2_93, %c0_94] : memref<8x512xf32, #tpu.memory_space<vmem>>, vector<1x512xf32>
    %114 = vector.broadcast %113 : vector<1x512xf32> to vector<8x512xf32>
    %115 = arith.addf %112, %114 : vector<8x512xf32>
    %116 = arith.truncf %115 : vector<8x512xf32> to vector<8x512xbf16>
    %c0_95 = arith.constant 0 : index
    %c0_96 = arith.constant 0 : index
    %c0_97 = arith.constant 0 : index
    %117 = vector.load %arg11[%c0_95, %c0_96, %c0_97] : memref<3x4x8xbf16, #tpu.memory_space<vmem>>, vector<1x4x8xbf16>
    %118 = vector.shape_cast %117 : vector<1x4x8xbf16> to vector<4x8xbf16>
    %cst_98 = arith.constant dense<0.000000e+00> : vector<4x512xf32>
    %119 = tpu.matmul %118, %116, %cst_98 {dimension_numbers = #tpu.dot_dimension_numbers<[1], [0], [0], [1], [0, 0, 1, 1], [], []>} : vector<4x8xbf16>, vector<8x512xbf16>, vector<4x512xf32> -> vector<4x512xf32>
    %120 = arith.truncf %119 : vector<4x512xf32> to vector<4x512xbf16>
    %c0_99 = arith.constant 0 : index
    %c0_100 = arith.constant 0 : index
    %c0_101 = arith.constant 0 : index
    %121 = vector.load %arg12[%c0_99, %c0_100, %c0_101] : memref<3x512x512xbf16, #tpu.memory_space<vmem>>, vector<1x512x512xbf16>
    %122 = vector.shape_cast %121 : vector<1x512x512xbf16> to vector<512x512xbf16>
    %cst_102 = arith.constant dense<0.000000e+00> : vector<4x512xf32>
    %123 = tpu.matmul %120, %122, %cst_102 {dimension_numbers = #tpu.dot_dimension_numbers<[1], [0], [0], [1], [0, 0, 1, 1], [], []>} : vector<4x512xbf16>, vector<512x512xbf16>, vector<4x512xf32> -> vector<4x512xf32>
    %c1_103 = arith.constant 1 : index
    %c0_104 = arith.constant 0 : index
    %c0_105 = arith.constant 0 : index
    %124 = vector.load %arg11[%c1_103, %c0_104, %c0_105] : memref<3x4x8xbf16, #tpu.memory_space<vmem>>, vector<1x4x8xbf16>
    %125 = vector.shape_cast %124 : vector<1x4x8xbf16> to vector<4x8xbf16>
    %cst_106 = arith.constant dense<0.000000e+00> : vector<4x512xf32>
    %126 = tpu.matmul %125, %116, %cst_106 {dimension_numbers = #tpu.dot_dimension_numbers<[1], [0], [0], [1], [0, 0, 1, 1], [], []>} : vector<4x8xbf16>, vector<8x512xbf16>, vector<4x512xf32> -> vector<4x512xf32>
    %127 = arith.truncf %126 : vector<4x512xf32> to vector<4x512xbf16>
    %c1_107 = arith.constant 1 : index
    %c0_108 = arith.constant 0 : index
    %c0_109 = arith.constant 0 : index
    %128 = vector.load %arg12[%c1_107, %c0_108, %c0_109] : memref<3x512x512xbf16, #tpu.memory_space<vmem>>, vector<1x512x512xbf16>
    %129 = vector.shape_cast %128 : vector<1x512x512xbf16> to vector<512x512xbf16>
    %cst_110 = arith.constant dense<0.000000e+00> : vector<4x512xf32>
    %130 = tpu.matmul %127, %129, %cst_110 {dimension_numbers = #tpu.dot_dimension_numbers<[1], [0], [0], [1], [0, 0, 1, 1], [], []>} : vector<4x512xbf16>, vector<512x512xbf16>, vector<4x512xf32> -> vector<4x512xf32>
    %131 = arith.addf %123, %130 : vector<4x512xf32>
    %c2_111 = arith.constant 2 : index
    %c0_112 = arith.constant 0 : index
    %c0_113 = arith.constant 0 : index
    %132 = vector.load %arg11[%c2_111, %c0_112, %c0_113] : memref<3x4x8xbf16, #tpu.memory_space<vmem>>, vector<1x4x8xbf16>
    %133 = vector.shape_cast %132 : vector<1x4x8xbf16> to vector<4x8xbf16>
    %cst_114 = arith.constant dense<0.000000e+00> : vector<4x512xf32>
    %134 = tpu.matmul %133, %116, %cst_114 {dimension_numbers = #tpu.dot_dimension_numbers<[1], [0], [0], [1], [0, 0, 1, 1], [], []>} : vector<4x8xbf16>, vector<8x512xbf16>, vector<4x512xf32> -> vector<4x512xf32>
    %135 = arith.truncf %134 : vector<4x512xf32> to vector<4x512xbf16>
    %c2_115 = arith.constant 2 : index
    %c0_116 = arith.constant 0 : index
    %c0_117 = arith.constant 0 : index
    %136 = vector.load %arg12[%c2_115, %c0_116, %c0_117] : memref<3x512x512xbf16, #tpu.memory_space<vmem>>, vector<1x512x512xbf16>
    %137 = vector.shape_cast %136 : vector<1x512x512xbf16> to vector<512x512xbf16>
    %cst_118 = arith.constant dense<0.000000e+00> : vector<4x512xf32>
    %138 = tpu.matmul %135, %137, %cst_118 {dimension_numbers = #tpu.dot_dimension_numbers<[1], [0], [0], [1], [0, 0, 1, 1], [], []>} : vector<4x512xbf16>, vector<512x512xbf16>, vector<4x512xf32> -> vector<4x512xf32>
    %139 = arith.addf %131, %138 : vector<4x512xf32>
    %c0_119 = arith.constant 0 : index
    %c0_120 = arith.constant 0 : index
    %140 = vector.load %arg13[%c0_119, %c0_120] : memref<8x512xf32, #tpu.memory_space<vmem>>, vector<1x512xf32>
    %141 = vector.broadcast %140 : vector<1x512xf32> to vector<4x512xf32>
    %142 = arith.addf %139, %141 : vector<4x512xf32>
    %cst_121 = arith.constant 0.000000e+00 : f32
    %143 = vector.broadcast %cst_121 : f32 to vector<4x512xf32>
    %144 = arith.cmpf ogt, %142, %143 : vector<4x512xf32>
    %cst_122 = arith.constant 2.000000e-01 : f32
    %145 = vector.broadcast %cst_122 : f32 to vector<4x512xf32>
    %146 = arith.mulf %145, %142 : vector<4x512xf32>
    %147 = arith.select %144, %142, %146 : vector<4x512xi1>, vector<4x512xf32>
    %c1_123 = arith.constant 1 : index
    %c0_124 = arith.constant 0 : index
    %148 = vector.load %arg13[%c1_123, %c0_124] : memref<8x512xf32, #tpu.memory_space<vmem>>, vector<1x512xf32>
    %149 = vector.broadcast %148 : vector<1x512xf32> to vector<4x512xf32>
    %150 = arith.mulf %147, %149 : vector<4x512xf32>
    %c2_125 = arith.constant 2 : index
    %c0_126 = arith.constant 0 : index
    %151 = vector.load %arg13[%c2_125, %c0_126] : memref<8x512xf32, #tpu.memory_space<vmem>>, vector<1x512xf32>
    %152 = vector.broadcast %151 : vector<1x512xf32> to vector<4x512xf32>
    %153 = arith.addf %150, %152 : vector<4x512xf32>
    %c0_127 = arith.constant 0 : index
    %c0_128 = arith.constant 0 : index
    %154 = vector.load %arg14[%c0_127, %c0_128] : memref<8x512xf32, #tpu.memory_space<vmem>>, vector<4x512xf32>
    %155 = arith.mulf %153, %154 : vector<4x512xf32>
    %cst_129 = arith.constant dense<0.000000e+00> : vector<4xf32>
    %156 = vector.multi_reduction <add>, %155, %cst_129 [1] : vector<4x512xf32> to vector<4xf32>
    %157 = vector.shape_cast %156 : vector<4xf32> to vector<4x1xf32>
    %cst_130 = arith.constant dense<0.000000e+00> : vector<1xf32>
    %158 = vector.multi_reduction <add>, %157, %cst_130 [0] : vector<4x1xf32> to vector<1xf32>
    %159 = vector.shape_cast %158 : vector<1xf32> to vector<1x1xf32>
    %c4 = arith.constant 4 : index
    %c0_131 = arith.constant 0 : index
    %160 = vector.load %arg14[%c4, %c0_131] : memref<8x512xf32, #tpu.memory_space<vmem>>, vector<1x1xf32>
    %161 = arith.addf %159, %160 : vector<1x1xf32>
    %cst_132 = arith.constant 0.000000e+00 : f32
    %162 = vector.broadcast %cst_132 : f32 to vector<1x1xf32>
    %163 = arith.subf %162, %161 : vector<1x1xf32>
    %164 = math.exp %163 : vector<1x1xf32>
    %cst_133 = arith.constant 1.000000e+00 : f32
    %165 = vector.broadcast %cst_133 : f32 to vector<1x1xf32>
    %166 = arith.addf %165, %164 : vector<1x1xf32>
    %cst_134 = arith.constant 1.000000e+00 : f32
    %167 = vector.broadcast %cst_134 : f32 to vector<1x1xf32>
    %168 = arith.divf %167, %166 : vector<1x1xf32>
    %169 = math.exp %161 : vector<1x1xf32>
    %cst_135 = arith.constant 1.000000e+00 : f32
    %170 = vector.broadcast %cst_135 : f32 to vector<1x1xf32>
    %171 = arith.addf %170, %169 : vector<1x1xf32>
    %172 = arith.divf %169, %171 : vector<1x1xf32>
    %cst_136 = arith.constant 0.000000e+00 : f32
    %173 = vector.broadcast %cst_136 : f32 to vector<1x1xf32>
    %174 = arith.cmpf oge, %161, %173 : vector<1x1xf32>
    %175 = arith.select %174, %168, %172 : vector<1x1xi1>, vector<1x1xf32>
    %176 = vector.shape_cast %175 : vector<1x1xf32> to vector<1x1xf32>
    %177 = vector.broadcast %176 : vector<1x1xf32> to vector<8x128xf32>
    %c0_137 = arith.constant 0 : index
    %c0_138 = arith.constant 0 : index
    %178 = vector.load %arg15[%c0_137, %c0_138] : memref<8x128xf32, #tpu.memory_space<vmem>>, vector<8x128xf32>
    tpu.vector_store %arg15[%c0_137, %c0_138], %177 {strides = array<i32>} : memref<8x128xf32, #tpu.memory_space<vmem>>, vector<8x128xf32>,
    return
  }
  func.func @transform_0(%arg0: i32) -> (i32, i32, i32) {
    %c0_i32 = arith.constant 0 : i32
    %c0_i32_0 = arith.constant 0 : i32
    %c0_i32_1 = arith.constant 0 : i32
    return %arg0, %c0_i32, %c0_i32_0 : i32, i32, i32
  }
  func.func @transform_1(%arg0: i32) -> (i32, i32, i32) {
    %c0_i32 = arith.constant 0 : i32
    %c0_i32_0 = arith.constant 0 : i32
    %c0_i32_1 = arith.constant 0 : i32
    %c0_i32_2 = arith.constant 0 : i32
    return %c0_i32, %c0_i32_0, %c0_i32_1 : i32, i32, i32
  }
  func.func @transform_2(%arg0: i32) -> (i32, i32, i32) {
    %c0_i32 = arith.constant 0 : i32
    %c0_i32_0 = arith.constant 0 : i32
    %c0_i32_1 = arith.constant 0 : i32
    %c0_i32_2 = arith.constant 0 : i32
    return %c0_i32, %c0_i32_0, %c0_i32_1 : i32, i32, i32
  }
  func.func @transform_3(%arg0: i32) -> (i32, i32) {
    %c0_i32 = arith.constant 0 : i32
    %c0_i32_0 = arith.constant 0 : i32
    %c0_i32_1 = arith.constant 0 : i32
    return %c0_i32, %c0_i32_0 : i32, i32
  }
  func.func @transform_4(%arg0: i32) -> (i32, i32, i32) {
    %c0_i32 = arith.constant 0 : i32
    %c0_i32_0 = arith.constant 0 : i32
    %c0_i32_1 = arith.constant 0 : i32
    %c0_i32_2 = arith.constant 0 : i32
    return %c0_i32, %c0_i32_0, %c0_i32_1 : i32, i32, i32
  }
  func.func @transform_5(%arg0: i32) -> (i32, i32, i32) {
    %c0_i32 = arith.constant 0 : i32
    %c0_i32_0 = arith.constant 0 : i32
    %c0_i32_1 = arith.constant 0 : i32
    %c0_i32_2 = arith.constant 0 : i32
    return %c0_i32, %c0_i32_0, %c0_i32_1 : i32, i32, i32
  }
  func.func @transform_6(%arg0: i32) -> (i32, i32) {
    %c0_i32 = arith.constant 0 : i32
    %c0_i32_0 = arith.constant 0 : i32
    %c0_i32_1 = arith.constant 0 : i32
    return %c0_i32, %c0_i32_0 : i32, i32
  }
  func.func @transform_7(%arg0: i32) -> (i32, i32, i32) {
    %c0_i32 = arith.constant 0 : i32
    %c0_i32_0 = arith.constant 0 : i32
    %c0_i32_1 = arith.constant 0 : i32
    %c0_i32_2 = arith.constant 0 : i32
    return %c0_i32, %c0_i32_0, %c0_i32_1 : i32, i32, i32
  }
  func.func @transform_8(%arg0: i32) -> (i32, i32, i32) {
    %c0_i32 = arith.constant 0 : i32
    %c0_i32_0 = arith.constant 0 : i32
    %c0_i32_1 = arith.constant 0 : i32
    %c0_i32_2 = arith.constant 0 : i32
    return %c0_i32, %c0_i32_0, %c0_i32_1 : i32, i32, i32
  }
  func.func @transform_9(%arg0: i32) -> (i32, i32) {
    %c0_i32 = arith.constant 0 : i32
    %c0_i32_0 = arith.constant 0 : i32
    %c0_i32_1 = arith.constant 0 : i32
    return %c0_i32, %c0_i32_0 : i32, i32
  }
  func.func @transform_10(%arg0: i32) -> (i32, i32, i32) {
    %c0_i32 = arith.constant 0 : i32
    %c0_i32_0 = arith.constant 0 : i32
    %c0_i32_1 = arith.constant 0 : i32
    %c0_i32_2 = arith.constant 0 : i32
    return %c0_i32, %c0_i32_0, %c0_i32_1 : i32, i32, i32
  }
  func.func @transform_11(%arg0: i32) -> (i32, i32, i32) {
    %c0_i32 = arith.constant 0 : i32
    %c0_i32_0 = arith.constant 0 : i32
    %c0_i32_1 = arith.constant 0 : i32
    %c0_i32_2 = arith.constant 0 : i32
    return %c0_i32, %c0_i32_0, %c0_i32_1 : i32, i32, i32
  }
  func.func @transform_12(%arg0: i32) -> (i32, i32) {
    %c0_i32 = arith.constant 0 : i32
    %c0_i32_0 = arith.constant 0 : i32
    %c0_i32_1 = arith.constant 0 : i32
    return %c0_i32, %c0_i32_0 : i32, i32
  }
  func.func @transform_13(%arg0: i32) -> (i32, i32) {
    %c0_i32 = arith.constant 0 : i32
    %c0_i32_0 = arith.constant 0 : i32
    %c0_i32_1 = arith.constant 0 : i32
    return %c0_i32, %c0_i32_0 : i32, i32
  }
  func.func @transform_14(%arg0: i32) -> (i32, i32) {
    %c0_i32 = arith.constant 0 : i32
    %c0_i32_0 = arith.constant 0 : i32
    return %arg0, %c0_i32 : i32, i32
  }
}

</mosaic_0001>

<bundles_post_ra>
// kernel: discriminator_forward.1
= control target key start
LH: loop header
LB: loop body
LE: loop exit
PB: predicated region body
PF: predicated region fallthrough
CT: control target
= control target key end

     0   :  { %s16491_s0 = inlined_call_operand.hbm [shape: f32[2,64,64], index: 0, kind: input, shape index: {}]   ;;  %s16492_s1 = inlined_call_operand.hbm [shape: bf16[3,32,64], index: 1, kind: input, shape index: {}]   ;;  %s16493_s2 = inlined_call_operand.hbm [shape: bf16[3,64,512], index: 2, kind: input, shape index: {}]   ;;  %s16494_s3 = inlined_call_operand.hbm [shape: f32[8,512], index: 3, kind: input, shape index: {}]   ;;  %s16495_s4 = inlined_call_operand.hbm [shape: bf16[3,16,32], index: 4, kind: input, shape index: {}]   ;;  %s16496_s5 = inlined_call_operand.hbm [shape: bf16[3,512,512], index: 5, kind: input, shape index: {}]   ;;  %s16497_s6 = inlined_call_operand.hbm [shape: f32[8,512], index: 6, kind: input, shape index: {}]   ;;  %s16498_s7 = inlined_call_operand.hbm [shape: bf16[3,8,16], index: 7, kind: input, shape index: {}]   ;;  %s16499_s8 = inlined_call_operand.hbm [shape: bf16[3,512,512], index: 8, kind: input, shape index: {}]   ;;  %s16500_s9 = inlined_call_operand.hbm [shape: f32[8,512], index: 9, kind: input, shape index: {}]   ;;  %s16501_s10 = inlined_call_operand.hbm [shape: bf16[3,4,8], index: 10, kind: input, shape index: {}]   ;;  %s16502_s11 = inlined_call_operand.hbm [shape: bf16[3,512,512], index: 11, kind: input, shape index: {}]   ;;  %s16503_s12 = inlined_call_operand.hbm [shape: f32[8,512], index: 12, kind: input, shape index: {}]   ;;  %s16504_s13 = inlined_call_operand.hbm [shape: f32[8,512], index: 13, kind: input, shape index: {}]   ;;  %s16505_s14 = inlined_call_operand.vmem [shape: f32[16,128], index: 14, kind: output, shape index: {}]  }
   0x1   :  { %16519 = sst [smem:[#allocation36_spill]] %s16491_s0 }
   0x2   :  { %16520 = sst [smem:[#allocation37_spill]] %s16492_s1 }
   0x3   :  { %16521 = sst [smem:[#allocation38_spill]] %s16494_s3 }
   0x4   :  { %16522 = sst [smem:[#allocation39_spill]] %s16496_s5 }
   0x5   :  { %16523 = sst [smem:[#allocation40_spill]] %s16505_s14 }
   0x6   :  { %19 = vsyncpa [#allocation3], 0 }
   0x7   :  { %21 = vsyncpa [#allocation3 + $0x1], 0 }
   0x8   :  { %22 = vsyncpa [#allocation5], 0 }
   0x9   :  { %23 = vsyncpa [#allocation8], 0 }
   0xa   :  { %24 = vsyncpa [#allocation11], 0 }
   0xb   :  { %25 = vsyncpa [#allocation14], 0 }
   0xc   :  { %26 = vsyncpa [#allocation17], 0 }
   0xd   :  { %27 = vsyncpa [#allocation20], 0 }
   0xe   :  { %28 = vsyncpa [#allocation23], 0  ;;  %s15514_s29 = smov 0   ;;  %s15516_s30 = smov 0  }
   0xf   :  { %s15518_s15 = smov 0   ;;  %s15520_s16 = smov 0  }
  0x10 LB: > { %16524 = sst [smem:[#allocation32_spill]] %s15402_s29  ;;  %s15416_s17 = smov [#allocation4]   ;;  %s15414_s16 = sphi %s15520_s16, %s16567_s16   ;;  %s15410_s15 = sphi %s15518_s15, %s16566_s15   ;;  %s15406_s30 = sphi %s15516_s30, %s16565_s30   ;;  %s15402_s29 = sphi %s15514_s29, %s16564_s29  }
  0x11   : > { %16525 = sst [smem:[#allocation33_spill]] %s15406_s30  ;;  %s376_s18 = sshll.u32 %s15416_s17, 4  ;;  %s15540_s18 = int_to_ptr.vmem [resolvable:$true] %s376_s18 }
  0x12   : > { %s15535_s19 = sadd.s32 4294967295, %s15414_s16   ;;  %p11547_p0 = scmp.ge.s32.totalorder %s15414_s16, 1 }
  0x13   : > { %16526 = sst [smem:[#allocation34_spill]] %s15535_s19  ;;  %p16511_p1 = scmp.eq.s32.totalorder %s15535_s19, 0 }
  0x14   : > { %p364_p2 = scmp.lt.s32.totalorder %s15414_s16, 3  ;;  %s15417_s21 = smov [#allocation7]  }
  0x15   : > { %s403_s22 = sshll.u32 %s15417_s21, 4  ;;  %s15418_s24 = smov [#allocation10]   ;;  %s15554_s22 = int_to_ptr.vmem [resolvable:$true] %s403_s22 }
  0x16   : > { %p15542_p3 = pnand %p11547_p0, %p364_p2  ;;  %s15556_s25 = sshll.u32 %s15418_s24, 4  ;;  %s427_s25 = int_to_ptr.vmem [resolvable:$true] %s15556_s25 }
  0x17   : > { %s16530_s1 = sld [smem:[#allocation37_spill]] }
  0x18   : > { %s16527_s20 = scalar_select %p15542_p3, 1, 0 }
  0x19   : > { %p13015_p4 = pneg %p15542_p3 }
  0x1a   : > { %16528 = sst [smem:[#allocation35_spill]] %s16527_s20 }
  0x1b   : > { %p15550_p5 = pnand %p13015_p4, %p16511_p1 }
  0x1d   : > { %s14958_s28 = scalar_lea.hbm %s16530_s1, 768  ;;  %p15566_p7 = pneg %p15550_p5 }
  0x1e   : > { %p14959_p6 = scmp.ne.s32.totalorder %s16530_s1, %s14958_s28  ;;  %p14965_p10 = scmp.lt.u32.totalorder %s14958_s28, %s16530_s1 }
  0x20   : > { %p14961_p8 = pnand %p15566_p7, %p14959_p6 }
  0x22   : > { %p14962_p9 = pneg %p14961_p8 }
  0x24   : > { %p14967_p11 = pnand %p14965_p10, %p14962_p9 }
  0x26   : > { %14970 = shalt.err (!%p14967_p11)
}
  0x27   : > { %s14971_s14 = scalar_lea.vmem %s15540_s18, 768  ;;  %p14979_p2 = scmp.lt.s32.totalorder %s15540_s18, %s15540_s18 }
  0x28   : > { %p14972_p12 = scmp.ne.s32.totalorder %s15540_s18, %s14971_s14  ;;  %p14980_p4 = scmp.lt.s32.totalorder %s14971_s14, %s14971_s14 }
  0x2a   : > { %p14974_p13 = pnand %p14972_p12, %p15566_p7  ;;  %p14981_p6 = por %p14980_p4, %p14979_p2 }
  0x2c   : > { %p14975_p0 = pneg %p14974_p13 }
  0x2e   : > { %p14982_p8 = pnand %p14981_p6, %p14975_p0 }
  0x30   : > { %14985 = shalt.err (!%p14982_p8)
}
  0x31   : > { %s16513_s26 = smov 64   ;;  %s16515_s20 = smov 4  }
  0x32   : > { %13018 = dma.hbm_to_vmem [thread:$0]  (!%p15550_p5), %s16530_s1, 768, %s15540_s18, [#allocation5], %s16513_s26, %s16513_s26, %s16515_s20  }
  0x33   : > { %s16532_s3 = sld [smem:[#allocation38_spill]] }
  0x39   : > { %s14986_s14 = scalar_lea.hbm %s16532_s3, 512 }
  0x3a   : > { %p14987_p9 = scmp.ne.s32.totalorder %s16532_s3, %s14986_s14  ;;  %p14993_p12 = scmp.lt.u32.totalorder %s14986_s14, %s16532_s3 }
  0x3c   : > { %p14989_p10 = pnand %p14987_p9, %p15566_p7 }
  0x3e   : > { %p14990_p11 = pneg %p14989_p10 }
  0x40   : > { %p14995_p13 = pnand %p14993_p12, %p14990_p11 }
  0x42   : > { %14998 = shalt.err (!%p14995_p13)
}
  0x43   : > { %s14999_s18 = scalar_lea.vmem %s15554_s22, 512  ;;  %p15007_p6 = scmp.lt.s32.totalorder %s15554_s22, %s15554_s22 }
  0x44   : > { %p15000_p0 = scmp.ne.s32.totalorder %s15554_s22, %s14999_s18  ;;  %p15008_p8 = scmp.lt.s32.totalorder %s14999_s18, %s14999_s18 }
  0x46   : > { %p15002_p2 = pnand %p15000_p0, %p15566_p7  ;;  %p15009_p9 = por %p15008_p8, %p15007_p6 }
  0x48   : > { %p15003_p4 = pneg %p15002_p2 }
  0x4a   : > { %p15010_p10 = pnand %p15009_p9, %p15003_p4 }
  0x4c   : > { %15013 = shalt.err (!%p15010_p10)
}
  0x4d   : > { %13024 = dma.hbm_to_vmem [thread:$0]  (!%p15550_p5), %s16532_s3, 512, %s15554_s22, [#allocation8]  }
  0x4e   : > { %s16533_s5 = sld [smem:[#allocation39_spill]] }
  0x54   : > { %s15014_s27 = scalar_lea.hbm %s16533_s5, 49152 }
  0x55   : > { %p15015_p11 = scmp.ne.s32.totalorder %s16533_s5, %s15014_s27  ;;  %p15021_p0 = scmp.lt.u32.totalorder %s15014_s27, %s16533_s5 }
  0x57   : > { %p15017_p12 = pnand %p15015_p11, %p15566_p7 }
  0x59   : > { %p15018_p13 = pneg %p15017_p12 }
  0x5b   : > { %p15023_p2 = pnand %p15021_p0, %p15018_p13 }
  0x5d   : > { %15026 = shalt.err (!%p15023_p2)
}
  0x5e   : > { %s15027_s18 = scalar_lea.vmem %s427_s25, 49152  ;;  %p15035_p9 = scmp.lt.s32.totalorder %s427_s25, %s427_s25 }
  0x5f   : > { %p15028_p4 = scmp.ne.s32.totalorder %s427_s25, %s15027_s18  ;;  %p15036_p10 = scmp.lt.s32.totalorder %s15027_s18, %s15027_s18 }
  0x61   : > { %p15030_p6 = pnand %p15028_p4, %p15566_p7  ;;  %p15037_p1 = por %p15036_p10, %p15035_p9 }
  0x63   : > { %p15031_p8 = pneg %p15030_p6 }
  0x65   : > { %p15038_p3 = pnand %p15037_p1, %p15031_p8 }
  0x67   : > { %15041 = shalt.err (!%p15038_p3)
}
  0x68   : > { %s16517_s22 = smov 256   ;;  %s15422_s0 = smov 16  }
  0x69   : > { %13030 = dma.hbm_to_vmem [thread:$0]  (!%p15550_p5), %s16533_s5, 49152, %s427_s25, [#allocation11], %s16517_s22, %s16517_s22, %s15422_s0  }
  0x6a   : > { %s15423_s19 = smov [#allocation13]   ;;  %s15424_s28 = smov [#allocation16]  }
  0x6b   : > { %s450_s27 = sshll.u32 %s15423_s19, 4  ;;  %s477_s17 = sshll.u32 %s15424_s28, 4  ;;  %s451_s27 = int_to_ptr.vmem [resolvable:$true] %s450_s27  ;;  %s478_s17 = int_to_ptr.vmem [resolvable:$true] %s477_s17 }
  0x6c   : > { %s15042_s18 = scalar_lea.hbm %s16498_s7, 192 }
  0x6d   : > { %p15043_p1 = scmp.ne.s32.totalorder %s16498_s7, %s15042_s18  ;;  %p15049_p12 = scmp.lt.u32.totalorder %s15042_s18, %s16498_s7 }
  0x6f   : > { %p15045_p3 = pnand %p15043_p1, %p15566_p7 }
  0x71   : > { %p15046_p11 = pneg %p15045_p3 }
  0x73   : > { %p15051_p13 = pnand %p15049_p12, %p15046_p11 }
  0x75   : > { %15054 = shalt.err (!%p15051_p13)
}
  0x76   : > { %s15055_s25 = scalar_lea.vmem %s451_s27, 192  ;;  %p15063_p6 = scmp.lt.s32.totalorder %s451_s27, %s451_s27 }
  0x77   : > { %p15056_p0 = scmp.ne.s32.totalorder %s451_s27, %s15055_s25  ;;  %p15064_p8 = scmp.lt.s32.totalorder %s15055_s25, %s15055_s25 }
  0x79   : > { %p15058_p2 = pnand %p15056_p0, %p15566_p7  ;;  %p15065_p9 = por %p15064_p8, %p15063_p6 }
  0x7b   : > { %p15059_p4 = pneg %p15058_p2 }
  0x7d   : > { %p15066_p10 = pnand %p15065_p9, %p15059_p4 }
  0x7f   : > { %15069 = shalt.err (!%p15066_p10)
}
  0x80   : > { %s16534_s26 = smov 4   ;;  %s16535_s20 = smov 64  }
  0x81   : > { %13036 = dma.hbm_to_vmem [thread:$0]  (!%p15550_p5), %s16498_s7, 192, %s451_s27, [#allocation14], %s16535_s20, %s16535_s20, %s16534_s26  }
  0x82   : > { %s15070_s19 = scalar_lea.hbm %s16500_s9, 512 }
  0x83   : > { %p15071_p1 = scmp.ne.s32.totalorder %s16500_s9, %s15070_s19  ;;  %p15077_p12 = scmp.lt.u32.totalorder %s15070_s19, %s16500_s9 }
  0x85   : > { %p15073_p3 = pnand %p15071_p1, %p15566_p7 }
  0x87   : > { %p15074_p11 = pneg %p15073_p3 }
  0x89   : > { %p15079_p13 = pnand %p15077_p12, %p15074_p11 }
  0x8b   : > { %15082 = shalt.err (!%p15079_p13)
}
  0x8c   : > { %s15083_s25 = scalar_lea.vmem %s478_s17, 512  ;;  %p15091_p6 = scmp.lt.s32.totalorder %s478_s17, %s478_s17 }
  0x8d   : > { %p15084_p0 = scmp.ne.s32.totalorder %s478_s17, %s15083_s25  ;;  %p15092_p8 = scmp.lt.s32.totalorder %s15083_s25, %s15083_s25 }
  0x8f   : > { %p15086_p2 = pnand %p15084_p0, %p15566_p7  ;;  %p15093_p9 = por %p15092_p8, %p15091_p6 }
  0x91   : > { %p15087_p4 = pneg %p15086_p2 }
  0x93   : > { %p15094_p10 = pnand %p15093_p9, %p15087_p4 }
  0x95   : > { %15097 = shalt.err (!%p15094_p10)
}
  0x96   : > { %13042 = dma.hbm_to_vmem [thread:$0]  (!%p15550_p5), %s16500_s9, 512, %s478_s17, [#allocation17]  }
  0x97   : > { %s15425_s3 = smov [#allocation19]   ;;  %s15426_s30 = smov [#allocation6]  }
  0x98   : > { %s500_s29 = sshll.u32 %s15425_s3, 4  ;;  %s389_s19 = sshll.u32 %s15426_s30, 4  ;;  %s501_s29 = int_to_ptr.vmem [resolvable:$true] %s500_s29  ;;  %s390_s19 = int_to_ptr.vmem [resolvable:$true] %s389_s19 }
  0x99   : > { %s15098_s14 = scalar_lea.hbm %s16502_s11, 49152 }
  0x9a   : > { %p15099_p1 = scmp.ne.s32.totalorder %s16502_s11, %s15098_s14  ;;  %p15105_p12 = scmp.lt.u32.totalorder %s15098_s14, %s16502_s11 }
  0x9c   : > { %p15101_p3 = pnand %p15099_p1, %p15566_p7 }
  0x9e   : > { %p15102_p11 = pneg %p15101_p3 }
  0xa0   : > { %p15107_p13 = pnand %p15105_p12, %p15102_p11 }
  0xa2   : > { %15110 = shalt.err (!%p15107_p13)
}
  0xa3   : > { %s15111_s17 = scalar_lea.vmem %s501_s29, 49152  ;;  %p15119_p6 = scmp.lt.s32.totalorder %s501_s29, %s501_s29 }
  0xa4   : > { %p15112_p0 = scmp.ne.s32.totalorder %s501_s29, %s15111_s17  ;;  %p15120_p8 = scmp.lt.s32.totalorder %s15111_s17, %s15111_s17 }
  0xa6   : > { %p15114_p2 = pnand %p15112_p0, %p15566_p7  ;;  %p15121_p9 = por %p15120_p8, %p15119_p6 }
  0xa8   : > { %p15115_p4 = pneg %p15114_p2 }
  0xaa   : > { %p15122_p10 = pnand %p15121_p9, %p15115_p4 }
  0xac   : > { %15125 = shalt.err (!%p15122_p10)
}
  0xad   : > { %s16536_s1 = smov 256   ;;  %s15126_s24 = scalar_lea.hbm %s16493_s2, 6144 }
  0xae   : > { %13048 = dma.hbm_to_vmem [thread:$0]  (!%p15550_p5), %s16502_s11, 49152, %s501_s29, [#allocation20], %s16536_s1, %s16536_s1, %s15422_s0  }
  0xaf   : > { %p15127_p1 = scmp.ne.s32.totalorder %s16493_s2, %s15126_s24  ;;  %p15133_p12 = scmp.lt.u32.totalorder %s15126_s24, %s16493_s2 }
  0xb1   : > { %p15129_p3 = pnand %p15127_p1, %p15566_p7 }
  0xb3   : > { %p15130_p11 = pneg %p15129_p3 }
  0xb5   : > { %p15135_p13 = pnand %p15133_p12, %p15130_p11 }
  0xb7   : > { %15138 = shalt.err (!%p15135_p13)
}
  0xb8   : > { %s15139_s17 = scalar_lea.vmem %s390_s19, 6144  ;;  %p15147_p6 = scmp.lt.s32.totalorder %s390_s19, %s390_s19 }
  0xb9   : > { %p15140_p0 = scmp.ne.s32.totalorder %s390_s19, %s15139_s17  ;;  %p15148_p8 = scmp.lt.s32.totalorder %s15139_s17, %s15139_s17 }
  0xbb   : > { %p15142_p2 = pnand %p15140_p0, %p15566_p7  ;;  %p15149_p9 = por %p15148_p8, %p15147_p6 }
  0xbd   : > { %p15143_p4 = pneg %p15142_p2 }
  0xbf   : > { %p15150_p10 = pnand %p15149_p9, %p15143_p4 }
  0xc1   : > { %15153 = shalt.err (!%p15150_p10)
}
  0xc2   : > { %13021 = dma.hbm_to_vmem [thread:$0]  (!%p15550_p5), %s16493_s2, 6144, %s390_s19, [#allocation5], %s16536_s1, %s16536_s1, %s15422_s0  }
  0xc3   : > { %s15427_s3 = smov [#allocation9]   ;;  %s15428_s28 = smov [#allocation12]  }
  0xc4   : > { %s413_s30 = sshll.u32 %s15427_s3, 4  ;;  %s440_s24 = sshll.u32 %s15428_s28, 4  ;;  %s414_s30 = int_to_ptr.vmem [resolvable:$true] %s413_s30  ;;  %s441_s24 = int_to_ptr.vmem [resolvable:$true] %s440_s24 }
  0xc5   : > { %s15154_s25 = scalar_lea.hbm %s16495_s4, 384 }
  0xc6   : > { %p15155_p1 = scmp.ne.s32.totalorder %s16495_s4, %s15154_s25  ;;  %p15161_p12 = scmp.lt.u32.totalorder %s15154_s25, %s16495_s4 }
  0xc8   : > { %p15157_p3 = pnand %p15155_p1, %p15566_p7 }
  0xca   : > { %p15158_p11 = pneg %p15157_p3 }
  0xcc   : > { %p15163_p13 = pnand %p15161_p12, %p15158_p11 }
  0xce   : > { %15166 = shalt.err (!%p15163_p13)
}
  0xcf   : > { %s15167_s19 = scalar_lea.vmem %s414_s30, 384  ;;  %p15175_p6 = scmp.lt.s32.totalorder %s414_s30, %s414_s30 }
  0xd0   : > { %p15168_p0 = scmp.ne.s32.totalorder %s414_s30, %s15167_s19  ;;  %p15176_p8 = scmp.lt.s32.totalorder %s15167_s19, %s15167_s19 }
  0xd2   : > { %p15170_p2 = pnand %p15168_p0, %p15566_p7  ;;  %p15177_p9 = por %p15176_p8, %p15175_p6 }
  0xd4   : > { %p15171_p4 = pneg %p15170_p2 }
  0xd6   : > { %p15178_p10 = pnand %p15177_p9, %p15171_p4 }
  0xd8   : > { %15181 = shalt.err (!%p15178_p10)
}
  0xd9   : > { %13027 = dma.hbm_to_vmem [thread:$0]  (!%p15550_p5), %s16495_s4, 384, %s414_s30, [#allocation8], %s16535_s20, %s16535_s20, %s16534_s26  }
  0xda   : > { %s15182_s14 = scalar_lea.hbm %s16497_s6, 512 }
  0xdb   : > { %p15183_p1 = scmp.ne.s32.totalorder %s16497_s6, %s15182_s14  ;;  %p15189_p12 = scmp.lt.u32.totalorder %s15182_s14, %s16497_s6 }
  0xdd   : > { %p15185_p3 = pnand %p15183_p1, %p15566_p7 }
  0xdf   : > { %p15186_p11 = pneg %p15185_p3 }
  0xe1   : > { %p15191_p13 = pnand %p15189_p12, %p15186_p11 }
  0xe3   : > { %15194 = shalt.err (!%p15191_p13)
}
  0xe4   : > { %s15195_s29 = scalar_lea.vmem %s441_s24, 512  ;;  %p15203_p6 = scmp.lt.s32.totalorder %s441_s24, %s441_s24 }
  0xe5   : > { %p15196_p0 = scmp.ne.s32.totalorder %s441_s24, %s15195_s29  ;;  %p15204_p8 = scmp.lt.s32.totalorder %s15195_s29, %s15195_s29 }
  0xe7   : > { %p15198_p2 = pnand %p15196_p0, %p15566_p7  ;;  %p15205_p9 = por %p15204_p8, %p15203_p6 }
  0xe9   : > { %p15199_p4 = pneg %p15198_p2 }
  0xeb   : > { %p15206_p10 = pnand %p15205_p9, %p15199_p4 }
  0xed   : > { %15209 = shalt.err (!%p15206_p10)
}
  0xee   : > { %13033 = dma.hbm_to_vmem [thread:$0]  (!%p15550_p5), %s16497_s6, 512, %s441_s24, [#allocation11]  }
  0xef   : > { %s15429_s30 = smov [#allocation15]   ;;  %s15430_s5 = smov [#allocation18]  }
  0xf0   : > { %s463_s19 = sshll.u32 %s15429_s30, 4  ;;  %s487_s22 = sshll.u32 %s15430_s5, 4  ;;  %s464_s19 = int_to_ptr.vmem [resolvable:$true] %s463_s19  ;;  %s488_s22 = int_to_ptr.vmem [resolvable:$true] %s487_s22 }
  0xf1   : > { %s15210_s14 = scalar_lea.hbm %s16499_s8, 49152 }
  0xf2   : > { %p15211_p1 = scmp.ne.s32.totalorder %s16499_s8, %s15210_s14  ;;  %p15217_p12 = scmp.lt.u32.totalorder %s15210_s14, %s16499_s8 }
  0xf4   : > { %p15213_p3 = pnand %p15211_p1, %p15566_p7 }
  0xf6   : > { %p15214_p11 = pneg %p15213_p3 }
  0xf8   : > { %p15219_p13 = pnand %p15217_p12, %p15214_p11 }
  0xfa   : > { %15222 = shalt.err (!%p15219_p13)
}
  0xfb   : > { %s15223_s24 = scalar_lea.vmem %s464_s19, 49152  ;;  %p15231_p6 = scmp.lt.s32.totalorder %s464_s19, %s464_s19 }
  0xfc   : > { %p15224_p0 = scmp.ne.s32.totalorder %s464_s19, %s15223_s24  ;;  %p15232_p8 = scmp.lt.s32.totalorder %s15223_s24, %s15223_s24 }
  0xfe   : > { %p15226_p2 = pnand %p15224_p0, %p15566_p7  ;;  %p15233_p9 = por %p15232_p8, %p15231_p6 }
 0x100   : > { %p15227_p4 = pneg %p15226_p2 }
 0x102   : > { %p15234_p10 = pnand %p15233_p9, %p15227_p4 }
 0x104   : > { %15237 = shalt.err (!%p15234_p10)
}
 0x105   : > { %13039 = dma.hbm_to_vmem [thread:$0]  (!%p15550_p5), %s16499_s8, 49152, %s464_s19, [#allocation14], %s16536_s1, %s16536_s1, %s15422_s0  }
 0x106   : > { %s15238_s5 = scalar_lea.hbm %s16501_s10, 96 }
 0x107   : > { %p15239_p1 = scmp.ne.s32.totalorder %s16501_s10, %s15238_s5  ;;  %p15245_p12 = scmp.lt.u32.totalorder %s15238_s5, %s16501_s10 }
 0x109   : > { %p15241_p3 = pnand %p15239_p1, %p15566_p7 }
 0x10b   : > { %p15242_p11 = pneg %p15241_p3 }
 0x10d   : > { %p15247_p13 = pnand %p15245_p12, %p15242_p11 }
 0x10f   : > { %15250 = shalt.err (!%p15247_p13)
}
 0x110   : > { %s15251_s25 = scalar_lea.vmem %s488_s22, 96  ;;  %p15259_p6 = scmp.lt.s32.totalorder %s488_s22, %s488_s22 }
 0x111   : > { %p15252_p0 = scmp.ne.s32.totalorder %s488_s22, %s15251_s25  ;;  %p15260_p8 = scmp.lt.s32.totalorder %s15251_s25, %s15251_s25 }
 0x113   : > { %p15254_p2 = pnand %p15252_p0, %p15566_p7  ;;  %p15261_p9 = por %p15260_p8, %p15259_p6 }
 0x115   : > { %p15255_p4 = pneg %p15254_p2 }
 0x117   : > { %p15262_p10 = pnand %p15261_p9, %p15255_p4 }
 0x119   : > { %15265 = shalt.err (!%p15262_p10)
}
 0x11a   : > { %s15431_s0 = smov 32   ;;  %s15432_s1 = smov 2  }
 0x11b   : > { %13045 = dma.hbm_to_vmem [thread:$0]  (!%p15550_p5), %s16501_s10, 96, %s488_s22, [#allocation17], %s15431_s0, %s15431_s0, %s15432_s1  }
 0x11c   : > { %s15433_s17 = smov [#allocation21]   ;;  %s15434_s29 = smov [#allocation22]  }
 0x11d   : > { %s514_s24 = sshll.u32 %s15433_s17, 4  ;;  %s525_s26 = sshll.u32 %s15434_s29, 4  ;;  %s515_s24 = int_to_ptr.vmem [resolvable:$true] %s514_s24  ;;  %s526_s26 = int_to_ptr.vmem [resolvable:$true] %s525_s26 }
 0x11e   : > { %s15266_s5 = scalar_lea.hbm %s16503_s12, 512 }
 0x11f   : > { %p15267_p1 = scmp.ne.s32.totalorder %s16503_s12, %s15266_s5  ;;  %p15273_p12 = scmp.lt.u32.totalorder %s15266_s5, %s16503_s12 }
 0x121   : > { %p15269_p3 = pnand %p15267_p1, %p15566_p7 }
 0x123   : > { %p15270_p11 = pneg %p15269_p3 }
 0x125   : > { %p15275_p13 = pnand %p15273_p12, %p15270_p11 }
 0x127   : > { %15278 = shalt.err (!%p15275_p13)
}
 0x128   : > { %s15279_s22 = scalar_lea.vmem %s515_s24, 512  ;;  %p15287_p6 = scmp.lt.s32.totalorder %s515_s24, %s515_s24 }
 0x129   : > { %p15280_p0 = scmp.ne.s32.totalorder %s515_s24, %s15279_s22  ;;  %p15288_p8 = scmp.lt.s32.totalorder %s15279_s22, %s15279_s22 }
 0x12b   : > { %p15282_p2 = pnand %p15280_p0, %p15566_p7  ;;  %p15289_p9 = por %p15288_p8, %p15287_p6 }
 0x12d   : > { %p15283_p4 = pneg %p15282_p2 }
 0x12f   : > { %p15290_p10 = pnand %p15289_p9, %p15283_p4 }
 0x131   : > { %15293 = shalt.err (!%p15290_p10)
}
 0x132   : > { %13051 = dma.hbm_to_vmem [thread:$0]  (!%p15550_p5), %s16503_s12, 512, %s515_s24, [#allocation20]  }
 0x133   : > { %s15294_s27 = scalar_lea.hbm %s16504_s13, 512 }
 0x134   : > { %p15295_p1 = scmp.ne.s32.totalorder %s16504_s13, %s15294_s27  ;;  %p15301_p12 = scmp.lt.u32.totalorder %s15294_s27, %s16504_s13 }
 0x136   : > { %p15297_p3 = pnand %p15295_p1, %p15566_p7 }
 0x138   : > { %p15298_p11 = pneg %p15297_p3 }
 0x13a   : > { %p15303_p13 = pnand %p15301_p12, %p15298_p11 }
 0x13c   : > { %15306 = shalt.err (!%p15303_p13)
}
 0x13d   : > { %s15307_s5 = scalar_lea.vmem %s526_s26, 512  ;;  %p15315_p6 = scmp.lt.s32.totalorder %s526_s26, %s526_s26 }
 0x13e   : > { %p15308_p0 = scmp.ne.s32.totalorder %s526_s26, %s15307_s5  ;;  %p15316_p8 = scmp.lt.s32.totalorder %s15307_s5, %s15307_s5 }
 0x140   : > { %p15310_p2 = pnand %p15308_p0, %p15566_p7  ;;  %p15317_p9 = por %p15316_p8, %p15315_p6 }
 0x142   : > { %p15311_p4 = pneg %p15310_p2 }
 0x144   : > { %p15318_p10 = pnand %p15317_p9, %p15311_p4 }
 0x146   : > { %15321 = shalt.err (!%p15318_p10)
}
 0x147   : > { %s16537_s28 = sld [smem:[#allocation33_spill]]  ;;  %s16538_s14 = sld [smem:[#allocation32_spill]] }
 0x148   : > { %s16539_s21 = sld [smem:[#allocation34_spill]]  ;;  %s15831_s18 = sadd.s32 1, %s15414_s16  }
 0x149   : > { %13054 = dma.hbm_to_vmem [thread:$0]  (!%p15550_p5), %s16504_s13, 512, %s526_s26, [#allocation23]  }
 0x14a   : > { %s38_s23 = ssub.s32 %s15414_s16, %s15831_s18  ;;  %s41_s22 = sadd.s32 1, %s15410_s15 }
 0x14b   : > { %p39_p7 = scmp.eq.s32.totalorder %s38_s23, 0  ;;  %p49_p3 = scmp.eq.s32.totalorder %s15414_s16, 0 }
 0x14c   : > { %p13072_p2 = scmp.lt.s32.totalorder %s15414_s16, 2  ;;  %s536_s1 = sand.u32 1, %s15410_s15  }
 0x14d   : > { %p48_p1 = scmp.ne.s32.totalorder %s15410_s15, %s16537_s28  ;;  %p54_p11 = scmp.ne.s32.totalorder %s16537_s28, %s16538_s14 }
 0x14e   : > { %s15842_s25 = scalar_select %p39_p7, %s15410_s15, %s41_s22  }
 0x14f   : > { %p50_p12 = por %p49_p3, %p48_p1  ;;  %p16540_p13 = scmp.eq.s32.totalorder %s16539_s21, 0 }
 0x150   : > { %s11562_s26 = sshll.u32 %s536_s1, 6  ;;  %s12834_s19 = sshll.u32 %s15414_s16, 10 }
 0x151   : > { %p15846_p0 = por %p16540_p13, %p54_p11  ;;  %s16542_s29 = sld [smem:[#allocation36_spill]] }
 0x152   : > { %s540_s5 = scalar_lea.vmem [#allocation2], %s11562_s26  ;;  %p15860_p5 = pnand %p13072_p2, %p50_p12 }
 0x153   : > { %s547_s24 = sshll.u32 %s540_s5, 4  ;;  %s15864_s16 = scalar_lea.sflag [#allocation3], %s536_s1  ;;  %s15858_s24 = int_to_ptr.vmem [resolvable:$true] %s547_s24 }
 0x154   : > { %p15324_p6 = pneg %p15860_p5 }
 0x157   : > { %s16543_s20 = smov %s16542_s29  ;;  %s15856_s30 = scalar_lea.hbm %s16542_s29, %s12834_s19 }
 0x158   : > { %s15322_s28 = scalar_lea.hbm %s15856_s30, 1024  ;;  %s15327_s23 = scalar_lea.hbm %s16543_s20, 2048 }
 0x159   : > { %p15323_p4 = scmp.ne.s32.totalorder %s15856_s30, %s15322_s28  ;;  %p15328_p10 = scmp.lt.u32.totalorder %s15856_s30, %s16543_s20 }
 0x15a   : > { %p15329_p7 = scmp.lt.u32.totalorder %s15327_s23, %s15322_s28  ;;  %p15331_p3 = scmp.lt.u32.totalorder %s15322_s28, %s15856_s30 }
 0x15b   : > { %p15325_p8 = pnand %p15324_p6, %p15323_p4 }
 0x15c   : > { %p15330_p1 = por %p15329_p7, %p15328_p10 }
 0x15d   : > { %p15326_p9 = pneg %p15325_p8 }
 0x15e   : > { %p15332_p11 = por %p15331_p3, %p15330_p1 }
 0x160   : > { %p15333_p12 = pnand %p15332_p11, %p15326_p9 }
 0x162   : > { %15336 = shalt.err (!%p15333_p12)
}
 0x163   : > { %s15337_s1 = scalar_lea.vmem %s15858_s24, 1024  ;;  %s15435_s19 = smov [#allocation2]  }
 0x164   : > { %p15338_p13 = scmp.ne.s32.totalorder %s15858_s24, %s15337_s1  ;;  %s15342_s27 = sshll.u32 %s15435_s19, 4  ;;  %s15343_s27 = int_to_ptr.vmem [resolvable:$false] %s15342_s27 }
 0x165   : > { %s15344_s17 = scalar_lea.vmem %s15343_s27, 2048  ;;  %p15345_p8 = scmp.lt.s32.totalorder %s15858_s24, %s15343_s27 }
 0x166   : > { %p15340_p2 = pnand %p15338_p13, %p15324_p6  ;;  %p15346_p10 = scmp.lt.s32.totalorder %s15344_s17, %s15337_s1 }
 0x168   : > { %p15341_p4 = pneg %p15340_p2  ;;  %p15347_p7 = por %p15346_p10, %p15345_p8 }
 0x16a   : > { %p15348_p1 = pnand %p15347_p7, %p15341_p4 }
 0x16c   : > { %15351 = shalt.err (!%p15348_p1)
}
 0x16d   : > { %s15436_s29 = smov 128   ;;  %s15437_s5 = smov 8  }
 0x16e   : > { %13058 = dma.hbm_to_vmem [thread:$0]  (!%p15860_p5), %s15856_s30, 1024, %s15858_s24, %s15864_s16, %s15436_s29, %s15436_s29, %s15437_s5  }
 0x16f   : > { %s16545_s28 = sld [smem:[#allocation35_spill]] }
 0x175   : > { %p16546_p6 = scmp.ne.s32.totalorder %s16545_s28, 0 }
 0x176   : > { %s16547_s14 = sld [smem:[#allocation33_spill]] (!%p16546_p6) }
 0x177   : > { %559 = sbr.rel (%p16546_p6) target bundleno = 4264 (0x10a8), region = 76 }
 0x17c   : > { %s561_s21 = sand.u32 (!%p16546_p6), 1, %s16547_s14  }
 0x17d   : > { %s11566_s23 = sshll.u32 (!%p16546_p6), %s561_s21, 6  ;;  %s562_s22 = scalar_lea.sflag (!%p16546_p6), [#allocation3], %s561_s21 }
 0x17e   : > { %s15895_s26 = scalar_lea.vmem [#allocation2], %s11566_s23 }
 0x17f   : > { %15369 = dma.done.wait (%p15846_p0), %s562_s22, 1024  }
 0x180   : > { %15371 = vsyncadd (%p15846_p0), %s562_s22, 4294966272  ;;  %s16548_s1 = sld [smem:[#allocation34_spill]] }
 0x186   : > { %p16549_p9 = scmp.eq.s32.totalorder %s16548_s1, 0 }
 0x188   : > { %15373 = dma.done.wait (%p16549_p9), [#allocation5], 6912   ;;  %p16550_p5 = pmov %p16549_p9 }
 0x18a   : > { %15375 = vsyncadd (%p16550_p5), [#allocation5], 4294960384  ;;  %p16551_p3 = pmov %p16550_p5 }
 0x18c   : > { %15377 = dma.done.wait (%p16551_p3), [#allocation8], 896   ;;  %p16552_p11 = pmov %p16551_p3 }
 0x18d   : > { %p16553_p12 = pmov %p16551_p3 }
 0x18e   : > { %15379 = vsyncadd (%p16552_p11), [#allocation8], 4294966400 }
 0x18f   : > { %15381 = dma.done.wait (%p16553_p12), [#allocation11], 49664   ;;  %p16554_p13 = pmov %p16551_p3 }
 0x190   : > { %p16555_p0 = pmov %p16551_p3 }
 0x191   : > { %15383 = vsyncadd (%p16554_p13), [#allocation11], 4294917632 }
 0x192   : > { %15385 = dma.done.wait (%p16555_p0), [#allocation14], 49344   ;;  %p16556_p2 = pmov %p16555_p0 }
 0x193   : > { %p16557_p4 = pmov %p16555_p0 }
 0x194   : > { %15387 = vsyncadd (%p16556_p2), [#allocation14], 4294917952 }
 0x195   : > { %15389 = dma.done.wait (%p16557_p4), [#allocation17], 608   ;;  %p16558_p8 = pmov %p16555_p0 }
 0x196   : > { %p16559_p10 = pmov %p16555_p0 }
 0x197   : > { %15391 = vsyncadd (%p16558_p8), [#allocation17], 4294966688 }
 0x198   : > { %15393 = dma.done.wait (%p16559_p10), [#allocation20], 49664   ;;  %p16560_p7 = pmov %p16555_p0 }
 0x199   : > { %p16561_p1 = pmov %p16555_p0 }
 0x19a   : > { %15395 = vsyncadd (%p16560_p7), [#allocation20], 4294917632 }
 0x19b   : > { %15397 = dma.done.wait (%p16561_p1), [#allocation23], 512   ;;  %p16562_p6 = pmov %p16555_p0 }
 0x19c   : > { %v666_v0 = vld [vmem:[%s15895_s26] sm:$0xff]  ;;  %v667_v1 = vld [vmem:[%s15895_s26 + $0x8] sm:$0xff]  ;;  %v668_v2 = vld [vmem:[%s15895_s26 + $0x10] sm:$0xff]  ;;  %vm692_vm0 = vcmask 523264   ;;  %v15438_v34 = vmov 0   ;;  %p661_p9 = scmp.lt.s32.totalorder %s16548_s1, 1 }
 0x19d   : > { %15399 = vsyncadd (%p16562_p6), [#allocation23], 4294966784  ;;  %v15932_v3 = vpack.c.bf16 %v667_v1, %v666_v0  ;;  %v669_v4 = vld [vmem:[%s15895_s26 + $0x18] sm:$0xff]  ;;  %v670_v6 = vld [vmem:[%s15895_s26 + $0x20] sm:$0xff]  ;;  %13140 = vset.pattern.permute.xlu0 %v15438_v34  ;;  %s16563_s3 = sld [smem:[#allocation40_spill]] }
 0x19e   : > { %v15935_v5 = vpack.c.bf16 %v669_v4, %v668_v2  ;;  %v671_v7 = vld [vmem:[%s15895_s26 + $0x28] sm:$0xff]  ;;  %v13141_v8 = vld [vmem:[#allocation4 + $0x10] sm:$0xff]   ;;  %v13143_v11 = vld [vmem:[#allocation4] sm:$0xff]   ;;  %s16569_s1 = smov (!%p661_p9, %s16548_s1), 1 }
 0x19f   : > { %12865 = vmatprep.subr.bf16.mxu1 %v15932_v3  ;;  %12853 = vmatprep.subr.bf16.mxu0 %v15932_v3  ;;  %v672_v9 = vld [vmem:[%s15895_s26 + $0x30] sm:$0xff]  ;;  %v15945_v10 = vpack.c.bf16 %v671_v7, %v670_v6  ;;  %v673_v12 = vld [vmem:[%s15895_s26 + $0x38] sm:$0xff]  ;;  %v13144_v16 = vld [vmem:[#allocation4 + $0x8] sm:$0xff]   ;;  %s11580_s0 = sshll.u32 %s16569_s1, 3 }
 0x1a0   : > { %12866 = vmatpush3.bf16.msra.mxu1 %v15932_v3  ;;  %12854 = vmatpush3.bf16.msra.mxu0 %v15932_v3  ;;  %v15954_v13 = vpack.c.bf16 %v673_v12, %v672_v9  ;;  %v13147_v14 = vld [vmem:[#allocation6 + $0x84] ss:$16 sps:$4 sm:$0xff]   ;;  %v13142_v15 = vld [vmem:[#allocation4 + $0x18] sm:$0xff]   ;;  %v13145_v18 = vld [vmem:[#allocation6 + $0x80] ss:$16 sps:$4 sm:$0xff]  }
 0x1a1   : > { %12867 = vmatprep.subr.bf16.mxu1 %v15935_v5  ;;  %12873 = vmatprep.mubr.msk.bf16.mxu1 %vm692_vm0, %v13141_v8  ;;  %v13150_v17 = vld [vmem:[#allocation6 + $0x8c] ss:$16 sps:$4 sm:$0xff]   ;;  %v13148_v19 = vld [vmem:[#allocation6 + $0x88] ss:$16 sps:$4 sm:$0xff]   ;;  %v13153_v20 = vld [vmem:[#allocation6 + $0xa4] ss:$16 sps:$4 sm:$0xff]  }
 0x1a2   : > { %12855 = vmatprep.subr.bf16.mxu0 %v15935_v5  ;;  %12861 = vmatprep.mubr.msk.bf16.mxu0 %vm692_vm0, %v13143_v11  ;;  %v13156_v21 = vld [vmem:[#allocation6 + $0xac] ss:$16 sps:$4 sm:$0xff]   ;;  %v13151_v22 = vld [vmem:[#allocation6 + $0xa0] ss:$16 sps:$4 sm:$0xff]   ;;  %v13154_v23 = vld [vmem:[#allocation6 + $0xa8] ss:$16 sps:$4 sm:$0xff]  }
 0x1a3   : > { %v13159_v24 = vld [vmem:[#allocation6 + $0xc4] ss:$16 sps:$4 sm:$0xff]   ;;  %v13162_v25 = vld [vmem:[#allocation6 + $0xcc] ss:$16 sps:$4 sm:$0xff]   ;;  %v13157_v26 = vld [vmem:[#allocation6 + $0xc0] ss:$16 sps:$4 sm:$0xff]   ;;  %s664_s16 = scalar_lea.vmem %s16563_s3, %s11580_s0 }
 0x1a4   : > { %12868 = vmatpush3.bf16.msra.mxu1 %v15935_v5  ;;  %12856 = vmatpush3.bf16.msra.mxu0 %v15935_v5  ;;  %v13160_v27 = vld [vmem:[#allocation6 + $0xc8] ss:$16 sps:$4 sm:$0xff]   ;;  %v13165_v28 = vld [vmem:[#allocation6 + $0xe4] ss:$16 sps:$4 sm:$0xff]   ;;  %v13168_v29 = vld [vmem:[#allocation6 + $0xec] ss:$16 sps:$4 sm:$0xff]  }
 0x1a5   : > { %12869 = vmatprep.subr.bf16.mxu1 %v15945_v10  ;;  %12857 = vmatprep.subr.bf16.mxu0 %v15945_v10  ;;  %v13163_v30 = vld [vmem:[#allocation6 + $0xe0] ss:$16 sps:$4 sm:$0xff]   ;;  %v13166_v31 = vld [vmem:[#allocation6 + $0xe8] ss:$16 sps:$4 sm:$0xff]   ;;  %v13171_v32 = vld [vmem:[#allocation6 + $0x4] ss:$16 sps:$4 sm:$0xff]  }
 0x1a6   : > { %v13174_v33 = vld [vmem:[#allocation6 + $0xc] ss:$16 sps:$4 sm:$0xff]   ;;  %v13169_v38 = vld [vmem:[#allocation6] ss:$16 sps:$4 sm:$0xff]   ;;  %v13172_v39 = vld [vmem:[#allocation6 + $0x8] ss:$16 sps:$4 sm:$0xff]  }
 0x1a7   : > { %v13177_v42 = vld [vmem:[#allocation6 + $0x24] ss:$16 sps:$4 sm:$0xff]   ;;  %v13180_v43 = vld [vmem:[#allocation6 + $0x2c] ss:$16 sps:$4 sm:$0xff]   ;;  %v13175_v51 = vld [vmem:[#allocation6 + $0x20] ss:$16 sps:$4 sm:$0xff]  }
 0x1a8   : > { %12870 = vmatpush3.bf16.msra.mxu1 %v15945_v10  ;;  %12858 = vmatpush3.bf16.msra.mxu0 %v15945_v10  ;;  %v13178_v52 = vld [vmem:[#allocation6 + $0x28] ss:$16 sps:$4 sm:$0xff]   ;;  %v13183_v53 = vld [vmem:[#allocation6 + $0x44] ss:$16 sps:$4 sm:$0xff]   ;;  %v13186_v54 = vld [vmem:[#allocation6 + $0x4c] ss:$16 sps:$4 sm:$0xff]  }
 0x1a9   : > { %12871 = vmatprep.subr.bf16.mxu1 %v15954_v13  ;;  %12859 = vmatprep.subr.bf16.mxu0 %v15954_v13  ;;  %v13181_v55 = vld [vmem:[#allocation6 + $0x40] ss:$16 sps:$4 sm:$0xff]   ;;  %v13184_v56 = vld [vmem:[#allocation6 + $0x48] ss:$16 sps:$4 sm:$0xff]   ;;  %v13189_v57 = vld [vmem:[#allocation6 + $0x64] ss:$16 sps:$4 sm:$0xff]  }
 0x1aa   : > { %v13192_v58 = vld [vmem:[#allocation6 + $0x6c] ss:$16 sps:$4 sm:$0xff]   ;;  %v13187_v59 = vld [vmem:[#allocation6 + $0x60] ss:$16 sps:$4 sm:$0xff]   ;;  %v13190_v60 = vld [vmem:[#allocation6 + $0x68] ss:$16 sps:$4 sm:$0xff]  }
 0x1ab   : > { %v13200_v61 = vld [vmem:[#allocation6 + $0x10c] ss:$16 sps:$4 sm:$0xff]   ;;  %v13198_v62 = vld [vmem:[#allocation6 + $0x108] ss:$16 sps:$4 sm:$0xff]   ;;  %v13193_v1 = vld [vmem:[#allocation4 + $0x20] sm:$0xff]  }
 0x1ac   : > { %12872 = vmatpush3.bf16.msra.mxu1 %v15954_v13  ;;  %12860 = vmatpush3.bf16.msra.mxu0 %v15954_v13  ;;  %v13206_v63 = vld [vmem:[#allocation6 + $0x12c] ss:$16 sps:$4 sm:$0xff]   ;;  %v13204_v0 = vld [vmem:[#allocation6 + $0x128] ss:$16 sps:$4 sm:$0xff]   ;;  %v13195_v7 = vld [vmem:[#allocation6 + $0x100] ss:$16 sps:$4 sm:$0xff]  }
 0x1ad   : > { %941 = vmatprep.subr.bf16.mxu0 %v13147_v14  ;;  %994 = vmatprep.subr.bf16.mxu1 %v13150_v17  ;;  %v13212_v2 = vld [vmem:[#allocation6 + $0x14c] ss:$16 sps:$4 sm:$0xff]   ;;  %v13210_v4 = vld [vmem:[#allocation6 + $0x148] ss:$16 sps:$4 sm:$0xff]   ;;  %v13201_v8 = vld [vmem:[#allocation6 + $0x120] ss:$16 sps:$4 sm:$0xff]  }
 0x1ae   : > { %v13194_v6 = vld [vmem:[#allocation4 + $0x28] sm:$0xff]   ;;  %v13209_v9 = vld [vmem:[#allocation6 + $0x144] ss:$16 sps:$4 sm:$0xff]   ;;  %v13213_v14 = vld [vmem:[#allocation6 + $0x160] ss:$16 sps:$4 sm:$0xff]  }
 0x1af   : > { %12874 = vmatmul.mubr.msk.bf16.vlgmr.msra.gmra.mrb[0].mxu1 %vm692_vm0, %v13142_v15  ;;  %12862 = vmatmul.mubr.msk.bf16.vlgmr.msra.gmra.mrb[0].mxu0 %vm692_vm0, %v13144_v16  ;;  %v13215_v11 = vld [vmem:[#allocation6 + $0x164] ss:$16 sps:$4 sm:$0xff]   ;;  %v13218_v12 = vld [vmem:[#allocation6 + $0x16c] ss:$16 sps:$4 sm:$0xff]   ;;  %v13216_v15 = vld [vmem:[#allocation6 + $0x168] ss:$16 sps:$4 sm:$0xff]  }
 0x1b0   : > { %942 = vmatpush1.bf16.msra.mxu0 %v13145_v18  ;;  %995 = vmatpush1.bf16.msra.mxu1 %v13148_v19 }
 0x1b1   : > { %943 = vmatprep.subr.bf16.mxu0 %v13153_v20  ;;  %996 = vmatprep.subr.bf16.mxu1 %v13156_v21  ;;  %v1538_v21 = vlaneseq }
 0x1b2   : > { %973 = vmatprep.mubr.bf16.mxu0 %v15438_v34  ;;  %1026 = vmatprep.mubr.bf16.mxu1 %v15438_v34 }
 0x1b4   : > { %944 = vmatpush1.bf16.msra.mxu0 %v13151_v22  ;;  %997 = vmatpush1.bf16.msra.mxu1 %v13154_v23  ;;  %v1539_v22 = vshrl.u32 %v1538_v21, 7 }
 0x1b5   : > { %945 = vmatprep.subr.bf16.mxu0 %v13159_v24  ;;  %998 = vmatprep.subr.bf16.mxu1 %v13162_v25  ;;  %v1536_v25 = vld [vmem:[#allocation7] ss:$8 sm:$0xf] }
 0x1b6   : > { %v16002_v23 = vsub.s32 0, %v1539_v22  ;;  %v16004_v24 = vsub.s32 2, %v1539_v22 }
 0x1b8   : > { %946 = vmatpush1.bf16.msra.mxu0 %v13157_v26  ;;  %999 = vmatpush1.bf16.msra.mxu1 %v13160_v27  ;;  %v16006_v26 = vsub.s32 1, %v1539_v22  ;;  %v16008_v27 = vsub.s32 3, %v1539_v22 }
 0x1b9   : > { %947 = vmatprep.subr.bf16.mxu0 %v13165_v28  ;;  %1000 = vmatprep.subr.bf16.mxu1 %v13168_v29  ;;  %v16011_v28 = vrot.slane %v1536_v25, %v16002_v23  ;;  %v1623_v29 = vld [vmem:[#allocation7 + $0x1] ss:$8 sm:$0xf] }
 0x1bc   : > { %948 = vmatpush1.bf16.msra.mxu0 %v13163_v30  ;;  %1001 = vmatpush1.bf16.msra.mxu1 %v13166_v31  ;;  %v16014_v30 = vrot.slane %v1536_v25, %v16004_v24  ;;  %v1662_v31 = vld [vmem:[#allocation7 + $0x2] ss:$8 sm:$0xf] }
 0x1bd   : > { %1133 = vmatprep.subr.bf16.mxu0 %v13171_v32  ;;  %1186 = vmatprep.subr.bf16.mxu1 %v13174_v33  ;;  %v16017_v32 = vrot.slane %v1536_v25, %v16006_v26  ;;  %v16020_v33 = vrot.slane %v1536_v25, %v16008_v27 }
 0x282   : > { %v12875_v35 = vpop.f32.mrb[0].mxu1  ;;  %v12863_v36 = vpop.f32.mrb[0].mxu0 }
 0x283   : > { %v821_v37 = vpop.f32.mrb[1].mxu1  ;;  %v733_v40 = vpop.f32.mrb[1].mxu0 }
 0x284   : > { %v12876_v41 = vpop.f32.mrb[2].mxu1  ;;  %v12864_v44 = vpop.f32.mrb[2].mxu0 }
 0x285   : > { %v837_v45 = vpack.c.bf16 %v12876_v41, %v12875_v35  ;;  %v824_v46 = vpop.f32.mrb[3].mxu1  ;;  %v749_v47 = vpack.c.bf16 %v12864_v44, %v12863_v36  ;;  %v736_v48 = vpop.f32.mrb[3].mxu0  ;;  %v16023_v36 = vrot.slane %v1623_v29, %v16002_v23  ;;  %v16040_v44 = vrot.slane %v1662_v31, %v16004_v24 }
 0x286   : > { %v836_v49 = vpack.c.bf16 %v824_v46, %v821_v37  ;;  %v748_v50 = vpack.c.bf16 %v736_v48, %v733_v40  ;;  %v16032_v40 = vrot.slane %v1623_v29, %v16008_v27 }
 0x288   : > { %11605 = vmatmul.mubr.msk.bf16.vlgmr.msra.gmra.mrb[4].mxu0 %vm692_vm0, %v836_v49  ;;  %11607 = vmatmul.mubr.msk.bf16.vlgmr.msra.gmra.mrb[4].mxu1 %vm692_vm0, %v836_v49 }
 0x289   : > { %1134 = vmatpush1.bf16.msra.mxu0 %v13169_v38  ;;  %1187 = vmatpush1.bf16.msra.mxu1 %v13172_v39  ;;  %v16026_v38 = vrot.slane %v1623_v29, %v16004_v24  ;;  %v16029_v39 = vrot.slane %v1623_v29, %v16006_v26 }
 0x28a   : > { %1135 = vmatprep.subr.bf16.mxu0 %v13177_v42  ;;  %1188 = vmatprep.subr.bf16.mxu1 %v13180_v43  ;;  %v16036_v42 = vrot.slane %v1662_v31, %v16002_v23 }
 0x28b   : > { %983 = vmatprep.mubr.bf16.mxu0 %v15438_v34  ;;  %1036 = vmatprep.mubr.bf16.mxu1 %v15438_v34 }
 0x28d   : > { %1136 = vmatpush1.bf16.msra.mxu0 %v13175_v51  ;;  %1189 = vmatpush1.bf16.msra.mxu1 %v13178_v52  ;;  %v16045_v51 = vrot.slane %v1662_v31, %v16006_v26  ;;  %v16048_v52 = vrot.slane %v1662_v31, %v16008_v27 }
 0x28e   : > { %1137 = vmatprep.subr.bf16.mxu0 %v13183_v53  ;;  %1190 = vmatprep.subr.bf16.mxu1 %v13186_v54 }
 0x290   : > { %11606 = vmatmul.mubr.msk.bf16.gmra.mrb[8].mxu0 %vm692_vm0, %v837_v45  ;;  %11608 = vmatmul.mubr.msk.bf16.gmra.mrb[8].mxu1 %vm692_vm0, %v837_v45 }
 0x291   : > { %1138 = vmatpush1.bf16.msra.mxu0 %v13181_v55  ;;  %1191 = vmatpush1.bf16.msra.mxu1 %v13184_v56 }
 0x292   : > { %1139 = vmatprep.subr.bf16.mxu0 %v13189_v57  ;;  %1192 = vmatprep.subr.bf16.mxu1 %v13192_v58 }
 0x293   : > { %1165 = vmatprep.mubr.bf16.mxu0 %v15438_v34  ;;  %1218 = vmatprep.mubr.bf16.mxu1 %v15438_v34 }
 0x295   : > { %1140 = vmatpush1.bf16.msra.mxu0 %v13187_v59  ;;  %1193 = vmatpush1.bf16.msra.mxu1 %v13190_v60 }
 0x296   : > { %12877 = vmatprep.subr.bf16.mxu0 %v15932_v3  ;;  %1467 = vmatprep.subr.bf16.mxu1 %v13200_v61 }
 0x298   : > { %11625 = vmatmul.mubr.msk.bf16.vlgmr.msra.gmra.mrb[4].mxu0 %vm692_vm0, %v748_v50  ;;  %11627 = vmatmul.mubr.msk.bf16.vlgmr.msra.gmra.mrb[4].mxu1 %vm692_vm0, %v748_v50 }
 0x299   : > { %12878 = vmatpush3.bf16.msra.mxu0 %v15932_v3  ;;  %1175 = vmatprep.mubr.bf16.mxu0 %v15438_v34  ;;  %v13197_v3 = vld [vmem:[#allocation6 + $0x104] ss:$16 sps:$4 sm:$0xff]  }
 0x29a   : > { %12879 = vmatprep.subr.bf16.mxu0 %v15935_v5  ;;  %1228 = vmatprep.mubr.bf16.mxu1 %v15438_v34 }
 0x29b   : > { %1468 = vmatpush1.bf16.msra.mxu1 %v13198_v62 }
 0x29c   : > { %1469 = vmatprep.subr.bf16.mxu1 %v13206_v63 }
 0x29d   : > { %12880 = vmatpush3.bf16.msra.mxu0 %v15935_v5  ;;  %v13203_v5 = vld [vmem:[#allocation6 + $0x124] ss:$16 sps:$4 sm:$0xff]  }
 0x29e   : > { %12881 = vmatprep.subr.bf16.mxu0 %v15945_v10 }
 0x29f   : > { %1470 = vmatpush1.bf16.msra.mxu1 %v13204_v0 }
 0x2a0   : > { %11626 = vmatmul.mubr.msk.bf16.gmra.mrb[8].mxu0 %vm692_vm0, %v749_v47  ;;  %11628 = vmatmul.mubr.msk.bf16.gmra.mrb[8].mxu1 %vm692_vm0, %v749_v47 }
 0x2a1   : > { %12882 = vmatpush3.bf16.msra.mxu0 %v15945_v10  ;;  %12885 = vmatprep.mubr.msk.bf16.mxu0 %vm692_vm0, %v13193_v1  ;;  %v13207_v10 = vld [vmem:[#allocation6 + $0x140] ss:$16 sps:$4 sm:$0xff]  }
 0x2a2   : > { %12883 = vmatprep.subr.bf16.mxu0 %v15954_v13  ;;  %1471 = vmatprep.subr.bf16.mxu1 %v13212_v2 }
 0x2a3   : > { %1472 = vmatpush1.bf16.msra.mxu1 %v13210_v4  ;;  %1499 = vmatprep.mubr.bf16.mxu1 %v15438_v34 }
 0x2a4   : > { %1473 = vmatprep.subr.bf16.mxu1 %v13218_v12 }
 0x2a5   : > { %12884 = vmatpush3.bf16.msra.mxu0 %v15954_v13 }
 0x2a6   : > { %1414 = vmatprep.subr.bf16.mxu0 %v13197_v3 }
 0x2a7   : > { %1474 = vmatpush1.bf16.msra.mxu1 %v13216_v15 }
 0x2a8   : > { %12886 = vmatmul.mubr.msk.bf16.vlgmr.msra.gmra.mrb[12].mxu0 %vm692_vm0, %v13194_v6 }
 0x2a9   : > { %1415 = vmatpush1.bf16.msra.mxu0 %v13195_v7  ;;  %1446 = vmatprep.mubr.bf16.mxu0 %v15438_v34 }
 0x2aa   : > { %1416 = vmatprep.subr.bf16.mxu0 %v13203_v5 }
 0x2ad   : > { %1417 = vmatpush1.bf16.msra.mxu0 %v13201_v8 }
 0x2ae   : > { %1418 = vmatprep.subr.bf16.mxu0 %v13209_v9 }
 0x2b1   : > { %1419 = vmatpush1.bf16.msra.mxu0 %v13207_v10 }
 0x2b2   : > { %1420 = vmatprep.subr.bf16.mxu0 %v13215_v11 }
 0x2b5   : > { %1421 = vmatpush1.bf16.msra.mxu0 %v13213_v14 }
 0x37b   : > { %v12887_v13 = vpop.f32.mrb[12].mxu0 }
 0x37c   : > { %v1294_v16 = vpop.f32.mrb[13].mxu0 }
 0x37d   : > { %v12888_v17 = vpop.f32.mrb[14].mxu0 }
 0x37e   : > { %v1310_v18 = vpack.c.bf16 %v12888_v17, %v12887_v13  ;;  %v1297_v19 = vpop.f32.mrb[15].mxu0 }
 0x37f   : > { %v1309_v20 = vpack.c.bf16 %v1297_v19, %v1294_v16 }
 0x381   : > { %11649 = vmatmul.mubr.msk.bf16.vlgmr.msra.gmra.mrb[4].mxu0 %vm692_vm0, %v1309_v20  ;;  %11651 = vmatmul.mubr.msk.bf16.vlgmr.msra.gmra.mrb[4].mxu1 %vm692_vm0, %v1309_v20 }
 0x382   : > { %1456 = vmatprep.mubr.bf16.mxu0 %v15438_v34  ;;  %1509 = vmatprep.mubr.bf16.mxu1 %v15438_v34 }
 0x389   : > { %11650 = vmatmul.mubr.msk.bf16.gmra.mrb[8].mxu0 %vm692_vm0, %v1310_v18  ;;  %11652 = vmatmul.mubr.msk.bf16.gmra.mrb[8].mxu1 %vm692_vm0, %v1310_v18 }
 0x38a   : > { %1980 = vmatprep.mubr.bf16.mxu0 %v15438_v34  ;;  %1751 = vmatprep.mubr.bf16.mxu1 %v15438_v34 }
 0x454   : > { %v1448_v35 = vpop.f32.mrb[4].mxu0  ;;  %v1501_v37 = vpop.f32.mrb[4].mxu1 }
 0x455   : > { %v1558_v41 = vadd.f32 %v16011_v28, %v1448_v35  ;;  %v1560_v43 = vadd.f32 %v16014_v30, %v1501_v37  ;;  %v1450_v45 = vpop.f32.mrb[5].mxu0  ;;  %v1503_v46 = vpop.f32.mrb[5].mxu1 }
 0x456   : > { %v1559_v47 = vadd.f32 %v16017_v32, %v1450_v45  ;;  %v1561_v48 = vadd.f32 %v16020_v33, %v1503_v46  ;;  %v1452_v49 = vpop.f32.mrb[6].mxu0  ;;  %v1505_v50 = vpop.f32.mrb[6].mxu1 }
 0x457   : > { %vm1574_vm1 = vcmp.gt.f32.partialorder %v1558_v41, 0.0  ;;  %v1590_v53 = vmul.f32 0.2, %v1558_v41  ;;  %vm1576_vm2 = vcmp.gt.f32.partialorder %v1560_v43, 0.0  ;;  %v1592_v54 = vmul.f32 0.2, %v1560_v43 }
 0x458   : > { %vm1575_vm3 = vcmp.gt.f32.partialorder %v1559_v47, 0.0  ;;  %v1591_v55 = vmul.f32 0.2, %v1559_v47  ;;  %vm1577_vm4 = vcmp.gt.f32.partialorder %v1561_v48, 0.0  ;;  %v1593_v56 = vmul.f32 0.2, %v1561_v48 }
 0x459   : > { %v1606_v57 = vsel %vm1574_vm1, %v1558_v41, %v1590_v53  ;;  %v1608_v58 = vsel %vm1576_vm2, %v1560_v43, %v1592_v54  ;;  %v1562_v59 = vadd.f32 %v16011_v28, %v1452_v49  ;;  %v1564_v60 = vadd.f32 %v16014_v30, %v1505_v50  ;;  %v1454_v61 = vpop.f32.mrb[7].mxu0  ;;  %v1507_v62 = vpop.f32.mrb[7].mxu1 }
 0x45a   : > { %v1645_v63 = vmul.f32 %v16023_v36, %v1606_v57  ;;  %v1647_v0 = vmul.f32 %v16026_v38, %v1608_v58  ;;  %v1607_v1 = vsel %vm1575_vm3, %v1559_v47, %v1591_v55  ;;  %v1609_v2 = vsel %vm1577_vm4, %v1561_v48, %v1593_v56 }
 0x45b   : > { %v16055_v4 = vmul.f32 %v16029_v39, %v1607_v1  ;;  %v16058_v3 = vmul.f32 %v16032_v40, %v1609_v2  ;;  %vm1578_vm5 = vcmp.gt.f32.partialorder %v1562_v59, 0.0  ;;  %v1594_v6 = vmul.f32 0.2, %v1562_v59 }
 0x45c   : > { %v16061_v7 = vadd.f32 %v16036_v42, %v1645_v63  ;;  %v16064_v5 = vadd.f32 %v16040_v44, %v1647_v0  ;;  %vm1580_vm6 = vcmp.gt.f32.partialorder %v1564_v60, 0.0  ;;  %v1596_v8 = vmul.f32 0.2, %v1564_v60  ;;  %v1458_v9 = vpop.f32.mrb[8].mxu0  ;;  %v1511_v10 = vpop.f32.mrb[8].mxu1 }
 0x45d   : > { %v1610_v11 = vsel %vm1578_vm5, %v1562_v59, %v1594_v6  ;;  %v1563_v12 = vadd.f32 %v16017_v32, %v1454_v61  ;;  %v1565_v14 = vadd.f32 %v16020_v33, %v1507_v62  ;;  %v1566_v15 = vadd.f32 %v16011_v28, %v1458_v9  ;;  %v1460_v13 = vpop.f32.mrb[9].mxu0  ;;  %v1513_v16 = vpop.f32.mrb[9].mxu1 }
 0x45e   : > { %v1649_v17 = vmul.f32 %v16023_v36, %v1610_v11  ;;  %v1612_v18 = vsel %vm1580_vm6, %v1564_v60, %v1596_v8  ;;  %v1568_v19 = vadd.f32 %v16014_v30, %v1511_v10  ;;  %v1567_v20 = vadd.f32 %v16017_v32, %v1460_v13  ;;  %v1462_v21 = vpop.f32.mrb[10].mxu0  ;;  %v1515_v22 = vpop.f32.mrb[10].mxu1 }
 0x45f   : > { %v1651_v25 = vmul.f32 %v16026_v38, %v1612_v18  ;;  %vm1579_vm7 = vcmp.gt.f32.partialorder %v1563_v12, 0.0  ;;  %v1595_v29 = vmul.f32 0.2, %v1563_v12  ;;  %vm1581_vm8 = vcmp.gt.f32.partialorder %v1565_v14, 0.0  ;;  %v1464_v31 = vpop.f32.mrb[11].mxu0  ;;  %v1517_v35 = vpop.f32.mrb[11].mxu1 }
 0x460   : > { %v1688_v37 = vadd.f32 %v16036_v42, %v1649_v17  ;;  %v1597_v41 = vmul.f32 0.2, %v1565_v14  ;;  %vm1582_vm9 = vcmp.gt.f32.partialorder %v1566_v15, 0.0  ;;  %v1598_v43 = vmul.f32 0.2, %v1566_v15 }
 0x461   : > { %v1690_v45 = vadd.f32 %v16040_v44, %v1651_v25  ;;  %v1611_v46 = vsel %vm1579_vm7, %v1563_v12, %v1595_v29  ;;  %vm1584_vm10 = vcmp.gt.f32.partialorder %v1568_v19, 0.0  ;;  %v1600_v47 = vmul.f32 0.2, %v1568_v19 }
 0x462   : > { %v1650_v48 = vmul.f32 %v16029_v39, %v1611_v46  ;;  %v1613_v49 = vsel %vm1581_vm8, %v1565_v14, %v1597_v41  ;;  %v1614_v50 = vsel %vm1582_vm9, %v1566_v15, %v1598_v43  ;;  %vm1583_vm11 = vcmp.gt.f32.partialorder %v1567_v20, 0.0  ;;  %v13229_v41 = vld [vmem:[#allocation10 + $0x424] ss:$16 sps:$4 sm:$0xff]   ;;  %v13227_v43 = vld [vmem:[#allocation10 + $0x420] ss:$16 sps:$4 sm:$0xff]  }
 0x463   : > { %v1652_v53 = vmul.f32 %v16032_v40, %v1613_v49  ;;  %v1653_v54 = vmul.f32 %v16023_v36, %v1614_v50  ;;  %v1616_v55 = vsel %vm1584_vm10, %v1568_v19, %v1600_v47  ;;  %v1599_v56 = vmul.f32 0.2, %v1567_v20  ;;  %v13233_v46 = vld [vmem:[#allocation10 + $0x440] ss:$16 sps:$4 sm:$0xff]   ;;  %v13241_v47 = vld [vmem:[#allocation10 + $0x464] ss:$16 sps:$4 sm:$0xff]  }
 0x464   : > { %v1655_v57 = vmul.f32 %v16026_v38, %v1616_v55  ;;  %v1569_v58 = vadd.f32 %v16020_v33, %v1513_v16  ;;  %v1570_v59 = vadd.f32 %v16011_v28, %v1462_v21  ;;  %v1572_v60 = vadd.f32 %v16014_v30, %v1515_v22  ;;  %v13239_v49 = vld [vmem:[#allocation10 + $0x460] ss:$16 sps:$4 sm:$0xff]   ;;  %v13247_v50 = vld [vmem:[#allocation10 + $0x484] ss:$16 sps:$4 sm:$0xff]  }
 0x465   : > { %v1692_v61 = vadd.f32 %v16036_v42, %v1653_v54  ;;  %v1615_v62 = vsel %vm1583_vm11, %v1567_v20, %v1599_v56  ;;  %v1571_v63 = vadd.f32 %v16017_v32, %v1464_v31  ;;  %v1573_v0 = vadd.f32 %v16020_v33, %v1517_v35  ;;  %v13219_v31 = vld [vmem:[#allocation9 + $0x8] sm:$0xff]   ;;  %v13220_v35 = vld [vmem:[#allocation9] sm:$0xff]  }
 0x466   : > { %v1694_v1 = vadd.f32 %v16040_v44, %v1655_v57  ;;  %v1654_v2 = vmul.f32 %v16029_v39, %v1615_v62  ;;  %vm1585_vm12 = vcmp.gt.f32.partialorder %v1569_v58, 0.0  ;;  %v1601_v6 = vmul.f32 0.2, %v1569_v58  ;;  %v13232_v54 = vld [vmem:[#allocation10 + $0x42c] ss:$16 sps:$4 sm:$0xff]  }
 0x467   : > { %vm1586_vm13 = vcmp.gt.f32.partialorder %v1570_v59, 0.0  ;;  %v1602_v8 = vmul.f32 0.2, %v1570_v59  ;;  %vm1588_vm14 = vcmp.gt.f32.partialorder %v1572_v60, 0.0  ;;  %v1604_v9 = vmul.f32 0.2, %v1572_v60 }
 0x468   : > { %v1617_v28 = vsel %vm1585_vm12, %v1569_v58, %v1601_v6  ;;  %vm1587_vm15 = vcmp.gt.f32.partialorder %v1571_v63, 0.0  ;;  %v1603_v30 = vmul.f32 0.2, %v1571_v63  ;;  %vm1589_vm0 = vcmp.gt.f32.partialorder %v1573_v0, 0.0  ;;  %v13245_v55 = vld [vmem:[#allocation10 + $0x480] ss:$16 sps:$4 sm:$0xff]  }
 0x469   : > { %v1656_v10 = vmul.f32 %v16032_v40, %v1617_v28  ;;  %v1618_v11 = vsel %vm1586_vm13, %v1570_v59, %v1602_v8  ;;  %v1620_v32 = vsel %vm1588_vm14, %v1572_v60, %v1604_v9  ;;  %v1605_v12 = vmul.f32 0.2, %v1573_v0  ;;  %v13253_v56 = vld [vmem:[#allocation10 + $0x4a4] ss:$16 sps:$4 sm:$0xff]   ;;  %v13230_v57 = vld [vmem:[#allocation10 + $0x428] ss:$16 sps:$4 sm:$0xff]  }
 0x46a   : > { %v1657_v33 = vmul.f32 %v16023_v36, %v1618_v11  ;;  %v1659_v14 = vmul.f32 %v16026_v38, %v1620_v32  ;;  %v1619_v15 = vsel %vm1587_vm15, %v1571_v63, %v1603_v30  ;;  %v1685_v13 = vadd.f32 %v16045_v51, %v16055_v4  ;;  %v13238_v58 = vld [vmem:[#allocation10 + $0x44c] ss:$16 sps:$4 sm:$0xff]   ;;  %v13251_v59 = vld [vmem:[#allocation10 + $0x4a0] ss:$16 sps:$4 sm:$0xff]   ;;  %v13259_v60 = vld [vmem:[#allocation10 + $0x4c4] ss:$16 sps:$4 sm:$0xff]  }
 0x46b   : > { %v1658_v16 = vmul.f32 %v16029_v39, %v1619_v15  ;;  %v1621_v17 = vsel %vm1589_vm0, %v1573_v0, %v1605_v12  ;;  %v1689_v18 = vadd.f32 %v16045_v51, %v1650_v48  ;;  %v16095_v19 = vpack.c.bf16 %v1688_v37, %v16061_v7  ;;  %v13221_v37 = vld [vmem:[#allocation10 + $0x400] ss:$16 sps:$4 sm:$0xff]   ;;  %v13226_v48 = vld [vmem:[#allocation10 + $0x40c] ss:$16 sps:$4 sm:$0xff]   ;;  %v13265_v0 = vld [vmem:[#allocation10 + $0x4e4] ss:$16 sps:$4 sm:$0xff]  }
 0x46c   : > { %v1696_v20 = vadd.f32 %v16036_v42, %v1657_v33  ;;  %v1698_v21 = vadd.f32 %v16040_v44, %v1659_v14  ;;  %v1660_v36 = vmul.f32 %v16032_v40, %v1621_v17  ;;  %v1693_v38 = vadd.f32 %v16045_v51, %v1654_v2  ;;  %v13244_v62 = vld [vmem:[#allocation10 + $0x46c] ss:$16 sps:$4 sm:$0xff]   ;;  %v13257_v63 = vld [vmem:[#allocation10 + $0x4c0] ss:$16 sps:$4 sm:$0xff]   ;;  %v13271_v8 = vld [vmem:[#allocation10 + $0x504] ss:$16 sps:$4 sm:$0xff]  }
 0x46d   : > { %v16101_v22 = vpack.c.bf16 %v1689_v18, %v1685_v13  ;;  %v1697_v4 = vadd.f32 %v16045_v51, %v1658_v16  ;;  %v1687_v39 = vadd.f32 %v16048_v52, %v16058_v3  ;;  %v1691_v25 = vadd.f32 %v16048_v52, %v1652_v53  ;;  %v13224_v53 = vld [vmem:[#allocation10 + $0x408] ss:$16 sps:$4 sm:$0xff]   ;;  %v13250_v2 = vld [vmem:[#allocation10 + $0x48c] ss:$16 sps:$4 sm:$0xff]   ;;  %v13263_v6 = vld [vmem:[#allocation10 + $0x4e0] ss:$16 sps:$4 sm:$0xff]  }
 0x46e   : > { %v16107_v29 = vpack.c.bf16 %v1696_v20, %v1692_v61  ;;  %v16110_v7 = vpack.c.bf16 %v1690_v45, %v16064_v5  ;;  %v1695_v42 = vadd.f32 %v16048_v52, %v1656_v10  ;;  %v1699_v40 = vadd.f32 %v16048_v52, %v1660_v36  ;;  %v13223_v52 = vld [vmem:[#allocation10 + $0x404] ss:$16 sps:$4 sm:$0xff]   ;;  %v13236_v61 = vld [vmem:[#allocation10 + $0x448] ss:$16 sps:$4 sm:$0xff]   ;;  %v13256_v28 = vld [vmem:[#allocation10 + $0x4ac] ss:$16 sps:$4 sm:$0xff]  }
 0x46f   : > { %1719 = vmatprep.subr.bf16.mxu1 %v16101_v22  ;;  %1948 = vmatprep.subr.bf16.mxu0 %v16101_v22  ;;  %v16116_v44 = vpack.c.bf16 %v1697_v4, %v1693_v38  ;;  %v16118_v51 = vpack.c.bf16 %v1691_v25, %v1687_v39  ;;  %v16120_v3 = vpack.c.bf16 %v1698_v21, %v1694_v1  ;;  %vm1715_vm1 = vcmask 261120   ;;  %v13235_v45 = vld [vmem:[#allocation10 + $0x444] ss:$16 sps:$4 sm:$0xff]   ;;  %v13242_v1 = vld [vmem:[#allocation10 + $0x468] ss:$16 sps:$4 sm:$0xff]  }
 0x470   : > { %1720 = vmatpush1.bf16.msra.mxu1 %v16095_v19  ;;  %1949 = vmatpush1.bf16.msra.mxu0 %v16095_v19  ;;  %v16124_v5 = vpack.c.bf16 %v1699_v40, %v1695_v42  ;;  %v13248_v9 = vld [vmem:[#allocation10 + $0x488] ss:$16 sps:$4 sm:$0xff]   ;;  %v13269_v30 = vld [vmem:[#allocation10 + $0x500] ss:$16 sps:$4 sm:$0xff]   ;;  %v13277_v10 = vld [vmem:[#allocation10 + $0x524] ss:$16 sps:$4 sm:$0xff]  }
 0x471   : > { %1721 = vmatprep.subr.bf16.mxu1 %v16116_v44  ;;  %1950 = vmatprep.subr.bf16.mxu0 %v16116_v44  ;;  %v13254_v11 = vld [vmem:[#allocation10 + $0x4a8] ss:$16 sps:$4 sm:$0xff]   ;;  %v13262_v32 = vld [vmem:[#allocation10 + $0x4cc] ss:$16 sps:$4 sm:$0xff]   ;;  %v13275_v12 = vld [vmem:[#allocation10 + $0x520] ss:$16 sps:$4 sm:$0xff]  }
 0x472   : > { %v13283_v33 = vld [vmem:[#allocation10 + $0x544] ss:$16 sps:$4 sm:$0xff]   ;;  %v13260_v14 = vld [vmem:[#allocation10 + $0x4c8] ss:$16 sps:$4 sm:$0xff]   ;;  %v13268_v15 = vld [vmem:[#allocation10 + $0x4ec] ss:$16 sps:$4 sm:$0xff]  }
 0x473   : > { %v13281_v13 = vld [vmem:[#allocation10 + $0x540] ss:$16 sps:$4 sm:$0xff]   ;;  %v13289_v16 = vld [vmem:[#allocation10 + $0x564] ss:$16 sps:$4 sm:$0xff]   ;;  %v13266_v17 = vld [vmem:[#allocation10 + $0x4e8] ss:$16 sps:$4 sm:$0xff]  }
 0x474   : > { %1722 = vmatpush1.bf16.msra.mxu1 %v16107_v29  ;;  %1951 = vmatpush1.bf16.msra.mxu0 %v16107_v29  ;;  %v13274_v18 = vld [vmem:[#allocation10 + $0x50c] ss:$16 sps:$4 sm:$0xff]   ;;  %v13287_v20 = vld [vmem:[#allocation10 + $0x560] ss:$16 sps:$4 sm:$0xff]   ;;  %v13295_v21 = vld [vmem:[#allocation10 + $0x584] ss:$16 sps:$4 sm:$0xff]  }
 0x475   : > { %1762 = vmatprep.subr.bf16.mxu1 %v16118_v51  ;;  %2807 = vmatprep.subr.bf16.mxu0 %v13223_v52  ;;  %v13272_v36 = vld [vmem:[#allocation10 + $0x508] ss:$16 sps:$4 sm:$0xff]   ;;  %v13280_v38 = vld [vmem:[#allocation10 + $0x52c] ss:$16 sps:$4 sm:$0xff]   ;;  %v13293_v4 = vld [vmem:[#allocation10 + $0x580] ss:$16 sps:$4 sm:$0xff]  }
 0x476   : > { %v13301_v39 = vld [vmem:[#allocation10 + $0x5a4] ss:$16 sps:$4 sm:$0xff]   ;;  %v13278_v25 = vld [vmem:[#allocation10 + $0x528] ss:$16 sps:$4 sm:$0xff]   ;;  %v13286_v42 = vld [vmem:[#allocation10 + $0x54c] ss:$16 sps:$4 sm:$0xff]  }
 0x477   : > { %11657 = vmatmul.mubr.msk.bf16.vlgmr.msra.gmra.mrb[16].mxu0 %vm1715_vm1, %v13219_v31  ;;  %11654 = vmatmul.mubr.msk.bf16.vlgmr.msra.gmra.mrb[12].mxu1 %vm1715_vm1, %v13220_v35  ;;  %v13299_v40 = vld [vmem:[#allocation10 + $0x5a0] ss:$16 sps:$4 sm:$0xff]   ;;  %v13307_v52 = vld [vmem:[#allocation10 + $0x5c4] ss:$16 sps:$4 sm:$0xff]   ;;  %vm4962_vm10 = vcmask 130048   ;;  %vm8137_vm13 = vcmask 1043456  }
 0x478   : > { %1763 = vmatpush1.bf16.msra.mxu1 %v16110_v7  ;;  %1794 = vmatprep.mubr.bf16.mxu1 %v15438_v34  ;;  %vm8133_vm14 = vcmask 64512  }
 0x479   : > { %1764 = vmatprep.subr.bf16.mxu1 %v16124_v5  ;;  %2808 = vmatpush1.bf16.msra.mxu0 %v13221_v37  ;;  %v13305_v37 = vld [vmem:[#allocation10 + $0x5c0] ss:$16 sps:$4 sm:$0xff]  }
 0x47a   : > { %2809 = vmatprep.subr.bf16.mxu0 %v13229_v41  ;;  %v13290_v41 = vld [vmem:[#allocation10 + $0x568] ss:$16 sps:$4 sm:$0xff]  }
 0x47c   : > { %1765 = vmatpush1.bf16.msra.mxu1 %v16120_v3 }
 0x47d   : > { %1991 = vmatprep.subr.bf16.mxu1 %v16118_v51  ;;  %2810 = vmatpush1.bf16.msra.mxu0 %v13227_v43  ;;  %v13298_v43 = vld [vmem:[#allocation10 + $0x58c] ss:$16 sps:$4 sm:$0xff]  }
 0x47e   : > { %2811 = vmatprep.subr.bf16.mxu0 %v13235_v45  ;;  %v13296_v45 = vld [vmem:[#allocation10 + $0x588] ss:$16 sps:$4 sm:$0xff]  }
 0x47f   : > { %11655 = vmatmul.mubr.msk.bf16.vlgmr.msra.gmra.mrb[16].mxu1 %vm1715_vm1, %v13220_v35  ;;  %v13292_v35 = vld [vmem:[#allocation10 + $0x56c] ss:$16 sps:$4 sm:$0xff]  }
 0x480   : > { %1992 = vmatpush1.bf16.msra.mxu1 %v16110_v7  ;;  %2023 = vmatprep.mubr.bf16.mxu1 %v15438_v34 }
 0x481   : > { %1993 = vmatprep.subr.bf16.mxu1 %v16124_v5  ;;  %2812 = vmatpush1.bf16.msra.mxu0 %v13233_v46  ;;  %v13304_v46 = vld [vmem:[#allocation10 + $0x5ac] ss:$16 sps:$4 sm:$0xff]  }
 0x482   : > { %2813 = vmatprep.subr.bf16.mxu0 %v13241_v47  ;;  %v13302_v47 = vld [vmem:[#allocation10 + $0x5a8] ss:$16 sps:$4 sm:$0xff]  }
 0x484   : > { %1994 = vmatpush1.bf16.msra.mxu1 %v16120_v3 }
 0x485   : > { %2893 = vmatprep.subr.bf16.mxu1 %v13226_v48  ;;  %2814 = vmatpush1.bf16.msra.mxu0 %v13239_v49  ;;  %v13310_v48 = vld [vmem:[#allocation10 + $0x5cc] ss:$16 sps:$4 sm:$0xff]   ;;  %v13308_v49 = vld [vmem:[#allocation10 + $0x5c8] ss:$16 sps:$4 sm:$0xff]  }
 0x486   : > { %2815 = vmatprep.subr.bf16.mxu0 %v13247_v50  ;;  %v13311_v50 = vld [vmem:[#allocation10 + $0x5e0] ss:$16 sps:$4 sm:$0xff]  }
 0x487   : > { %11658 = vmatmul.mubr.msk.bf16.vlgmr.msra.gmra.mrb[20].mxu1 %vm1715_vm1, %v13219_v31  ;;  %v13284_v31 = vld [vmem:[#allocation10 + $0x548] ss:$16 sps:$4 sm:$0xff]  }
 0x488   : > { %2894 = vmatpush1.bf16.msra.mxu1 %v13224_v53  ;;  %v13313_v53 = vld [vmem:[#allocation10 + $0x5e4] ss:$16 sps:$4 sm:$0xff]  }
 0x489   : > { %2895 = vmatprep.subr.bf16.mxu1 %v13232_v54  ;;  %2816 = vmatpush1.bf16.msra.mxu0 %v13245_v55  ;;  %v13314_v54 = vld [vmem:[#allocation10 + $0x5e8] ss:$16 sps:$4 sm:$0xff]   ;;  %v13316_v55 = vld [vmem:[#allocation10 + $0x5ec] ss:$16 sps:$4 sm:$0xff]  }
 0x48a   : > { %2817 = vmatprep.subr.bf16.mxu0 %v13253_v56  ;;  %v13319_v56 = vld [vmem:[#allocation10 + $0x604] ss:$16 sps:$4 sm:$0xff]  }
 0x48c   : > { %2896 = vmatpush1.bf16.msra.mxu1 %v13230_v57  ;;  %v13322_v57 = vld [vmem:[#allocation10 + $0x60c] ss:$16 sps:$4 sm:$0xff]  }
 0x48d   : > { %2897 = vmatprep.subr.bf16.mxu1 %v13238_v58  ;;  %2818 = vmatpush1.bf16.msra.mxu0 %v13251_v59 }
 0x48e   : > { %2819 = vmatprep.subr.bf16.mxu0 %v13259_v60 }
 0x490   : > { %2898 = vmatpush1.bf16.msra.mxu1 %v13236_v61 }
 0x491   : > { %2899 = vmatprep.subr.bf16.mxu1 %v13244_v62  ;;  %2820 = vmatpush1.bf16.msra.mxu0 %v13257_v63 }
 0x492   : > { %2821 = vmatprep.subr.bf16.mxu0 %v13265_v0 }
 0x494   : > { %2900 = vmatpush1.bf16.msra.mxu1 %v13242_v1 }
 0x495   : > { %2901 = vmatprep.subr.bf16.mxu1 %v13250_v2  ;;  %2822 = vmatpush1.bf16.msra.mxu0 %v13263_v6 }
 0x496   : > { %2823 = vmatprep.subr.bf16.mxu0 %v13271_v8 }
 0x498   : > { %2902 = vmatpush1.bf16.msra.mxu1 %v13248_v9  ;;  %v13317_v9 = vld [vmem:[#allocation10 + $0x600] ss:$16 sps:$4 sm:$0xff]  }
 0x499   : > { %2903 = vmatprep.subr.bf16.mxu1 %v13256_v28  ;;  %2824 = vmatpush1.bf16.msra.mxu0 %v13269_v30  ;;  %v13320_v28 = vld [vmem:[#allocation10 + $0x608] ss:$16 sps:$4 sm:$0xff]  }
 0x49a   : > { %2825 = vmatprep.subr.bf16.mxu0 %v13277_v10  ;;  %v13325_v10 = vld [vmem:[#allocation10 + $0x624] ss:$16 sps:$4 sm:$0xff]  }
 0x49c   : > { %2904 = vmatpush1.bf16.msra.mxu1 %v13254_v11  ;;  %v13328_v11 = vld [vmem:[#allocation10 + $0x62c] ss:$16 sps:$4 sm:$0xff]  }
 0x49d   : > { %2905 = vmatprep.subr.bf16.mxu1 %v13262_v32  ;;  %2826 = vmatpush1.bf16.msra.mxu0 %v13275_v12  ;;  %v13323_v32 = vld [vmem:[#allocation10 + $0x620] ss:$16 sps:$4 sm:$0xff]   ;;  %v13326_v12 = vld [vmem:[#allocation10 + $0x628] ss:$16 sps:$4 sm:$0xff]  }
 0x49e   : > { %2827 = vmatprep.subr.bf16.mxu0 %v13283_v33 }
 0x4a0   : > { %2906 = vmatpush1.bf16.msra.mxu1 %v13260_v14  ;;  %v13331_v14 = vld [vmem:[#allocation10 + $0x644] ss:$16 sps:$4 sm:$0xff]  }
 0x4a1   : > { %2907 = vmatprep.subr.bf16.mxu1 %v13268_v15  ;;  %2828 = vmatpush1.bf16.msra.mxu0 %v13281_v13  ;;  %v13334_v15 = vld [vmem:[#allocation10 + $0x64c] ss:$16 sps:$4 sm:$0xff]  }
 0x4a2   : > { %2829 = vmatprep.subr.bf16.mxu0 %v13289_v16 }
 0x4a4   : > { %2908 = vmatpush1.bf16.msra.mxu1 %v13266_v17 }
 0x4a5   : > { %2909 = vmatprep.subr.bf16.mxu1 %v13274_v18  ;;  %2830 = vmatpush1.bf16.msra.mxu0 %v13287_v20  ;;  %v13329_v20 = vld [vmem:[#allocation10 + $0x640] ss:$16 sps:$4 sm:$0xff]  }
 0x4a6   : > { %2831 = vmatprep.subr.bf16.mxu0 %v13295_v21  ;;  %v13332_v21 = vld [vmem:[#allocation10 + $0x648] ss:$16 sps:$4 sm:$0xff]  }
 0x4a8   : > { %2910 = vmatpush1.bf16.msra.mxu1 %v13272_v36 }
 0x4a9   : > { %2911 = vmatprep.subr.bf16.mxu1 %v13280_v38  ;;  %2832 = vmatpush1.bf16.msra.mxu0 %v13293_v4  ;;  %v13337_v38 = vld [vmem:[#allocation10 + $0x664] ss:$16 sps:$4 sm:$0xff]   ;;  %v13340_v4 = vld [vmem:[#allocation10 + $0x66c] ss:$16 sps:$4 sm:$0xff]  }
 0x4aa   : > { %2833 = vmatprep.subr.bf16.mxu0 %v13301_v39  ;;  %v13335_v39 = vld [vmem:[#allocation10 + $0x660] ss:$16 sps:$4 sm:$0xff]  }
 0x4ac   : > { %2912 = vmatpush1.bf16.msra.mxu1 %v13278_v25  ;;  %v13338_v25 = vld [vmem:[#allocation10 + $0x668] ss:$16 sps:$4 sm:$0xff]  }
 0x4ad   : > { %2913 = vmatprep.subr.bf16.mxu1 %v13286_v42  ;;  %2834 = vmatpush1.bf16.msra.mxu0 %v13299_v40  ;;  %v13343_v40 = vld [vmem:[#allocation10 + $0x684] ss:$16 sps:$4 sm:$0xff]  }
 0x4ae   : > { %2835 = vmatprep.subr.bf16.mxu0 %v13307_v52  ;;  %v13346_v52 = vld [vmem:[#allocation10 + $0x68c] ss:$16 sps:$4 sm:$0xff]  }
 0x4b0   : > { %2914 = vmatpush1.bf16.msra.mxu1 %v13284_v31 }
 0x4b1   : > { %2915 = vmatprep.subr.bf16.mxu1 %v13292_v35  ;;  %2836 = vmatpush1.bf16.msra.mxu0 %v13305_v37 }
 0x4b2   : > { %2837 = vmatprep.subr.bf16.mxu0 %v13313_v53  ;;  %v13355_v53 = vld [vmem:[#allocation10 + $0x6c4] ss:$16 sps:$4 sm:$0xff]  }
 0x4b4   : > { %2916 = vmatpush1.bf16.msra.mxu1 %v13290_v41 }
 0x4b5   : > { %2917 = vmatprep.subr.bf16.mxu1 %v13298_v43  ;;  %2838 = vmatpush1.bf16.msra.mxu0 %v13311_v50  ;;  %v13341_v43 = vld [vmem:[#allocation10 + $0x680] ss:$16 sps:$4 sm:$0xff]   ;;  %v13350_v50 = vld [vmem:[#allocation10 + $0x6a8] ss:$16 sps:$4 sm:$0xff]  }
 0x4b6   : > { %2850 = vmatprep.subr.bf16.mxu0 %v13319_v56  ;;  %v13356_v56 = vld [vmem:[#allocation10 + $0x6c8] ss:$16 sps:$4 sm:$0xff]  }
 0x4b8   : > { %2918 = vmatpush1.bf16.msra.mxu1 %v13296_v45  ;;  %v13344_v45 = vld [vmem:[#allocation10 + $0x688] ss:$16 sps:$4 sm:$0xff]  }
 0x4b9   : > { %2919 = vmatprep.subr.bf16.mxu1 %v13304_v46 }
 0x4bc   : > { %2920 = vmatpush1.bf16.msra.mxu1 %v13302_v47  ;;  %v13349_v47 = vld [vmem:[#allocation10 + $0x6a4] ss:$16 sps:$4 sm:$0xff]  }
 0x4bd   : > { %2921 = vmatprep.subr.bf16.mxu1 %v13310_v48  ;;  %v13352_v48 = vld [vmem:[#allocation10 + $0x6ac] ss:$16 sps:$4 sm:$0xff]  }
 0x4c0   : > { %2922 = vmatpush1.bf16.msra.mxu1 %v13308_v49  ;;  %v13347_v49 = vld [vmem:[#allocation10 + $0x6a0] ss:$16 sps:$4 sm:$0xff]  }
 0x4c1   : > { %2923 = vmatprep.subr.bf16.mxu1 %v13316_v55  ;;  %v13353_v55 = vld [vmem:[#allocation10 + $0x6c0] ss:$16 sps:$4 sm:$0xff]  }
 0x4c4   : > { %2924 = vmatpush1.bf16.msra.mxu1 %v13314_v54  ;;  %v13358_v54 = vld [vmem:[#allocation10 + $0x6cc] ss:$16 sps:$4 sm:$0xff]  }
 0x4c5   : > { %2936 = vmatprep.subr.bf16.mxu1 %v13322_v57  ;;  %v13361_v57 = vld [vmem:[#allocation10 + $0x6e4] ss:$16 sps:$4 sm:$0xff]  }
 0x54a   : > { %v1982_v58 = vpop.f32.mrb[16].mxu0  ;;  %v1753_v59 = vpop.f32.mrb[12].mxu1 }
 0x54b   : > { %v1984_v60 = vpop.f32.mrb[17].mxu0  ;;  %v1755_v61 = vpop.f32.mrb[13].mxu1 }
 0x54c   : > { %v1986_v62 = vpop.f32.mrb[18].mxu0  ;;  %v1757_v63 = vpop.f32.mrb[14].mxu1 }
 0x54d   : > { %v2034_v0 = vpack.c.bf16 %v1986_v62, %v1982_v58  ;;  %v1988_v1 = vpop.f32.mrb[19].mxu0  ;;  %v16144_v2 = vpack.c.bf16 %v1757_v63, %v1753_v59  ;;  %v1759_v6 = vpop.f32.mrb[15].mxu1  ;;  %v13364_v58 = vld [vmem:[#allocation10 + $0x6ec] ss:$16 sps:$4 sm:$0xff]   ;;  %v13359_v59 = vld [vmem:[#allocation10 + $0x6e0] ss:$16 sps:$4 sm:$0xff]  }
 0x54e   : > { %v2035_v8 = vpack.c.bf16 %v1988_v1, %v1984_v60  ;;  %v16146_v30 = vpack.c.bf16 %v1759_v6, %v1755_v61  ;;  %v13362_v60 = vld [vmem:[#allocation10 + $0x6e8] ss:$16 sps:$4 sm:$0xff]   ;;  %v13367_v61 = vld [vmem:[#allocation10 + $0x704] ss:$16 sps:$4 sm:$0xff]   ;;  %v13370_v62 = vld [vmem:[#allocation10 + $0x70c] ss:$16 sps:$4 sm:$0xff]  }
 0x54f   : > { %v13365_v63 = vld [vmem:[#allocation10 + $0x700] ss:$16 sps:$4 sm:$0xff]   ;;  %v13373_v1 = vld [vmem:[#allocation10 + $0x724] ss:$16 sps:$4 sm:$0xff]   ;;  %v13376_v6 = vld [vmem:[#allocation10 + $0x72c] ss:$16 sps:$4 sm:$0xff]  }
 0x550   : > { %2839 = vmatprep.mubr.bf16.mxu0 %v2035_v8  ;;  %2925 = vmatprep.mubr.bf16.mxu1 %v2035_v8  ;;  %v13371_v8 = vld [vmem:[#allocation10 + $0x720] ss:$16 sps:$4 sm:$0xff]  }
 0x551   : > { %2840 = vmatmul.mubr.bf16.vlgmr.msra.gmra.mrb[20].mxu0 %v2034_v0  ;;  %2926 = vmatmul.mubr.bf16.vlgmr.msra.gmra.mrb[24].mxu1 %v2034_v0  ;;  %v13368_v0 = vld [vmem:[#allocation10 + $0x708] ss:$16 sps:$4 sm:$0xff]  }
 0x552   : > { %2851 = vmatpush1.bf16.msra.mxu0 %v13317_v9  ;;  %2937 = vmatpush1.bf16.msra.mxu1 %v13320_v28  ;;  %v1796_v33 = vpop.f32.mrb[16].mxu1  ;;  %v13374_v9 = vld [vmem:[#allocation10 + $0x728] ss:$16 sps:$4 sm:$0xff]   ;;  %v13379_v28 = vld [vmem:[#allocation10 + $0x744] ss:$16 sps:$4 sm:$0xff]  }
 0x553   : > { %2852 = vmatprep.subr.bf16.mxu0 %v13325_v10  ;;  %2938 = vmatprep.subr.bf16.mxu1 %v13328_v11  ;;  %v1798_v13 = vpop.f32.mrb[17].mxu1  ;;  %v13382_v10 = vld [vmem:[#allocation10 + $0x74c] ss:$16 sps:$4 sm:$0xff]   ;;  %v13377_v11 = vld [vmem:[#allocation10 + $0x740] ss:$16 sps:$4 sm:$0xff]  }
 0x554   : > { %v1800_v16 = vpop.f32.mrb[18].mxu1 }
 0x555   : > { %v16148_v17 = vpack.c.bf16 %v1800_v16, %v1796_v33  ;;  %v1802_v18 = vpop.f32.mrb[19].mxu1  ;;  %v13388_v33 = vld [vmem:[#allocation10 + $0x76c] ss:$16 sps:$4 sm:$0xff]  }
 0x556   : > { %2853 = vmatpush1.bf16.msra.mxu0 %v13323_v32  ;;  %2939 = vmatpush1.bf16.msra.mxu1 %v13326_v12  ;;  %v16150_v36 = vpack.c.bf16 %v1802_v18, %v1798_v13  ;;  %v13380_v32 = vld [vmem:[#allocation10 + $0x748] ss:$16 sps:$4 sm:$0xff]   ;;  %v13385_v12 = vld [vmem:[#allocation10 + $0x764] ss:$16 sps:$4 sm:$0xff]   ;;  %v13394_v16 = vld [vmem:[#allocation10 + $0x78c] ss:$16 sps:$4 sm:$0xff]  }
 0x557   : > { %2854 = vmatprep.subr.bf16.mxu0 %v13331_v14  ;;  %2940 = vmatprep.subr.bf16.mxu1 %v13334_v15  ;;  %v13383_v14 = vld [vmem:[#allocation10 + $0x760] ss:$16 sps:$4 sm:$0xff]   ;;  %v13386_v15 = vld [vmem:[#allocation10 + $0x768] ss:$16 sps:$4 sm:$0xff]   ;;  %v13391_v13 = vld [vmem:[#allocation10 + $0x784] ss:$16 sps:$4 sm:$0xff]  }
 0x558   : > { %v13389_v18 = vld [vmem:[#allocation10 + $0x780] ss:$16 sps:$4 sm:$0xff]  }
 0x55a   : > { %2855 = vmatpush1.bf16.msra.mxu0 %v13329_v20  ;;  %2941 = vmatpush1.bf16.msra.mxu1 %v13332_v21  ;;  %v2025_v42 = vpop.f32.mrb[20].mxu1  ;;  %v13392_v20 = vld [vmem:[#allocation10 + $0x788] ss:$16 sps:$4 sm:$0xff]   ;;  %v13397_v21 = vld [vmem:[#allocation10 + $0x7a4] ss:$16 sps:$4 sm:$0xff]  }
 0x55b   : > { %2856 = vmatprep.subr.bf16.mxu0 %v13337_v38  ;;  %2942 = vmatprep.subr.bf16.mxu1 %v13340_v4  ;;  %v2027_v31 = vpop.f32.mrb[21].mxu1  ;;  %v13400_v38 = vld [vmem:[#allocation10 + $0x7ac] ss:$16 sps:$4 sm:$0xff]   ;;  %v13395_v4 = vld [vmem:[#allocation10 + $0x7a0] ss:$16 sps:$4 sm:$0xff]  }
 0x55c   : > { %v2029_v35 = vpop.f32.mrb[22].mxu1 }
 0x55d   : > { %v16152_v37 = vpack.c.bf16 %v2029_v35, %v2025_v42  ;;  %v2031_v41 = vpop.f32.mrb[23].mxu1  ;;  %v13406_v42 = vld [vmem:[#allocation10 + $0x7cc] ss:$16 sps:$4 sm:$0xff]  }
 0x55e   : > { %2857 = vmatpush1.bf16.msra.mxu0 %v13335_v39  ;;  %2943 = vmatpush1.bf16.msra.mxu1 %v13338_v25  ;;  %v2037_v46 = vpack.c.bf16 %v2031_v41, %v2027_v31  ;;  %v13398_v39 = vld [vmem:[#allocation10 + $0x7a8] ss:$16 sps:$4 sm:$0xff]   ;;  %v13403_v25 = vld [vmem:[#allocation10 + $0x7c4] ss:$16 sps:$4 sm:$0xff]   ;;  %v13412_v35 = vld [vmem:[#allocation10 + $0x7ec] ss:$16 sps:$4 sm:$0xff]  }
 0x55f   : > { %2858 = vmatprep.subr.bf16.mxu0 %v13343_v40  ;;  %2944 = vmatprep.subr.bf16.mxu1 %v13346_v52  ;;  %v13401_v40 = vld [vmem:[#allocation10 + $0x7c0] ss:$16 sps:$4 sm:$0xff]   ;;  %v13404_v52 = vld [vmem:[#allocation10 + $0x7c8] ss:$16 sps:$4 sm:$0xff]   ;;  %v13409_v31 = vld [vmem:[#allocation10 + $0x7e4] ss:$16 sps:$4 sm:$0xff]  }
 0x560   : > { %2882 = vmatprep.mubr.bf16.mxu0 %v2037_v46  ;;  %2968 = vmatprep.mubr.bf16.mxu1 %v2037_v46  ;;  %v13407_v41 = vld [vmem:[#allocation10 + $0x7e0] ss:$16 sps:$4 sm:$0xff]   ;;  %v13418_v46 = vld [vmem:[#allocation10 + $0xc] ss:$16 sps:$4 sm:$0xff]  }
 0x562   : > { %2859 = vmatpush1.bf16.msra.mxu0 %v13341_v43  ;;  %2945 = vmatpush1.bf16.msra.mxu1 %v13344_v45  ;;  %v13410_v43 = vld [vmem:[#allocation10 + $0x7e8] ss:$16 sps:$4 sm:$0xff]   ;;  %v13415_v45 = vld [vmem:[#allocation10 + $0x4] ss:$16 sps:$4 sm:$0xff]  }
 0x563   : > { %2860 = vmatprep.subr.bf16.mxu0 %v13349_v47  ;;  %2946 = vmatprep.subr.bf16.mxu1 %v13352_v48  ;;  %v13413_v47 = vld [vmem:[#allocation10] ss:$16 sps:$4 sm:$0xff]   ;;  %v13416_v48 = vld [vmem:[#allocation10 + $0x8] ss:$16 sps:$4 sm:$0xff]  }
 0x566   : > { %2861 = vmatpush1.bf16.msra.mxu0 %v13347_v49  ;;  %2947 = vmatpush1.bf16.msra.mxu1 %v13350_v50  ;;  %v13421_v49 = vld [vmem:[#allocation10 + $0x24] ss:$16 sps:$4 sm:$0xff]   ;;  %v13424_v50 = vld [vmem:[#allocation10 + $0x2c] ss:$16 sps:$4 sm:$0xff]  }
 0x567   : > { %2862 = vmatprep.subr.bf16.mxu0 %v13355_v53  ;;  %2948 = vmatprep.subr.bf16.mxu1 %v13358_v54  ;;  %v13419_v53 = vld [vmem:[#allocation10 + $0x20] ss:$16 sps:$4 sm:$0xff]   ;;  %v13422_v54 = vld [vmem:[#allocation10 + $0x28] ss:$16 sps:$4 sm:$0xff]  }
 0x56a   : > { %2863 = vmatpush1.bf16.msra.mxu0 %v13353_v55  ;;  %2949 = vmatpush1.bf16.msra.mxu1 %v13356_v56  ;;  %v13427_v55 = vld [vmem:[#allocation10 + $0x44] ss:$16 sps:$4 sm:$0xff]   ;;  %v13430_v56 = vld [vmem:[#allocation10 + $0x4c] ss:$16 sps:$4 sm:$0xff]  }
 0x56b   : > { %2864 = vmatprep.subr.bf16.mxu0 %v13361_v57  ;;  %2950 = vmatprep.subr.bf16.mxu1 %v13364_v58  ;;  %v13425_v57 = vld [vmem:[#allocation10 + $0x40] ss:$16 sps:$4 sm:$0xff]   ;;  %v13428_v58 = vld [vmem:[#allocation10 + $0x48] ss:$16 sps:$4 sm:$0xff]  }
 0x56e   : > { %2865 = vmatpush1.bf16.msra.mxu0 %v13359_v59  ;;  %2951 = vmatpush1.bf16.msra.mxu1 %v13362_v60  ;;  %v13433_v59 = vld [vmem:[#allocation10 + $0x64] ss:$16 sps:$4 sm:$0xff]   ;;  %v13431_v60 = vld [vmem:[#allocation10 + $0x60] ss:$16 sps:$4 sm:$0xff]  }
 0x56f   : > { %2866 = vmatprep.subr.bf16.mxu0 %v13367_v61  ;;  %2952 = vmatprep.subr.bf16.mxu1 %v13370_v62  ;;  %v13434_v61 = vld [vmem:[#allocation10 + $0x68] ss:$16 sps:$4 sm:$0xff]   ;;  %v13439_v62 = vld [vmem:[#allocation10 + $0x84] ss:$16 sps:$4 sm:$0xff]  }
 0x572   : > { %2867 = vmatpush1.bf16.msra.mxu0 %v13365_v63  ;;  %2953 = vmatpush1.bf16.msra.mxu1 %v13368_v0  ;;  %v13437_v63 = vld [vmem:[#allocation10 + $0x80] ss:$16 sps:$4 sm:$0xff]   ;;  %v13440_v0 = vld [vmem:[#allocation10 + $0x88] ss:$16 sps:$4 sm:$0xff]  }
 0x573   : > { %2868 = vmatprep.subr.bf16.mxu0 %v13373_v1  ;;  %2954 = vmatprep.subr.bf16.mxu1 %v13376_v6  ;;  %v13445_v1 = vld [vmem:[#allocation10 + $0xa4] ss:$16 sps:$4 sm:$0xff]   ;;  %v13448_v6 = vld [vmem:[#allocation10 + $0xac] ss:$16 sps:$4 sm:$0xff]  }
 0x576   : > { %2869 = vmatpush1.bf16.msra.mxu0 %v13371_v8  ;;  %2955 = vmatpush1.bf16.msra.mxu1 %v13374_v9  ;;  %v13443_v8 = vld [vmem:[#allocation10 + $0xa0] ss:$16 sps:$4 sm:$0xff]   ;;  %v13446_v9 = vld [vmem:[#allocation10 + $0xa8] ss:$16 sps:$4 sm:$0xff]  }
 0x577   : > { %2870 = vmatprep.subr.bf16.mxu0 %v13379_v28  ;;  %2956 = vmatprep.subr.bf16.mxu1 %v13382_v10  ;;  %v13451_v28 = vld [vmem:[#allocation10 + $0xc4] ss:$16 sps:$4 sm:$0xff]   ;;  %v13454_v10 = vld [vmem:[#allocation10 + $0xcc] ss:$16 sps:$4 sm:$0xff]  }
 0x57a   : > { %2871 = vmatpush1.bf16.msra.mxu0 %v13377_v11  ;;  %2957 = vmatpush1.bf16.msra.mxu1 %v13380_v32  ;;  %v13449_v11 = vld [vmem:[#allocation10 + $0xc0] ss:$16 sps:$4 sm:$0xff]   ;;  %v13452_v32 = vld [vmem:[#allocation10 + $0xc8] ss:$16 sps:$4 sm:$0xff]  }
 0x57b   : > { %2872 = vmatprep.subr.bf16.mxu0 %v13385_v12  ;;  %2958 = vmatprep.subr.bf16.mxu1 %v13388_v33  ;;  %v13457_v12 = vld [vmem:[#allocation10 + $0xe4] ss:$16 sps:$4 sm:$0xff]   ;;  %v13460_v33 = vld [vmem:[#allocation10 + $0xec] ss:$16 sps:$4 sm:$0xff]  }
 0x57e   : > { %2873 = vmatpush1.bf16.msra.mxu0 %v13383_v14  ;;  %2959 = vmatpush1.bf16.msra.mxu1 %v13386_v15  ;;  %v13455_v14 = vld [vmem:[#allocation10 + $0xe0] ss:$16 sps:$4 sm:$0xff]   ;;  %v13458_v15 = vld [vmem:[#allocation10 + $0xe8] ss:$16 sps:$4 sm:$0xff]  }
 0x57f   : > { %2874 = vmatprep.subr.bf16.mxu0 %v13391_v13  ;;  %2960 = vmatprep.subr.bf16.mxu1 %v13394_v16  ;;  %v13463_v13 = vld [vmem:[#allocation10 + $0x104] ss:$16 sps:$4 sm:$0xff]   ;;  %v13466_v16 = vld [vmem:[#allocation10 + $0x10c] ss:$16 sps:$4 sm:$0xff]  }
 0x582   : > { %2875 = vmatpush1.bf16.msra.mxu0 %v13389_v18  ;;  %2961 = vmatpush1.bf16.msra.mxu1 %v13392_v20  ;;  %v13461_v18 = vld [vmem:[#allocation10 + $0x100] ss:$16 sps:$4 sm:$0xff]   ;;  %v13464_v20 = vld [vmem:[#allocation10 + $0x108] ss:$16 sps:$4 sm:$0xff]  }
 0x583   : > { %2876 = vmatprep.subr.bf16.mxu0 %v13397_v21  ;;  %2962 = vmatprep.subr.bf16.mxu1 %v13400_v38  ;;  %v13469_v21 = vld [vmem:[#allocation10 + $0x124] ss:$16 sps:$4 sm:$0xff]   ;;  %v13472_v38 = vld [vmem:[#allocation10 + $0x12c] ss:$16 sps:$4 sm:$0xff]  }
 0x586   : > { %2877 = vmatpush1.bf16.msra.mxu0 %v13395_v4  ;;  %2963 = vmatpush1.bf16.msra.mxu1 %v13398_v39  ;;  %v13467_v4 = vld [vmem:[#allocation10 + $0x120] ss:$16 sps:$4 sm:$0xff]   ;;  %v13470_v39 = vld [vmem:[#allocation10 + $0x128] ss:$16 sps:$4 sm:$0xff]  }
 0x587   : > { %2878 = vmatprep.subr.bf16.mxu0 %v13403_v25  ;;  %2964 = vmatprep.subr.bf16.mxu1 %v13406_v42  ;;  %v13475_v25 = vld [vmem:[#allocation10 + $0x144] ss:$16 sps:$4 sm:$0xff]   ;;  %v13478_v42 = vld [vmem:[#allocation10 + $0x14c] ss:$16 sps:$4 sm:$0xff]  }
 0x58a   : > { %2879 = vmatpush1.bf16.msra.mxu0 %v13401_v40  ;;  %2965 = vmatpush1.bf16.msra.mxu1 %v13404_v52  ;;  %v13473_v40 = vld [vmem:[#allocation10 + $0x140] ss:$16 sps:$4 sm:$0xff]   ;;  %v13476_v52 = vld [vmem:[#allocation10 + $0x148] ss:$16 sps:$4 sm:$0xff]  }
 0x58b   : > { %2880 = vmatprep.subr.bf16.mxu0 %v13409_v31  ;;  %2966 = vmatprep.subr.bf16.mxu1 %v13412_v35  ;;  %v13481_v31 = vld [vmem:[#allocation10 + $0x164] ss:$16 sps:$4 sm:$0xff]   ;;  %v13484_v35 = vld [vmem:[#allocation10 + $0x16c] ss:$16 sps:$4 sm:$0xff]  }
 0x58e   : > { %2881 = vmatpush1.bf16.msra.mxu0 %v13407_v41  ;;  %2967 = vmatpush1.bf16.msra.mxu1 %v13410_v43  ;;  %v13479_v41 = vld [vmem:[#allocation10 + $0x160] ss:$16 sps:$4 sm:$0xff]   ;;  %v13482_v43 = vld [vmem:[#allocation10 + $0x168] ss:$16 sps:$4 sm:$0xff]  }
 0x58f   : > { %3619 = vmatprep.subr.bf16.mxu0 %v13415_v45  ;;  %3705 = vmatprep.subr.bf16.mxu1 %v13418_v46  ;;  %v13487_v45 = vld [vmem:[#allocation10 + $0x184] ss:$16 sps:$4 sm:$0xff]   ;;  %v13490_v46 = vld [vmem:[#allocation10 + $0x18c] ss:$16 sps:$4 sm:$0xff]  }
 0x591   : > { %2883 = vmatmul.mubr.bf16.vlgmr.msra.gmra.mrb[20].mxu0 %v16152_v37  ;;  %2969 = vmatmul.mubr.bf16.vlgmr.msra.gmra.mrb[24].mxu1 %v16152_v37  ;;  %v13436_v37 = vld [vmem:[#allocation10 + $0x6c] ss:$16 sps:$4 sm:$0xff]  }
 0x592   : > { %3620 = vmatpush1.bf16.msra.mxu0 %v13413_v47  ;;  %3651 = vmatprep.mubr.bf16.mxu0 %v16146_v30  ;;  %v13485_v47 = vld [vmem:[#allocation10 + $0x180] ss:$16 sps:$4 sm:$0xff]  }
 0x593   : > { %3706 = vmatpush1.bf16.msra.mxu1 %v13416_v48  ;;  %3737 = vmatprep.mubr.bf16.mxu1 %v16146_v30  ;;  %v13442_v30 = vld [vmem:[#allocation10 + $0x8c] ss:$16 sps:$4 sm:$0xff]   ;;  %v13488_v48 = vld [vmem:[#allocation10 + $0x188] ss:$16 sps:$4 sm:$0xff]  }
 0x594   : > { %3621 = vmatprep.subr.bf16.mxu0 %v13421_v49  ;;  %3707 = vmatprep.subr.bf16.mxu1 %v13424_v50  ;;  %v13493_v49 = vld [vmem:[#allocation10 + $0x1a4] ss:$16 sps:$4 sm:$0xff]   ;;  %v13496_v50 = vld [vmem:[#allocation10 + $0x1ac] ss:$16 sps:$4 sm:$0xff]  }
 0x596   : > { %3622 = vmatpush1.bf16.msra.mxu0 %v13419_v53  ;;  %v13491_v53 = vld [vmem:[#allocation10 + $0x1a0] ss:$16 sps:$4 sm:$0xff]  }
 0x597   : > { %3708 = vmatpush1.bf16.msra.mxu1 %v13422_v54  ;;  %3623 = vmatprep.subr.bf16.mxu0 %v13427_v55  ;;  %v13494_v54 = vld [vmem:[#allocation10 + $0x1a8] ss:$16 sps:$4 sm:$0xff]   ;;  %v13499_v55 = vld [vmem:[#allocation10 + $0x1c4] ss:$16 sps:$4 sm:$0xff]  }
 0x598   : > { %3709 = vmatprep.subr.bf16.mxu1 %v13430_v56  ;;  %v13502_v56 = vld [vmem:[#allocation10 + $0x1cc] ss:$16 sps:$4 sm:$0xff]  }
 0x59a   : > { %3624 = vmatpush1.bf16.msra.mxu0 %v13425_v57  ;;  %v13497_v57 = vld [vmem:[#allocation10 + $0x1c0] ss:$16 sps:$4 sm:$0xff]  }
 0x59b   : > { %3710 = vmatpush1.bf16.msra.mxu1 %v13428_v58  ;;  %3625 = vmatprep.subr.bf16.mxu0 %v13433_v59  ;;  %v13500_v58 = vld [vmem:[#allocation10 + $0x1c8] ss:$16 sps:$4 sm:$0xff]   ;;  %v13505_v59 = vld [vmem:[#allocation10 + $0x1e4] ss:$16 sps:$4 sm:$0xff]  }
 0x59c   : > { %3711 = vmatprep.subr.bf16.mxu1 %v13436_v37  ;;  %v13508_v37 = vld [vmem:[#allocation10 + $0x1ec] ss:$16 sps:$4 sm:$0xff]  }
 0x59e   : > { %3626 = vmatpush1.bf16.msra.mxu0 %v13431_v60  ;;  %v13503_v60 = vld [vmem:[#allocation10 + $0x1e0] ss:$16 sps:$4 sm:$0xff]  }
 0x59f   : > { %3712 = vmatpush1.bf16.msra.mxu1 %v13434_v61  ;;  %3627 = vmatprep.subr.bf16.mxu0 %v13439_v62  ;;  %v13506_v61 = vld [vmem:[#allocation10 + $0x1e8] ss:$16 sps:$4 sm:$0xff]   ;;  %v13511_v62 = vld [vmem:[#allocation10 + $0x204] ss:$16 sps:$4 sm:$0xff]  }
 0x5a0   : > { %3713 = vmatprep.subr.bf16.mxu1 %v13442_v30  ;;  %v13514_v30 = vld [vmem:[#allocation10 + $0x20c] ss:$16 sps:$4 sm:$0xff]  }
 0x5a2   : > { %3628 = vmatpush1.bf16.msra.mxu0 %v13437_v63  ;;  %v13509_v63 = vld [vmem:[#allocation10 + $0x200] ss:$16 sps:$4 sm:$0xff]  }
 0x5a3   : > { %3714 = vmatpush1.bf16.msra.mxu1 %v13440_v0  ;;  %3629 = vmatprep.subr.bf16.mxu0 %v13445_v1  ;;  %v13512_v0 = vld [vmem:[#allocation10 + $0x208] ss:$16 sps:$4 sm:$0xff]   ;;  %v13517_v1 = vld [vmem:[#allocation10 + $0x224] ss:$16 sps:$4 sm:$0xff]  }
 0x5a4   : > { %3715 = vmatprep.subr.bf16.mxu1 %v13448_v6  ;;  %v13520_v6 = vld [vmem:[#allocation10 + $0x22c] ss:$16 sps:$4 sm:$0xff]  }
 0x5a6   : > { %3630 = vmatpush1.bf16.msra.mxu0 %v13443_v8  ;;  %v13515_v8 = vld [vmem:[#allocation10 + $0x220] ss:$16 sps:$4 sm:$0xff]  }
 0x5a7   : > { %3716 = vmatpush1.bf16.msra.mxu1 %v13446_v9  ;;  %3631 = vmatprep.subr.bf16.mxu0 %v13451_v28  ;;  %v13518_v9 = vld [vmem:[#allocation10 + $0x228] ss:$16 sps:$4 sm:$0xff]   ;;  %v13523_v28 = vld [vmem:[#allocation10 + $0x244] ss:$16 sps:$4 sm:$0xff]  }
 0x5a8   : > { %3717 = vmatprep.subr.bf16.mxu1 %v13454_v10  ;;  %v13526_v10 = vld [vmem:[#allocation10 + $0x24c] ss:$16 sps:$4 sm:$0xff]  }
 0x5aa   : > { %3632 = vmatpush1.bf16.msra.mxu0 %v13449_v11  ;;  %v13521_v11 = vld [vmem:[#allocation10 + $0x240] ss:$16 sps:$4 sm:$0xff]  }
 0x5ab   : > { %3718 = vmatpush1.bf16.msra.mxu1 %v13452_v32  ;;  %3633 = vmatprep.subr.bf16.mxu0 %v13457_v12  ;;  %v13524_v32 = vld [vmem:[#allocation10 + $0x248] ss:$16 sps:$4 sm:$0xff]   ;;  %v13529_v12 = vld [vmem:[#allocation10 + $0x264] ss:$16 sps:$4 sm:$0xff]  }
 0x5ac   : > { %3719 = vmatprep.subr.bf16.mxu1 %v13460_v33  ;;  %v13527_v33 = vld [vmem:[#allocation10 + $0x260] ss:$16 sps:$4 sm:$0xff]  }
 0x5ae   : > { %3634 = vmatpush1.bf16.msra.mxu0 %v13455_v14  ;;  %v13530_v14 = vld [vmem:[#allocation10 + $0x268] ss:$16 sps:$4 sm:$0xff]  }
 0x5af   : > { %3720 = vmatpush1.bf16.msra.mxu1 %v13458_v15  ;;  %3635 = vmatprep.subr.bf16.mxu0 %v13463_v13  ;;  %v13535_v15 = vld [vmem:[#allocation10 + $0x284] ss:$16 sps:$4 sm:$0xff]   ;;  %v13538_v13 = vld [vmem:[#allocation10 + $0x28c] ss:$16 sps:$4 sm:$0xff]  }
 0x5b0   : > { %3721 = vmatprep.subr.bf16.mxu1 %v13466_v16  ;;  %v13536_v16 = vld [vmem:[#allocation10 + $0x288] ss:$16 sps:$4 sm:$0xff]  }
 0x5b2   : > { %3636 = vmatpush1.bf16.msra.mxu0 %v13461_v18  ;;  %v13541_v18 = vld [vmem:[#allocation10 + $0x2a4] ss:$16 sps:$4 sm:$0xff]  }
 0x5b3   : > { %3722 = vmatpush1.bf16.msra.mxu1 %v13464_v20  ;;  %3637 = vmatprep.subr.bf16.mxu0 %v13469_v21  ;;  %v13544_v20 = vld [vmem:[#allocation10 + $0x2ac] ss:$16 sps:$4 sm:$0xff]   ;;  %v13539_v21 = vld [vmem:[#allocation10 + $0x2a0] ss:$16 sps:$4 sm:$0xff]  }
 0x5b4   : > { %3723 = vmatprep.subr.bf16.mxu1 %v13472_v38  ;;  %v13542_v38 = vld [vmem:[#allocation10 + $0x2a8] ss:$16 sps:$4 sm:$0xff]  }
 0x5b6   : > { %3638 = vmatpush1.bf16.msra.mxu0 %v13467_v4  ;;  %v13547_v4 = vld [vmem:[#allocation10 + $0x2c4] ss:$16 sps:$4 sm:$0xff]  }
 0x5b7   : > { %3724 = vmatpush1.bf16.msra.mxu1 %v13470_v39  ;;  %3639 = vmatprep.subr.bf16.mxu0 %v13475_v25  ;;  %v13550_v39 = vld [vmem:[#allocation10 + $0x2cc] ss:$16 sps:$4 sm:$0xff]   ;;  %v13545_v25 = vld [vmem:[#allocation10 + $0x2c0] ss:$16 sps:$4 sm:$0xff]  }
 0x5b8   : > { %3725 = vmatprep.subr.bf16.mxu1 %v13478_v42  ;;  %v13548_v42 = vld [vmem:[#allocation10 + $0x2c8] ss:$16 sps:$4 sm:$0xff]  }
 0x5ba   : > { %3640 = vmatpush1.bf16.msra.mxu0 %v13473_v40  ;;  %v13553_v40 = vld [vmem:[#allocation10 + $0x2e4] ss:$16 sps:$4 sm:$0xff]  }
 0x5bb   : > { %3726 = vmatpush1.bf16.msra.mxu1 %v13476_v52  ;;  %3641 = vmatprep.subr.bf16.mxu0 %v13481_v31  ;;  %v13556_v52 = vld [vmem:[#allocation10 + $0x2ec] ss:$16 sps:$4 sm:$0xff]   ;;  %v13551_v31 = vld [vmem:[#allocation10 + $0x2e0] ss:$16 sps:$4 sm:$0xff]  }
 0x5bc   : > { %3727 = vmatprep.subr.bf16.mxu1 %v13484_v35  ;;  %v13554_v35 = vld [vmem:[#allocation10 + $0x2e8] ss:$16 sps:$4 sm:$0xff]  }
 0x5be   : > { %3642 = vmatpush1.bf16.msra.mxu0 %v13479_v41  ;;  %v13559_v41 = vld [vmem:[#allocation10 + $0x304] ss:$16 sps:$4 sm:$0xff]  }
 0x5bf   : > { %3728 = vmatpush1.bf16.msra.mxu1 %v13482_v43  ;;  %3643 = vmatprep.subr.bf16.mxu0 %v13487_v45  ;;  %v13562_v43 = vld [vmem:[#allocation10 + $0x30c] ss:$16 sps:$4 sm:$0xff]   ;;  %v13557_v45 = vld [vmem:[#allocation10 + $0x300] ss:$16 sps:$4 sm:$0xff]  }
 0x5c0   : > { %3729 = vmatprep.subr.bf16.mxu1 %v13490_v46  ;;  %v13560_v46 = vld [vmem:[#allocation10 + $0x308] ss:$16 sps:$4 sm:$0xff]  }
 0x5c2   : > { %3644 = vmatpush1.bf16.msra.mxu0 %v13485_v47  ;;  %v13565_v47 = vld [vmem:[#allocation10 + $0x324] ss:$16 sps:$4 sm:$0xff]  }
 0x5c3   : > { %3730 = vmatpush1.bf16.msra.mxu1 %v13488_v48  ;;  %3645 = vmatprep.subr.bf16.mxu0 %v13493_v49  ;;  %v13568_v48 = vld [vmem:[#allocation10 + $0x32c] ss:$16 sps:$4 sm:$0xff]   ;;  %v13563_v49 = vld [vmem:[#allocation10 + $0x320] ss:$16 sps:$4 sm:$0xff]  }
 0x5c4   : > { %3731 = vmatprep.subr.bf16.mxu1 %v13496_v50  ;;  %v13566_v50 = vld [vmem:[#allocation10 + $0x328] ss:$16 sps:$4 sm:$0xff]  }
 0x5c6   : > { %3646 = vmatpush1.bf16.msra.mxu0 %v13491_v53  ;;  %v13571_v53 = vld [vmem:[#allocation10 + $0x344] ss:$16 sps:$4 sm:$0xff]  }
 0x5c7   : > { %3732 = vmatpush1.bf16.msra.mxu1 %v13494_v54  ;;  %3647 = vmatprep.subr.bf16.mxu0 %v13499_v55  ;;  %v13574_v54 = vld [vmem:[#allocation10 + $0x34c] ss:$16 sps:$4 sm:$0xff]   ;;  %v13569_v55 = vld [vmem:[#allocation10 + $0x340] ss:$16 sps:$4 sm:$0xff]  }
 0x5c8   : > { %3733 = vmatprep.subr.bf16.mxu1 %v13502_v56  ;;  %v13572_v56 = vld [vmem:[#allocation10 + $0x348] ss:$16 sps:$4 sm:$0xff]  }
 0x5ca   : > { %3648 = vmatpush1.bf16.msra.mxu0 %v13497_v57  ;;  %v13577_v57 = vld [vmem:[#allocation10 + $0x364] ss:$16 sps:$4 sm:$0xff]  }
 0x5cb   : > { %3734 = vmatpush1.bf16.msra.mxu1 %v13500_v58  ;;  %3649 = vmatprep.subr.bf16.mxu0 %v13505_v59  ;;  %v13580_v58 = vld [vmem:[#allocation10 + $0x36c] ss:$16 sps:$4 sm:$0xff]   ;;  %v13575_v59 = vld [vmem:[#allocation10 + $0x360] ss:$16 sps:$4 sm:$0xff]  }
 0x5cc   : > { %3735 = vmatprep.subr.bf16.mxu1 %v13508_v37  ;;  %v13578_v37 = vld [vmem:[#allocation10 + $0x368] ss:$16 sps:$4 sm:$0xff]  }
 0x5ce   : > { %3650 = vmatpush1.bf16.msra.mxu0 %v13503_v60  ;;  %v13583_v60 = vld [vmem:[#allocation10 + $0x384] ss:$16 sps:$4 sm:$0xff]  }
 0x5cf   : > { %3736 = vmatpush1.bf16.msra.mxu1 %v13506_v61  ;;  %3662 = vmatprep.subr.bf16.mxu0 %v13511_v62  ;;  %v13586_v61 = vld [vmem:[#allocation10 + $0x38c] ss:$16 sps:$4 sm:$0xff]   ;;  %v13581_v62 = vld [vmem:[#allocation10 + $0x380] ss:$16 sps:$4 sm:$0xff]  }
 0x5d0   : > { %3748 = vmatprep.subr.bf16.mxu1 %v13514_v30  ;;  %v13584_v30 = vld [vmem:[#allocation10 + $0x388] ss:$16 sps:$4 sm:$0xff]  }
 0x5d1   : > { %3652 = vmatmul.mubr.bf16.vlgmr.msra.gmra.mrb[20].mxu0 %v16144_v2 }
 0x5d2   : > { %3738 = vmatmul.mubr.bf16.vlgmr.msra.gmra.mrb[24].mxu1 %v16144_v2  ;;  %3663 = vmatpush1.bf16.msra.mxu0 %v13509_v63  ;;  %v13532_v2 = vld [vmem:[#allocation10 + $0x26c] ss:$16 sps:$4 sm:$0xff]   ;;  %v13589_v63 = vld [vmem:[#allocation10 + $0x3a4] ss:$16 sps:$4 sm:$0xff]  }
 0x5d3   : > { %3694 = vmatprep.mubr.bf16.mxu0 %v16150_v36  ;;  %3749 = vmatpush1.bf16.msra.mxu1 %v13512_v0  ;;  %v13592_v0 = vld [vmem:[#allocation10 + $0x3ac] ss:$16 sps:$4 sm:$0xff]  }
 0x5d4   : > { %3780 = vmatprep.mubr.bf16.mxu1 %v16150_v36  ;;  %3664 = vmatprep.subr.bf16.mxu0 %v13517_v1  ;;  %v13533_v36 = vld [vmem:[#allocation10 + $0x280] ss:$16 sps:$4 sm:$0xff]  }
 0x5d5   : > { %3750 = vmatprep.subr.bf16.mxu1 %v13520_v6  ;;  %v13587_v1 = vld [vmem:[#allocation10 + $0x3a0] ss:$16 sps:$4 sm:$0xff]   ;;  %v13590_v6 = vld [vmem:[#allocation10 + $0x3a8] ss:$16 sps:$4 sm:$0xff]  }
 0x5d6   : > { %3665 = vmatpush1.bf16.msra.mxu0 %v13515_v8  ;;  %v13595_v8 = vld [vmem:[#allocation10 + $0x3c4] ss:$16 sps:$4 sm:$0xff]  }
 0x5d7   : > { %3751 = vmatpush1.bf16.msra.mxu1 %v13518_v9  ;;  %3666 = vmatprep.subr.bf16.mxu0 %v13523_v28  ;;  %v13598_v9 = vld [vmem:[#allocation10 + $0x3cc] ss:$16 sps:$4 sm:$0xff]   ;;  %v13593_v28 = vld [vmem:[#allocation10 + $0x3c0] ss:$16 sps:$4 sm:$0xff]  }
 0x5d8   : > { %3752 = vmatprep.subr.bf16.mxu1 %v13526_v10  ;;  %v13596_v10 = vld [vmem:[#allocation10 + $0x3c8] ss:$16 sps:$4 sm:$0xff]  }
 0x5da   : > { %3667 = vmatpush1.bf16.msra.mxu0 %v13521_v11  ;;  %v13601_v11 = vld [vmem:[#allocation10 + $0x3e4] ss:$16 sps:$4 sm:$0xff]  }
 0x5db   : > { %3753 = vmatpush1.bf16.msra.mxu1 %v13524_v32  ;;  %3668 = vmatprep.subr.bf16.mxu0 %v13529_v12  ;;  %v13604_v32 = vld [vmem:[#allocation10 + $0x3ec] ss:$16 sps:$4 sm:$0xff]   ;;  %v13599_v12 = vld [vmem:[#allocation10 + $0x3e0] ss:$16 sps:$4 sm:$0xff]  }
 0x5dc   : > { %3754 = vmatprep.subr.bf16.mxu1 %v13532_v2  ;;  %v13602_v2 = vld [vmem:[#allocation10 + $0x3e8] ss:$16 sps:$4 sm:$0xff]  }
 0x5de   : > { %3669 = vmatpush1.bf16.msra.mxu0 %v13527_v33  ;;  %v13608_v33 = vld [vmem:[#allocation10 + $0x804] ss:$16 sps:$4 sm:$0xff]  }
 0x5df   : > { %3755 = vmatpush1.bf16.msra.mxu1 %v13530_v14  ;;  %3670 = vmatprep.subr.bf16.mxu0 %v13535_v15  ;;  %v13611_v14 = vld [vmem:[#allocation10 + $0x80c] ss:$16 sps:$4 sm:$0xff]  }
 0x5e0   : > { %3756 = vmatprep.subr.bf16.mxu1 %v13538_v13  ;;  %v13605_v15 = vld [vmem:[#allocation9 + $0x10] sm:$0xff]   ;;  %v13618_v13 = vld [vmem:[#allocation10 + $0x840] ss:$16 sps:$4 sm:$0xff]  }
 0x5e2   : > { %3671 = vmatpush1.bf16.msra.mxu0 %v13533_v36  ;;  %v13626_v36 = vld [vmem:[#allocation10 + $0x864] ss:$16 sps:$4 sm:$0xff]  }
 0x5e3   : > { %3757 = vmatpush1.bf16.msra.mxu1 %v13536_v16  ;;  %3672 = vmatprep.subr.bf16.mxu0 %v13541_v18  ;;  %v13629_v16 = vld [vmem:[#allocation10 + $0x86c] ss:$16 sps:$4 sm:$0xff]   ;;  %v13624_v18 = vld [vmem:[#allocation10 + $0x860] ss:$16 sps:$4 sm:$0xff]  }
 0x5e4   : > { %3758 = vmatprep.subr.bf16.mxu1 %v13544_v20  ;;  %v13627_v20 = vld [vmem:[#allocation10 + $0x868] ss:$16 sps:$4 sm:$0xff]  }
 0x5e6   : > { %3673 = vmatpush1.bf16.msra.mxu0 %v13539_v21  ;;  %v13632_v21 = vld [vmem:[#allocation10 + $0x884] ss:$16 sps:$4 sm:$0xff]  }
 0x5e7   : > { %3759 = vmatpush1.bf16.msra.mxu1 %v13542_v38  ;;  %3674 = vmatprep.subr.bf16.mxu0 %v13547_v4  ;;  %v13635_v38 = vld [vmem:[#allocation10 + $0x88c] ss:$16 sps:$4 sm:$0xff]   ;;  %v13630_v4 = vld [vmem:[#allocation10 + $0x880] ss:$16 sps:$4 sm:$0xff]  }
 0x5e8   : > { %3760 = vmatprep.subr.bf16.mxu1 %v13550_v39  ;;  %v13633_v39 = vld [vmem:[#allocation10 + $0x888] ss:$16 sps:$4 sm:$0xff]  }
 0x5ea   : > { %3675 = vmatpush1.bf16.msra.mxu0 %v13545_v25  ;;  %v13638_v25 = vld [vmem:[#allocation10 + $0x8a4] ss:$16 sps:$4 sm:$0xff]  }
 0x5eb   : > { %3761 = vmatpush1.bf16.msra.mxu1 %v13548_v42  ;;  %3676 = vmatprep.subr.bf16.mxu0 %v13553_v40  ;;  %v13641_v42 = vld [vmem:[#allocation10 + $0x8ac] ss:$16 sps:$4 sm:$0xff]   ;;  %v13636_v40 = vld [vmem:[#allocation10 + $0x8a0] ss:$16 sps:$4 sm:$0xff]  }
 0x5ec   : > { %3762 = vmatprep.subr.bf16.mxu1 %v13556_v52  ;;  %v13639_v52 = vld [vmem:[#allocation10 + $0x8a8] ss:$16 sps:$4 sm:$0xff]  }
 0x5ee   : > { %3677 = vmatpush1.bf16.msra.mxu0 %v13551_v31  ;;  %v13644_v31 = vld [vmem:[#allocation10 + $0x8c4] ss:$16 sps:$4 sm:$0xff]  }
 0x5ef   : > { %3763 = vmatpush1.bf16.msra.mxu1 %v13554_v35  ;;  %3678 = vmatprep.subr.bf16.mxu0 %v13559_v41  ;;  %v13647_v35 = vld [vmem:[#allocation10 + $0x8cc] ss:$16 sps:$4 sm:$0xff]   ;;  %v13642_v41 = vld [vmem:[#allocation10 + $0x8c0] ss:$16 sps:$4 sm:$0xff]  }
 0x5f0   : > { %3764 = vmatprep.subr.bf16.mxu1 %v13562_v43  ;;  %v13645_v43 = vld [vmem:[#allocation10 + $0x8c8] ss:$16 sps:$4 sm:$0xff]  }
 0x5f2   : > { %3679 = vmatpush1.bf16.msra.mxu0 %v13557_v45  ;;  %v13650_v45 = vld [vmem:[#allocation10 + $0x8e4] ss:$16 sps:$4 sm:$0xff]  }
 0x5f3   : > { %3765 = vmatpush1.bf16.msra.mxu1 %v13560_v46  ;;  %3680 = vmatprep.subr.bf16.mxu0 %v13565_v47  ;;  %v13653_v46 = vld [vmem:[#allocation10 + $0x8ec] ss:$16 sps:$4 sm:$0xff]   ;;  %v13648_v47 = vld [vmem:[#allocation10 + $0x8e0] ss:$16 sps:$4 sm:$0xff]  }
 0x5f4   : > { %3766 = vmatprep.subr.bf16.mxu1 %v13568_v48  ;;  %v13651_v48 = vld [vmem:[#allocation10 + $0x8e8] ss:$16 sps:$4 sm:$0xff]  }
 0x5f6   : > { %3681 = vmatpush1.bf16.msra.mxu0 %v13563_v49  ;;  %v13656_v49 = vld [vmem:[#allocation10 + $0x904] ss:$16 sps:$4 sm:$0xff]  }
 0x5f7   : > { %3767 = vmatpush1.bf16.msra.mxu1 %v13566_v50  ;;  %3682 = vmatprep.subr.bf16.mxu0 %v13571_v53  ;;  %v13659_v50 = vld [vmem:[#allocation10 + $0x90c] ss:$16 sps:$4 sm:$0xff]   ;;  %v13654_v53 = vld [vmem:[#allocation10 + $0x900] ss:$16 sps:$4 sm:$0xff]  }
 0x5f8   : > { %3768 = vmatprep.subr.bf16.mxu1 %v13574_v54  ;;  %v13657_v54 = vld [vmem:[#allocation10 + $0x908] ss:$16 sps:$4 sm:$0xff]  }
 0x5fa   : > { %3683 = vmatpush1.bf16.msra.mxu0 %v13569_v55  ;;  %v13662_v55 = vld [vmem:[#allocation10 + $0x924] ss:$16 sps:$4 sm:$0xff]  }
 0x5fb   : > { %3769 = vmatpush1.bf16.msra.mxu1 %v13572_v56  ;;  %3684 = vmatprep.subr.bf16.mxu0 %v13577_v57  ;;  %v13665_v56 = vld [vmem:[#allocation10 + $0x92c] ss:$16 sps:$4 sm:$0xff]   ;;  %v13660_v57 = vld [vmem:[#allocation10 + $0x920] ss:$16 sps:$4 sm:$0xff]  }
 0x5fc   : > { %3770 = vmatprep.subr.bf16.mxu1 %v13580_v58  ;;  %v13663_v58 = vld [vmem:[#allocation10 + $0x928] ss:$16 sps:$4 sm:$0xff]  }
 0x5fe   : > { %3685 = vmatpush1.bf16.msra.mxu0 %v13575_v59  ;;  %v13668_v59 = vld [vmem:[#allocation10 + $0x944] ss:$16 sps:$4 sm:$0xff]  }
 0x5ff   : > { %3771 = vmatpush1.bf16.msra.mxu1 %v13578_v37  ;;  %3686 = vmatprep.subr.bf16.mxu0 %v13583_v60  ;;  %v13671_v37 = vld [vmem:[#allocation10 + $0x94c] ss:$16 sps:$4 sm:$0xff]   ;;  %v13666_v60 = vld [vmem:[#allocation10 + $0x940] ss:$16 sps:$4 sm:$0xff]  }
 0x600   : > { %3772 = vmatprep.subr.bf16.mxu1 %v13586_v61  ;;  %v13669_v61 = vld [vmem:[#allocation10 + $0x948] ss:$16 sps:$4 sm:$0xff]  }
 0x602   : > { %3687 = vmatpush1.bf16.msra.mxu0 %v13581_v62  ;;  %v13674_v62 = vld [vmem:[#allocation10 + $0x964] ss:$16 sps:$4 sm:$0xff]  }
 0x603   : > { %3773 = vmatpush1.bf16.msra.mxu1 %v13584_v30  ;;  %3688 = vmatprep.subr.bf16.mxu0 %v13589_v63  ;;  %v13677_v30 = vld [vmem:[#allocation10 + $0x96c] ss:$16 sps:$4 sm:$0xff]   ;;  %v13672_v63 = vld [vmem:[#allocation10 + $0x960] ss:$16 sps:$4 sm:$0xff]  }
 0x604   : > { %3774 = vmatprep.subr.bf16.mxu1 %v13592_v0  ;;  %v13675_v0 = vld [vmem:[#allocation10 + $0x968] ss:$16 sps:$4 sm:$0xff]  }
 0x606   : > { %3689 = vmatpush1.bf16.msra.mxu0 %v13587_v1  ;;  %v13680_v1 = vld [vmem:[#allocation10 + $0x984] ss:$16 sps:$4 sm:$0xff]  }
 0x607   : > { %3775 = vmatpush1.bf16.msra.mxu1 %v13590_v6  ;;  %3690 = vmatprep.subr.bf16.mxu0 %v13595_v8  ;;  %v13683_v6 = vld [vmem:[#allocation10 + $0x98c] ss:$16 sps:$4 sm:$0xff]   ;;  %v13678_v8 = vld [vmem:[#allocation10 + $0x980] ss:$16 sps:$4 sm:$0xff]  }
 0x608   : > { %3776 = vmatprep.subr.bf16.mxu1 %v13598_v9  ;;  %v13681_v9 = vld [vmem:[#allocation10 + $0x988] ss:$16 sps:$4 sm:$0xff]  }
 0x60a   : > { %3691 = vmatpush1.bf16.msra.mxu0 %v13593_v28  ;;  %v13686_v28 = vld [vmem:[#allocation10 + $0x9a4] ss:$16 sps:$4 sm:$0xff]  }
 0x60b   : > { %3777 = vmatpush1.bf16.msra.mxu1 %v13596_v10  ;;  %3692 = vmatprep.subr.bf16.mxu0 %v13601_v11  ;;  %v13689_v10 = vld [vmem:[#allocation10 + $0x9ac] ss:$16 sps:$4 sm:$0xff]   ;;  %v13684_v11 = vld [vmem:[#allocation10 + $0x9a0] ss:$16 sps:$4 sm:$0xff]  }
 0x60c   : > { %3778 = vmatprep.subr.bf16.mxu1 %v13604_v32  ;;  %v13687_v32 = vld [vmem:[#allocation10 + $0x9a8] ss:$16 sps:$4 sm:$0xff]  }
 0x60e   : > { %3693 = vmatpush1.bf16.msra.mxu0 %v13599_v12  ;;  %v13692_v12 = vld [vmem:[#allocation10 + $0x9c4] ss:$16 sps:$4 sm:$0xff]  }
 0x60f   : > { %3779 = vmatpush1.bf16.msra.mxu1 %v13602_v2  ;;  %3802 = vmatprep.subr.bf16.mxu0 %v16101_v22  ;;  %v13606_v22 = vld [vmem:[#allocation10 + $0x800] ss:$16 sps:$4 sm:$0xff]   ;;  %v13695_v2 = vld [vmem:[#allocation10 + $0x9cc] ss:$16 sps:$4 sm:$0xff]  }
 0x610   : > { %3845 = vmatprep.subr.bf16.mxu1 %v16118_v51  ;;  %v13614_v51 = vld [vmem:[#allocation10 + $0x824] ss:$16 sps:$4 sm:$0xff]  }
 0x611   : > { %3695 = vmatmul.mubr.bf16.vlgmr.msra.gmra.mrb[20].mxu0 %v16148_v17 }
 0x612   : > { %3781 = vmatmul.mubr.bf16.vlgmr.msra.gmra.mrb[24].mxu1 %v16148_v17  ;;  %3803 = vmatpush1.bf16.msra.mxu0 %v16095_v19  ;;  %v13609_v19 = vld [vmem:[#allocation10 + $0x808] ss:$16 sps:$4 sm:$0xff]   ;;  %v13620_v17 = vld [vmem:[#allocation10 + $0x844] ss:$16 sps:$4 sm:$0xff]  }
 0x613   : > { %3846 = vmatpush1.bf16.msra.mxu1 %v16110_v7  ;;  %3804 = vmatprep.subr.bf16.mxu0 %v16116_v44  ;;  %v13617_v7 = vld [vmem:[#allocation10 + $0x82c] ss:$16 sps:$4 sm:$0xff]   ;;  %v13612_v44 = vld [vmem:[#allocation10 + $0x820] ss:$16 sps:$4 sm:$0xff]  }
 0x614   : > { %3847 = vmatprep.subr.bf16.mxu1 %v16124_v5  ;;  %3834 = vmatprep.mubr.bf16.mxu0 %v15438_v34  ;;  %v13615_v5 = vld [vmem:[#allocation10 + $0x828] ss:$16 sps:$4 sm:$0xff]  }
 0x615   : > { %3877 = vmatprep.mubr.bf16.mxu1 %v15438_v34 }
 0x616   : > { %3805 = vmatpush1.bf16.msra.mxu0 %v16107_v29  ;;  %v13623_v29 = vld [vmem:[#allocation10 + $0x84c] ss:$16 sps:$4 sm:$0xff]  }
 0x617   : > { %3848 = vmatpush1.bf16.msra.mxu1 %v16120_v3  ;;  %4661 = vmatprep.subr.bf16.mxu0 %v13608_v33  ;;  %v13621_v3 = vld [vmem:[#allocation10 + $0x848] ss:$16 sps:$4 sm:$0xff]   ;;  %v13690_v33 = vld [vmem:[#allocation10 + $0x9c0] ss:$16 sps:$4 sm:$0xff]  }
 0x618   : > { %4747 = vmatprep.subr.bf16.mxu1 %v13611_v14  ;;  %v13693_v14 = vld [vmem:[#allocation10 + $0x9c8] ss:$16 sps:$4 sm:$0xff]  }
 0x619   : > { %11916 = vmatmul.mubr.msk.bf16.vlgmr.msra.gmra.mrb[24].mxu0 %vm1715_vm1, %v13605_v15 }
 0x61a   : > { %11917 = vmatmul.mubr.msk.bf16.vlgmr.msra.gmra.mrb[28].mxu1 %vm1715_vm1, %v13605_v15  ;;  %4662 = vmatpush1.bf16.msra.mxu0 %v13606_v22  ;;  %v13696_v15 = vld [vmem:[#allocation10 + $0x9e0] ss:$16 sps:$4 sm:$0xff]   ;;  %v13698_v22 = vld [vmem:[#allocation10 + $0x9e4] ss:$16 sps:$4 sm:$0xff]  }
 0x61b   : > { %4748 = vmatpush1.bf16.msra.mxu1 %v13609_v19  ;;  %4663 = vmatprep.subr.bf16.mxu0 %v13614_v51  ;;  %v13699_v19 = vld [vmem:[#allocation10 + $0x9e8] ss:$16 sps:$4 sm:$0xff]   ;;  %v13701_v51 = vld [vmem:[#allocation10 + $0x9ec] ss:$16 sps:$4 sm:$0xff]  }
 0x61c   : > { %4749 = vmatprep.subr.bf16.mxu1 %v13617_v7  ;;  %v13704_v7 = vld [vmem:[#allocation10 + $0xa04] ss:$16 sps:$4 sm:$0xff]  }
 0x61e   : > { %4664 = vmatpush1.bf16.msra.mxu0 %v13612_v44  ;;  %v13707_v44 = vld [vmem:[#allocation10 + $0xa0c] ss:$16 sps:$4 sm:$0xff]  }
 0x61f   : > { %4750 = vmatpush1.bf16.msra.mxu1 %v13615_v5  ;;  %4665 = vmatprep.subr.bf16.mxu0 %v13620_v17 }
 0x620   : > { %4751 = vmatprep.subr.bf16.mxu1 %v13623_v29 }
 0x622   : > { %4666 = vmatpush1.bf16.msra.mxu0 %v13618_v13 }
 0x623   : > { %4752 = vmatpush1.bf16.msra.mxu1 %v13621_v3  ;;  %4667 = vmatprep.subr.bf16.mxu0 %v13626_v36 }
 0x624   : > { %4753 = vmatprep.subr.bf16.mxu1 %v13629_v16 }
 0x626   : > { %4668 = vmatpush1.bf16.msra.mxu0 %v13624_v18 }
 0x627   : > { %4754 = vmatpush1.bf16.msra.mxu1 %v13627_v20  ;;  %4669 = vmatprep.subr.bf16.mxu0 %v13632_v21  ;;  %v13702_v21 = vld [vmem:[#allocation10 + $0xa00] ss:$16 sps:$4 sm:$0xff]  }
 0x628   : > { %4755 = vmatprep.subr.bf16.mxu1 %v13635_v38  ;;  %v13705_v38 = vld [vmem:[#allocation10 + $0xa08] ss:$16 sps:$4 sm:$0xff]  }
 0x62a   : > { %4670 = vmatpush1.bf16.msra.mxu0 %v13630_v4 }
 0x62b   : > { %4756 = vmatpush1.bf16.msra.mxu1 %v13633_v39  ;;  %4671 = vmatprep.subr.bf16.mxu0 %v13638_v25  ;;  %v13710_v25 = vld [vmem:[#allocation10 + $0xa24] ss:$16 sps:$4 sm:$0xff]  }
 0x62c   : > { %4757 = vmatprep.subr.bf16.mxu1 %v13641_v42  ;;  %v13713_v42 = vld [vmem:[#allocation10 + $0xa2c] ss:$16 sps:$4 sm:$0xff]  }
 0x62e   : > { %4672 = vmatpush1.bf16.msra.mxu0 %v13636_v40 }
 0x62f   : > { %4758 = vmatpush1.bf16.msra.mxu1 %v13639_v52  ;;  %4673 = vmatprep.subr.bf16.mxu0 %v13644_v31  ;;  %v13708_v52 = vld [vmem:[#allocation10 + $0xa20] ss:$16 sps:$4 sm:$0xff]   ;;  %v13711_v31 = vld [vmem:[#allocation10 + $0xa28] ss:$16 sps:$4 sm:$0xff]  }
 0x630   : > { %4759 = vmatprep.subr.bf16.mxu1 %v13647_v35  ;;  %v13716_v35 = vld [vmem:[#allocation10 + $0xa44] ss:$16 sps:$4 sm:$0xff]  }
 0x632   : > { %4674 = vmatpush1.bf16.msra.mxu0 %v13642_v41  ;;  %v13719_v41 = vld [vmem:[#allocation10 + $0xa4c] ss:$16 sps:$4 sm:$0xff]  }
 0x633   : > { %4760 = vmatpush1.bf16.msra.mxu1 %v13645_v43  ;;  %4675 = vmatprep.subr.bf16.mxu0 %v13650_v45  ;;  %v13714_v43 = vld [vmem:[#allocation10 + $0xa40] ss:$16 sps:$4 sm:$0xff]   ;;  %v13717_v45 = vld [vmem:[#allocation10 + $0xa48] ss:$16 sps:$4 sm:$0xff]  }
 0x634   : > { %4761 = vmatprep.subr.bf16.mxu1 %v13653_v46  ;;  %v13722_v46 = vld [vmem:[#allocation10 + $0xa64] ss:$16 sps:$4 sm:$0xff]  }
 0x636   : > { %4676 = vmatpush1.bf16.msra.mxu0 %v13648_v47  ;;  %v13725_v47 = vld [vmem:[#allocation10 + $0xa6c] ss:$16 sps:$4 sm:$0xff]  }
 0x637   : > { %4762 = vmatpush1.bf16.msra.mxu1 %v13651_v48  ;;  %4677 = vmatprep.subr.bf16.mxu0 %v13656_v49  ;;  %v13720_v48 = vld [vmem:[#allocation10 + $0xa60] ss:$16 sps:$4 sm:$0xff]   ;;  %v13723_v49 = vld [vmem:[#allocation10 + $0xa68] ss:$16 sps:$4 sm:$0xff]  }
 0x638   : > { %4763 = vmatprep.subr.bf16.mxu1 %v13659_v50  ;;  %v13728_v50 = vld [vmem:[#allocation10 + $0xa84] ss:$16 sps:$4 sm:$0xff]  }
 0x63a   : > { %4678 = vmatpush1.bf16.msra.mxu0 %v13654_v53  ;;  %v13731_v53 = vld [vmem:[#allocation10 + $0xa8c] ss:$16 sps:$4 sm:$0xff]  }
 0x63b   : > { %4764 = vmatpush1.bf16.msra.mxu1 %v13657_v54  ;;  %4679 = vmatprep.subr.bf16.mxu0 %v13662_v55  ;;  %v13726_v54 = vld [vmem:[#allocation10 + $0xa80] ss:$16 sps:$4 sm:$0xff]   ;;  %v13729_v55 = vld [vmem:[#allocation10 + $0xa88] ss:$16 sps:$4 sm:$0xff]  }
 0x63c   : > { %4765 = vmatprep.subr.bf16.mxu1 %v13665_v56  ;;  %v13734_v56 = vld [vmem:[#allocation10 + $0xaa4] ss:$16 sps:$4 sm:$0xff]  }
 0x63e   : > { %4680 = vmatpush1.bf16.msra.mxu0 %v13660_v57  ;;  %v13737_v57 = vld [vmem:[#allocation10 + $0xaac] ss:$16 sps:$4 sm:$0xff]  }
 0x63f   : > { %4766 = vmatpush1.bf16.msra.mxu1 %v13663_v58  ;;  %4681 = vmatprep.subr.bf16.mxu0 %v13668_v59  ;;  %v13732_v58 = vld [vmem:[#allocation10 + $0xaa0] ss:$16 sps:$4 sm:$0xff]   ;;  %v13735_v59 = vld [vmem:[#allocation10 + $0xaa8] ss:$16 sps:$4 sm:$0xff]  }
 0x640   : > { %4767 = vmatprep.subr.bf16.mxu1 %v13671_v37  ;;  %v13740_v37 = vld [vmem:[#allocation10 + $0xac4] ss:$16 sps:$4 sm:$0xff]  }
 0x642   : > { %4682 = vmatpush1.bf16.msra.mxu0 %v13666_v60  ;;  %v13743_v60 = vld [vmem:[#allocation10 + $0xacc] ss:$16 sps:$4 sm:$0xff]  }
 0x643   : > { %4768 = vmatpush1.bf16.msra.mxu1 %v13669_v61  ;;  %4683 = vmatprep.subr.bf16.mxu0 %v13674_v62  ;;  %v13738_v61 = vld [vmem:[#allocation10 + $0xac0] ss:$16 sps:$4 sm:$0xff]   ;;  %v13741_v62 = vld [vmem:[#allocation10 + $0xac8] ss:$16 sps:$4 sm:$0xff]  }
 0x644   : > { %4769 = vmatprep.subr.bf16.mxu1 %v13677_v30  ;;  %v13746_v30 = vld [vmem:[#allocation10 + $0xae4] ss:$16 sps:$4 sm:$0xff]  }
 0x646   : > { %4684 = vmatpush1.bf16.msra.mxu0 %v13672_v63  ;;  %v13749_v63 = vld [vmem:[#allocation10 + $0xaec] ss:$16 sps:$4 sm:$0xff]  }
 0x647   : > { %4770 = vmatpush1.bf16.msra.mxu1 %v13675_v0  ;;  %4685 = vmatprep.subr.bf16.mxu0 %v13680_v1  ;;  %v13744_v0 = vld [vmem:[#allocation10 + $0xae0] ss:$16 sps:$4 sm:$0xff]   ;;  %v13747_v1 = vld [vmem:[#allocation10 + $0xae8] ss:$16 sps:$4 sm:$0xff]  }
 0x648   : > { %4771 = vmatprep.subr.bf16.mxu1 %v13683_v6  ;;  %v13752_v6 = vld [vmem:[#allocation10 + $0xb04] ss:$16 sps:$4 sm:$0xff]  }
 0x64a   : > { %4686 = vmatpush1.bf16.msra.mxu0 %v13678_v8  ;;  %v13755_v8 = vld [vmem:[#allocation10 + $0xb0c] ss:$16 sps:$4 sm:$0xff]  }
 0x64b   : > { %4772 = vmatpush1.bf16.msra.mxu1 %v13681_v9  ;;  %4687 = vmatprep.subr.bf16.mxu0 %v13686_v28  ;;  %v13750_v9 = vld [vmem:[#allocation10 + $0xb00] ss:$16 sps:$4 sm:$0xff]   ;;  %v13753_v28 = vld [vmem:[#allocation10 + $0xb08] ss:$16 sps:$4 sm:$0xff]  }
 0x64c   : > { %4773 = vmatprep.subr.bf16.mxu1 %v13689_v10  ;;  %v13758_v10 = vld [vmem:[#allocation10 + $0xb24] ss:$16 sps:$4 sm:$0xff]  }
 0x64e   : > { %4688 = vmatpush1.bf16.msra.mxu0 %v13684_v11  ;;  %v13761_v11 = vld [vmem:[#allocation10 + $0xb2c] ss:$16 sps:$4 sm:$0xff]  }
 0x64f   : > { %4774 = vmatpush1.bf16.msra.mxu1 %v13687_v32  ;;  %4689 = vmatprep.subr.bf16.mxu0 %v13692_v12  ;;  %v13756_v32 = vld [vmem:[#allocation10 + $0xb20] ss:$16 sps:$4 sm:$0xff]   ;;  %v13759_v12 = vld [vmem:[#allocation10 + $0xb28] ss:$16 sps:$4 sm:$0xff]  }
 0x650   : > { %4775 = vmatprep.subr.bf16.mxu1 %v13695_v2  ;;  %v13764_v2 = vld [vmem:[#allocation10 + $0xb44] ss:$16 sps:$4 sm:$0xff]  }
 0x652   : > { %4690 = vmatpush1.bf16.msra.mxu0 %v13690_v33  ;;  %v13767_v33 = vld [vmem:[#allocation10 + $0xb4c] ss:$16 sps:$4 sm:$0xff]  }
 0x653   : > { %4776 = vmatpush1.bf16.msra.mxu1 %v13693_v14  ;;  %4691 = vmatprep.subr.bf16.mxu0 %v13698_v22  ;;  %v13762_v14 = vld [vmem:[#allocation10 + $0xb40] ss:$16 sps:$4 sm:$0xff]   ;;  %v13770_v22 = vld [vmem:[#allocation10 + $0xb64] ss:$16 sps:$4 sm:$0xff]  }
 0x654   : > { %4777 = vmatprep.subr.bf16.mxu1 %v13701_v51  ;;  %v13768_v51 = vld [vmem:[#allocation10 + $0xb60] ss:$16 sps:$4 sm:$0xff]  }
 0x656   : > { %4692 = vmatpush1.bf16.msra.mxu0 %v13696_v15  ;;  %v13765_v15 = vld [vmem:[#allocation10 + $0xb48] ss:$16 sps:$4 sm:$0xff]  }
 0x657   : > { %4778 = vmatpush1.bf16.msra.mxu1 %v13699_v19  ;;  %4704 = vmatprep.subr.bf16.mxu0 %v13704_v7  ;;  %v13773_v19 = vld [vmem:[#allocation10 + $0xb6c] ss:$16 sps:$4 sm:$0xff]   ;;  %v13771_v7 = vld [vmem:[#allocation10 + $0xb68] ss:$16 sps:$4 sm:$0xff]  }
 0x658   : > { %4790 = vmatprep.subr.bf16.mxu1 %v13707_v44  ;;  %v13776_v44 = vld [vmem:[#allocation10 + $0xb84] ss:$16 sps:$4 sm:$0xff]  }
 0x6ec   : > { %v3836_v5 = vpop.f32.mrb[24].mxu0 }
 0x6ed   : > { %v3838_v17 = vpop.f32.mrb[25].mxu0  ;;  %v3879_v29 = vpop.f32.mrb[28].mxu1 }
 0x6ee   : > { %v3840_v13 = vpop.f32.mrb[26].mxu0  ;;  %v3881_v3 = vpop.f32.mrb[29].mxu1 }
 0x6ef   : > { %v3888_v36 = vpack.c.bf16 %v3840_v13, %v3836_v5  ;;  %v3842_v16 = vpop.f32.mrb[27].mxu0  ;;  %v3883_v18 = vpop.f32.mrb[30].mxu1  ;;  %v13779_v5 = vld [vmem:[#allocation10 + $0xb8c] ss:$16 sps:$4 sm:$0xff]   ;;  %v13782_v13 = vld [vmem:[#allocation10 + $0xba4] ss:$16 sps:$4 sm:$0xff]  }
 0x6f0   : > { %v3889_v20 = vpack.c.bf16 %v3842_v16, %v3838_v17  ;;  %v16176_v4 = vpack.c.bf16 %v3883_v18, %v3879_v29  ;;  %v3885_v39 = vpop.f32.mrb[31].mxu1  ;;  %v13774_v17 = vld [vmem:[#allocation10 + $0xb80] ss:$16 sps:$4 sm:$0xff]   ;;  %v13777_v29 = vld [vmem:[#allocation10 + $0xb88] ss:$16 sps:$4 sm:$0xff]  }
 0x6f1   : > { %v3891_v40 = vpack.c.bf16 %v3885_v39, %v3881_v3  ;;  %v13785_v3 = vld [vmem:[#allocation10 + $0xbac] ss:$16 sps:$4 sm:$0xff]   ;;  %v13783_v16 = vld [vmem:[#allocation10 + $0xba8] ss:$16 sps:$4 sm:$0xff]   ;;  %v13788_v18 = vld [vmem:[#allocation10 + $0xbc4] ss:$16 sps:$4 sm:$0xff]  }
 0x6f2   : > { %4693 = vmatprep.mubr.bf16.mxu0 %v3889_v20  ;;  %4779 = vmatprep.mubr.bf16.mxu1 %v3889_v20  ;;  %v13791_v20 = vld [vmem:[#allocation10 + $0xbcc] ss:$16 sps:$4 sm:$0xff]   ;;  %v13794_v39 = vld [vmem:[#allocation10 + $0xbe4] ss:$16 sps:$4 sm:$0xff]  }
 0x6f3   : > { %4694 = vmatmul.mubr.bf16.vlgmr.msra.gmra.mrb[20].mxu0 %v3888_v36  ;;  %4780 = vmatmul.mubr.bf16.vlgmr.msra.gmra.mrb[24].mxu1 %v3888_v36  ;;  %v13780_v36 = vld [vmem:[#allocation10 + $0xba0] ss:$16 sps:$4 sm:$0xff]  }
 0x6f4   : > { %4705 = vmatpush1.bf16.msra.mxu0 %v13702_v21  ;;  %4791 = vmatpush1.bf16.msra.mxu1 %v13705_v38  ;;  %v13786_v21 = vld [vmem:[#allocation10 + $0xbc0] ss:$16 sps:$4 sm:$0xff]   ;;  %v13789_v38 = vld [vmem:[#allocation10 + $0xbc8] ss:$16 sps:$4 sm:$0xff]  }
 0x6f5   : > { %4706 = vmatprep.subr.bf16.mxu0 %v13710_v25  ;;  %4792 = vmatprep.subr.bf16.mxu1 %v13713_v42  ;;  %v13797_v25 = vld [vmem:[#allocation10 + $0xbec] ss:$16 sps:$4 sm:$0xff]   ;;  %v13792_v42 = vld [vmem:[#allocation10 + $0xbe0] ss:$16 sps:$4 sm:$0xff]  }
 0x6f6   : > { %4736 = vmatprep.mubr.bf16.mxu0 %v3891_v40  ;;  %4822 = vmatprep.mubr.bf16.mxu1 %v3891_v40  ;;  %v13795_v40 = vld [vmem:[#allocation10 + $0xbe8] ss:$16 sps:$4 sm:$0xff]  }
 0x6f8   : > { %4707 = vmatpush1.bf16.msra.mxu0 %v13708_v52  ;;  %4793 = vmatpush1.bf16.msra.mxu1 %v13711_v31  ;;  %v4841_v52 = vld [vmem:[#allocation12] ss:$8 sm:$0xf] }
 0x6f9   : > { %4708 = vmatprep.subr.bf16.mxu0 %v13716_v35  ;;  %4794 = vmatprep.subr.bf16.mxu1 %v13719_v41  ;;  %v4846_v31 = vrot.slane %v4841_v52, %v16002_v23  ;;  %v4854_v35 = vrot.slane %v4841_v52, %v16004_v24  ;;  %v4850_v41 = vrot.slane %v4841_v52, %v16006_v26 }
 0x6fc   : > { %4709 = vmatpush1.bf16.msra.mxu0 %v13714_v43  ;;  %4795 = vmatpush1.bf16.msra.mxu1 %v13717_v45  ;;  %v4858_v43 = vrot.slane %v4841_v52, %v16008_v27  ;;  %v4896_v45 = vld [vmem:[#allocation12 + $0x1] ss:$8 sm:$0xf] }
 0x6fd   : > { %4710 = vmatprep.subr.bf16.mxu0 %v13722_v46  ;;  %4796 = vmatprep.subr.bf16.mxu1 %v13725_v47 }
 0x700   : > { %4711 = vmatpush1.bf16.msra.mxu0 %v13720_v48  ;;  %4797 = vmatpush1.bf16.msra.mxu1 %v13723_v49  ;;  %v4927_v49 = vld [vmem:[#allocation12 + $0x2] ss:$8 sm:$0xf] }
 0x701   : > { %4712 = vmatprep.subr.bf16.mxu0 %v13728_v50  ;;  %4798 = vmatprep.subr.bf16.mxu1 %v13731_v53 }
 0x704   : > { %4713 = vmatpush1.bf16.msra.mxu0 %v13726_v54  ;;  %4799 = vmatpush1.bf16.msra.mxu1 %v13729_v55  ;;  %v4901_v54 = vrot.slane %v4896_v45, %v16002_v23 }
 0x705   : > { %4714 = vmatprep.subr.bf16.mxu0 %v13734_v56  ;;  %4800 = vmatprep.subr.bf16.mxu1 %v13737_v57 }
 0x708   : > { %4715 = vmatpush1.bf16.msra.mxu0 %v13732_v58  ;;  %4801 = vmatpush1.bf16.msra.mxu1 %v13735_v59 }
 0x709   : > { %4716 = vmatprep.subr.bf16.mxu0 %v13740_v37  ;;  %4802 = vmatprep.subr.bf16.mxu1 %v13743_v60  ;;  %v4932_v60 = vrot.slane %v4927_v49, %v16002_v23 }
 0x70c   : > { %4717 = vmatpush1.bf16.msra.mxu0 %v13738_v61  ;;  %4803 = vmatpush1.bf16.msra.mxu1 %v13741_v62  ;;  %v4909_v61 = vrot.slane %v4896_v45, %v16004_v24  ;;  %v4940_v62 = vrot.slane %v4927_v49, %v16004_v24 }
 0x70d   : > { %4718 = vmatprep.subr.bf16.mxu0 %v13746_v30  ;;  %4804 = vmatprep.subr.bf16.mxu1 %v13749_v63 }
 0x710   : > { %4719 = vmatpush1.bf16.msra.mxu0 %v13744_v0  ;;  %4805 = vmatpush1.bf16.msra.mxu1 %v13747_v1 }
 0x711   : > { %4720 = vmatprep.subr.bf16.mxu0 %v13752_v6  ;;  %4806 = vmatprep.subr.bf16.mxu1 %v13755_v8 }
 0x714   : > { %4721 = vmatpush1.bf16.msra.mxu0 %v13750_v9  ;;  %4807 = vmatpush1.bf16.msra.mxu1 %v13753_v28  ;;  %v4905_v28 = vrot.slane %v4896_v45, %v16006_v26 }
 0x715   : > { %4722 = vmatprep.subr.bf16.mxu0 %v13758_v10  ;;  %4808 = vmatprep.subr.bf16.mxu1 %v13761_v11  ;;  %v4913_v11 = vrot.slane %v4896_v45, %v16008_v27 }
 0x718   : > { %4723 = vmatpush1.bf16.msra.mxu0 %v13756_v32  ;;  %4809 = vmatpush1.bf16.msra.mxu1 %v13759_v12  ;;  %v4936_v12 = vrot.slane %v4927_v49, %v16006_v26 }
 0x719   : > { %4724 = vmatprep.subr.bf16.mxu0 %v13764_v2  ;;  %4810 = vmatprep.subr.bf16.mxu1 %v13767_v33 }
 0x71c   : > { %4725 = vmatpush1.bf16.msra.mxu0 %v13762_v14  ;;  %4811 = vmatpush1.bf16.msra.mxu1 %v13765_v15 }
 0x71d   : > { %4726 = vmatprep.subr.bf16.mxu0 %v13770_v22  ;;  %4812 = vmatprep.subr.bf16.mxu1 %v13773_v19 }
 0x720   : > { %4727 = vmatpush1.bf16.msra.mxu0 %v13768_v51  ;;  %4813 = vmatpush1.bf16.msra.mxu1 %v13771_v7 }
 0x721   : > { %4728 = vmatprep.subr.bf16.mxu0 %v13776_v44  ;;  %4814 = vmatprep.subr.bf16.mxu1 %v13779_v5 }
 0x724   : > { %4729 = vmatpush1.bf16.msra.mxu0 %v13774_v17  ;;  %4815 = vmatpush1.bf16.msra.mxu1 %v13777_v29  ;;  %v4944_v17 = vrot.slane %v4927_v49, %v16008_v27  ;;  %v13800_v49 = vld [vmem:[#allocation15 + $0x404] ss:$16 sps:$4 sm:$0xff]  }
 0x725   : > { %4730 = vmatprep.subr.bf16.mxu0 %v13782_v13  ;;  %4816 = vmatprep.subr.bf16.mxu1 %v13785_v3 }
 0x728   : > { %4731 = vmatpush1.bf16.msra.mxu0 %v13780_v36  ;;  %4817 = vmatpush1.bf16.msra.mxu1 %v13783_v16 }
 0x729   : > { %4732 = vmatprep.subr.bf16.mxu0 %v13788_v18  ;;  %4818 = vmatprep.subr.bf16.mxu1 %v13791_v20 }
 0x72c   : > { %4733 = vmatpush1.bf16.msra.mxu0 %v13786_v21  ;;  %4819 = vmatpush1.bf16.msra.mxu1 %v13789_v38 }
 0x72d   : > { %4734 = vmatprep.subr.bf16.mxu0 %v13794_v39  ;;  %4820 = vmatprep.subr.bf16.mxu1 %v13797_v25 }
 0x730   : > { %4735 = vmatpush1.bf16.msra.mxu0 %v13792_v42  ;;  %4821 = vmatpush1.bf16.msra.mxu1 %v13795_v40 }
 0x733   : > { %4737 = vmatmul.mubr.bf16.vlgmr.msra.gmra.mrb[20].mxu0 %v16176_v4  ;;  %4823 = vmatmul.mubr.bf16.vlgmr.msra.gmra.mrb[24].mxu1 %v16176_v4 }
 0x734   : > { %4998 = vmatprep.mubr.bf16.mxu0 %v15438_v34  ;;  %5039 = vmatprep.mubr.bf16.mxu1 %v15438_v34 }
 0x806   : > { %v4738_v46 = vpop.f32.mrb[20].mxu0  ;;  %v4824_v47 = vpop.f32.mrb[24].mxu1 }
 0x807   : > { %v4863_v48 = vadd.f32 %v4846_v31, %v4738_v46  ;;  %v4865_v50 = vadd.f32 %v4854_v35, %v4824_v47  ;;  %v4740_v4 = vpop.f32.mrb[21].mxu0  ;;  %v4826_v53 = vpop.f32.mrb[25].mxu1 }
 0x808   : > { %v4864_v55 = vadd.f32 %v4850_v41, %v4740_v4  ;;  %v4866_v56 = vadd.f32 %v4858_v43, %v4826_v53  ;;  %v4742_v57 = vpop.f32.mrb[22].mxu0  ;;  %v4828_v58 = vpop.f32.mrb[26].mxu1  ;;  %v5181_v4 = vld [vmem:[#allocation13 + $0x4] sm:$0xf]  ;;  %v13798_v53 = vld [vmem:[#allocation15 + $0x400] ss:$16 sps:$4 sm:$0xff]  }
 0x809   : > { %vm4871_vm2 = vcmp.gt.f32.partialorder %v4863_v48, 0.0  ;;  %v4879_v59 = vmul.f32 0.2, %v4863_v48  ;;  %vm4873_vm3 = vcmp.gt.f32.partialorder %v4865_v50, 0.0  ;;  %v4881_v37 = vmul.f32 0.2, %v4865_v50 }
 0x80a   : > { %v4880_v30 = vmul.f32 0.2, %v4864_v55  ;;  %v4867_v1 = vadd.f32 %v4846_v31, %v4742_v57  ;;  %v4869_v6 = vadd.f32 %v4854_v35, %v4828_v58  ;;  %v4744_v8 = vpop.f32.mrb[23].mxu0  ;;  %v4830_v9 = vpop.f32.mrb[27].mxu1  ;;  %vm4872_vm4 = vcmp.gt.f32.partialorder %v4864_v55, 0.0 }
 0x80b   : > { %v4887_v63 = vsel %vm4871_vm2, %v4863_v48, %v4879_v59  ;;  %v4889_v0 = vsel %vm4873_vm3, %v4865_v50, %v4881_v37  ;;  %v4882_v10 = vmul.f32 0.2, %v4866_v56  ;;  %vm4874_vm5 = vcmp.gt.f32.partialorder %v4866_v56, 0.0  ;;  %v4961_v48 = vld [vmem:[#allocation13] sm:$0xf] }
 0x80c   : > { %vm4875_vm6 = vcmp.gt.f32.partialorder %v4867_v1, 0.0  ;;  %v4883_v32 = vmul.f32 0.2, %v4867_v1  ;;  %v4918_v2 = vmul.f32 %v4901_v54, %v4887_v63  ;;  %v4920_v33 = vmul.f32 %v4909_v61, %v4889_v0  ;;  %v13803_v50 = vld [vmem:[#allocation15 + $0x604] ss:$16 sps:$4 sm:$0xff]  }
 0x80d   : > { %vm4877_vm7 = vcmp.gt.f32.partialorder %v4869_v6, 0.0  ;;  %v4885_v14 = vmul.f32 0.2, %v4869_v6  ;;  %v4888_v15 = vsel %vm4872_vm4, %v4864_v55, %v4880_v30  ;;  %v4868_v19 = vadd.f32 %v4850_v41, %v4744_v8  ;;  %v13806_v55 = vld [vmem:[#allocation15 + $0x424] ss:$16 sps:$4 sm:$0xff]  }
 0x80e   : > { %v4891_v22 = vsel %vm4875_vm6, %v4867_v1, %v4883_v32  ;;  %v4870_v51 = vadd.f32 %v4858_v43, %v4830_v9  ;;  %v4890_v7 = vsel %vm4874_vm5, %v4866_v56, %v4882_v10  ;;  %v4949_v3 = vadd.f32 %v4932_v60, %v4918_v2  ;;  %v13809_v56 = vld [vmem:[#allocation15 + $0x624] ss:$16 sps:$4 sm:$0xff]   ;;  %v13804_v57 = vld [vmem:[#allocation15 + $0x420] ss:$16 sps:$4 sm:$0xff]  }
 0x80f   : > { %v4922_v44 = vmul.f32 %v4901_v54, %v4891_v22  ;;  %v4893_v5 = vsel %vm4877_vm7, %v4869_v6, %v4885_v14  ;;  %vm4876_vm8 = vcmp.gt.f32.partialorder %v4868_v19, 0.0  ;;  %v4884_v13 = vmul.f32 0.2, %v4868_v19  ;;  %v13801_v54 = vld [vmem:[#allocation15 + $0x600] ss:$16 sps:$4 sm:$0xff]  }
 0x810   : > { %v4924_v29 = vmul.f32 %v4909_v61, %v4893_v5  ;;  %vm4878_vm9 = vcmp.gt.f32.partialorder %v4870_v51, 0.0  ;;  %v4919_v36 = vmul.f32 %v4905_v28, %v4888_v15  ;;  %v4886_v18 = vmul.f32 0.2, %v4870_v51  ;;  %v13807_v58 = vld [vmem:[#allocation15 + $0x620] ss:$16 sps:$4 sm:$0xff]  }
 0x811   : > { %v4953_v16 = vadd.f32 %v4932_v60, %v4922_v44  ;;  %v4951_v20 = vadd.f32 %v4940_v62, %v4920_v33  ;;  %v4921_v21 = vmul.f32 %v4913_v11, %v4890_v7  ;;  %v4892_v39 = vsel %vm4876_vm8, %v4868_v19, %v4884_v13  ;;  %v13812_v59 = vld [vmem:[#allocation15 + $0x444] ss:$16 sps:$4 sm:$0xff]   ;;  %v13810_v60 = vld [vmem:[#allocation15 + $0x440] ss:$16 sps:$4 sm:$0xff]  }
 0x812   : > { %v4955_v38 = vadd.f32 %v4940_v62, %v4924_v29  ;;  %v4923_v25 = vmul.f32 %v4905_v28, %v4892_v39  ;;  %v4894_v42 = vsel %vm4878_vm9, %v4870_v51, %v4886_v18  ;;  %v4950_v35 = vadd.f32 %v4936_v12, %v4919_v36  ;;  %v13815_v37 = vld [vmem:[#allocation15 + $0x644] ss:$16 sps:$4 sm:$0xff]   ;;  %v13813_v61 = vld [vmem:[#allocation15 + $0x640] ss:$16 sps:$4 sm:$0xff]  }
 0x813   : > { %v16194_v40 = vpack.c.bf16 %v4953_v16, %v4949_v3  ;;  %v4925_v52 = vmul.f32 %v4913_v11, %v4894_v42  ;;  %v4952_v43 = vadd.f32 %v4944_v17, %v4921_v21  ;;  %v13818_v62 = vld [vmem:[#allocation15 + $0x464] ss:$16 sps:$4 sm:$0xff]   ;;  %v13816_v63 = vld [vmem:[#allocation15 + $0x460] ss:$16 sps:$4 sm:$0xff]  }
 0x814   : > { %v16196_v31 = vpack.c.bf16 %v4955_v38, %v4951_v20  ;;  %v4954_v41 = vadd.f32 %v4936_v12, %v4923_v25  ;;  %v13821_v30 = vld [vmem:[#allocation15 + $0x664] ss:$16 sps:$4 sm:$0xff]   ;;  %v13819_v0 = vld [vmem:[#allocation15 + $0x660] ss:$16 sps:$4 sm:$0xff]  }
 0x815   : > { %v4956_v45 = vadd.f32 %v4944_v17, %v4925_v52  ;;  %v13824_v1 = vld [vmem:[#allocation15 + $0x484] ss:$16 sps:$4 sm:$0xff]   ;;  %v13822_v8 = vld [vmem:[#allocation15 + $0x480] ss:$16 sps:$4 sm:$0xff]  }
 0x816   : > { %v16198_v46 = vpack.c.bf16 %v4954_v41, %v4950_v35  ;;  %v13827_v6 = vld [vmem:[#allocation15 + $0x684] ss:$16 sps:$4 sm:$0xff]   ;;  %v13825_v9 = vld [vmem:[#allocation15 + $0x680] ss:$16 sps:$4 sm:$0xff]  }
 0x817   : > { %v16200_v47 = vpack.c.bf16 %v4956_v45, %v4952_v43  ;;  %v13830_v28 = vld [vmem:[#allocation15 + $0x4a4] ss:$16 sps:$4 sm:$0xff]   ;;  %v13828_v11 = vld [vmem:[#allocation15 + $0x4a0] ss:$16 sps:$4 sm:$0xff]  }
 0x818   : > { %4966 = vmatprep.subr.bf16.mxu0 %v16198_v46  ;;  %v13833_v10 = vld [vmem:[#allocation15 + $0x6a4] ss:$16 sps:$4 sm:$0xff]   ;;  %v13831_v32 = vld [vmem:[#allocation15 + $0x6a0] ss:$16 sps:$4 sm:$0xff]  }
 0x819   : > { %5007 = vmatprep.subr.bf16.mxu1 %v16200_v47  ;;  %4967 = vmatpush1.bf16.msra.mxu0 %v16194_v40  ;;  %v13836_v12 = vld [vmem:[#allocation15 + $0x4c4] ss:$16 sps:$4 sm:$0xff]   ;;  %v13834_v33 = vld [vmem:[#allocation15 + $0x4c0] ss:$16 sps:$4 sm:$0xff]  }
 0x81a   : > { %5008 = vmatpush1.bf16.msra.mxu1 %v16196_v31  ;;  %5185 = vmatprep.subr.bf16.mxu0 %v16198_v46  ;;  %v13839_v2 = vld [vmem:[#allocation15 + $0x6c4] ss:$16 sps:$4 sm:$0xff]   ;;  %v13837_v14 = vld [vmem:[#allocation15 + $0x6c0] ss:$16 sps:$4 sm:$0xff]  }
 0x81b   : > { %5226 = vmatprep.subr.bf16.mxu1 %v16200_v47  ;;  %v13842_v15 = vld [vmem:[#allocation15 + $0x4e4] ss:$16 sps:$4 sm:$0xff]   ;;  %v13840_v19 = vld [vmem:[#allocation15 + $0x4e0] ss:$16 sps:$4 sm:$0xff]  }
 0x81c   : > { %12046 = vmatmul.mubr.msk.bf16.vlgmr.msra.gmra.mrb[28].mxu0 %vm4962_vm10, %v4961_v48  ;;  %v13845_v22 = vld [vmem:[#allocation15 + $0x6e4] ss:$16 sps:$4 sm:$0xff]   ;;  %v13843_v51 = vld [vmem:[#allocation15 + $0x6e0] ss:$16 sps:$4 sm:$0xff]  }
 0x81d   : > { %12047 = vmatmul.mubr.msk.bf16.vlgmr.msra.gmra.mrb[32].mxu1 %vm4962_vm10, %v4961_v48  ;;  %5186 = vmatpush1.bf16.msra.mxu0 %v16194_v40  ;;  %v13848_v7 = vld [vmem:[#allocation15 + $0x504] ss:$16 sps:$4 sm:$0xff]   ;;  %v13846_v5 = vld [vmem:[#allocation15 + $0x500] ss:$16 sps:$4 sm:$0xff]  }
 0x81e   : > { %5227 = vmatpush1.bf16.msra.mxu1 %v16196_v31  ;;  %5217 = vmatprep.mubr.bf16.mxu0 %v15438_v34  ;;  %v13851_v44 = vld [vmem:[#allocation15 + $0x704] ss:$16 sps:$4 sm:$0xff]   ;;  %v13849_v17 = vld [vmem:[#allocation15 + $0x700] ss:$16 sps:$4 sm:$0xff]  }
 0x81f   : > { %5258 = vmatprep.mubr.bf16.mxu1 %v15438_v34  ;;  %6040 = vmatprep.subr.bf16.mxu0 %v13800_v49  ;;  %v13854_v29 = vld [vmem:[#allocation15 + $0x524] ss:$16 sps:$4 sm:$0xff]   ;;  %v13852_v3 = vld [vmem:[#allocation15 + $0x520] ss:$16 sps:$4 sm:$0xff]  }
 0x820   : > { %6081 = vmatprep.subr.bf16.mxu1 %v13803_v50  ;;  %v13857_v13 = vld [vmem:[#allocation15 + $0x724] ss:$16 sps:$4 sm:$0xff]   ;;  %v13855_v36 = vld [vmem:[#allocation15 + $0x720] ss:$16 sps:$4 sm:$0xff]  }
 0x821   : > { %v13860_v16 = vld [vmem:[#allocation15 + $0x544] ss:$16 sps:$4 sm:$0xff]   ;;  %v13858_v20 = vld [vmem:[#allocation15 + $0x540] ss:$16 sps:$4 sm:$0xff]  }
 0x822   : > { %v13863_v18 = vld [vmem:[#allocation15 + $0x744] ss:$16 sps:$4 sm:$0xff]   ;;  %v13861_v21 = vld [vmem:[#allocation15 + $0x740] ss:$16 sps:$4 sm:$0xff]  }
 0x823   : > { %v13866_v38 = vld [vmem:[#allocation15 + $0x564] ss:$16 sps:$4 sm:$0xff]   ;;  %v13864_v25 = vld [vmem:[#allocation15 + $0x560] ss:$16 sps:$4 sm:$0xff]  }
 0x824   : > { %12048 = vmatmul.mubr.msk.bf16.vlgmr.msra.gmra.mrb[32].mxu0 %vm4962_vm10, %v5181_v4  ;;  %v13869_v39 = vld [vmem:[#allocation15 + $0x764] ss:$16 sps:$4 sm:$0xff]   ;;  %v13867_v42 = vld [vmem:[#allocation15 + $0x760] ss:$16 sps:$4 sm:$0xff]  }
 0x825   : > { %12049 = vmatmul.mubr.msk.bf16.vlgmr.msra.gmra.mrb[36].mxu1 %vm4962_vm10, %v5181_v4  ;;  %6041 = vmatpush1.bf16.msra.mxu0 %v13798_v53  ;;  %v13872_v52 = vld [vmem:[#allocation15 + $0x584] ss:$16 sps:$4 sm:$0xff]   ;;  %v13870_v41 = vld [vmem:[#allocation15 + $0x580] ss:$16 sps:$4 sm:$0xff]  }
 0x826   : > { %6082 = vmatpush1.bf16.msra.mxu1 %v13801_v54  ;;  %6042 = vmatprep.subr.bf16.mxu0 %v13806_v55  ;;  %v13875_v35 = vld [vmem:[#allocation15 + $0x784] ss:$16 sps:$4 sm:$0xff]   ;;  %v13873_v43 = vld [vmem:[#allocation15 + $0x780] ss:$16 sps:$4 sm:$0xff]  }
 0x827   : > { %6083 = vmatprep.subr.bf16.mxu1 %v13809_v56  ;;  %v13878_v45 = vld [vmem:[#allocation15 + $0x5a4] ss:$16 sps:$4 sm:$0xff]   ;;  %v13876_v49 = vld [vmem:[#allocation15 + $0x5a0] ss:$16 sps:$4 sm:$0xff]  }
 0x828   : > { %v13881_v48 = vld [vmem:[#allocation15 + $0x7a4] ss:$16 sps:$4 sm:$0xff]   ;;  %v13879_v50 = vld [vmem:[#allocation15 + $0x7a0] ss:$16 sps:$4 sm:$0xff]  }
 0x829   : > { %6043 = vmatpush1.bf16.msra.mxu0 %v13804_v57  ;;  %v13884_v4 = vld [vmem:[#allocation15 + $0x5c4] ss:$16 sps:$4 sm:$0xff]   ;;  %v13882_v54 = vld [vmem:[#allocation15 + $0x5c0] ss:$16 sps:$4 sm:$0xff]  }
 0x82a   : > { %6084 = vmatpush1.bf16.msra.mxu1 %v13807_v58  ;;  %6044 = vmatprep.subr.bf16.mxu0 %v13812_v59  ;;  %v13887_v53 = vld [vmem:[#allocation15 + $0x7c4] ss:$16 sps:$4 sm:$0xff]   ;;  %v13885_v55 = vld [vmem:[#allocation15 + $0x7c0] ss:$16 sps:$4 sm:$0xff]  }
 0x82b   : > { %6085 = vmatprep.subr.bf16.mxu1 %v13815_v37  ;;  %v13890_v56 = vld [vmem:[#allocation15 + $0x5e4] ss:$16 sps:$4 sm:$0xff]   ;;  %v13888_v58 = vld [vmem:[#allocation15 + $0x5e0] ss:$16 sps:$4 sm:$0xff]   ;;  %v13896_v37 = vld [vmem:[#allocation15 + $0x40c] ss:$16 sps:$4 sm:$0xff]  }
 0x82c   : > { %v13893_v57 = vld [vmem:[#allocation15 + $0x7e4] ss:$16 sps:$4 sm:$0xff]   ;;  %v13891_v59 = vld [vmem:[#allocation15 + $0x7e0] ss:$16 sps:$4 sm:$0xff]  }
 0x82d   : > { %6045 = vmatpush1.bf16.msra.mxu0 %v13810_v60  ;;  %v13899_v60 = vld [vmem:[#allocation15 + $0x60c] ss:$16 sps:$4 sm:$0xff]  }
 0x82e   : > { %6086 = vmatpush1.bf16.msra.mxu1 %v13813_v61  ;;  %6046 = vmatprep.subr.bf16.mxu0 %v13818_v62 }
 0x82f   : > { %6087 = vmatprep.subr.bf16.mxu1 %v13821_v30 }
 0x831   : > { %6047 = vmatpush1.bf16.msra.mxu0 %v13816_v63 }
 0x832   : > { %6088 = vmatpush1.bf16.msra.mxu1 %v13819_v0  ;;  %6048 = vmatprep.subr.bf16.mxu0 %v13824_v1 }
 0x833   : > { %6089 = vmatprep.subr.bf16.mxu1 %v13827_v6 }
 0x835   : > { %6049 = vmatpush1.bf16.msra.mxu0 %v13822_v8 }
 0x836   : > { %6090 = vmatpush1.bf16.msra.mxu1 %v13825_v9  ;;  %6050 = vmatprep.subr.bf16.mxu0 %v13830_v28 }
 0x837   : > { %6091 = vmatprep.subr.bf16.mxu1 %v13833_v10 }
 0x839   : > { %6051 = vmatpush1.bf16.msra.mxu0 %v13828_v11 }
 0x83a   : > { %6092 = vmatpush1.bf16.msra.mxu1 %v13831_v32  ;;  %6052 = vmatprep.subr.bf16.mxu0 %v13836_v12 }
 0x83b   : > { %6093 = vmatprep.subr.bf16.mxu1 %v13839_v2  ;;  %v13894_v2 = vld [vmem:[#allocation15 + $0x408] ss:$16 sps:$4 sm:$0xff]  }
 0x83d   : > { %6053 = vmatpush1.bf16.msra.mxu0 %v13834_v33 }
 0x83e   : > { %6094 = vmatpush1.bf16.msra.mxu1 %v13837_v14  ;;  %6054 = vmatprep.subr.bf16.mxu0 %v13842_v15 }
 0x83f   : > { %6095 = vmatprep.subr.bf16.mxu1 %v13845_v22 }
 0x841   : > { %6055 = vmatpush1.bf16.msra.mxu0 %v13840_v19  ;;  %v13897_v19 = vld [vmem:[#allocation15 + $0x608] ss:$16 sps:$4 sm:$0xff]  }
 0x842   : > { %6096 = vmatpush1.bf16.msra.mxu1 %v13843_v51  ;;  %6056 = vmatprep.subr.bf16.mxu0 %v13848_v7 }
 0x843   : > { %6097 = vmatprep.subr.bf16.mxu1 %v13851_v44  ;;  %v13902_v44 = vld [vmem:[#allocation15 + $0x42c] ss:$16 sps:$4 sm:$0xff]  }
 0x845   : > { %6057 = vmatpush1.bf16.msra.mxu0 %v13846_v5  ;;  %v13905_v5 = vld [vmem:[#allocation15 + $0x62c] ss:$16 sps:$4 sm:$0xff]  }
 0x846   : > { %6098 = vmatpush1.bf16.msra.mxu1 %v13849_v17  ;;  %6058 = vmatprep.subr.bf16.mxu0 %v13854_v29  ;;  %v13900_v17 = vld [vmem:[#allocation15 + $0x428] ss:$16 sps:$4 sm:$0xff]  }
 0x847   : > { %6099 = vmatprep.subr.bf16.mxu1 %v13857_v13  ;;  %v13903_v29 = vld [vmem:[#allocation15 + $0x628] ss:$16 sps:$4 sm:$0xff]   ;;  %v13908_v13 = vld [vmem:[#allocation15 + $0x44c] ss:$16 sps:$4 sm:$0xff]  }
 0x849   : > { %6059 = vmatpush1.bf16.msra.mxu0 %v13852_v3  ;;  %v13911_v3 = vld [vmem:[#allocation15 + $0x64c] ss:$16 sps:$4 sm:$0xff]  }
 0x84a   : > { %6100 = vmatpush1.bf16.msra.mxu1 %v13855_v36  ;;  %6060 = vmatprep.subr.bf16.mxu0 %v13860_v16  ;;  %v13906_v36 = vld [vmem:[#allocation15 + $0x448] ss:$16 sps:$4 sm:$0xff]  }
 0x84b   : > { %6101 = vmatprep.subr.bf16.mxu1 %v13863_v18  ;;  %v13909_v16 = vld [vmem:[#allocation15 + $0x648] ss:$16 sps:$4 sm:$0xff]   ;;  %v13914_v18 = vld [vmem:[#allocation15 + $0x46c] ss:$16 sps:$4 sm:$0xff]  }
 0x84d   : > { %6061 = vmatpush1.bf16.msra.mxu0 %v13858_v20  ;;  %v13917_v20 = vld [vmem:[#allocation15 + $0x66c] ss:$16 sps:$4 sm:$0xff]  }
 0x84e   : > { %6102 = vmatpush1.bf16.msra.mxu1 %v13861_v21  ;;  %6062 = vmatprep.subr.bf16.mxu0 %v13866_v38  ;;  %v13912_v21 = vld [vmem:[#allocation15 + $0x468] ss:$16 sps:$4 sm:$0xff]  }
 0x84f   : > { %6103 = vmatprep.subr.bf16.mxu1 %v13869_v39  ;;  %v13915_v38 = vld [vmem:[#allocation15 + $0x668] ss:$16 sps:$4 sm:$0xff]   ;;  %v13920_v39 = vld [vmem:[#allocation15 + $0x48c] ss:$16 sps:$4 sm:$0xff]  }
 0x851   : > { %6063 = vmatpush1.bf16.msra.mxu0 %v13864_v25  ;;  %v13923_v25 = vld [vmem:[#allocation15 + $0x68c] ss:$16 sps:$4 sm:$0xff]  }
 0x852   : > { %6104 = vmatpush1.bf16.msra.mxu1 %v13867_v42  ;;  %6064 = vmatprep.subr.bf16.mxu0 %v13872_v52  ;;  %v13918_v42 = vld [vmem:[#allocation15 + $0x488] ss:$16 sps:$4 sm:$0xff]  }
 0x853   : > { %6105 = vmatprep.subr.bf16.mxu1 %v13875_v35  ;;  %v13921_v52 = vld [vmem:[#allocation15 + $0x688] ss:$16 sps:$4 sm:$0xff]   ;;  %v13926_v35 = vld [vmem:[#allocation15 + $0x4ac] ss:$16 sps:$4 sm:$0xff]  }
 0x855   : > { %6065 = vmatpush1.bf16.msra.mxu0 %v13870_v41  ;;  %v13929_v41 = vld [vmem:[#allocation15 + $0x6ac] ss:$16 sps:$4 sm:$0xff]  }
 0x856   : > { %6106 = vmatpush1.bf16.msra.mxu1 %v13873_v43  ;;  %6066 = vmatprep.subr.bf16.mxu0 %v13878_v45  ;;  %v13924_v43 = vld [vmem:[#allocation15 + $0x4a8] ss:$16 sps:$4 sm:$0xff]  }
 0x857   : > { %6107 = vmatprep.subr.bf16.mxu1 %v13881_v48  ;;  %v13927_v45 = vld [vmem:[#allocation15 + $0x6a8] ss:$16 sps:$4 sm:$0xff]   ;;  %v13932_v48 = vld [vmem:[#allocation15 + $0x4cc] ss:$16 sps:$4 sm:$0xff]  }
 0x859   : > { %6067 = vmatpush1.bf16.msra.mxu0 %v13876_v49  ;;  %v13935_v49 = vld [vmem:[#allocation15 + $0x6cc] ss:$16 sps:$4 sm:$0xff]  }
 0x85a   : > { %6108 = vmatpush1.bf16.msra.mxu1 %v13879_v50  ;;  %6068 = vmatprep.subr.bf16.mxu0 %v13884_v4  ;;  %v13930_v50 = vld [vmem:[#allocation15 + $0x4c8] ss:$16 sps:$4 sm:$0xff]  }
 0x85b   : > { %6109 = vmatprep.subr.bf16.mxu1 %v13887_v53  ;;  %v13933_v4 = vld [vmem:[#allocation15 + $0x6c8] ss:$16 sps:$4 sm:$0xff]   ;;  %v13938_v53 = vld [vmem:[#allocation15 + $0x4ec] ss:$16 sps:$4 sm:$0xff]  }
 0x85d   : > { %6069 = vmatpush1.bf16.msra.mxu0 %v13882_v54  ;;  %v13941_v54 = vld [vmem:[#allocation15 + $0x6ec] ss:$16 sps:$4 sm:$0xff]  }
 0x85e   : > { %6110 = vmatpush1.bf16.msra.mxu1 %v13885_v55  ;;  %6070 = vmatprep.subr.bf16.mxu0 %v13890_v56  ;;  %v13936_v55 = vld [vmem:[#allocation15 + $0x4e8] ss:$16 sps:$4 sm:$0xff]  }
 0x85f   : > { %6111 = vmatprep.subr.bf16.mxu1 %v13893_v57  ;;  %v13939_v56 = vld [vmem:[#allocation15 + $0x6e8] ss:$16 sps:$4 sm:$0xff]   ;;  %v13944_v57 = vld [vmem:[#allocation15 + $0x50c] ss:$16 sps:$4 sm:$0xff]  }
 0x861   : > { %6071 = vmatpush1.bf16.msra.mxu0 %v13888_v58  ;;  %v13947_v58 = vld [vmem:[#allocation15 + $0x70c] ss:$16 sps:$4 sm:$0xff]  }
 0x862   : > { %6112 = vmatpush1.bf16.msra.mxu1 %v13891_v59  ;;  %6122 = vmatprep.subr.bf16.mxu0 %v13896_v37  ;;  %v13942_v59 = vld [vmem:[#allocation15 + $0x508] ss:$16 sps:$4 sm:$0xff]  }
 0x863   : > { %6163 = vmatprep.subr.bf16.mxu1 %v13899_v60  ;;  %v13945_v37 = vld [vmem:[#allocation15 + $0x708] ss:$16 sps:$4 sm:$0xff]   ;;  %v13950_v60 = vld [vmem:[#allocation15 + $0x52c] ss:$16 sps:$4 sm:$0xff]  }
 0x8ef   : > { %v16216_v61 = vpop.f32.mrb[28].mxu0 }
 0x8f0   : > { %v16218_v62 = vpop.f32.mrb[32].mxu1  ;;  %v16220_v30 = vpop.f32.mrb[29].mxu0 }
 0x8f1   : > { %v16222_v63 = vpop.f32.mrb[33].mxu1  ;;  %v5004_v0 = vpop.f32.mrb[30].mxu0 }
 0x8f2   : > { %v5045_v1 = vpop.f32.mrb[34].mxu1  ;;  %v5005_v6 = vpop.f32.mrb[31].mxu0  ;;  %v13953_v0 = vld [vmem:[#allocation15 + $0x72c] ss:$16 sps:$4 sm:$0xff]  }
 0x8f3   : > { %v5046_v8 = vpop.f32.mrb[35].mxu1  ;;  %v13948_v1 = vld [vmem:[#allocation15 + $0x528] ss:$16 sps:$4 sm:$0xff]  }
 0x8f4   : > { %v13951_v6 = vld [vmem:[#allocation15 + $0x728] ss:$16 sps:$4 sm:$0xff]   ;;  %v13956_v8 = vld [vmem:[#allocation15 + $0x54c] ss:$16 sps:$4 sm:$0xff]  }
 0x8f7   : > { %v5219_v9 = vpop.f32.mrb[32].mxu0 }
 0x8f8   : > { %v5260_v28 = vpop.f32.mrb[36].mxu1  ;;  %v5221_v10 = vpop.f32.mrb[33].mxu0  ;;  %v16224_v33 = vpack.c.bf16 %v5219_v9, %v5219_v9  ;;  %v13959_v9 = vld [vmem:[#allocation15 + $0x74c] ss:$16 sps:$4 sm:$0xff]  }
 0x8f9   : > { %v5268_v11 = vpack.c.bf16 %v5221_v10, %v5221_v10  ;;  %v5262_v32 = vpop.f32.mrb[37].mxu1  ;;  %v5223_v12 = vpop.f32.mrb[34].mxu0  ;;  %v16226_v51 = vpack.c.bf16 %v5260_v28, %v5260_v28  ;;  %v13954_v28 = vld [vmem:[#allocation15 + $0x548] ss:$16 sps:$4 sm:$0xff]  }
 0x8fa   : > { %v5270_v14 = vpack.c.bf16 %v5262_v32, %v5262_v32  ;;  %v5264_v15 = vpop.f32.mrb[38].mxu1  ;;  %v5224_v22 = vpop.f32.mrb[35].mxu0  ;;  %v13957_v10 = vld [vmem:[#allocation15 + $0x748] ss:$16 sps:$4 sm:$0xff]   ;;  %v13965_v32 = vld [vmem:[#allocation15 + $0x76c] ss:$16 sps:$4 sm:$0xff]  }
 0x8fb   : > { %v5265_v7 = vpop.f32.mrb[39].mxu1  ;;  %6072 = vmatprep.mubr.bf16.mxu0 %v5268_v11  ;;  %v13960_v12 = vld [vmem:[#allocation15 + $0x568] ss:$16 sps:$4 sm:$0xff]   ;;  %v13971_v15 = vld [vmem:[#allocation15 + $0x78c] ss:$16 sps:$4 sm:$0xff]  }
 0x8fc   : > { %6113 = vmatprep.mubr.bf16.mxu1 %v5270_v14  ;;  %6073 = vmatmul.mubr.bf16.vlgmr.msra.gmra.mrb[36].mxu0 %v16224_v33  ;;  %v13966_v22 = vld [vmem:[#allocation15 + $0x588] ss:$16 sps:$4 sm:$0xff]   ;;  %v13974_v7 = vld [vmem:[#allocation15 + $0x5ac] ss:$16 sps:$4 sm:$0xff]  }
 0x8fd   : > { %6114 = vmatmul.mubr.bf16.vlgmr.msra.gmra.mrb[40].mxu1 %v16226_v51  ;;  %6123 = vmatpush1.bf16.msra.mxu0 %v13894_v2  ;;  %v13963_v2 = vld [vmem:[#allocation15 + $0x768] ss:$16 sps:$4 sm:$0xff]  }
 0x8fe   : > { %6164 = vmatpush1.bf16.msra.mxu1 %v13897_v19  ;;  %6154 = vmatprep.mubr.bf16.mxu0 %v5268_v11  ;;  %v13962_v11 = vld [vmem:[#allocation15 + $0x56c] ss:$16 sps:$4 sm:$0xff]   ;;  %v13969_v19 = vld [vmem:[#allocation15 + $0x788] ss:$16 sps:$4 sm:$0xff]  }
 0x8ff   : > { %6195 = vmatprep.mubr.bf16.mxu1 %v5270_v14  ;;  %6124 = vmatprep.subr.bf16.mxu0 %v13902_v44  ;;  %v13968_v14 = vld [vmem:[#allocation15 + $0x58c] ss:$16 sps:$4 sm:$0xff]  }
 0x900   : > { %6165 = vmatprep.subr.bf16.mxu1 %v13905_v5  ;;  %v13977_v44 = vld [vmem:[#allocation15 + $0x7ac] ss:$16 sps:$4 sm:$0xff]   ;;  %v13972_v5 = vld [vmem:[#allocation15 + $0x5a8] ss:$16 sps:$4 sm:$0xff]  }
 0x901   : > { %6125 = vmatpush1.bf16.msra.mxu0 %v13900_v17  ;;  %v13975_v17 = vld [vmem:[#allocation15 + $0x7a8] ss:$16 sps:$4 sm:$0xff]  }
 0x902   : > { %6166 = vmatpush1.bf16.msra.mxu1 %v13903_v29  ;;  %6126 = vmatprep.subr.bf16.mxu0 %v13908_v13  ;;  %v13980_v29 = vld [vmem:[#allocation15 + $0x5cc] ss:$16 sps:$4 sm:$0xff]  }
 0x903   : > { %6167 = vmatprep.subr.bf16.mxu1 %v13911_v3  ;;  %v13983_v13 = vld [vmem:[#allocation15 + $0x7cc] ss:$16 sps:$4 sm:$0xff]   ;;  %v13978_v3 = vld [vmem:[#allocation15 + $0x5c8] ss:$16 sps:$4 sm:$0xff]  }
 0x905   : > { %6127 = vmatpush1.bf16.msra.mxu0 %v13906_v36  ;;  %v13981_v36 = vld [vmem:[#allocation15 + $0x7c8] ss:$16 sps:$4 sm:$0xff]  }
 0x906   : > { %6168 = vmatpush1.bf16.msra.mxu1 %v13909_v16  ;;  %6128 = vmatprep.subr.bf16.mxu0 %v13914_v18  ;;  %v13986_v16 = vld [vmem:[#allocation15 + $0x5ec] ss:$16 sps:$4 sm:$0xff]  }
 0x907   : > { %6169 = vmatprep.subr.bf16.mxu1 %v13917_v20  ;;  %v13989_v18 = vld [vmem:[#allocation15 + $0x7ec] ss:$16 sps:$4 sm:$0xff]   ;;  %v13984_v20 = vld [vmem:[#allocation15 + $0x5e8] ss:$16 sps:$4 sm:$0xff]  }
 0x909   : > { %6129 = vmatpush1.bf16.msra.mxu0 %v13912_v21  ;;  %v13987_v21 = vld [vmem:[#allocation15 + $0x7e8] ss:$16 sps:$4 sm:$0xff]  }
 0x90a   : > { %6170 = vmatpush1.bf16.msra.mxu1 %v13915_v38  ;;  %6130 = vmatprep.subr.bf16.mxu0 %v13920_v39  ;;  %v13992_v38 = vld [vmem:[#allocation15 + $0x4] ss:$16 sps:$4 sm:$0xff]  }
 0x90b   : > { %6171 = vmatprep.subr.bf16.mxu1 %v13923_v25  ;;  %v13995_v39 = vld [vmem:[#allocation15 + $0x204] ss:$16 sps:$4 sm:$0xff]   ;;  %v13990_v25 = vld [vmem:[#allocation15] ss:$16 sps:$4 sm:$0xff]  }
 0x90d   : > { %6131 = vmatpush1.bf16.msra.mxu0 %v13918_v42  ;;  %v13993_v42 = vld [vmem:[#allocation15 + $0x200] ss:$16 sps:$4 sm:$0xff]  }
 0x90e   : > { %6172 = vmatpush1.bf16.msra.mxu1 %v13921_v52  ;;  %6132 = vmatprep.subr.bf16.mxu0 %v13926_v35  ;;  %v13998_v52 = vld [vmem:[#allocation15 + $0x24] ss:$16 sps:$4 sm:$0xff]   ;;  %v16232_v35 = vpack.c.bf16 %v16220_v30, %v16220_v30 }
 0x90f   : > { %6173 = vmatprep.subr.bf16.mxu1 %v13929_v41  ;;  %v14001_v41 = vld [vmem:[#allocation15 + $0x224] ss:$16 sps:$4 sm:$0xff]  }
 0x910   : > { %v14007_v30 = vld [vmem:[#allocation15 + $0x244] ss:$16 sps:$4 sm:$0xff]  }
 0x911   : > { %6133 = vmatpush1.bf16.msra.mxu0 %v13924_v43  ;;  %v16237_v43 = vpack.c.bf16 %v16222_v63, %v16222_v63  ;;  %v14005_v63 = vld [vmem:[#allocation15 + $0x240] ss:$16 sps:$4 sm:$0xff]  }
 0x912   : > { %6174 = vmatpush1.bf16.msra.mxu1 %v13927_v45  ;;  %6134 = vmatprep.subr.bf16.mxu0 %v13932_v48  ;;  %v13996_v45 = vld [vmem:[#allocation15 + $0x20] ss:$16 sps:$4 sm:$0xff]  }
 0x913   : > { %6175 = vmatprep.subr.bf16.mxu1 %v13935_v49  ;;  %v13999_v48 = vld [vmem:[#allocation15 + $0x220] ss:$16 sps:$4 sm:$0xff]   ;;  %v14004_v49 = vld [vmem:[#allocation15 + $0x44] ss:$16 sps:$4 sm:$0xff]  }
 0x915   : > { %6135 = vmatpush1.bf16.msra.mxu0 %v13930_v50  ;;  %v14010_v50 = vld [vmem:[#allocation15 + $0x64] ss:$16 sps:$4 sm:$0xff]  }
 0x916   : > { %6176 = vmatpush1.bf16.msra.mxu1 %v13933_v4  ;;  %6136 = vmatprep.subr.bf16.mxu0 %v13938_v53  ;;  %v14008_v4 = vld [vmem:[#allocation15 + $0x60] ss:$16 sps:$4 sm:$0xff]  }
 0x917   : > { %6177 = vmatprep.subr.bf16.mxu1 %v13941_v54  ;;  %v14011_v53 = vld [vmem:[#allocation15 + $0x260] ss:$16 sps:$4 sm:$0xff]   ;;  %v14016_v54 = vld [vmem:[#allocation15 + $0x84] ss:$16 sps:$4 sm:$0xff]  }
 0x919   : > { %6137 = vmatpush1.bf16.msra.mxu0 %v13936_v55  ;;  %v14019_v55 = vld [vmem:[#allocation15 + $0x284] ss:$16 sps:$4 sm:$0xff]  }
 0x91a   : > { %6178 = vmatpush1.bf16.msra.mxu1 %v13939_v56  ;;  %6138 = vmatprep.subr.bf16.mxu0 %v13944_v57  ;;  %v14014_v56 = vld [vmem:[#allocation15 + $0x80] ss:$16 sps:$4 sm:$0xff]  }
 0x91b   : > { %6179 = vmatprep.subr.bf16.mxu1 %v13947_v58  ;;  %v14017_v57 = vld [vmem:[#allocation15 + $0x280] ss:$16 sps:$4 sm:$0xff]   ;;  %v14022_v58 = vld [vmem:[#allocation15 + $0xa4] ss:$16 sps:$4 sm:$0xff]  }
 0x91d   : > { %6139 = vmatpush1.bf16.msra.mxu0 %v13942_v59  ;;  %v14025_v59 = vld [vmem:[#allocation15 + $0x2a4] ss:$16 sps:$4 sm:$0xff]  }
 0x91e   : > { %6180 = vmatpush1.bf16.msra.mxu1 %v13945_v37  ;;  %6140 = vmatprep.subr.bf16.mxu0 %v13950_v60  ;;  %v14020_v37 = vld [vmem:[#allocation15 + $0xa0] ss:$16 sps:$4 sm:$0xff]  }
 0x91f   : > { %6181 = vmatprep.subr.bf16.mxu1 %v13953_v0  ;;  %v14023_v60 = vld [vmem:[#allocation15 + $0x2a0] ss:$16 sps:$4 sm:$0xff]   ;;  %v14028_v0 = vld [vmem:[#allocation15 + $0xc4] ss:$16 sps:$4 sm:$0xff]  }
 0x921   : > { %6141 = vmatpush1.bf16.msra.mxu0 %v13948_v1  ;;  %v14031_v1 = vld [vmem:[#allocation15 + $0x2c4] ss:$16 sps:$4 sm:$0xff]  }
 0x922   : > { %6182 = vmatpush1.bf16.msra.mxu1 %v13951_v6  ;;  %6142 = vmatprep.subr.bf16.mxu0 %v13956_v8  ;;  %v14026_v6 = vld [vmem:[#allocation15 + $0xc0] ss:$16 sps:$4 sm:$0xff]  }
 0x923   : > { %6183 = vmatprep.subr.bf16.mxu1 %v13959_v9  ;;  %v14029_v8 = vld [vmem:[#allocation15 + $0x2c0] ss:$16 sps:$4 sm:$0xff]   ;;  %v14034_v9 = vld [vmem:[#allocation15 + $0xe4] ss:$16 sps:$4 sm:$0xff]  }
 0x925   : > { %6143 = vmatpush1.bf16.msra.mxu0 %v13954_v28  ;;  %v14037_v28 = vld [vmem:[#allocation15 + $0x2e4] ss:$16 sps:$4 sm:$0xff]  }
 0x926   : > { %6184 = vmatpush1.bf16.msra.mxu1 %v13957_v10  ;;  %6144 = vmatprep.subr.bf16.mxu0 %v13962_v11  ;;  %v14032_v10 = vld [vmem:[#allocation15 + $0xe0] ss:$16 sps:$4 sm:$0xff]  }
 0x927   : > { %6185 = vmatprep.subr.bf16.mxu1 %v13965_v32  ;;  %v14035_v11 = vld [vmem:[#allocation15 + $0x2e0] ss:$16 sps:$4 sm:$0xff]   ;;  %v14040_v32 = vld [vmem:[#allocation15 + $0x104] ss:$16 sps:$4 sm:$0xff]  }
 0x929   : > { %6145 = vmatpush1.bf16.msra.mxu0 %v13960_v12  ;;  %v14043_v12 = vld [vmem:[#allocation15 + $0x304] ss:$16 sps:$4 sm:$0xff]  }
 0x92a   : > { %6186 = vmatpush1.bf16.msra.mxu1 %v13963_v2  ;;  %6146 = vmatprep.subr.bf16.mxu0 %v13968_v14  ;;  %v14038_v2 = vld [vmem:[#allocation15 + $0x100] ss:$16 sps:$4 sm:$0xff]  }
 0x92b   : > { %6187 = vmatprep.subr.bf16.mxu1 %v13971_v15  ;;  %v14041_v14 = vld [vmem:[#allocation15 + $0x300] ss:$16 sps:$4 sm:$0xff]   ;;  %v14046_v15 = vld [vmem:[#allocation15 + $0x124] ss:$16 sps:$4 sm:$0xff]  }
 0x92d   : > { %6147 = vmatpush1.bf16.msra.mxu0 %v13966_v22  ;;  %v14049_v22 = vld [vmem:[#allocation15 + $0x324] ss:$16 sps:$4 sm:$0xff]  }
 0x92e   : > { %6188 = vmatpush1.bf16.msra.mxu1 %v13969_v19  ;;  %6148 = vmatprep.subr.bf16.mxu0 %v13974_v7  ;;  %v14044_v19 = vld [vmem:[#allocation15 + $0x120] ss:$16 sps:$4 sm:$0xff]  }
 0x92f   : > { %6189 = vmatprep.subr.bf16.mxu1 %v13977_v44  ;;  %v14047_v7 = vld [vmem:[#allocation15 + $0x320] ss:$16 sps:$4 sm:$0xff]   ;;  %v14052_v44 = vld [vmem:[#allocation15 + $0x144] ss:$16 sps:$4 sm:$0xff]  }
 0x931   : > { %6149 = vmatpush1.bf16.msra.mxu0 %v13972_v5  ;;  %v14055_v5 = vld [vmem:[#allocation15 + $0x344] ss:$16 sps:$4 sm:$0xff]  }
 0x932   : > { %6190 = vmatpush1.bf16.msra.mxu1 %v13975_v17  ;;  %6150 = vmatprep.subr.bf16.mxu0 %v13980_v29  ;;  %v14050_v17 = vld [vmem:[#allocation15 + $0x140] ss:$16 sps:$4 sm:$0xff]  }
 0x933   : > { %6191 = vmatprep.subr.bf16.mxu1 %v13983_v13  ;;  %v14053_v29 = vld [vmem:[#allocation15 + $0x340] ss:$16 sps:$4 sm:$0xff]   ;;  %v14058_v13 = vld [vmem:[#allocation15 + $0x164] ss:$16 sps:$4 sm:$0xff]  }
 0x935   : > { %6151 = vmatpush1.bf16.msra.mxu0 %v13978_v3  ;;  %v14061_v3 = vld [vmem:[#allocation15 + $0x364] ss:$16 sps:$4 sm:$0xff]  }
 0x936   : > { %6192 = vmatpush1.bf16.msra.mxu1 %v13981_v36  ;;  %6152 = vmatprep.subr.bf16.mxu0 %v13986_v16  ;;  %v14056_v36 = vld [vmem:[#allocation15 + $0x160] ss:$16 sps:$4 sm:$0xff]  }
 0x937   : > { %6193 = vmatprep.subr.bf16.mxu1 %v13989_v18  ;;  %v14059_v16 = vld [vmem:[#allocation15 + $0x360] ss:$16 sps:$4 sm:$0xff]   ;;  %v14064_v18 = vld [vmem:[#allocation15 + $0x184] ss:$16 sps:$4 sm:$0xff]  }
 0x939   : > { %6153 = vmatpush1.bf16.msra.mxu0 %v13984_v20  ;;  %v14067_v20 = vld [vmem:[#allocation15 + $0x384] ss:$16 sps:$4 sm:$0xff]  }
 0x93a   : > { %6194 = vmatpush1.bf16.msra.mxu1 %v13987_v21  ;;  %6844 = vmatprep.subr.bf16.mxu0 %v13992_v38  ;;  %v14062_v21 = vld [vmem:[#allocation15 + $0x180] ss:$16 sps:$4 sm:$0xff]  }
 0x93b   : > { %6885 = vmatprep.subr.bf16.mxu1 %v13995_v39  ;;  %v14065_v38 = vld [vmem:[#allocation15 + $0x380] ss:$16 sps:$4 sm:$0xff]   ;;  %v14070_v39 = vld [vmem:[#allocation15 + $0x1a4] ss:$16 sps:$4 sm:$0xff]  }
 0x93c   : > { %6155 = vmatmul.mubr.bf16.vlgmr.msra.gmra.mrb[40].mxu0 %v16224_v33  ;;  %v14002_v33 = vld [vmem:[#allocation15 + $0x40] ss:$16 sps:$4 sm:$0xff]  }
 0x93d   : > { %6196 = vmatmul.mubr.bf16.vlgmr.msra.gmra.mrb[44].mxu1 %v16226_v51  ;;  %6845 = vmatpush1.bf16.msra.mxu0 %v13990_v25  ;;  %v14013_v51 = vld [vmem:[#allocation15 + $0x264] ss:$16 sps:$4 sm:$0xff]  }
 0x93e   : > { %6876 = vmatprep.mubr.bf16.mxu0 %v16232_v35  ;;  %6886 = vmatpush1.bf16.msra.mxu1 %v13993_v42  ;;  %v14073_v25 = vld [vmem:[#allocation15 + $0x3a4] ss:$16 sps:$4 sm:$0xff]   ;;  %v14068_v42 = vld [vmem:[#allocation15 + $0x1a0] ss:$16 sps:$4 sm:$0xff]  }
 0x93f   : > { %6917 = vmatprep.mubr.bf16.mxu1 %v16237_v43  ;;  %6846 = vmatprep.subr.bf16.mxu0 %v13998_v52  ;;  %v14071_v52 = vld [vmem:[#allocation15 + $0x3a0] ss:$16 sps:$4 sm:$0xff]  }
 0x940   : > { %6887 = vmatprep.subr.bf16.mxu1 %v14001_v41  ;;  %v14076_v41 = vld [vmem:[#allocation15 + $0x1c4] ss:$16 sps:$4 sm:$0xff]  }
 0x941   : > { %6847 = vmatpush1.bf16.msra.mxu0 %v13996_v45  ;;  %v14079_v45 = vld [vmem:[#allocation15 + $0x3c4] ss:$16 sps:$4 sm:$0xff]  }
 0x942   : > { %6888 = vmatpush1.bf16.msra.mxu1 %v13999_v48  ;;  %6848 = vmatprep.subr.bf16.mxu0 %v14004_v49  ;;  %v14074_v48 = vld [vmem:[#allocation15 + $0x1c0] ss:$16 sps:$4 sm:$0xff]  }
 0x943   : > { %6889 = vmatprep.subr.bf16.mxu1 %v14007_v30  ;;  %v14077_v49 = vld [vmem:[#allocation15 + $0x3c0] ss:$16 sps:$4 sm:$0xff]   ;;  %v14082_v30 = vld [vmem:[#allocation15 + $0x1e4] ss:$16 sps:$4 sm:$0xff]  }
 0x945   : > { %6849 = vmatpush1.bf16.msra.mxu0 %v14002_v33  ;;  %v14085_v33 = vld [vmem:[#allocation15 + $0x3e4] ss:$16 sps:$4 sm:$0xff]  }
 0x946   : > { %6890 = vmatpush1.bf16.msra.mxu1 %v14005_v63  ;;  %6850 = vmatprep.subr.bf16.mxu0 %v14010_v50  ;;  %v14080_v63 = vld [vmem:[#allocation15 + $0x1e0] ss:$16 sps:$4 sm:$0xff]  }
 0x947   : > { %6891 = vmatprep.subr.bf16.mxu1 %v14013_v51  ;;  %v14083_v50 = vld [vmem:[#allocation15 + $0x3e0] ss:$16 sps:$4 sm:$0xff]   ;;  %v14088_v51 = vld [vmem:[#allocation15 + $0xc] ss:$16 sps:$4 sm:$0xff]  }
 0x949   : > { %6851 = vmatpush1.bf16.msra.mxu0 %v14008_v4  ;;  %v14091_v4 = vld [vmem:[#allocation15 + $0x20c] ss:$16 sps:$4 sm:$0xff]  }
 0x94a   : > { %6892 = vmatpush1.bf16.msra.mxu1 %v14011_v53  ;;  %6852 = vmatprep.subr.bf16.mxu0 %v14016_v54  ;;  %v14086_v53 = vld [vmem:[#allocation15 + $0x8] ss:$16 sps:$4 sm:$0xff]   ;;  %v16244_v54 = vpack.c.bf16 %v16216_v61, %v16216_v61 }
 0x94b   : > { %6893 = vmatprep.subr.bf16.mxu1 %v14019_v55  ;;  %v14089_v55 = vld [vmem:[#allocation15 + $0x208] ss:$16 sps:$4 sm:$0xff]  }
 0x94c   : > { %v14095_v61 = vld [vmem:[#allocation15 + $0x228] ss:$16 sps:$4 sm:$0xff]  }
 0x94d   : > { %6853 = vmatpush1.bf16.msra.mxu0 %v14014_v56  ;;  %v16248_v56 = vpack.c.bf16 %v16218_v62, %v16218_v62  ;;  %v14098_v62 = vld [vmem:[#allocation15 + $0x48] ss:$16 sps:$4 sm:$0xff]  }
 0x94e   : > { %6894 = vmatpush1.bf16.msra.mxu1 %v14017_v57  ;;  %6854 = vmatprep.subr.bf16.mxu0 %v14022_v58  ;;  %v14094_v57 = vld [vmem:[#allocation15 + $0x2c] ss:$16 sps:$4 sm:$0xff]  }
 0x94f   : > { %6895 = vmatprep.subr.bf16.mxu1 %v14025_v59  ;;  %v14097_v58 = vld [vmem:[#allocation15 + $0x22c] ss:$16 sps:$4 sm:$0xff]   ;;  %v14092_v59 = vld [vmem:[#allocation15 + $0x28] ss:$16 sps:$4 sm:$0xff]  }
 0x951   : > { %6855 = vmatpush1.bf16.msra.mxu0 %v14020_v37  ;;  %v14100_v37 = vld [vmem:[#allocation15 + $0x4c] ss:$16 sps:$4 sm:$0xff]  }
 0x952   : > { %6896 = vmatpush1.bf16.msra.mxu1 %v14023_v60  ;;  %6856 = vmatprep.subr.bf16.mxu0 %v14028_v0  ;;  %v14103_v60 = vld [vmem:[#allocation15 + $0x24c] ss:$16 sps:$4 sm:$0xff]   ;;  %v14101_v0 = vld [vmem:[#allocation15 + $0x248] ss:$16 sps:$4 sm:$0xff]  }
 0x953   : > { %6897 = vmatprep.subr.bf16.mxu1 %v14031_v1  ;;  %v14106_v1 = vld [vmem:[#allocation15 + $0x6c] ss:$16 sps:$4 sm:$0xff]  }
 0x955   : > { %6857 = vmatpush1.bf16.msra.mxu0 %v14026_v6  ;;  %v14109_v6 = vld [vmem:[#allocation15 + $0x26c] ss:$16 sps:$4 sm:$0xff]  }
 0x956   : > { %6898 = vmatpush1.bf16.msra.mxu1 %v14029_v8  ;;  %6858 = vmatprep.subr.bf16.mxu0 %v14034_v9  ;;  %v14104_v8 = vld [vmem:[#allocation15 + $0x68] ss:$16 sps:$4 sm:$0xff]   ;;  %v14112_v9 = vld [vmem:[#allocation15 + $0x8c] ss:$16 sps:$4 sm:$0xff]  }
 0x957   : > { %6899 = vmatprep.subr.bf16.mxu1 %v14037_v28  ;;  %v14115_v28 = vld [vmem:[#allocation15 + $0x28c] ss:$16 sps:$4 sm:$0xff]  }
 0x959   : > { %6859 = vmatpush1.bf16.msra.mxu0 %v14032_v10  ;;  %v14113_v10 = vld [vmem:[#allocation15 + $0x288] ss:$16 sps:$4 sm:$0xff]  }
 0x95a   : > { %6900 = vmatpush1.bf16.msra.mxu1 %v14035_v11  ;;  %6860 = vmatprep.subr.bf16.mxu0 %v14040_v32  ;;  %v14118_v11 = vld [vmem:[#allocation15 + $0xac] ss:$16 sps:$4 sm:$0xff]  }
 0x95b   : > { %6901 = vmatprep.subr.bf16.mxu1 %v14043_v12  ;;  %v14121_v32 = vld [vmem:[#allocation15 + $0x2ac] ss:$16 sps:$4 sm:$0xff]   ;;  %v14116_v12 = vld [vmem:[#allocation15 + $0xa8] ss:$16 sps:$4 sm:$0xff]  }
 0x95d   : > { %6861 = vmatpush1.bf16.msra.mxu0 %v14038_v2  ;;  %v14119_v2 = vld [vmem:[#allocation15 + $0x2a8] ss:$16 sps:$4 sm:$0xff]  }
 0x95e   : > { %6902 = vmatpush1.bf16.msra.mxu1 %v14041_v14  ;;  %6862 = vmatprep.subr.bf16.mxu0 %v14046_v15  ;;  %v14124_v14 = vld [vmem:[#allocation15 + $0xcc] ss:$16 sps:$4 sm:$0xff]  }
 0x95f   : > { %6903 = vmatprep.subr.bf16.mxu1 %v14049_v22  ;;  %v14127_v15 = vld [vmem:[#allocation15 + $0x2cc] ss:$16 sps:$4 sm:$0xff]   ;;  %v14122_v22 = vld [vmem:[#allocation15 + $0xc8] ss:$16 sps:$4 sm:$0xff]  }
 0x961   : > { %6863 = vmatpush1.bf16.msra.mxu0 %v14044_v19  ;;  %v14125_v19 = vld [vmem:[#allocation15 + $0x2c8] ss:$16 sps:$4 sm:$0xff]  }
 0x962   : > { %6904 = vmatpush1.bf16.msra.mxu1 %v14047_v7  ;;  %6864 = vmatprep.subr.bf16.mxu0 %v14052_v44  ;;  %v14130_v7 = vld [vmem:[#allocation15 + $0xec] ss:$16 sps:$4 sm:$0xff]  }
 0x963   : > { %6905 = vmatprep.subr.bf16.mxu1 %v14055_v5  ;;  %v14133_v44 = vld [vmem:[#allocation15 + $0x2ec] ss:$16 sps:$4 sm:$0xff]   ;;  %v14128_v5 = vld [vmem:[#allocation15 + $0xe8] ss:$16 sps:$4 sm:$0xff]  }
 0x965   : > { %6865 = vmatpush1.bf16.msra.mxu0 %v14050_v17  ;;  %v14131_v17 = vld [vmem:[#allocation15 + $0x2e8] ss:$16 sps:$4 sm:$0xff]  }
 0x966   : > { %6906 = vmatpush1.bf16.msra.mxu1 %v14053_v29  ;;  %6866 = vmatprep.subr.bf16.mxu0 %v14058_v13  ;;  %v14136_v29 = vld [vmem:[#allocation15 + $0x10c] ss:$16 sps:$4 sm:$0xff]  }
 0x967   : > { %6907 = vmatprep.subr.bf16.mxu1 %v14061_v3  ;;  %v14139_v13 = vld [vmem:[#allocation15 + $0x30c] ss:$16 sps:$4 sm:$0xff]   ;;  %v14134_v3 = vld [vmem:[#allocation15 + $0x108] ss:$16 sps:$4 sm:$0xff]  }
 0x969   : > { %6867 = vmatpush1.bf16.msra.mxu0 %v14056_v36  ;;  %v14137_v36 = vld [vmem:[#allocation15 + $0x308] ss:$16 sps:$4 sm:$0xff]  }
 0x96a   : > { %6908 = vmatpush1.bf16.msra.mxu1 %v14059_v16  ;;  %6868 = vmatprep.subr.bf16.mxu0 %v14064_v18  ;;  %v14142_v16 = vld [vmem:[#allocation15 + $0x12c] ss:$16 sps:$4 sm:$0xff]  }
 0x96b   : > { %6909 = vmatprep.subr.bf16.mxu1 %v14067_v20  ;;  %v14145_v18 = vld [vmem:[#allocation15 + $0x32c] ss:$16 sps:$4 sm:$0xff]   ;;  %v14140_v20 = vld [vmem:[#allocation15 + $0x128] ss:$16 sps:$4 sm:$0xff]  }
 0x96d   : > { %6869 = vmatpush1.bf16.msra.mxu0 %v14062_v21  ;;  %v14143_v21 = vld [vmem:[#allocation15 + $0x328] ss:$16 sps:$4 sm:$0xff]  }
 0x96e   : > { %6910 = vmatpush1.bf16.msra.mxu1 %v14065_v38  ;;  %6870 = vmatprep.subr.bf16.mxu0 %v14070_v39  ;;  %v14148_v38 = vld [vmem:[#allocation15 + $0x14c] ss:$16 sps:$4 sm:$0xff]  }
 0x96f   : > { %6911 = vmatprep.subr.bf16.mxu1 %v14073_v25  ;;  %v14151_v39 = vld [vmem:[#allocation15 + $0x34c] ss:$16 sps:$4 sm:$0xff]   ;;  %v14146_v25 = vld [vmem:[#allocation15 + $0x148] ss:$16 sps:$4 sm:$0xff]  }
 0x971   : > { %6871 = vmatpush1.bf16.msra.mxu0 %v14068_v42  ;;  %v14149_v42 = vld [vmem:[#allocation15 + $0x348] ss:$16 sps:$4 sm:$0xff]  }
 0x972   : > { %6912 = vmatpush1.bf16.msra.mxu1 %v14071_v52  ;;  %6872 = vmatprep.subr.bf16.mxu0 %v14076_v41  ;;  %v14154_v52 = vld [vmem:[#allocation15 + $0x16c] ss:$16 sps:$4 sm:$0xff]  }
 0x973   : > { %6913 = vmatprep.subr.bf16.mxu1 %v14079_v45  ;;  %v14157_v41 = vld [vmem:[#allocation15 + $0x36c] ss:$16 sps:$4 sm:$0xff]   ;;  %v14152_v45 = vld [vmem:[#allocation15 + $0x168] ss:$16 sps:$4 sm:$0xff]  }
 0x975   : > { %6873 = vmatpush1.bf16.msra.mxu0 %v14074_v48  ;;  %v14155_v48 = vld [vmem:[#allocation15 + $0x368] ss:$16 sps:$4 sm:$0xff]  }
 0x976   : > { %6914 = vmatpush1.bf16.msra.mxu1 %v14077_v49  ;;  %6874 = vmatprep.subr.bf16.mxu0 %v14082_v30  ;;  %v14160_v49 = vld [vmem:[#allocation15 + $0x18c] ss:$16 sps:$4 sm:$0xff]  }
 0x977   : > { %6915 = vmatprep.subr.bf16.mxu1 %v14085_v33  ;;  %v14163_v30 = vld [vmem:[#allocation15 + $0x38c] ss:$16 sps:$4 sm:$0xff]   ;;  %v14158_v33 = vld [vmem:[#allocation15 + $0x188] ss:$16 sps:$4 sm:$0xff]  }
 0x979   : > { %6875 = vmatpush1.bf16.msra.mxu0 %v14080_v63  ;;  %v14161_v63 = vld [vmem:[#allocation15 + $0x388] ss:$16 sps:$4 sm:$0xff]  }
 0x97a   : > { %6916 = vmatpush1.bf16.msra.mxu1 %v14083_v50  ;;  %6926 = vmatprep.subr.bf16.mxu0 %v14088_v51  ;;  %v14166_v50 = vld [vmem:[#allocation15 + $0x1ac] ss:$16 sps:$4 sm:$0xff]  }
 0x97b   : > { %6967 = vmatprep.subr.bf16.mxu1 %v14091_v4  ;;  %v14169_v51 = vld [vmem:[#allocation15 + $0x3ac] ss:$16 sps:$4 sm:$0xff]   ;;  %v14164_v4 = vld [vmem:[#allocation15 + $0x1a8] ss:$16 sps:$4 sm:$0xff]  }
 0x97c   : > { %6877 = vmatmul.mubr.bf16.vlgmr.msra.gmra.mrb[44].mxu0 %v16244_v54 }
 0x97d   : > { %6918 = vmatmul.mubr.bf16.vlgmr.msra.gmra.mrb[48].mxu1 %v16248_v56  ;;  %6927 = vmatpush1.bf16.msra.mxu0 %v14086_v53  ;;  %v14167_v53 = vld [vmem:[#allocation15 + $0x3a8] ss:$16 sps:$4 sm:$0xff]  }
 0x97e   : > { %6958 = vmatprep.mubr.bf16.mxu0 %v16232_v35  ;;  %6968 = vmatpush1.bf16.msra.mxu1 %v14089_v55  ;;  %v14107_v35 = vld [vmem:[#allocation15 + $0x268] ss:$16 sps:$4 sm:$0xff]   ;;  %v14172_v55 = vld [vmem:[#allocation15 + $0x1cc] ss:$16 sps:$4 sm:$0xff]  }
 0x97f   : > { %6999 = vmatprep.mubr.bf16.mxu1 %v16237_v43  ;;  %6928 = vmatprep.subr.bf16.mxu0 %v14094_v57  ;;  %v14110_v43 = vld [vmem:[#allocation15 + $0x88] ss:$16 sps:$4 sm:$0xff]   ;;  %v14175_v57 = vld [vmem:[#allocation15 + $0x3cc] ss:$16 sps:$4 sm:$0xff]  }
 0x980   : > { %6969 = vmatprep.subr.bf16.mxu1 %v14097_v58  ;;  %v14170_v58 = vld [vmem:[#allocation15 + $0x1c8] ss:$16 sps:$4 sm:$0xff]  }
 0x981   : > { %6929 = vmatpush1.bf16.msra.mxu0 %v14092_v59  ;;  %v14173_v59 = vld [vmem:[#allocation15 + $0x3c8] ss:$16 sps:$4 sm:$0xff]  }
 0x982   : > { %6970 = vmatpush1.bf16.msra.mxu1 %v14095_v61  ;;  %6930 = vmatprep.subr.bf16.mxu0 %v14100_v37  ;;  %v14178_v61 = vld [vmem:[#allocation15 + $0x1ec] ss:$16 sps:$4 sm:$0xff]  }
 0x983   : > { %6971 = vmatprep.subr.bf16.mxu1 %v14103_v60  ;;  %v14181_v37 = vld [vmem:[#allocation15 + $0x3ec] ss:$16 sps:$4 sm:$0xff]   ;;  %v14176_v60 = vld [vmem:[#allocation15 + $0x1e8] ss:$16 sps:$4 sm:$0xff]  }
 0x985   : > { %6931 = vmatpush1.bf16.msra.mxu0 %v14098_v62  ;;  %v14179_v62 = vld [vmem:[#allocation15 + $0x3e8] ss:$16 sps:$4 sm:$0xff]  }
 0x986   : > { %6972 = vmatpush1.bf16.msra.mxu1 %v14101_v0  ;;  %6932 = vmatprep.subr.bf16.mxu0 %v14106_v1  ;;  %v7009_v0 = vld [vmem:[#allocation13 + $0x8] sm:$0xf] }
 0x987   : > { %6973 = vmatprep.subr.bf16.mxu1 %v14109_v6 }
 0x989   : > { %6933 = vmatpush1.bf16.msra.mxu0 %v14104_v8 }
 0x98a   : > { %6974 = vmatpush1.bf16.msra.mxu1 %v14107_v35  ;;  %6934 = vmatprep.subr.bf16.mxu0 %v14112_v9  ;;  %v14182_v9 = vld [vmem:[#allocation15 + $0x800] ss:$16 sps:$4 sm:$0xff]  }
 0x98b   : > { %6975 = vmatprep.subr.bf16.mxu1 %v14115_v28  ;;  %v14184_v28 = vld [vmem:[#allocation15 + $0x804] ss:$16 sps:$4 sm:$0xff]  }
 0x98d   : > { %6935 = vmatpush1.bf16.msra.mxu0 %v14110_v43  ;;  %v14185_v43 = vld [vmem:[#allocation15 + $0xa00] ss:$16 sps:$4 sm:$0xff]  }
 0x98e   : > { %6976 = vmatpush1.bf16.msra.mxu1 %v14113_v10  ;;  %6936 = vmatprep.subr.bf16.mxu0 %v14118_v11  ;;  %v14187_v10 = vld [vmem:[#allocation15 + $0xa04] ss:$16 sps:$4 sm:$0xff]  }
 0x98f   : > { %6977 = vmatprep.subr.bf16.mxu1 %v14121_v32  ;;  %v14190_v11 = vld [vmem:[#allocation15 + $0x824] ss:$16 sps:$4 sm:$0xff]  }
 0x990   : > { %v14193_v32 = vld [vmem:[#allocation15 + $0xa24] ss:$16 sps:$4 sm:$0xff]  }
 0x991   : > { %6937 = vmatpush1.bf16.msra.mxu0 %v14116_v12  ;;  %v14188_v12 = vld [vmem:[#allocation15 + $0x820] ss:$16 sps:$4 sm:$0xff]  }
 0x992   : > { %6978 = vmatpush1.bf16.msra.mxu1 %v14119_v2  ;;  %6938 = vmatprep.subr.bf16.mxu0 %v14124_v14  ;;  %v14191_v2 = vld [vmem:[#allocation15 + $0xa20] ss:$16 sps:$4 sm:$0xff]   ;;  %v14196_v14 = vld [vmem:[#allocation15 + $0x844] ss:$16 sps:$4 sm:$0xff]  }
 0x993   : > { %6979 = vmatprep.subr.bf16.mxu1 %v14127_v15  ;;  %v14199_v15 = vld [vmem:[#allocation15 + $0xa44] ss:$16 sps:$4 sm:$0xff]  }
 0x995   : > { %6939 = vmatpush1.bf16.msra.mxu0 %v14122_v22  ;;  %v14194_v22 = vld [vmem:[#allocation15 + $0x840] ss:$16 sps:$4 sm:$0xff]  }
 0x996   : > { %6980 = vmatpush1.bf16.msra.mxu1 %v14125_v19  ;;  %6940 = vmatprep.subr.bf16.mxu0 %v14130_v7  ;;  %v14197_v19 = vld [vmem:[#allocation15 + $0xa40] ss:$16 sps:$4 sm:$0xff]   ;;  %v14202_v7 = vld [vmem:[#allocation15 + $0x864] ss:$16 sps:$4 sm:$0xff]  }
 0x997   : > { %6981 = vmatprep.subr.bf16.mxu1 %v14133_v44  ;;  %v14205_v44 = vld [vmem:[#allocation15 + $0xa64] ss:$16 sps:$4 sm:$0xff]  }
 0x999   : > { %6941 = vmatpush1.bf16.msra.mxu0 %v14128_v5  ;;  %v14200_v5 = vld [vmem:[#allocation15 + $0x860] ss:$16 sps:$4 sm:$0xff]  }
 0x99a   : > { %6982 = vmatpush1.bf16.msra.mxu1 %v14131_v17  ;;  %6942 = vmatprep.subr.bf16.mxu0 %v14136_v29  ;;  %v14203_v17 = vld [vmem:[#allocation15 + $0xa60] ss:$16 sps:$4 sm:$0xff]   ;;  %v14208_v29 = vld [vmem:[#allocation15 + $0x884] ss:$16 sps:$4 sm:$0xff]  }
 0x99b   : > { %6983 = vmatprep.subr.bf16.mxu1 %v14139_v13  ;;  %v14211_v13 = vld [vmem:[#allocation15 + $0xa84] ss:$16 sps:$4 sm:$0xff]  }
 0x99d   : > { %6943 = vmatpush1.bf16.msra.mxu0 %v14134_v3  ;;  %v14206_v3 = vld [vmem:[#allocation15 + $0x880] ss:$16 sps:$4 sm:$0xff]  }
 0x99e   : > { %6984 = vmatpush1.bf16.msra.mxu1 %v14137_v36  ;;  %6944 = vmatprep.subr.bf16.mxu0 %v14142_v16  ;;  %v14209_v36 = vld [vmem:[#allocation15 + $0xa80] ss:$16 sps:$4 sm:$0xff]   ;;  %v14214_v16 = vld [vmem:[#allocation15 + $0x8a4] ss:$16 sps:$4 sm:$0xff]  }
 0x99f   : > { %6985 = vmatprep.subr.bf16.mxu1 %v14145_v18  ;;  %v14217_v18 = vld [vmem:[#allocation15 + $0xaa4] ss:$16 sps:$4 sm:$0xff]  }
 0x9a1   : > { %6945 = vmatpush1.bf16.msra.mxu0 %v14140_v20  ;;  %v14212_v20 = vld [vmem:[#allocation15 + $0x8a0] ss:$16 sps:$4 sm:$0xff]  }
 0x9a2   : > { %6986 = vmatpush1.bf16.msra.mxu1 %v14143_v21  ;;  %6946 = vmatprep.subr.bf16.mxu0 %v14148_v38  ;;  %v14215_v21 = vld [vmem:[#allocation15 + $0xaa0] ss:$16 sps:$4 sm:$0xff]   ;;  %v14220_v38 = vld [vmem:[#allocation15 + $0x8c4] ss:$16 sps:$4 sm:$0xff]  }
 0x9a3   : > { %6987 = vmatprep.subr.bf16.mxu1 %v14151_v39  ;;  %v14223_v39 = vld [vmem:[#allocation15 + $0xac4] ss:$16 sps:$4 sm:$0xff]  }
 0x9a5   : > { %6947 = vmatpush1.bf16.msra.mxu0 %v14146_v25  ;;  %v14218_v25 = vld [vmem:[#allocation15 + $0x8c0] ss:$16 sps:$4 sm:$0xff]  }
 0x9a6   : > { %6988 = vmatpush1.bf16.msra.mxu1 %v14149_v42  ;;  %6948 = vmatprep.subr.bf16.mxu0 %v14154_v52  ;;  %v14221_v42 = vld [vmem:[#allocation15 + $0xac0] ss:$16 sps:$4 sm:$0xff]   ;;  %v14226_v52 = vld [vmem:[#allocation15 + $0x8e4] ss:$16 sps:$4 sm:$0xff]  }
 0x9a7   : > { %6989 = vmatprep.subr.bf16.mxu1 %v14157_v41  ;;  %v14229_v41 = vld [vmem:[#allocation15 + $0xae4] ss:$16 sps:$4 sm:$0xff]  }
 0x9a9   : > { %6949 = vmatpush1.bf16.msra.mxu0 %v14152_v45  ;;  %v14224_v45 = vld [vmem:[#allocation15 + $0x8e0] ss:$16 sps:$4 sm:$0xff]  }
 0x9aa   : > { %6990 = vmatpush1.bf16.msra.mxu1 %v14155_v48  ;;  %6950 = vmatprep.subr.bf16.mxu0 %v14160_v49  ;;  %v14227_v48 = vld [vmem:[#allocation15 + $0xae0] ss:$16 sps:$4 sm:$0xff]   ;;  %v14232_v49 = vld [vmem:[#allocation15 + $0x904] ss:$16 sps:$4 sm:$0xff]  }
 0x9ab   : > { %6991 = vmatprep.subr.bf16.mxu1 %v14163_v30  ;;  %v14235_v30 = vld [vmem:[#allocation15 + $0xb04] ss:$16 sps:$4 sm:$0xff]  }
 0x9ad   : > { %6951 = vmatpush1.bf16.msra.mxu0 %v14158_v33  ;;  %v14230_v33 = vld [vmem:[#allocation15 + $0x900] ss:$16 sps:$4 sm:$0xff]  }
 0x9ae   : > { %6992 = vmatpush1.bf16.msra.mxu1 %v14161_v63  ;;  %6952 = vmatprep.subr.bf16.mxu0 %v14166_v50  ;;  %v14233_v63 = vld [vmem:[#allocation15 + $0xb00] ss:$16 sps:$4 sm:$0xff]   ;;  %v14238_v50 = vld [vmem:[#allocation15 + $0x924] ss:$16 sps:$4 sm:$0xff]  }
 0x9af   : > { %6993 = vmatprep.subr.bf16.mxu1 %v14169_v51  ;;  %v14241_v51 = vld [vmem:[#allocation15 + $0xb24] ss:$16 sps:$4 sm:$0xff]  }
 0x9b1   : > { %6953 = vmatpush1.bf16.msra.mxu0 %v14164_v4  ;;  %v14236_v4 = vld [vmem:[#allocation15 + $0x920] ss:$16 sps:$4 sm:$0xff]  }
 0x9b2   : > { %6994 = vmatpush1.bf16.msra.mxu1 %v14167_v53  ;;  %6954 = vmatprep.subr.bf16.mxu0 %v14172_v55  ;;  %v14239_v53 = vld [vmem:[#allocation15 + $0xb20] ss:$16 sps:$4 sm:$0xff]   ;;  %v14244_v55 = vld [vmem:[#allocation15 + $0x944] ss:$16 sps:$4 sm:$0xff]  }
 0x9b3   : > { %6995 = vmatprep.subr.bf16.mxu1 %v14175_v57  ;;  %v14247_v57 = vld [vmem:[#allocation15 + $0xb44] ss:$16 sps:$4 sm:$0xff]  }
 0x9b5   : > { %6955 = vmatpush1.bf16.msra.mxu0 %v14170_v58  ;;  %v14242_v58 = vld [vmem:[#allocation15 + $0x940] ss:$16 sps:$4 sm:$0xff]  }
 0x9b6   : > { %6996 = vmatpush1.bf16.msra.mxu1 %v14173_v59  ;;  %6956 = vmatprep.subr.bf16.mxu0 %v14178_v61  ;;  %v14245_v59 = vld [vmem:[#allocation15 + $0xb40] ss:$16 sps:$4 sm:$0xff]   ;;  %v14250_v61 = vld [vmem:[#allocation15 + $0x964] ss:$16 sps:$4 sm:$0xff]  }
 0x9b7   : > { %6997 = vmatprep.subr.bf16.mxu1 %v14181_v37  ;;  %v14253_v37 = vld [vmem:[#allocation15 + $0xb64] ss:$16 sps:$4 sm:$0xff]  }
 0x9b9   : > { %6957 = vmatpush1.bf16.msra.mxu0 %v14176_v60  ;;  %v14248_v60 = vld [vmem:[#allocation15 + $0x960] ss:$16 sps:$4 sm:$0xff]  }
 0x9ba   : > { %6998 = vmatpush1.bf16.msra.mxu1 %v14179_v62  ;;  %7013 = vmatprep.subr.bf16.mxu0 %v16198_v46  ;;  %v14251_v62 = vld [vmem:[#allocation15 + $0xb60] ss:$16 sps:$4 sm:$0xff]  }
 0x9bb   : > { %7054 = vmatprep.subr.bf16.mxu1 %v16200_v47 }
 0x9bc   : > { %6959 = vmatmul.mubr.bf16.vlgmr.msra.gmra.mrb[48].mxu0 %v16244_v54 }
 0x9bd   : > { %7000 = vmatmul.mubr.bf16.vlgmr.msra.gmra.mrb[52].mxu1 %v16248_v56  ;;  %7014 = vmatpush1.bf16.msra.mxu0 %v16194_v40 }
 0x9be   : > { %7055 = vmatpush1.bf16.msra.mxu1 %v16196_v31  ;;  %7045 = vmatprep.mubr.bf16.mxu0 %v15438_v34 }
 0x9bf   : > { %7086 = vmatprep.mubr.bf16.mxu1 %v15438_v34  ;;  %7868 = vmatprep.subr.bf16.mxu0 %v14184_v28  ;;  %v14263_v28 = vld [vmem:[#allocation15 + $0xba0] ss:$16 sps:$4 sm:$0xff]  }
 0x9c0   : > { %7909 = vmatprep.subr.bf16.mxu1 %v14187_v10 }
 0x9c4   : > { %12306 = vmatmul.mubr.msk.bf16.vlgmr.msra.gmra.mrb[52].mxu0 %vm4962_vm10, %v7009_v0 }
 0x9c5   : > { %12307 = vmatmul.mubr.msk.bf16.vlgmr.msra.gmra.mrb[56].mxu1 %vm4962_vm10, %v7009_v0  ;;  %7869 = vmatpush1.bf16.msra.mxu0 %v14182_v9  ;;  %v14256_v0 = vld [vmem:[#allocation15 + $0x984] ss:$16 sps:$4 sm:$0xff]   ;;  %v14260_v9 = vld [vmem:[#allocation15 + $0x9a0] ss:$16 sps:$4 sm:$0xff]  }
 0x9c6   : > { %7910 = vmatpush1.bf16.msra.mxu1 %v14185_v43  ;;  %7870 = vmatprep.subr.bf16.mxu0 %v14190_v11 }
 0x9c7   : > { %7911 = vmatprep.subr.bf16.mxu1 %v14193_v32 }
 0x9c9   : > { %7871 = vmatpush1.bf16.msra.mxu0 %v14188_v12 }
 0x9ca   : > { %7912 = vmatpush1.bf16.msra.mxu1 %v14191_v2  ;;  %7872 = vmatprep.subr.bf16.mxu0 %v14196_v14 }
 0x9cb   : > { %7913 = vmatprep.subr.bf16.mxu1 %v14199_v15  ;;  %v14266_v15 = vld [vmem:[#allocation15 + $0x9c0] ss:$16 sps:$4 sm:$0xff]  }
 0x9cd   : > { %7873 = vmatpush1.bf16.msra.mxu0 %v14194_v22  ;;  %v14268_v22 = vld [vmem:[#allocation15 + $0x9c4] ss:$16 sps:$4 sm:$0xff]  }
 0x9ce   : > { %7914 = vmatpush1.bf16.msra.mxu1 %v14197_v19  ;;  %7874 = vmatprep.subr.bf16.mxu0 %v14202_v7  ;;  %v14269_v19 = vld [vmem:[#allocation15 + $0xbc0] ss:$16 sps:$4 sm:$0xff]   ;;  %v14271_v7 = vld [vmem:[#allocation15 + $0xbc4] ss:$16 sps:$4 sm:$0xff]  }
 0x9cf   : > { %v6074_v46 = vpop.f32.mrb[36].mxu0  ;;  %7915 = vmatprep.subr.bf16.mxu1 %v14205_v44  ;;  %v14274_v44 = vld [vmem:[#allocation15 + $0x9e4] ss:$16 sps:$4 sm:$0xff]  }
 0x9d0   : > { %v6115_v1 = vpop.f32.mrb[40].mxu1  ;;  %v6076_v47 = vpop.f32.mrb[37].mxu0 }
 0x9d1   : > { %v16264_v6 = vadd.f32 %v6115_v1, %v6074_v46  ;;  %v6117_v54 = vpop.f32.mrb[41].mxu1  ;;  %v6078_v56 = vpop.f32.mrb[38].mxu0  ;;  %7875 = vmatpush1.bf16.msra.mxu0 %v14200_v5  ;;  %v14259_v46 = vld [vmem:[#allocation15 + $0xb84] ss:$16 sps:$4 sm:$0xff]   ;;  %v14254_v1 = vld [vmem:[#allocation15 + $0x980] ss:$16 sps:$4 sm:$0xff]  }
 0x9d2   : > { %v16266_v8 = vadd.f32 %v6117_v54, %v6076_v47  ;;  %v6119_v40 = vpop.f32.mrb[42].mxu1  ;;  %v6079_v31 = vpop.f32.mrb[39].mxu0  ;;  %7916 = vmatpush1.bf16.msra.mxu1 %v14203_v17  ;;  %7876 = vmatprep.subr.bf16.mxu0 %v14208_v29  ;;  %v14257_v47 = vld [vmem:[#allocation15 + $0xb80] ss:$16 sps:$4 sm:$0xff]   ;;  %v14262_v56 = vld [vmem:[#allocation15 + $0x9a4] ss:$16 sps:$4 sm:$0xff]  }
 0x9d3   : > { %v6120_v35 = vpop.f32.mrb[43].mxu1  ;;  %7917 = vmatprep.subr.bf16.mxu1 %v14211_v13  ;;  %v14265_v40 = vld [vmem:[#allocation15 + $0xba4] ss:$16 sps:$4 sm:$0xff]   ;;  %v14272_v17 = vld [vmem:[#allocation15 + $0x9e0] ss:$16 sps:$4 sm:$0xff]  }
 0x9d4   : > { %v14277_v5 = vld [vmem:[#allocation15 + $0xbe4] ss:$16 sps:$4 sm:$0xff]   ;;  %v14275_v29 = vld [vmem:[#allocation15 + $0xbe0] ss:$16 sps:$4 sm:$0xff]   ;;  %v14280_v13 = vld [vmem:[#allocation15 + $0x80c] ss:$16 sps:$4 sm:$0xff]  }
 0x9d5   : > { %7877 = vmatpush1.bf16.msra.mxu0 %v14206_v3  ;;  %v14283_v3 = vld [vmem:[#allocation15 + $0xa0c] ss:$16 sps:$4 sm:$0xff]  }
 0x9d6   : > { %7918 = vmatpush1.bf16.msra.mxu1 %v14209_v36  ;;  %7878 = vmatprep.subr.bf16.mxu0 %v14214_v16 }
 0x9d7   : > { %7919 = vmatprep.subr.bf16.mxu1 %v14217_v18 }
 0x9d9   : > { %7879 = vmatpush1.bf16.msra.mxu0 %v14212_v20 }
 0x9da   : > { %7920 = vmatpush1.bf16.msra.mxu1 %v14215_v21  ;;  %7880 = vmatprep.subr.bf16.mxu0 %v14220_v38 }
 0x9db   : > { %7921 = vmatprep.subr.bf16.mxu1 %v14223_v39 }
 0x9dd   : > { %7881 = vmatpush1.bf16.msra.mxu0 %v14218_v25 }
 0x9de   : > { %7922 = vmatpush1.bf16.msra.mxu1 %v14221_v42  ;;  %7882 = vmatprep.subr.bf16.mxu0 %v14226_v52 }
 0x9df   : > { %7923 = vmatprep.subr.bf16.mxu1 %v14229_v41 }
 0x9e1   : > { %7883 = vmatpush1.bf16.msra.mxu0 %v14224_v45 }
 0x9e2   : > { %7924 = vmatpush1.bf16.msra.mxu1 %v14227_v48  ;;  %7884 = vmatprep.subr.bf16.mxu0 %v14232_v49 }
 0x9e3   : > { %7925 = vmatprep.subr.bf16.mxu1 %v14235_v30 }
 0x9e5   : > { %7885 = vmatpush1.bf16.msra.mxu0 %v14230_v33 }
 0x9e6   : > { %7926 = vmatpush1.bf16.msra.mxu1 %v14233_v63  ;;  %7886 = vmatprep.subr.bf16.mxu0 %v14238_v50 }
 0x9e7   : > { %7927 = vmatprep.subr.bf16.mxu1 %v14241_v51 }
 0x9e9   : > { %7887 = vmatpush1.bf16.msra.mxu0 %v14236_v4 }
 0x9ea   : > { %7928 = vmatpush1.bf16.msra.mxu1 %v14239_v53  ;;  %7888 = vmatprep.subr.bf16.mxu0 %v14244_v55 }
 0x9eb   : > { %7929 = vmatprep.subr.bf16.mxu1 %v14247_v57 }
 0x9ed   : > { %7889 = vmatpush1.bf16.msra.mxu0 %v14242_v58 }
 0x9ee   : > { %7930 = vmatpush1.bf16.msra.mxu1 %v14245_v59  ;;  %7890 = vmatprep.subr.bf16.mxu0 %v14250_v61 }
 0x9ef   : > { %7931 = vmatprep.subr.bf16.mxu1 %v14253_v37 }
 0x9f1   : > { %7891 = vmatpush1.bf16.msra.mxu0 %v14248_v60 }
 0x9f2   : > { %7932 = vmatpush1.bf16.msra.mxu1 %v14251_v62  ;;  %7892 = vmatprep.subr.bf16.mxu0 %v14256_v0  ;;  %v14278_v62 = vld [vmem:[#allocation15 + $0x808] ss:$16 sps:$4 sm:$0xff]  }
 0x9f3   : > { %7933 = vmatprep.subr.bf16.mxu1 %v14259_v46 }
 0x9f5   : > { %7893 = vmatpush1.bf16.msra.mxu0 %v14254_v1 }
 0x9f6   : > { %7934 = vmatpush1.bf16.msra.mxu1 %v14257_v47  ;;  %7894 = vmatprep.subr.bf16.mxu0 %v14262_v56 }
 0x9f7   : > { %7935 = vmatprep.subr.bf16.mxu1 %v14265_v40 }
 0x9f9   : > { %7895 = vmatpush1.bf16.msra.mxu0 %v14260_v9  ;;  %v14284_v9 = vld [vmem:[#allocation15 + $0x828] ss:$16 sps:$4 sm:$0xff]  }
 0x9fa   : > { %7936 = vmatpush1.bf16.msra.mxu1 %v14263_v28  ;;  %7896 = vmatprep.subr.bf16.mxu0 %v14268_v22  ;;  %v14287_v28 = vld [vmem:[#allocation15 + $0xa28] ss:$16 sps:$4 sm:$0xff]   ;;  %v14304_v22 = vld [vmem:[#allocation15 + $0x88c] ss:$16 sps:$4 sm:$0xff]  }
 0x9fb   : > { %7937 = vmatprep.subr.bf16.mxu1 %v14271_v7  ;;  %v14302_v7 = vld [vmem:[#allocation15 + $0x888] ss:$16 sps:$4 sm:$0xff]  }
 0x9fd   : > { %7897 = vmatpush1.bf16.msra.mxu0 %v14266_v15  ;;  %v14299_v15 = vld [vmem:[#allocation15 + $0xa68] ss:$16 sps:$4 sm:$0xff]  }
 0x9fe   : > { %7938 = vmatpush1.bf16.msra.mxu1 %v14269_v19  ;;  %7898 = vmatprep.subr.bf16.mxu0 %v14274_v44  ;;  %v14307_v19 = vld [vmem:[#allocation15 + $0xa8c] ss:$16 sps:$4 sm:$0xff]   ;;  %v14305_v44 = vld [vmem:[#allocation15 + $0xa88] ss:$16 sps:$4 sm:$0xff]  }
 0x9ff   : > { %7939 = vmatprep.subr.bf16.mxu1 %v14277_v5  ;;  %v14310_v5 = vld [vmem:[#allocation15 + $0x8ac] ss:$16 sps:$4 sm:$0xff]  }
 0xa01   : > { %7899 = vmatpush1.bf16.msra.mxu0 %v14272_v17  ;;  %v14313_v17 = vld [vmem:[#allocation15 + $0xaac] ss:$16 sps:$4 sm:$0xff]  }
 0xa02   : > { %7940 = vmatpush1.bf16.msra.mxu1 %v14275_v29  ;;  %7950 = vmatprep.subr.bf16.mxu0 %v14280_v13  ;;  %v14308_v29 = vld [vmem:[#allocation15 + $0x8a8] ss:$16 sps:$4 sm:$0xff]  }
 0xa03   : > { %7991 = vmatprep.subr.bf16.mxu1 %v14283_v3  ;;  %v14311_v13 = vld [vmem:[#allocation15 + $0xaa8] ss:$16 sps:$4 sm:$0xff]   ;;  %v14316_v3 = vld [vmem:[#allocation15 + $0x8cc] ss:$16 sps:$4 sm:$0xff]  }
 0xa0f   : > { %v6156_v54 = vpop.f32.mrb[40].mxu0 }
 0xa10   : > { %v6197_v31 = vpop.f32.mrb[44].mxu1  ;;  %v6158_v35 = vpop.f32.mrb[41].mxu0 }
 0xa11   : > { %v6198_v43 = vadd.f32 %v6197_v31, %v6156_v54  ;;  %v6199_v10 = vpop.f32.mrb[45].mxu1  ;;  %v6160_v11 = vpop.f32.mrb[42].mxu0  ;;  %v14281_v54 = vld [vmem:[#allocation15 + $0xa08] ss:$16 sps:$4 sm:$0xff]   ;;  %v14286_v31 = vld [vmem:[#allocation15 + $0x82c] ss:$16 sps:$4 sm:$0xff]  }
 0xa12   : > { %v6200_v32 = vadd.f32 %v6199_v10, %v6158_v35  ;;  %v6201_v12 = vpop.f32.mrb[46].mxu1  ;;  %v6161_v2 = vpop.f32.mrb[43].mxu0  ;;  %v14289_v35 = vld [vmem:[#allocation15 + $0xa2c] ss:$16 sps:$4 sm:$0xff]   ;;  %v14290_v11 = vld [vmem:[#allocation15 + $0x848] ss:$16 sps:$4 sm:$0xff]  }
 0xa13   : > { %v6202_v14 = vpop.f32.mrb[47].mxu1  ;;  %v14295_v10 = vld [vmem:[#allocation15 + $0xa4c] ss:$16 sps:$4 sm:$0xff]  }
 0xa14   : > { %v14298_v12 = vld [vmem:[#allocation15 + $0x86c] ss:$16 sps:$4 sm:$0xff]   ;;  %v14296_v14 = vld [vmem:[#allocation15 + $0x868] ss:$16 sps:$4 sm:$0xff]  }
 0xa15   : > { %v14301_v2 = vld [vmem:[#allocation15 + $0xa6c] ss:$16 sps:$4 sm:$0xff]  }
 0xa4f   : > { %v6878_v36 = vpop.f32.mrb[44].mxu0 }
 0xa50   : > { %v6879_v16 = vadd.f32 %v6878_v36, %v16264_v6  ;;  %v6919_v18 = vpop.f32.mrb[48].mxu1  ;;  %v6880_v20 = vpop.f32.mrb[45].mxu0  ;;  %v14319_v36 = vld [vmem:[#allocation15 + $0xacc] ss:$16 sps:$4 sm:$0xff]  }
 0xa51   : > { %v6881_v21 = vadd.f32 %v6880_v20, %v16266_v8  ;;  %v6921_v38 = vpop.f32.mrb[49].mxu1  ;;  %v6882_v39 = vpop.f32.mrb[46].mxu0  ;;  %v14322_v20 = vld [vmem:[#allocation15 + $0x8ec] ss:$16 sps:$4 sm:$0xff]  }
 0xa52   : > { %v16270_v25 = vadd.f32 %v6919_v18, %v6879_v16  ;;  %v6923_v42 = vpop.f32.mrb[50].mxu1  ;;  %v6883_v52 = vpop.f32.mrb[47].mxu0  ;;  %v14314_v16 = vld [vmem:[#allocation15 + $0x8c8] ss:$16 sps:$4 sm:$0xff]  }
 0xa53   : > { %v16272_v41 = vadd.f32 %v6921_v38, %v6881_v21  ;;  %v6924_v45 = vpop.f32.mrb[51].mxu1  ;;  %v14317_v18 = vld [vmem:[#allocation15 + $0xac8] ss:$16 sps:$4 sm:$0xff]   ;;  %v14325_v21 = vld [vmem:[#allocation15 + $0xaec] ss:$16 sps:$4 sm:$0xff]  }
 0xa54   : > { %v14320_v38 = vld [vmem:[#allocation15 + $0x8e8] ss:$16 sps:$4 sm:$0xff]   ;;  %v14328_v42 = vld [vmem:[#allocation15 + $0x90c] ss:$16 sps:$4 sm:$0xff]  }
 0xa55   : > { %v14323_v39 = vld [vmem:[#allocation15 + $0xae8] ss:$16 sps:$4 sm:$0xff]   ;;  %v14331_v52 = vld [vmem:[#allocation15 + $0xb0c] ss:$16 sps:$4 sm:$0xff]  }
 0xa56   : > { %v14326_v45 = vld [vmem:[#allocation15 + $0x908] ss:$16 sps:$4 sm:$0xff]  }
 0xa8f   : > { %v6960_v48 = vpop.f32.mrb[48].mxu0 }
 0xa90   : > { %v6961_v49 = vadd.f32 %v6960_v48, %v6198_v43  ;;  %v7001_v30 = vpop.f32.mrb[52].mxu1  ;;  %v6962_v33 = vpop.f32.mrb[49].mxu0  ;;  %v14292_v43 = vld [vmem:[#allocation15 + $0x84c] ss:$16 sps:$4 sm:$0xff]   ;;  %v14329_v48 = vld [vmem:[#allocation15 + $0xb08] ss:$16 sps:$4 sm:$0xff]  }
 0xa91   : > { %v6963_v63 = vadd.f32 %v6962_v33, %v6200_v32  ;;  %v7003_v50 = vpop.f32.mrb[53].mxu1  ;;  %v6964_v6 = vpop.f32.mrb[50].mxu0  ;;  %v14293_v32 = vld [vmem:[#allocation15 + $0xa48] ss:$16 sps:$4 sm:$0xff]  }
 0xa92   : > { %v16274_v51 = vadd.f32 %v7001_v30, %v6961_v49  ;;  %v7005_v4 = vpop.f32.mrb[54].mxu1  ;;  %v6965_v8 = vpop.f32.mrb[51].mxu0  ;;  %v14334_v49 = vld [vmem:[#allocation15 + $0x92c] ss:$16 sps:$4 sm:$0xff]   ;;  %v14332_v33 = vld [vmem:[#allocation15 + $0x928] ss:$16 sps:$4 sm:$0xff]  }
 0xa93   : > { %v16276_v53 = vadd.f32 %v7003_v50, %v6963_v63  ;;  %v7006_v55 = vpop.f32.mrb[55].mxu1  ;;  %v14337_v30 = vld [vmem:[#allocation15 + $0xb2c] ss:$16 sps:$4 sm:$0xff]   ;;  %v14335_v63 = vld [vmem:[#allocation15 + $0xb28] ss:$16 sps:$4 sm:$0xff]  }
 0xa94   : > { %v14340_v50 = vld [vmem:[#allocation15 + $0x94c] ss:$16 sps:$4 sm:$0xff]   ;;  %v14338_v4 = vld [vmem:[#allocation15 + $0x948] ss:$16 sps:$4 sm:$0xff]  }
 0xa95   : > { %v14343_v6 = vld [vmem:[#allocation15 + $0xb4c] ss:$16 sps:$4 sm:$0xff]   ;;  %v14341_v8 = vld [vmem:[#allocation15 + $0xb48] ss:$16 sps:$4 sm:$0xff]  }
 0xa96   : > { %v14346_v55 = vld [vmem:[#allocation15 + $0x96c] ss:$16 sps:$4 sm:$0xff]  }
 0xa97   : > { %v7047_v57 = vpop.f32.mrb[52].mxu0 }
 0xa98   : > { %v7088_v58 = vpop.f32.mrb[56].mxu1  ;;  %v7049_v59 = vpop.f32.mrb[53].mxu0  ;;  %v16278_v0 = vpack.c.bf16 %v7047_v57, %v7047_v57  ;;  %v14349_v57 = vld [vmem:[#allocation15 + $0xb6c] ss:$16 sps:$4 sm:$0xff]  }
 0xa99   : > { %v7096_v61 = vpack.c.bf16 %v7049_v59, %v7049_v59  ;;  %v7090_v37 = vpop.f32.mrb[57].mxu1  ;;  %v7051_v60 = vpop.f32.mrb[54].mxu0  ;;  %v16280_v56 = vpack.c.bf16 %v7088_v58, %v7088_v58  ;;  %v14344_v58 = vld [vmem:[#allocation15 + $0x968] ss:$16 sps:$4 sm:$0xff]  }
 0xa9a   : > { %v7098_v46 = vpack.c.bf16 %v7090_v37, %v7090_v37  ;;  %v7092_v1 = vpop.f32.mrb[58].mxu1  ;;  %v7052_v47 = vpop.f32.mrb[55].mxu0  ;;  %v14347_v59 = vld [vmem:[#allocation15 + $0xb68] ss:$16 sps:$4 sm:$0xff]   ;;  %v14355_v37 = vld [vmem:[#allocation15 + $0xb8c] ss:$16 sps:$4 sm:$0xff]  }
 0xa9b   : > { %v7093_v40 = vpop.f32.mrb[59].mxu1  ;;  %7900 = vmatprep.mubr.bf16.mxu0 %v7096_v61  ;;  %v14350_v60 = vld [vmem:[#allocation15 + $0x988] ss:$16 sps:$4 sm:$0xff]   ;;  %v14361_v1 = vld [vmem:[#allocation15 + $0xbac] ss:$16 sps:$4 sm:$0xff]  }
 0xa9c   : > { %7941 = vmatprep.mubr.bf16.mxu1 %v7098_v46  ;;  %7901 = vmatmul.mubr.bf16.vlgmr.msra.gmra.mrb[56].mxu0 %v16278_v0  ;;  %v14356_v47 = vld [vmem:[#allocation15 + $0x9a8] ss:$16 sps:$4 sm:$0xff]   ;;  %v14364_v40 = vld [vmem:[#allocation15 + $0x9cc] ss:$16 sps:$4 sm:$0xff]  }
 0xa9d   : > { %7942 = vmatmul.mubr.bf16.vlgmr.msra.gmra.mrb[60].mxu1 %v16280_v56  ;;  %7951 = vmatpush1.bf16.msra.mxu0 %v14278_v62  ;;  %v14353_v62 = vld [vmem:[#allocation15 + $0xb88] ss:$16 sps:$4 sm:$0xff]  }
 0xa9e   : > { %7992 = vmatpush1.bf16.msra.mxu1 %v14281_v54  ;;  %7982 = vmatprep.mubr.bf16.mxu0 %v7096_v61  ;;  %v14352_v61 = vld [vmem:[#allocation15 + $0x98c] ss:$16 sps:$4 sm:$0xff]   ;;  %v14359_v54 = vld [vmem:[#allocation15 + $0xba8] ss:$16 sps:$4 sm:$0xff]  }
 0xa9f   : > { %8023 = vmatprep.mubr.bf16.mxu1 %v7098_v46  ;;  %7952 = vmatprep.subr.bf16.mxu0 %v14286_v31  ;;  %v14358_v46 = vld [vmem:[#allocation15 + $0x9ac] ss:$16 sps:$4 sm:$0xff]  }
 0xaa0   : > { %7993 = vmatprep.subr.bf16.mxu1 %v14289_v35  ;;  %v14367_v31 = vld [vmem:[#allocation15 + $0xbcc] ss:$16 sps:$4 sm:$0xff]   ;;  %v14362_v35 = vld [vmem:[#allocation15 + $0x9c8] ss:$16 sps:$4 sm:$0xff]  }
 0xaa1   : > { %7953 = vmatpush1.bf16.msra.mxu0 %v14284_v9  ;;  %v14365_v9 = vld [vmem:[#allocation15 + $0xbc8] ss:$16 sps:$4 sm:$0xff]  }
 0xaa2   : > { %7994 = vmatpush1.bf16.msra.mxu1 %v14287_v28  ;;  %7954 = vmatprep.subr.bf16.mxu0 %v14292_v43  ;;  %v14370_v28 = vld [vmem:[#allocation15 + $0x9ec] ss:$16 sps:$4 sm:$0xff]  }
 0xaa3   : > { %7995 = vmatprep.subr.bf16.mxu1 %v14295_v10  ;;  %v14373_v43 = vld [vmem:[#allocation15 + $0xbec] ss:$16 sps:$4 sm:$0xff]   ;;  %v14368_v10 = vld [vmem:[#allocation15 + $0x9e8] ss:$16 sps:$4 sm:$0xff]  }
 0xaa5   : > { %7955 = vmatpush1.bf16.msra.mxu0 %v14290_v11  ;;  %v14371_v11 = vld [vmem:[#allocation15 + $0xbe8] ss:$16 sps:$4 sm:$0xff]  }
 0xaa6   : > { %7996 = vmatpush1.bf16.msra.mxu1 %v14293_v32  ;;  %7956 = vmatprep.subr.bf16.mxu0 %v14298_v12  ;;  %v16288_v32 = vld [vmem:[#allocation16] ss:$8 sm:$0xf] }
 0xaa7   : > { %7997 = vmatprep.subr.bf16.mxu1 %v14301_v2 }
 0xaa9   : > { %7957 = vmatpush1.bf16.msra.mxu0 %v14296_v14 }
 0xaaa   : > { %7998 = vmatpush1.bf16.msra.mxu1 %v14299_v15  ;;  %7958 = vmatprep.subr.bf16.mxu0 %v14304_v22  ;;  %v8041_v22 = vrot.slane %v16288_v32, %v16002_v23 }
 0xaab   : > { %7999 = vmatprep.subr.bf16.mxu1 %v14307_v19 }
 0xaad   : > { %7959 = vmatpush1.bf16.msra.mxu0 %v14302_v7 }
 0xaae   : > { %8000 = vmatpush1.bf16.msra.mxu1 %v14305_v44  ;;  %7960 = vmatprep.subr.bf16.mxu0 %v14310_v5 }
 0xaaf   : > { %8001 = vmatprep.subr.bf16.mxu1 %v14313_v17 }
 0xab1   : > { %7961 = vmatpush1.bf16.msra.mxu0 %v14308_v29 }
 0xab2   : > { %8002 = vmatpush1.bf16.msra.mxu1 %v14311_v13  ;;  %7962 = vmatprep.subr.bf16.mxu0 %v14316_v3  ;;  %v16295_v13 = vld [vmem:[#allocation16 + $0x1] ss:$8 sm:$0xf] }
 0xab3   : > { %8003 = vmatprep.subr.bf16.mxu1 %v14319_v36 }
 0xab5   : > { %7963 = vmatpush1.bf16.msra.mxu0 %v14314_v16  ;;  %v16298_v16 = vld [vmem:[#allocation16 + $0x2] ss:$8 sm:$0xf] }
 0xab6   : > { %8004 = vmatpush1.bf16.msra.mxu1 %v14317_v18  ;;  %7964 = vmatprep.subr.bf16.mxu0 %v14322_v20  ;;  %v8080_v20 = vrot.slane %v16295_v13, %v16002_v23 }
 0xab7   : > { %8005 = vmatprep.subr.bf16.mxu1 %v14325_v21 }
 0xab9   : > { %7965 = vmatpush1.bf16.msra.mxu0 %v14320_v38  ;;  %v8084_v38 = vrot.slane %v16295_v13, %v16006_v26 }
 0xaba   : > { %8006 = vmatpush1.bf16.msra.mxu1 %v14323_v39  ;;  %7966 = vmatprep.subr.bf16.mxu0 %v14328_v42 }
 0xabb   : > { %8007 = vmatprep.subr.bf16.mxu1 %v14331_v52 }
 0xabd   : > { %7967 = vmatpush1.bf16.msra.mxu0 %v14326_v45 }
 0xabe   : > { %8008 = vmatpush1.bf16.msra.mxu1 %v14329_v48  ;;  %7968 = vmatprep.subr.bf16.mxu0 %v14334_v49 }
 0xabf   : > { %8009 = vmatprep.subr.bf16.mxu1 %v14337_v30 }
 0xac1   : > { %7969 = vmatpush1.bf16.msra.mxu0 %v14332_v33 }
 0xac2   : > { %8010 = vmatpush1.bf16.msra.mxu1 %v14335_v63  ;;  %7970 = vmatprep.subr.bf16.mxu0 %v14340_v50 }
 0xac3   : > { %8011 = vmatprep.subr.bf16.mxu1 %v14343_v6  ;;  %v16316_v6 = vld [vmem:[#allocation18] sm:$0x3] }
 0xac5   : > { %7971 = vmatpush1.bf16.msra.mxu0 %v14338_v4  ;;  %v14376_v4 = vld [vmem:[#allocation19 + $0x404] ss:$16 sps:$4 sm:$0xff]  }
 0xac6   : > { %8012 = vmatpush1.bf16.msra.mxu1 %v14341_v8  ;;  %7972 = vmatprep.subr.bf16.mxu0 %v14346_v55  ;;  %v16324_v8 = vld [vmem:[#allocation18 + $0x2] sm:$0x3]  ;;  %v14374_v55 = vld [vmem:[#allocation19 + $0x400] ss:$16 sps:$4 sm:$0xff]  }
 0xac7   : > { %8013 = vmatprep.subr.bf16.mxu1 %v14349_v57  ;;  %v14379_v57 = vld [vmem:[#allocation19 + $0x424] ss:$16 sps:$4 sm:$0xff]  }
 0xac9   : > { %7973 = vmatpush1.bf16.msra.mxu0 %v14344_v58  ;;  %v14377_v58 = vld [vmem:[#allocation19 + $0x420] ss:$16 sps:$4 sm:$0xff]  }
 0xaca   : > { %8014 = vmatpush1.bf16.msra.mxu1 %v14347_v59  ;;  %7974 = vmatprep.subr.bf16.mxu0 %v14352_v61  ;;  %v14382_v59 = vld [vmem:[#allocation19 + $0x444] ss:$16 sps:$4 sm:$0xff]   ;;  %v14380_v61 = vld [vmem:[#allocation19 + $0x440] ss:$16 sps:$4 sm:$0xff]  }
 0xacb   : > { %8015 = vmatprep.subr.bf16.mxu1 %v14355_v37  ;;  %v14385_v37 = vld [vmem:[#allocation19 + $0x464] ss:$16 sps:$4 sm:$0xff]  }
 0xacd   : > { %7975 = vmatpush1.bf16.msra.mxu0 %v14350_v60  ;;  %v14383_v60 = vld [vmem:[#allocation19 + $0x460] ss:$16 sps:$4 sm:$0xff]  }
 0xace   : > { %8016 = vmatpush1.bf16.msra.mxu1 %v14353_v62  ;;  %7976 = vmatprep.subr.bf16.mxu0 %v14358_v46  ;;  %v14388_v62 = vld [vmem:[#allocation19 + $0x484] ss:$16 sps:$4 sm:$0xff]   ;;  %v14386_v46 = vld [vmem:[#allocation19 + $0x480] ss:$16 sps:$4 sm:$0xff]  }
 0xacf   : > { %8017 = vmatprep.subr.bf16.mxu1 %v14361_v1  ;;  %v14391_v1 = vld [vmem:[#allocation19 + $0x4a4] ss:$16 sps:$4 sm:$0xff]  }
 0xad1   : > { %7977 = vmatpush1.bf16.msra.mxu0 %v14356_v47  ;;  %v14389_v47 = vld [vmem:[#allocation19 + $0x4a0] ss:$16 sps:$4 sm:$0xff]  }
 0xad2   : > { %8018 = vmatpush1.bf16.msra.mxu1 %v14359_v54  ;;  %7978 = vmatprep.subr.bf16.mxu0 %v14364_v40  ;;  %v14394_v54 = vld [vmem:[#allocation19 + $0x4c4] ss:$16 sps:$4 sm:$0xff]   ;;  %v14392_v40 = vld [vmem:[#allocation19 + $0x4c0] ss:$16 sps:$4 sm:$0xff]  }
 0xad3   : > { %8019 = vmatprep.subr.bf16.mxu1 %v14367_v31  ;;  %v14397_v31 = vld [vmem:[#allocation19 + $0x4e4] ss:$16 sps:$4 sm:$0xff]  }
 0xad5   : > { %7979 = vmatpush1.bf16.msra.mxu0 %v14362_v35  ;;  %v14395_v35 = vld [vmem:[#allocation19 + $0x4e0] ss:$16 sps:$4 sm:$0xff]  }
 0xad6   : > { %8020 = vmatpush1.bf16.msra.mxu1 %v14365_v9  ;;  %7980 = vmatprep.subr.bf16.mxu0 %v14370_v28  ;;  %v14400_v9 = vld [vmem:[#allocation19 + $0x504] ss:$16 sps:$4 sm:$0xff]   ;;  %v14398_v28 = vld [vmem:[#allocation19 + $0x500] ss:$16 sps:$4 sm:$0xff]  }
 0xad7   : > { %8021 = vmatprep.subr.bf16.mxu1 %v14373_v43  ;;  %v14403_v43 = vld [vmem:[#allocation19 + $0x524] ss:$16 sps:$4 sm:$0xff]  }
 0xad9   : > { %7981 = vmatpush1.bf16.msra.mxu0 %v14368_v10  ;;  %v14401_v10 = vld [vmem:[#allocation19 + $0x520] ss:$16 sps:$4 sm:$0xff]  }
 0xada   : > { %8022 = vmatpush1.bf16.msra.mxu1 %v14371_v11 }
 0xadc   : > { %7983 = vmatmul.mubr.bf16.vlgmr.msra.gmra.mrb[60].mxu0 %v16278_v0  ;;  %v8045_v0 = vrot.slane %v16288_v32, %v16006_v26 }
 0xadd   : > { %8024 = vmatmul.mubr.bf16.vlgmr.msra.gmra.mrb[64].mxu1 %v16280_v56  ;;  %8182 = vmatprep.mubr.bf16.mxu0 %v15438_v34 }
 0xade   : > { %8223 = vmatprep.mubr.bf16.mxu1 %v15438_v34 }
 0xb6f   : > { %v7902_v12 = vpop.f32.mrb[56].mxu0 }
 0xb70   : > { %v7943_v2 = vpop.f32.mrb[60].mxu1  ;;  %v7904_v14 = vpop.f32.mrb[57].mxu0 }
 0xb71   : > { %v7944_v15 = vadd.f32 %v7943_v2, %v7902_v12  ;;  %v7945_v19 = vpop.f32.mrb[61].mxu1  ;;  %v7906_v7 = vpop.f32.mrb[58].mxu0  ;;  %v14406_v12 = vld [vmem:[#allocation19 + $0x544] ss:$16 sps:$4 sm:$0xff]  }
 0xb72   : > { %v7946_v44 = vadd.f32 %v7945_v19, %v7904_v14  ;;  %v7947_v56 = vpop.f32.mrb[62].mxu1  ;;  %v7907_v5 = vpop.f32.mrb[59].mxu0 }
 0xb73   : > { %v8032_v17 = vadd.f32 %v7944_v15, %v16270_v25  ;;  %v7948_v29 = vpop.f32.mrb[63].mxu1  ;;  %v8107_v25 = vrot.slane %v16298_v16, %v16002_v23 }
 0xb74   : > { %v8033_v3 = vadd.f32 %v7946_v44, %v16272_v41  ;;  %v8111_v41 = vrot.slane %v16298_v16, %v16006_v26 }
 0xb75   : > { %v8058_v36 = vadd.f32 %v8041_v22, %v8032_v17  ;;  %v8049_v22 = vrot.slane %v16288_v32, %v16004_v24  ;;  %v14404_v17 = vld [vmem:[#allocation19 + $0x540] ss:$16 sps:$4 sm:$0xff]  }
 0xb76   : > { %v8059_v18 = vadd.f32 %v8045_v0, %v8033_v3  ;;  %v8053_v0 = vrot.slane %v16288_v32, %v16008_v27 }
 0xb77   : > { %vm8062_vm11 = vcmp.gt.f32.partialorder %v8058_v36, 0.0  ;;  %v8066_v21 = vmul.f32 0.2, %v8058_v36 }
 0xb78   : > { %vm8063_vm12 = vcmp.gt.f32.partialorder %v8059_v18, 0.0  ;;  %v8067_v39 = vmul.f32 0.2, %v8059_v18 }
 0xb79   : > { %v8070_v42 = vsel %vm8062_vm11, %v8058_v36, %v8066_v21  ;;  %v14409_v36 = vld [vmem:[#allocation19 + $0x564] ss:$16 sps:$4 sm:$0xff]  }
 0xb7a   : > { %v8071_v52 = vsel %vm8063_vm12, %v8059_v18, %v8067_v39  ;;  %v8097_v45 = vmul.f32 %v8080_v20, %v8070_v42  ;;  %v14407_v39 = vld [vmem:[#allocation19 + $0x560] ss:$16 sps:$4 sm:$0xff]   ;;  %v8115_v42 = vrot.slane %v16298_v16, %v16004_v24 }
 0xb7b   : > { %v8098_v48 = vmul.f32 %v8084_v38, %v8071_v52  ;;  %v8088_v38 = vrot.slane %v16295_v13, %v16004_v24 }
 0xb7c   : > { %v8124_v49 = vadd.f32 %v8107_v25, %v8097_v45  ;;  %v8092_v25 = vrot.slane %v16295_v13, %v16008_v27 }
 0xb7d   : > { %v8125_v30 = vadd.f32 %v8111_v41, %v8098_v48  ;;  %v14412_v41 = vld [vmem:[#allocation19 + $0x584] ss:$16 sps:$4 sm:$0xff]  }
 0xb7e   : > { %v8128_v33 = vpack.c.bf16 %v8124_v49, %v8124_v49  ;;  %v14410_v49 = vld [vmem:[#allocation19 + $0x580] ss:$16 sps:$4 sm:$0xff]  }
 0xb7f   : > { %v16308_v63 = vpack.c.bf16 %v8125_v30, %v8125_v30 }
 0xb80   : > { %v16311_v50 = vsel %vm8137_vm13, %v8128_v33, 0  ;;  %v14415_v33 = vld [vmem:[#allocation19 + $0x5a4] ss:$16 sps:$4 sm:$0xff]  }
 0xb81   : > { %12436 = vmatprep.subr.msk.bf16.mxu0 %vm8137_vm13, %v16308_v63 }
 0xb82   : > { %8151 = vmatpush1.bf16.msra.mxu0 %v16311_v50 }
 0xb83   : > { %12440 = vmatprep.subr.msk.bf16.mxu0 %vm8137_vm13, %v16308_v63 }
 0xb85   : > { %12437 = vmatmul.mubr.msk.bf16.vlgmr.msra.gmra.mrb[64].mxu0 %vm8133_vm14, %v16316_v6 }
 0xb86   : > { %8370 = vmatpush1.bf16.msra.mxu0 %v16311_v50  ;;  %8401 = vmatprep.mubr.bf16.mxu0 %v15438_v34 }
 0xb87   : > { %9224 = vmatprep.subr.bf16.mxu0 %v14376_v4 }
 0xb8d   : > { %12441 = vmatmul.mubr.msk.bf16.vlgmr.msra.gmra.mrb[68].mxu0 %vm8133_vm14, %v16324_v8 }
 0xb8e   : > { %9225 = vmatpush1.bf16.msra.mxu0 %v14374_v55 }
 0xb8f   : > { %9226 = vmatprep.subr.bf16.mxu0 %v14379_v57  ;;  %v14413_v57 = vld [vmem:[#allocation19 + $0x5a0] ss:$16 sps:$4 sm:$0xff]  }
 0xb92   : > { %9227 = vmatpush1.bf16.msra.mxu0 %v14377_v58 }
 0xb93   : > { %9228 = vmatprep.subr.bf16.mxu0 %v14382_v59 }
 0xb96   : > { %9229 = vmatpush1.bf16.msra.mxu0 %v14380_v61  ;;  %v14418_v61 = vld [vmem:[#allocation19 + $0x5c4] ss:$16 sps:$4 sm:$0xff]  }
 0xb97   : > { %9230 = vmatprep.subr.bf16.mxu0 %v14385_v37  ;;  %v14421_v37 = vld [vmem:[#allocation19 + $0x5e4] ss:$16 sps:$4 sm:$0xff]  }
 0xb9a   : > { %9231 = vmatpush1.bf16.msra.mxu0 %v14383_v60  ;;  %v14419_v60 = vld [vmem:[#allocation19 + $0x5e0] ss:$16 sps:$4 sm:$0xff]  }
 0xb9b   : > { %9232 = vmatprep.subr.bf16.mxu0 %v14388_v62  ;;  %v14422_v62 = vld [vmem:[#allocation19 + $0x600] ss:$16 sps:$4 sm:$0xff]  }
 0xb9e   : > { %9233 = vmatpush1.bf16.msra.mxu0 %v14386_v46  ;;  %v14424_v46 = vld [vmem:[#allocation19 + $0x604] ss:$16 sps:$4 sm:$0xff]  }
 0xb9f   : > { %9234 = vmatprep.subr.bf16.mxu0 %v14391_v1  ;;  %v14427_v1 = vld [vmem:[#allocation19 + $0x40c] ss:$16 sps:$4 sm:$0xff]  }
 0xba2   : > { %9235 = vmatpush1.bf16.msra.mxu0 %v14389_v47  ;;  %v14430_v47 = vld [vmem:[#allocation19 + $0x624] ss:$16 sps:$4 sm:$0xff]  }
 0xba3   : > { %9236 = vmatprep.subr.bf16.mxu0 %v14394_v54  ;;  %v14434_v54 = vld [vmem:[#allocation19 + $0x640] ss:$16 sps:$4 sm:$0xff]  }
 0xba6   : > { %9237 = vmatpush1.bf16.msra.mxu0 %v14392_v40  ;;  %v14440_v40 = vld [vmem:[#allocation19 + $0x660] ss:$16 sps:$4 sm:$0xff]  }
 0xba7   : > { %9238 = vmatprep.subr.bf16.mxu0 %v14397_v31  ;;  %v14442_v31 = vld [vmem:[#allocation19 + $0x664] ss:$16 sps:$4 sm:$0xff]  }
 0xbaa   : > { %9239 = vmatpush1.bf16.msra.mxu0 %v14395_v35  ;;  %v14446_v35 = vld [vmem:[#allocation19 + $0x680] ss:$16 sps:$4 sm:$0xff]  }
 0xbab   : > { %9240 = vmatprep.subr.bf16.mxu0 %v14400_v9  ;;  %v14448_v9 = vld [vmem:[#allocation19 + $0x684] ss:$16 sps:$4 sm:$0xff]  }
 0xbae   : > { %9241 = vmatpush1.bf16.msra.mxu0 %v14398_v28  ;;  %v14452_v28 = vld [vmem:[#allocation19 + $0x6a0] ss:$16 sps:$4 sm:$0xff]  }
 0xbaf   : > { %v7984_v11 = vpop.f32.mrb[60].mxu0  ;;  %9242 = vmatprep.subr.bf16.mxu0 %v14403_v43  ;;  %v14454_v43 = vld [vmem:[#allocation19 + $0x6a4] ss:$16 sps:$4 sm:$0xff]  }
 0xbb0   : > { %v8025_v2 = vpop.f32.mrb[64].mxu1  ;;  %v7986_v14 = vpop.f32.mrb[61].mxu0 }
 0xbb1   : > { %v8026_v15 = vadd.f32 %v8025_v2, %v7984_v11  ;;  %v8027_v19 = vpop.f32.mrb[65].mxu1  ;;  %v7988_v7 = vpop.f32.mrb[62].mxu0  ;;  %v14460_v11 = vld [vmem:[#allocation19 + $0x6c4] ss:$16 sps:$4 sm:$0xff]  }
 0xbb2   : > { %v8028_v44 = vadd.f32 %v8027_v19, %v7986_v14  ;;  %v8029_v56 = vpop.f32.mrb[66].mxu1  ;;  %v7989_v5 = vpop.f32.mrb[63].mxu0  ;;  %9243 = vmatpush1.bf16.msra.mxu0 %v14401_v10  ;;  %v14458_v10 = vld [vmem:[#allocation19 + $0x6c0] ss:$16 sps:$4 sm:$0xff]   ;;  %v14466_v2 = vld [vmem:[#allocation19 + $0x6e4] ss:$16 sps:$4 sm:$0xff]  }
 0xbb3   : > { %v8034_v29 = vadd.f32 %v8026_v15, %v16274_v51  ;;  %v8030_v3 = vpop.f32.mrb[67].mxu1  ;;  %9244 = vmatprep.subr.bf16.mxu0 %v14406_v12  ;;  %v14464_v12 = vld [vmem:[#allocation19 + $0x6e0] ss:$16 sps:$4 sm:$0xff]   ;;  %v14472_v15 = vld [vmem:[#allocation19 + $0x704] ss:$16 sps:$4 sm:$0xff]  }
 0xbb4   : > { %v8035_v18 = vadd.f32 %v8028_v44, %v16276_v53  ;;  %v8119_v53 = vrot.slane %v16298_v16, %v16008_v27  ;;  %v14416_v16 = vld [vmem:[#allocation19 + $0x5c0] ss:$16 sps:$4 sm:$0xff]   ;;  %v14478_v19 = vld [vmem:[#allocation19 + $0x724] ss:$16 sps:$4 sm:$0xff]  }
 0xbb5   : > { %v8060_v20 = vadd.f32 %v8049_v22, %v8034_v29  ;;  %v14470_v14 = vld [vmem:[#allocation19 + $0x700] ss:$16 sps:$4 sm:$0xff]   ;;  %v14484_v44 = vld [vmem:[#allocation19 + $0x744] ss:$16 sps:$4 sm:$0xff]  }
 0xbb6   : > { %v8061_v21 = vadd.f32 %v8053_v0, %v8035_v18  ;;  %9245 = vmatpush1.bf16.msra.mxu0 %v14404_v17  ;;  %v14476_v22 = vld [vmem:[#allocation19 + $0x720] ss:$16 sps:$4 sm:$0xff]   ;;  %v14490_v56 = vld [vmem:[#allocation19 + $0x764] ss:$16 sps:$4 sm:$0xff]  }
 0xbb7   : > { %vm8064_vm15 = vcmp.gt.f32.partialorder %v8060_v20, 0.0  ;;  %v8068_v32 = vmul.f32 0.2, %v8060_v20  ;;  %9246 = vmatprep.subr.bf16.mxu0 %v14409_v36  ;;  %v14482_v7 = vld [vmem:[#allocation19 + $0x740] ss:$16 sps:$4 sm:$0xff]  }
 0xbb8   : > { %vm8065_vm0 = vcmp.gt.f32.partialorder %v8061_v21, 0.0  ;;  %v8069_v51 = vmul.f32 0.2, %v8061_v21  ;;  %v14488_v0 = vld [vmem:[#allocation19 + $0x760] ss:$16 sps:$4 sm:$0xff]  }
 0xbb9   : > { %v8072_v52 = vsel %vm8064_vm15, %v8060_v20, %v8068_v32  ;;  %v14494_v5 = vld [vmem:[#allocation19 + $0x780] ss:$16 sps:$4 sm:$0xff]   ;;  %v14496_v17 = vld [vmem:[#allocation19 + $0x784] ss:$16 sps:$4 sm:$0xff]  }
 0xbba   : > { %v8073_v45 = vsel %vm8065_vm0, %v8061_v21, %v8069_v51  ;;  %v8099_v48 = vmul.f32 %v8088_v38, %v8072_v52  ;;  %9247 = vmatpush1.bf16.msra.mxu0 %v14407_v39  ;;  %v14500_v29 = vld [vmem:[#allocation19 + $0x7a0] ss:$16 sps:$4 sm:$0xff]   ;;  %v14502_v3 = vld [vmem:[#allocation19 + $0x7a4] ss:$16 sps:$4 sm:$0xff]   ;;  %v14520_v38 = vld [vmem:[#allocation19 + $0x60c] ss:$16 sps:$4 sm:$0xff]  }
 0xbbb   : > { %v8100_v30 = vmul.f32 %v8092_v25, %v8073_v45  ;;  %9248 = vmatprep.subr.bf16.mxu0 %v14412_v41  ;;  %v14508_v36 = vld [vmem:[#allocation19 + $0x7c4] ss:$16 sps:$4 sm:$0xff]   ;;  %v14506_v18 = vld [vmem:[#allocation19 + $0x7c0] ss:$16 sps:$4 sm:$0xff]   ;;  %v14425_v45 = vld [vmem:[#allocation19 + $0x408] ss:$16 sps:$4 sm:$0xff]  }
 0xbbc   : > { %v8126_v4 = vadd.f32 %v8115_v42, %v8099_v48  ;;  %v14514_v20 = vld [vmem:[#allocation19 + $0x7e4] ss:$16 sps:$4 sm:$0xff]   ;;  %v14512_v21 = vld [vmem:[#allocation19 + $0x7e0] ss:$16 sps:$4 sm:$0xff]  }
 0xbbd   : > { %v8127_v13 = vadd.f32 %v8119_v53, %v8100_v30 }
 0xbbe   : > { %v8130_v55 = vpack.c.bf16 %v8126_v4, %v8126_v4  ;;  %9249 = vmatpush1.bf16.msra.mxu0 %v14410_v49  ;;  %v14433_v49 = vld [vmem:[#allocation19 + $0x42c] ss:$16 sps:$4 sm:$0xff]  }
 0xbbf   : > { %v16342_v58 = vpack.c.bf16 %v8127_v13, %v8127_v13  ;;  %9250 = vmatprep.subr.bf16.mxu0 %v14415_v33  ;;  %v14431_v33 = vld [vmem:[#allocation19 + $0x428] ss:$16 sps:$4 sm:$0xff]   ;;  %v14439_v4 = vld [vmem:[#allocation19 + $0x44c] ss:$16 sps:$4 sm:$0xff]  }
 0xbc0   : > { %v16345_v59 = vsel %vm8137_vm13, %v8130_v55, 0  ;;  %v14437_v13 = vld [vmem:[#allocation19 + $0x448] ss:$16 sps:$4 sm:$0xff]   ;;  %v14445_v55 = vld [vmem:[#allocation19 + $0x46c] ss:$16 sps:$4 sm:$0xff]  }
 0xbc1   : > { %12438 = vmatprep.subr.msk.bf16.mxu1 %vm8137_vm13, %v16342_v58 }
 0xbc2   : > { %8192 = vmatpush1.bf16.msra.mxu1 %v16345_v59  ;;  %9251 = vmatpush1.bf16.msra.mxu0 %v14413_v57  ;;  %v14443_v57 = vld [vmem:[#allocation19 + $0x468] ss:$16 sps:$4 sm:$0xff]  }
 0xbc3   : > { %12442 = vmatprep.subr.msk.bf16.mxu1 %vm8137_vm13, %v16342_v58  ;;  %9252 = vmatprep.subr.bf16.mxu0 %v14418_v61  ;;  %v14449_v61 = vld [vmem:[#allocation19 + $0x488] ss:$16 sps:$4 sm:$0xff]  }
 0xbc5   : > { %12439 = vmatmul.mubr.msk.bf16.vlgmr.msra.gmra.mrb[68].mxu1 %vm8133_vm14, %v16316_v6  ;;  %v14428_v6 = vld [vmem:[#allocation19 + $0x620] ss:$16 sps:$4 sm:$0xff]  }
 0xbc6   : > { %8411 = vmatpush1.bf16.msra.mxu1 %v16345_v59  ;;  %8442 = vmatprep.mubr.bf16.mxu1 %v15438_v34 }
 0xbc7   : > { %9253 = vmatpush1.bf16.msra.mxu0 %v14416_v16  ;;  %9265 = vmatprep.subr.bf16.mxu1 %v14424_v46  ;;  %v14451_v16 = vld [vmem:[#allocation19 + $0x48c] ss:$16 sps:$4 sm:$0xff]   ;;  %v14461_v46 = vld [vmem:[#allocation19 + $0x4c8] ss:$16 sps:$4 sm:$0xff]  }
 0xbc8   : > { %9254 = vmatprep.subr.bf16.mxu0 %v14421_v37  ;;  %v14457_v37 = vld [vmem:[#allocation19 + $0x4ac] ss:$16 sps:$4 sm:$0xff]  }
 0xbcb   : > { %9255 = vmatpush1.bf16.msra.mxu0 %v14419_v60  ;;  %v14455_v60 = vld [vmem:[#allocation19 + $0x4a8] ss:$16 sps:$4 sm:$0xff]  }
 0xbcc   : > { %9306 = vmatprep.subr.bf16.mxu0 %v14427_v1  ;;  %v14469_v1 = vld [vmem:[#allocation19 + $0x4ec] ss:$16 sps:$4 sm:$0xff]  }
 0xbcd   : > { %12443 = vmatmul.mubr.msk.bf16.vlgmr.msra.gmra.mrb[72].mxu1 %vm8133_vm14, %v16324_v8  ;;  %v14436_v8 = vld [vmem:[#allocation19 + $0x644] ss:$16 sps:$4 sm:$0xff]  }
 0xbce   : > { %9266 = vmatpush1.bf16.msra.mxu1 %v14422_v62  ;;  %v14463_v62 = vld [vmem:[#allocation19 + $0x4cc] ss:$16 sps:$4 sm:$0xff]  }
 0xbcf   : > { %9267 = vmatprep.subr.bf16.mxu1 %v14430_v47  ;;  %v14475_v47 = vld [vmem:[#allocation19 + $0x50c] ss:$16 sps:$4 sm:$0xff]  }
 0xbd2   : > { %9268 = vmatpush1.bf16.msra.mxu1 %v14428_v6  ;;  %v14467_v6 = vld [vmem:[#allocation19 + $0x4e8] ss:$16 sps:$4 sm:$0xff]  }
 0xbd3   : > { %9269 = vmatprep.subr.bf16.mxu1 %v14436_v8  ;;  %v14481_v8 = vld [vmem:[#allocation19 + $0x52c] ss:$16 sps:$4 sm:$0xff]  }
 0xbd6   : > { %9270 = vmatpush1.bf16.msra.mxu1 %v14434_v54  ;;  %v14473_v54 = vld [vmem:[#allocation19 + $0x508] ss:$16 sps:$4 sm:$0xff]  }
 0xbd7   : > { %9271 = vmatprep.subr.bf16.mxu1 %v14442_v31  ;;  %v14487_v31 = vld [vmem:[#allocation19 + $0x54c] ss:$16 sps:$4 sm:$0xff]  }
 0xbda   : > { %9272 = vmatpush1.bf16.msra.mxu1 %v14440_v40  ;;  %v14479_v40 = vld [vmem:[#allocation19 + $0x528] ss:$16 sps:$4 sm:$0xff]  }
 0xbdb   : > { %9273 = vmatprep.subr.bf16.mxu1 %v14448_v9  ;;  %v14493_v9 = vld [vmem:[#allocation19 + $0x56c] ss:$16 sps:$4 sm:$0xff]  }
 0xbde   : > { %9274 = vmatpush1.bf16.msra.mxu1 %v14446_v35  ;;  %v14485_v35 = vld [vmem:[#allocation19 + $0x548] ss:$16 sps:$4 sm:$0xff]  }
 0xbdf   : > { %9275 = vmatprep.subr.bf16.mxu1 %v14454_v43  ;;  %v14499_v43 = vld [vmem:[#allocation19 + $0x58c] ss:$16 sps:$4 sm:$0xff]  }
 0xbe2   : > { %9276 = vmatpush1.bf16.msra.mxu1 %v14452_v28  ;;  %v14491_v28 = vld [vmem:[#allocation19 + $0x568] ss:$16 sps:$4 sm:$0xff]  }
 0xbe3   : > { %9277 = vmatprep.subr.bf16.mxu1 %v14460_v11  ;;  %v14505_v11 = vld [vmem:[#allocation19 + $0x5ac] ss:$16 sps:$4 sm:$0xff]  }
 0xbe6   : > { %9278 = vmatpush1.bf16.msra.mxu1 %v14458_v10  ;;  %v14497_v10 = vld [vmem:[#allocation19 + $0x588] ss:$16 sps:$4 sm:$0xff]  }
 0xbe7   : > { %9279 = vmatprep.subr.bf16.mxu1 %v14466_v2  ;;  %v14511_v2 = vld [vmem:[#allocation19 + $0x5cc] ss:$16 sps:$4 sm:$0xff]  }
 0xbea   : > { %9280 = vmatpush1.bf16.msra.mxu1 %v14464_v12  ;;  %v14503_v12 = vld [vmem:[#allocation19 + $0x5a8] ss:$16 sps:$4 sm:$0xff]  }
 0xbeb   : > { %9281 = vmatprep.subr.bf16.mxu1 %v14472_v15 }
 0xbee   : > { %9282 = vmatpush1.bf16.msra.mxu1 %v14470_v14 }
 0xbef   : > { %9283 = vmatprep.subr.bf16.mxu1 %v14478_v19  ;;  %v14509_v19 = vld [vmem:[#allocation19 + $0x5c8] ss:$16 sps:$4 sm:$0xff]  }
 0xbf2   : > { %9284 = vmatpush1.bf16.msra.mxu1 %v14476_v22 }
 0xbf3   : > { %9285 = vmatprep.subr.bf16.mxu1 %v14484_v44  ;;  %v14517_v44 = vld [vmem:[#allocation19 + $0x5ec] ss:$16 sps:$4 sm:$0xff]  }
 0xbf6   : > { %9286 = vmatpush1.bf16.msra.mxu1 %v14482_v7 }
 0xbf7   : > { %9287 = vmatprep.subr.bf16.mxu1 %v14490_v56  ;;  %v14523_v56 = vld [vmem:[#allocation19 + $0x4] ss:$16 sps:$4 sm:$0xff]  }
 0xbfa   : > { %9288 = vmatpush1.bf16.msra.mxu1 %v14488_v0  ;;  %v14515_v0 = vld [vmem:[#allocation19 + $0x5e8] ss:$16 sps:$4 sm:$0xff]  }
 0xbfb   : > { %9289 = vmatprep.subr.bf16.mxu1 %v14496_v17 }
 0xbfe   : > { %9290 = vmatpush1.bf16.msra.mxu1 %v14494_v5 }
 0xbff   : > { %9291 = vmatprep.subr.bf16.mxu1 %v14502_v3 }
 0xc02   : > { %9292 = vmatpush1.bf16.msra.mxu1 %v14500_v29 }
 0xc03   : > { %9293 = vmatprep.subr.bf16.mxu1 %v14508_v36  ;;  %v14518_v36 = vld [vmem:[#allocation19 + $0x608] ss:$16 sps:$4 sm:$0xff]  }
 0xc06   : > { %9294 = vmatpush1.bf16.msra.mxu1 %v14506_v18  ;;  %v14521_v18 = vld [vmem:[#allocation19] ss:$16 sps:$4 sm:$0xff]  }
 0xc07   : > { %9295 = vmatprep.subr.bf16.mxu1 %v14514_v20 }
 0xc0a   : > { %9296 = vmatpush1.bf16.msra.mxu1 %v14512_v21 }
 0xc0b   : > { %9347 = vmatprep.subr.bf16.mxu1 %v14520_v38  ;;  %v14526_v38 = vld [vmem:[#allocation19 + $0x62c] ss:$16 sps:$4 sm:$0xff]  }
 0xc58   : > { %v16358_v39 = vpop.f32.mrb[64].mxu0 }
 0xc59   : > { %v16360_v32 = vpop.f32.mrb[65].mxu0 }
 0xc5a   : > { %v8188_v25 = vpop.f32.mrb[66].mxu0 }
 0xc5b   : > { %v8189_v41 = vpop.f32.mrb[67].mxu0  ;;  %v14529_v25 = vld [vmem:[#allocation19 + $0x24] ss:$16 sps:$4 sm:$0xff]  }
 0xc5c   : > { %v16373_v41 = vpack.c.bf16 %v16360_v32, %v16360_v32  ;;  %v14533_v32 = vld [vmem:[#allocation19 + $0x40] ss:$16 sps:$4 sm:$0xff]  }
 0xc60   : > { %v8403_v51 = vpop.f32.mrb[68].mxu0 }
 0xc61   : > { %v16362_v42 = vpack.c.bf16 %v8403_v51, %v8403_v51  ;;  %v8405_v53 = vpop.f32.mrb[69].mxu0  ;;  %v14524_v51 = vld [vmem:[#allocation19 + $0x628] ss:$16 sps:$4 sm:$0xff]  }
 0xc62   : > { %v8452_v52 = vpack.c.bf16 %v8405_v53, %v8405_v53  ;;  %v8407_v48 = vpop.f32.mrb[70].mxu0  ;;  %v14527_v53 = vld [vmem:[#allocation19 + $0x20] ss:$16 sps:$4 sm:$0xff]  }
 0xc63   : > { %v8408_v30 = vpop.f32.mrb[71].mxu0  ;;  %v14530_v48 = vld [vmem:[#allocation19 + $0x648] ss:$16 sps:$4 sm:$0xff]  }
 0xc64   : > { %9256 = vmatprep.mubr.bf16.mxu0 %v8452_v52  ;;  %v14541_v30 = vld [vmem:[#allocation19 + $0x64] ss:$16 sps:$4 sm:$0xff]  }
 0xc65   : > { %9257 = vmatmul.mubr.bf16.vlgmr.msra.gmra.mrb[72].mxu0 %v16362_v42 }
 0xc66   : > { %9307 = vmatpush1.bf16.msra.mxu0 %v14425_v45  ;;  %9338 = vmatprep.mubr.bf16.mxu0 %v8452_v52  ;;  %v14532_v52 = vld [vmem:[#allocation19 + $0x64c] ss:$16 sps:$4 sm:$0xff]   ;;  %v14535_v45 = vld [vmem:[#allocation19 + $0x44] ss:$16 sps:$4 sm:$0xff]  }
 0xc67   : > { %9308 = vmatprep.subr.bf16.mxu0 %v14433_v49  ;;  %v14538_v49 = vld [vmem:[#allocation19 + $0x66c] ss:$16 sps:$4 sm:$0xff]  }
 0xc6a   : > { %9309 = vmatpush1.bf16.msra.mxu0 %v14431_v33  ;;  %v14539_v33 = vld [vmem:[#allocation19 + $0x60] ss:$16 sps:$4 sm:$0xff]  }
 0xc6b   : > { %9310 = vmatprep.subr.bf16.mxu0 %v14439_v4  ;;  %v14544_v4 = vld [vmem:[#allocation19 + $0x68c] ss:$16 sps:$4 sm:$0xff]  }
 0xc6e   : > { %9311 = vmatpush1.bf16.msra.mxu0 %v14437_v13  ;;  %v14547_v13 = vld [vmem:[#allocation19 + $0x84] ss:$16 sps:$4 sm:$0xff]  }
 0xc6f   : > { %9312 = vmatprep.subr.bf16.mxu0 %v14445_v55  ;;  %v14542_v55 = vld [vmem:[#allocation19 + $0x688] ss:$16 sps:$4 sm:$0xff]  }
 0xc72   : > { %9313 = vmatpush1.bf16.msra.mxu0 %v14443_v57  ;;  %v14545_v57 = vld [vmem:[#allocation19 + $0x80] ss:$16 sps:$4 sm:$0xff]  }
 0xc73   : > { %9314 = vmatprep.subr.bf16.mxu0 %v14451_v16  ;;  %v14550_v16 = vld [vmem:[#allocation19 + $0x6ac] ss:$16 sps:$4 sm:$0xff]  }
 0xc76   : > { %9315 = vmatpush1.bf16.msra.mxu0 %v14449_v61  ;;  %v14553_v61 = vld [vmem:[#allocation19 + $0xa4] ss:$16 sps:$4 sm:$0xff]  }
 0xc77   : > { %9316 = vmatprep.subr.bf16.mxu0 %v14457_v37  ;;  %v14548_v37 = vld [vmem:[#allocation19 + $0x6a8] ss:$16 sps:$4 sm:$0xff]  }
 0xc7a   : > { %9317 = vmatpush1.bf16.msra.mxu0 %v14455_v60  ;;  %v14551_v60 = vld [vmem:[#allocation19 + $0xa0] ss:$16 sps:$4 sm:$0xff]  }
 0xc7b   : > { %9318 = vmatprep.subr.bf16.mxu0 %v14463_v62  ;;  %v14556_v62 = vld [vmem:[#allocation19 + $0x6cc] ss:$16 sps:$4 sm:$0xff]  }
 0xc7e   : > { %9319 = vmatpush1.bf16.msra.mxu0 %v14461_v46  ;;  %v14559_v46 = vld [vmem:[#allocation19 + $0xc4] ss:$16 sps:$4 sm:$0xff]  }
 0xc7f   : > { %9320 = vmatprep.subr.bf16.mxu0 %v14469_v1  ;;  %v14554_v1 = vld [vmem:[#allocation19 + $0x6c8] ss:$16 sps:$4 sm:$0xff]  }
 0xc82   : > { %9321 = vmatpush1.bf16.msra.mxu0 %v14467_v6  ;;  %v14557_v6 = vld [vmem:[#allocation19 + $0xc0] ss:$16 sps:$4 sm:$0xff]  }
 0xc83   : > { %9322 = vmatprep.subr.bf16.mxu0 %v14475_v47  ;;  %v14562_v47 = vld [vmem:[#allocation19 + $0x6ec] ss:$16 sps:$4 sm:$0xff]  }
 0xc86   : > { %9323 = vmatpush1.bf16.msra.mxu0 %v14473_v54  ;;  %v14565_v54 = vld [vmem:[#allocation19 + $0xe4] ss:$16 sps:$4 sm:$0xff]  }
 0xc87   : > { %9324 = vmatprep.subr.bf16.mxu0 %v14481_v8  ;;  %v14560_v8 = vld [vmem:[#allocation19 + $0x6e8] ss:$16 sps:$4 sm:$0xff]  }
 0xc8a   : > { %9325 = vmatpush1.bf16.msra.mxu0 %v14479_v40  ;;  %v14563_v40 = vld [vmem:[#allocation19 + $0xe0] ss:$16 sps:$4 sm:$0xff]  }
 0xc8b   : > { %9326 = vmatprep.subr.bf16.mxu0 %v14487_v31  ;;  %v14568_v31 = vld [vmem:[#allocation19 + $0x70c] ss:$16 sps:$4 sm:$0xff]  }
 0xc8e   : > { %9327 = vmatpush1.bf16.msra.mxu0 %v14485_v35  ;;  %v14571_v35 = vld [vmem:[#allocation19 + $0x104] ss:$16 sps:$4 sm:$0xff]  }
 0xc8f   : > { %9328 = vmatprep.subr.bf16.mxu0 %v14493_v9  ;;  %v14566_v9 = vld [vmem:[#allocation19 + $0x708] ss:$16 sps:$4 sm:$0xff]  }
 0xc92   : > { %9329 = vmatpush1.bf16.msra.mxu0 %v14491_v28  ;;  %v14569_v28 = vld [vmem:[#allocation19 + $0x100] ss:$16 sps:$4 sm:$0xff]  }
 0xc93   : > { %9330 = vmatprep.subr.bf16.mxu0 %v14499_v43  ;;  %v14574_v43 = vld [vmem:[#allocation19 + $0x72c] ss:$16 sps:$4 sm:$0xff]  }
 0xc96   : > { %9331 = vmatpush1.bf16.msra.mxu0 %v14497_v10  ;;  %v14577_v10 = vld [vmem:[#allocation19 + $0x124] ss:$16 sps:$4 sm:$0xff]  }
 0xc97   : > { %9332 = vmatprep.subr.bf16.mxu0 %v14505_v11  ;;  %v14572_v11 = vld [vmem:[#allocation19 + $0x728] ss:$16 sps:$4 sm:$0xff]  }
 0xc98   : > { %v16365_v14 = vpop.f32.mrb[68].mxu1 }
 0xc99   : > { %v16367_v15 = vpop.f32.mrb[69].mxu1 }
 0xc9a   : > { %9333 = vmatpush1.bf16.msra.mxu0 %v14503_v12  ;;  %v8229_v22 = vpop.f32.mrb[70].mxu1  ;;  %v14575_v12 = vld [vmem:[#allocation19 + $0x120] ss:$16 sps:$4 sm:$0xff]  }
 0xc9b   : > { %v8230_v7 = vpop.f32.mrb[71].mxu1  ;;  %9334 = vmatprep.subr.bf16.mxu0 %v14511_v2  ;;  %v14580_v2 = vld [vmem:[#allocation19 + $0x74c] ss:$16 sps:$4 sm:$0xff]   ;;  %v14583_v22 = vld [vmem:[#allocation19 + $0x144] ss:$16 sps:$4 sm:$0xff]  }
 0xc9c   : > { %v14581_v7 = vld [vmem:[#allocation19 + $0x140] ss:$16 sps:$4 sm:$0xff]  }
 0xc9e   : > { %9335 = vmatpush1.bf16.msra.mxu0 %v14509_v19  ;;  %v14578_v19 = vld [vmem:[#allocation19 + $0x748] ss:$16 sps:$4 sm:$0xff]  }
 0xc9f   : > { %9336 = vmatprep.subr.bf16.mxu0 %v14517_v44  ;;  %v14586_v44 = vld [vmem:[#allocation19 + $0x76c] ss:$16 sps:$4 sm:$0xff]  }
 0xca0   : > { %v8444_v5 = vpop.f32.mrb[72].mxu1 }
 0xca1   : > { %v8446_v17 = vpop.f32.mrb[73].mxu1  ;;  %v16369_v20 = vpack.c.bf16 %v8444_v5, %v8444_v5  ;;  %v14587_v5 = vld [vmem:[#allocation19 + $0x160] ss:$16 sps:$4 sm:$0xff]  }
 0xca2   : > { %v8454_v29 = vpack.c.bf16 %v8446_v17, %v8446_v17  ;;  %9337 = vmatpush1.bf16.msra.mxu0 %v14515_v0  ;;  %v8448_v3 = vpop.f32.mrb[74].mxu1  ;;  %v14589_v0 = vld [vmem:[#allocation19 + $0x164] ss:$16 sps:$4 sm:$0xff]   ;;  %v14592_v17 = vld [vmem:[#allocation19 + $0x78c] ss:$16 sps:$4 sm:$0xff]  }
 0xca3   : > { %v8449_v21 = vpop.f32.mrb[75].mxu1  ;;  %10028 = vmatprep.subr.bf16.mxu0 %v14523_v56  ;;  %v14584_v56 = vld [vmem:[#allocation19 + $0x768] ss:$16 sps:$4 sm:$0xff]  }
 0xca4   : > { %9297 = vmatprep.mubr.bf16.mxu1 %v8454_v29  ;;  %v14590_v3 = vld [vmem:[#allocation19 + $0x788] ss:$16 sps:$4 sm:$0xff]   ;;  %v14601_v21 = vld [vmem:[#allocation19 + $0x1a4] ss:$16 sps:$4 sm:$0xff]  }
 0xca5   : > { %9298 = vmatmul.mubr.bf16.vlgmr.msra.gmra.mrb[76].mxu1 %v16369_v20  ;;  %9339 = vmatmul.mubr.bf16.vlgmr.msra.gmra.mrb[76].mxu0 %v16362_v42  ;;  %v14536_v42 = vld [vmem:[#allocation19 + $0x668] ss:$16 sps:$4 sm:$0xff]  }
 0xca6   : > { %9348 = vmatpush1.bf16.msra.mxu1 %v14518_v36  ;;  %10029 = vmatpush1.bf16.msra.mxu0 %v14521_v18  ;;  %v14593_v36 = vld [vmem:[#allocation19 + $0x180] ss:$16 sps:$4 sm:$0xff]   ;;  %v14598_v18 = vld [vmem:[#allocation19 + $0x7ac] ss:$16 sps:$4 sm:$0xff]  }
 0xca7   : > { %10060 = vmatprep.mubr.bf16.mxu0 %v16373_v41  ;;  %9379 = vmatprep.mubr.bf16.mxu1 %v8454_v29  ;;  %v14595_v29 = vld [vmem:[#allocation19 + $0x184] ss:$16 sps:$4 sm:$0xff]  }
 0xca8   : > { %9349 = vmatprep.subr.bf16.mxu1 %v14526_v38  ;;  %10030 = vmatprep.subr.bf16.mxu0 %v14529_v25  ;;  %v14596_v38 = vld [vmem:[#allocation19 + $0x7a8] ss:$16 sps:$4 sm:$0xff]   ;;  %v14599_v25 = vld [vmem:[#allocation19 + $0x1a0] ss:$16 sps:$4 sm:$0xff]  }
 0xcaa   : > { %9350 = vmatpush1.bf16.msra.mxu1 %v14524_v51  ;;  %10031 = vmatpush1.bf16.msra.mxu0 %v14527_v53  ;;  %v14604_v51 = vld [vmem:[#allocation19 + $0x7cc] ss:$16 sps:$4 sm:$0xff]   ;;  %v14607_v53 = vld [vmem:[#allocation19 + $0x1c4] ss:$16 sps:$4 sm:$0xff]  }
 0xcab   : > { %9351 = vmatprep.subr.bf16.mxu1 %v14532_v52  ;;  %10032 = vmatprep.subr.bf16.mxu0 %v14535_v45  ;;  %v14602_v52 = vld [vmem:[#allocation19 + $0x7c8] ss:$16 sps:$4 sm:$0xff]   ;;  %v14605_v45 = vld [vmem:[#allocation19 + $0x1c0] ss:$16 sps:$4 sm:$0xff]  }
 0xcae   : > { %9352 = vmatpush1.bf16.msra.mxu1 %v14530_v48  ;;  %10033 = vmatpush1.bf16.msra.mxu0 %v14533_v32  ;;  %v14610_v48 = vld [vmem:[#allocation19 + $0x7ec] ss:$16 sps:$4 sm:$0xff]   ;;  %v14613_v32 = vld [vmem:[#allocation19 + $0x1e4] ss:$16 sps:$4 sm:$0xff]  }
 0xcaf   : > { %9353 = vmatprep.subr.bf16.mxu1 %v14538_v49  ;;  %10034 = vmatprep.subr.bf16.mxu0 %v14541_v30  ;;  %v14608_v49 = vld [vmem:[#allocation19 + $0x7e8] ss:$16 sps:$4 sm:$0xff]   ;;  %v14611_v30 = vld [vmem:[#allocation19 + $0x1e0] ss:$16 sps:$4 sm:$0xff]  }
 0xcb2   : > { %9354 = vmatpush1.bf16.msra.mxu1 %v14536_v42  ;;  %10035 = vmatpush1.bf16.msra.mxu0 %v14539_v33  ;;  %v14616_v42 = vld [vmem:[#allocation19 + $0x204] ss:$16 sps:$4 sm:$0xff]   ;;  %v14619_v33 = vld [vmem:[#allocation19 + $0xc] ss:$16 sps:$4 sm:$0xff]  }
 0xcb3   : > { %9355 = vmatprep.subr.bf16.mxu1 %v14544_v4  ;;  %10036 = vmatprep.subr.bf16.mxu0 %v14547_v13  ;;  %v14614_v4 = vld [vmem:[#allocation19 + $0x200] ss:$16 sps:$4 sm:$0xff]   ;;  %v16380_v13 = vpack.c.bf16 %v16358_v39, %v16358_v39  ;;  %v14623_v39 = vld [vmem:[#allocation19 + $0x28] ss:$16 sps:$4 sm:$0xff]  }
 0xcb6   : > { %9356 = vmatpush1.bf16.msra.mxu1 %v14542_v55  ;;  %10037 = vmatpush1.bf16.msra.mxu0 %v14545_v57  ;;  %v14617_v55 = vld [vmem:[#allocation19 + $0x8] ss:$16 sps:$4 sm:$0xff]   ;;  %v16384_v57 = vpack.c.bf16 %v16367_v15, %v16367_v15  ;;  %v14626_v15 = vld [vmem:[#allocation19 + $0x240] ss:$16 sps:$4 sm:$0xff]  }
 0xcb7   : > { %9357 = vmatprep.subr.bf16.mxu1 %v14550_v16  ;;  %10038 = vmatprep.subr.bf16.mxu0 %v14553_v61  ;;  %v14622_v16 = vld [vmem:[#allocation19 + $0x224] ss:$16 sps:$4 sm:$0xff]   ;;  %v14625_v61 = vld [vmem:[#allocation19 + $0x2c] ss:$16 sps:$4 sm:$0xff]  }
 0xcba   : > { %9358 = vmatpush1.bf16.msra.mxu1 %v14548_v37  ;;  %10039 = vmatpush1.bf16.msra.mxu0 %v14551_v60  ;;  %v14620_v37 = vld [vmem:[#allocation19 + $0x220] ss:$16 sps:$4 sm:$0xff]   ;;  %v14628_v60 = vld [vmem:[#allocation19 + $0x244] ss:$16 sps:$4 sm:$0xff]  }
 0xcbb   : > { %9359 = vmatprep.subr.bf16.mxu1 %v14556_v62  ;;  %10040 = vmatprep.subr.bf16.mxu0 %v14559_v46  ;;  %v14631_v62 = vld [vmem:[#allocation19 + $0x4c] ss:$16 sps:$4 sm:$0xff]   ;;  %v14629_v46 = vld [vmem:[#allocation19 + $0x48] ss:$16 sps:$4 sm:$0xff]  }
 0xcbe   : > { %9360 = vmatpush1.bf16.msra.mxu1 %v14554_v1  ;;  %10041 = vmatpush1.bf16.msra.mxu0 %v14557_v6  ;;  %v14637_v1 = vld [vmem:[#allocation19 + $0x6c] ss:$16 sps:$4 sm:$0xff]   ;;  %v14632_v6 = vld [vmem:[#allocation19 + $0x260] ss:$16 sps:$4 sm:$0xff]  }
 0xcbf   : > { %9361 = vmatprep.subr.bf16.mxu1 %v14562_v47  ;;  %10042 = vmatprep.subr.bf16.mxu0 %v14565_v54  ;;  %v14635_v47 = vld [vmem:[#allocation19 + $0x68] ss:$16 sps:$4 sm:$0xff]   ;;  %v14640_v54 = vld [vmem:[#allocation19 + $0x284] ss:$16 sps:$4 sm:$0xff]  }
 0xcc2   : > { %9362 = vmatpush1.bf16.msra.mxu1 %v14560_v8  ;;  %10043 = vmatpush1.bf16.msra.mxu0 %v14563_v40  ;;  %v14638_v8 = vld [vmem:[#allocation19 + $0x280] ss:$16 sps:$4 sm:$0xff]   ;;  %v14641_v40 = vld [vmem:[#allocation19 + $0x88] ss:$16 sps:$4 sm:$0xff]  }
 0xcc3   : > { %9363 = vmatprep.subr.bf16.mxu1 %v14568_v31  ;;  %10044 = vmatprep.subr.bf16.mxu0 %v14571_v35  ;;  %v14646_v31 = vld [vmem:[#allocation19 + $0x2a4] ss:$16 sps:$4 sm:$0xff]   ;;  %v14649_v35 = vld [vmem:[#allocation19 + $0xac] ss:$16 sps:$4 sm:$0xff]  }
 0xcc6   : > { %9364 = vmatpush1.bf16.msra.mxu1 %v14566_v9  ;;  %10045 = vmatpush1.bf16.msra.mxu0 %v14569_v28  ;;  %v14644_v9 = vld [vmem:[#allocation19 + $0x2a0] ss:$16 sps:$4 sm:$0xff]   ;;  %v14647_v28 = vld [vmem:[#allocation19 + $0xa8] ss:$16 sps:$4 sm:$0xff]  }
 0xcc7   : > { %9365 = vmatprep.subr.bf16.mxu1 %v14574_v43  ;;  %10046 = vmatprep.subr.bf16.mxu0 %v14577_v10  ;;  %v14652_v43 = vld [vmem:[#allocation19 + $0x2c4] ss:$16 sps:$4 sm:$0xff]   ;;  %v14655_v10 = vld [vmem:[#allocation19 + $0xcc] ss:$16 sps:$4 sm:$0xff]  }
 0xcca   : > { %9366 = vmatpush1.bf16.msra.mxu1 %v14572_v11  ;;  %10047 = vmatpush1.bf16.msra.mxu0 %v14575_v12  ;;  %v14650_v11 = vld [vmem:[#allocation19 + $0x2c0] ss:$16 sps:$4 sm:$0xff]   ;;  %v14653_v12 = vld [vmem:[#allocation19 + $0xc8] ss:$16 sps:$4 sm:$0xff]  }
 0xccb   : > { %9367 = vmatprep.subr.bf16.mxu1 %v14580_v2  ;;  %10048 = vmatprep.subr.bf16.mxu0 %v14583_v22  ;;  %v14658_v2 = vld [vmem:[#allocation19 + $0x2e4] ss:$16 sps:$4 sm:$0xff]   ;;  %v14661_v22 = vld [vmem:[#allocation19 + $0xec] ss:$16 sps:$4 sm:$0xff]  }
 0xcce   : > { %9368 = vmatpush1.bf16.msra.mxu1 %v14578_v19  ;;  %10049 = vmatpush1.bf16.msra.mxu0 %v14581_v7  ;;  %v14656_v19 = vld [vmem:[#allocation19 + $0x2e0] ss:$16 sps:$4 sm:$0xff]   ;;  %v14659_v7 = vld [vmem:[#allocation19 + $0xe8] ss:$16 sps:$4 sm:$0xff]  }
 0xccf   : > { %9369 = vmatprep.subr.bf16.mxu1 %v14586_v44  ;;  %10050 = vmatprep.subr.bf16.mxu0 %v14589_v0  ;;  %v14664_v44 = vld [vmem:[#allocation19 + $0x304] ss:$16 sps:$4 sm:$0xff]   ;;  %v14667_v0 = vld [vmem:[#allocation19 + $0x10c] ss:$16 sps:$4 sm:$0xff]  }
 0xcd2   : > { %9370 = vmatpush1.bf16.msra.mxu1 %v14584_v56  ;;  %10051 = vmatpush1.bf16.msra.mxu0 %v14587_v5  ;;  %v14662_v56 = vld [vmem:[#allocation19 + $0x300] ss:$16 sps:$4 sm:$0xff]   ;;  %v14665_v5 = vld [vmem:[#allocation19 + $0x108] ss:$16 sps:$4 sm:$0xff]  }
 0xcd3   : > { %9371 = vmatprep.subr.bf16.mxu1 %v14592_v17  ;;  %10052 = vmatprep.subr.bf16.mxu0 %v14595_v29  ;;  %v14670_v17 = vld [vmem:[#allocation19 + $0x324] ss:$16 sps:$4 sm:$0xff]   ;;  %v14673_v29 = vld [vmem:[#allocation19 + $0x12c] ss:$16 sps:$4 sm:$0xff]  }
 0xcd6   : > { %9372 = vmatpush1.bf16.msra.mxu1 %v14590_v3  ;;  %10053 = vmatpush1.bf16.msra.mxu0 %v14593_v36  ;;  %v14668_v3 = vld [vmem:[#allocation19 + $0x320] ss:$16 sps:$4 sm:$0xff]   ;;  %v14671_v36 = vld [vmem:[#allocation19 + $0x128] ss:$16 sps:$4 sm:$0xff]  }
 0xcd7   : > { %9373 = vmatprep.subr.bf16.mxu1 %v14598_v18  ;;  %10054 = vmatprep.subr.bf16.mxu0 %v14601_v21  ;;  %v14676_v18 = vld [vmem:[#allocation19 + $0x344] ss:$16 sps:$4 sm:$0xff]   ;;  %v14679_v21 = vld [vmem:[#allocation19 + $0x14c] ss:$16 sps:$4 sm:$0xff]  }
 0xcda   : > { %9374 = vmatpush1.bf16.msra.mxu1 %v14596_v38  ;;  %10055 = vmatpush1.bf16.msra.mxu0 %v14599_v25  ;;  %v14674_v38 = vld [vmem:[#allocation19 + $0x340] ss:$16 sps:$4 sm:$0xff]   ;;  %v14677_v25 = vld [vmem:[#allocation19 + $0x148] ss:$16 sps:$4 sm:$0xff]  }
 0xcdb   : > { %9375 = vmatprep.subr.bf16.mxu1 %v14604_v51  ;;  %10056 = vmatprep.subr.bf16.mxu0 %v14607_v53  ;;  %v14682_v51 = vld [vmem:[#allocation19 + $0x364] ss:$16 sps:$4 sm:$0xff]   ;;  %v14685_v53 = vld [vmem:[#allocation19 + $0x16c] ss:$16 sps:$4 sm:$0xff]  }
 0xcde   : > { %9376 = vmatpush1.bf16.msra.mxu1 %v14602_v52  ;;  %10057 = vmatpush1.bf16.msra.mxu0 %v14605_v45  ;;  %v14680_v52 = vld [vmem:[#allocation19 + $0x360] ss:$16 sps:$4 sm:$0xff]   ;;  %v14683_v45 = vld [vmem:[#allocation19 + $0x168] ss:$16 sps:$4 sm:$0xff]  }
 0xcdf   : > { %9377 = vmatprep.subr.bf16.mxu1 %v14610_v48  ;;  %10058 = vmatprep.subr.bf16.mxu0 %v14613_v32  ;;  %v14688_v48 = vld [vmem:[#allocation19 + $0x384] ss:$16 sps:$4 sm:$0xff]   ;;  %v14691_v32 = vld [vmem:[#allocation19 + $0x18c] ss:$16 sps:$4 sm:$0xff]  }
 0xce2   : > { %9378 = vmatpush1.bf16.msra.mxu1 %v14608_v49  ;;  %10059 = vmatpush1.bf16.msra.mxu0 %v14611_v30  ;;  %v14686_v49 = vld [vmem:[#allocation19 + $0x380] ss:$16 sps:$4 sm:$0xff]   ;;  %v14689_v30 = vld [vmem:[#allocation19 + $0x188] ss:$16 sps:$4 sm:$0xff]  }
 0xce3   : > { %10069 = vmatprep.subr.bf16.mxu1 %v14616_v42  ;;  %10110 = vmatprep.subr.bf16.mxu0 %v14619_v33  ;;  %v14694_v42 = vld [vmem:[#allocation19 + $0x3a4] ss:$16 sps:$4 sm:$0xff]   ;;  %v14697_v33 = vld [vmem:[#allocation19 + $0x1ac] ss:$16 sps:$4 sm:$0xff]  }
 0xce5   : > { %9380 = vmatmul.mubr.bf16.vlgmr.msra.gmra.mrb[80].mxu1 %v16369_v20  ;;  %10061 = vmatmul.mubr.bf16.vlgmr.msra.gmra.mrb[80].mxu0 %v16380_v13  ;;  %v14634_v20 = vld [vmem:[#allocation19 + $0x264] ss:$16 sps:$4 sm:$0xff]  }
 0xce6   : > { %10070 = vmatpush1.bf16.msra.mxu1 %v14614_v4  ;;  %10101 = vmatprep.mubr.bf16.mxu1 %v16384_v57  ;;  %v14692_v4 = vld [vmem:[#allocation19 + $0x3a0] ss:$16 sps:$4 sm:$0xff]  }
 0xce7   : > { %10111 = vmatpush1.bf16.msra.mxu0 %v14617_v55  ;;  %10142 = vmatprep.mubr.bf16.mxu0 %v16373_v41  ;;  %v14643_v41 = vld [vmem:[#allocation19 + $0x8c] ss:$16 sps:$4 sm:$0xff]   ;;  %v14695_v55 = vld [vmem:[#allocation19 + $0x1a8] ss:$16 sps:$4 sm:$0xff]  }
 0xce8   : > { %10071 = vmatprep.subr.bf16.mxu1 %v14622_v16  ;;  %10112 = vmatprep.subr.bf16.mxu0 %v14625_v61  ;;  %v14700_v16 = vld [vmem:[#allocation19 + $0x3c4] ss:$16 sps:$4 sm:$0xff]   ;;  %v14703_v61 = vld [vmem:[#allocation19 + $0x1cc] ss:$16 sps:$4 sm:$0xff]  }
 0xcea   : > { %10072 = vmatpush1.bf16.msra.mxu1 %v14620_v37  ;;  %v14698_v37 = vld [vmem:[#allocation19 + $0x3c0] ss:$16 sps:$4 sm:$0xff]  }
 0xceb   : > { %10113 = vmatpush1.bf16.msra.mxu0 %v14623_v39  ;;  %10073 = vmatprep.subr.bf16.mxu1 %v14628_v60  ;;  %v14701_v39 = vld [vmem:[#allocation19 + $0x1c8] ss:$16 sps:$4 sm:$0xff]   ;;  %v14706_v60 = vld [vmem:[#allocation19 + $0x3e4] ss:$16 sps:$4 sm:$0xff]  }
 0xcec   : > { %10114 = vmatprep.subr.bf16.mxu0 %v14631_v62  ;;  %v14709_v62 = vld [vmem:[#allocation19 + $0x1ec] ss:$16 sps:$4 sm:$0xff]  }
 0xcee   : > { %10074 = vmatpush1.bf16.msra.mxu1 %v14626_v15  ;;  %v14704_v15 = vld [vmem:[#allocation19 + $0x3e0] ss:$16 sps:$4 sm:$0xff]  }
 0xcef   : > { %10115 = vmatpush1.bf16.msra.mxu0 %v14629_v46  ;;  %10075 = vmatprep.subr.bf16.mxu1 %v14634_v20  ;;  %v14707_v46 = vld [vmem:[#allocation19 + $0x1e8] ss:$16 sps:$4 sm:$0xff]   ;;  %v14712_v20 = vld [vmem:[#allocation19 + $0x20c] ss:$16 sps:$4 sm:$0xff]  }
 0xcf0   : > { %10116 = vmatprep.subr.bf16.mxu0 %v14637_v1  ;;  %v14710_v1 = vld [vmem:[#allocation19 + $0x208] ss:$16 sps:$4 sm:$0xff]  }
 0xcf2   : > { %10076 = vmatpush1.bf16.msra.mxu1 %v14632_v6  ;;  %v16392_v6 = vpack.c.bf16 %v16365_v14, %v16365_v14  ;;  %v14716_v14 = vld [vmem:[#allocation19 + $0x248] ss:$16 sps:$4 sm:$0xff]  }
 0xcf3   : > { %10117 = vmatpush1.bf16.msra.mxu0 %v14635_v47  ;;  %10077 = vmatprep.subr.bf16.mxu1 %v14640_v54  ;;  %v14715_v47 = vld [vmem:[#allocation19 + $0x22c] ss:$16 sps:$4 sm:$0xff]   ;;  %v14713_v54 = vld [vmem:[#allocation19 + $0x228] ss:$16 sps:$4 sm:$0xff]  }
 0xcf4   : > { %10118 = vmatprep.subr.bf16.mxu0 %v14643_v41  ;;  %v14718_v41 = vld [vmem:[#allocation19 + $0x24c] ss:$16 sps:$4 sm:$0xff]  }
 0xcf6   : > { %10078 = vmatpush1.bf16.msra.mxu1 %v14638_v8  ;;  %v16401_v8 = vld [vmem:[#allocation18 + $0x4] sm:$0x3] }
 0xcf7   : > { %10119 = vmatpush1.bf16.msra.mxu0 %v14641_v40  ;;  %10079 = vmatprep.subr.bf16.mxu1 %v14646_v31  ;;  %v14724_v40 = vld [vmem:[#allocation19 + $0x28c] ss:$16 sps:$4 sm:$0xff]   ;;  %v14725_v31 = vld [vmem:[#allocation19 + $0x2a8] ss:$16 sps:$4 sm:$0xff]  }
 0xcf8   : > { %10120 = vmatprep.subr.bf16.mxu0 %v14649_v35  ;;  %v14730_v35 = vld [vmem:[#allocation19 + $0x2cc] ss:$16 sps:$4 sm:$0xff]  }
 0xcfa   : > { %10080 = vmatpush1.bf16.msra.mxu1 %v14644_v9 }
 0xcfb   : > { %10121 = vmatpush1.bf16.msra.mxu0 %v14647_v28  ;;  %10081 = vmatprep.subr.bf16.mxu1 %v14652_v43  ;;  %v14728_v43 = vld [vmem:[#allocation19 + $0x2c8] ss:$16 sps:$4 sm:$0xff]  }
 0xcfc   : > { %10122 = vmatprep.subr.bf16.mxu0 %v14655_v10  ;;  %v14733_v10 = vld [vmem:[#allocation19 + $0x2ec] ss:$16 sps:$4 sm:$0xff]  }
 0xcfe   : > { %10082 = vmatpush1.bf16.msra.mxu1 %v14650_v11 }
 0xcff   : > { %10123 = vmatpush1.bf16.msra.mxu0 %v14653_v12  ;;  %10083 = vmatprep.subr.bf16.mxu1 %v14658_v2  ;;  %v14758_v2 = vld [vmem:[#allocation19 + $0x800] ss:$16 sps:$4 sm:$0xff]  }
 0xd00   : > { %10124 = vmatprep.subr.bf16.mxu0 %v14661_v22  ;;  %v14760_v22 = vld [vmem:[#allocation19 + $0x804] ss:$16 sps:$4 sm:$0xff]  }
 0xd02   : > { %10084 = vmatpush1.bf16.msra.mxu1 %v14656_v19  ;;  %v14763_v19 = vld [vmem:[#allocation19 + $0x824] ss:$16 sps:$4 sm:$0xff]  }
 0xd03   : > { %10125 = vmatpush1.bf16.msra.mxu0 %v14659_v7  ;;  %10085 = vmatprep.subr.bf16.mxu1 %v14664_v44  ;;  %v14731_v7 = vld [vmem:[#allocation19 + $0x2e8] ss:$16 sps:$4 sm:$0xff]   ;;  %v14761_v44 = vld [vmem:[#allocation19 + $0x820] ss:$16 sps:$4 sm:$0xff]  }
 0xd04   : > { %10126 = vmatprep.subr.bf16.mxu0 %v14667_v0  ;;  %v14736_v0 = vld [vmem:[#allocation19 + $0x30c] ss:$16 sps:$4 sm:$0xff]  }
 0xd06   : > { %10086 = vmatpush1.bf16.msra.mxu1 %v14662_v56  ;;  %v14766_v56 = vld [vmem:[#allocation19 + $0x844] ss:$16 sps:$4 sm:$0xff]  }
 0xd07   : > { %10127 = vmatpush1.bf16.msra.mxu0 %v14665_v5  ;;  %10087 = vmatprep.subr.bf16.mxu1 %v14670_v17  ;;  %v14734_v5 = vld [vmem:[#allocation19 + $0x308] ss:$16 sps:$4 sm:$0xff]   ;;  %v14764_v17 = vld [vmem:[#allocation19 + $0x840] ss:$16 sps:$4 sm:$0xff]  }
 0xd08   : > { %10128 = vmatprep.subr.bf16.mxu0 %v14673_v29  ;;  %v14739_v29 = vld [vmem:[#allocation19 + $0x32c] ss:$16 sps:$4 sm:$0xff]  }
 0xd0a   : > { %10088 = vmatpush1.bf16.msra.mxu1 %v14668_v3  ;;  %v14769_v3 = vld [vmem:[#allocation19 + $0x864] ss:$16 sps:$4 sm:$0xff]  }
 0xd0b   : > { %10129 = vmatpush1.bf16.msra.mxu0 %v14671_v36  ;;  %10089 = vmatprep.subr.bf16.mxu1 %v14676_v18  ;;  %v14737_v36 = vld [vmem:[#allocation19 + $0x328] ss:$16 sps:$4 sm:$0xff]   ;;  %v14767_v18 = vld [vmem:[#allocation19 + $0x860] ss:$16 sps:$4 sm:$0xff]  }
 0xd0c   : > { %10130 = vmatprep.subr.bf16.mxu0 %v14679_v21  ;;  %v14742_v21 = vld [vmem:[#allocation19 + $0x34c] ss:$16 sps:$4 sm:$0xff]  }
 0xd0e   : > { %10090 = vmatpush1.bf16.msra.mxu1 %v14674_v38  ;;  %v14772_v38 = vld [vmem:[#allocation19 + $0x884] ss:$16 sps:$4 sm:$0xff]  }
 0xd0f   : > { %10131 = vmatpush1.bf16.msra.mxu0 %v14677_v25  ;;  %10091 = vmatprep.subr.bf16.mxu1 %v14682_v51  ;;  %v14740_v25 = vld [vmem:[#allocation19 + $0x348] ss:$16 sps:$4 sm:$0xff]   ;;  %v14770_v51 = vld [vmem:[#allocation19 + $0x880] ss:$16 sps:$4 sm:$0xff]  }
 0xd10   : > { %10132 = vmatprep.subr.bf16.mxu0 %v14685_v53  ;;  %v14745_v53 = vld [vmem:[#allocation19 + $0x36c] ss:$16 sps:$4 sm:$0xff]  }
 0xd12   : > { %10092 = vmatpush1.bf16.msra.mxu1 %v14680_v52  ;;  %v14775_v52 = vld [vmem:[#allocation19 + $0x8a4] ss:$16 sps:$4 sm:$0xff]  }
 0xd13   : > { %10133 = vmatpush1.bf16.msra.mxu0 %v14683_v45  ;;  %10093 = vmatprep.subr.bf16.mxu1 %v14688_v48  ;;  %v14743_v45 = vld [vmem:[#allocation19 + $0x368] ss:$16 sps:$4 sm:$0xff]   ;;  %v14773_v48 = vld [vmem:[#allocation19 + $0x8a0] ss:$16 sps:$4 sm:$0xff]  }
 0xd14   : > { %10134 = vmatprep.subr.bf16.mxu0 %v14691_v32  ;;  %v14748_v32 = vld [vmem:[#allocation19 + $0x38c] ss:$16 sps:$4 sm:$0xff]  }
 0xd16   : > { %10094 = vmatpush1.bf16.msra.mxu1 %v14686_v49  ;;  %v14778_v49 = vld [vmem:[#allocation19 + $0x8c4] ss:$16 sps:$4 sm:$0xff]  }
 0xd17   : > { %10135 = vmatpush1.bf16.msra.mxu0 %v14689_v30  ;;  %10095 = vmatprep.subr.bf16.mxu1 %v14694_v42  ;;  %v14746_v30 = vld [vmem:[#allocation19 + $0x388] ss:$16 sps:$4 sm:$0xff]   ;;  %v14776_v42 = vld [vmem:[#allocation19 + $0x8c0] ss:$16 sps:$4 sm:$0xff]  }
 0xd18   : > { %10136 = vmatprep.subr.bf16.mxu0 %v14697_v33  ;;  %v14751_v33 = vld [vmem:[#allocation19 + $0x3ac] ss:$16 sps:$4 sm:$0xff]  }
 0xd1a   : > { %10096 = vmatpush1.bf16.msra.mxu1 %v14692_v4  ;;  %v14781_v4 = vld [vmem:[#allocation19 + $0x8e4] ss:$16 sps:$4 sm:$0xff]  }
 0xd1b   : > { %10137 = vmatpush1.bf16.msra.mxu0 %v14695_v55  ;;  %10097 = vmatprep.subr.bf16.mxu1 %v14700_v16  ;;  %v14749_v55 = vld [vmem:[#allocation19 + $0x3a8] ss:$16 sps:$4 sm:$0xff]   ;;  %v14779_v16 = vld [vmem:[#allocation19 + $0x8e0] ss:$16 sps:$4 sm:$0xff]  }
 0xd1c   : > { %10138 = vmatprep.subr.bf16.mxu0 %v14703_v61  ;;  %v14754_v61 = vld [vmem:[#allocation19 + $0x3cc] ss:$16 sps:$4 sm:$0xff]  }
 0xd1e   : > { %10098 = vmatpush1.bf16.msra.mxu1 %v14698_v37  ;;  %v14784_v37 = vld [vmem:[#allocation19 + $0x904] ss:$16 sps:$4 sm:$0xff]  }
 0xd1f   : > { %10139 = vmatpush1.bf16.msra.mxu0 %v14701_v39  ;;  %10099 = vmatprep.subr.bf16.mxu1 %v14706_v60  ;;  %v14752_v39 = vld [vmem:[#allocation19 + $0x3c8] ss:$16 sps:$4 sm:$0xff]   ;;  %v14782_v60 = vld [vmem:[#allocation19 + $0x900] ss:$16 sps:$4 sm:$0xff]  }
 0xd20   : > { %10140 = vmatprep.subr.bf16.mxu0 %v14709_v62  ;;  %v14757_v62 = vld [vmem:[#allocation19 + $0x3ec] ss:$16 sps:$4 sm:$0xff]  }
 0xd22   : > { %10100 = vmatpush1.bf16.msra.mxu1 %v14704_v15  ;;  %v14787_v15 = vld [vmem:[#allocation19 + $0x924] ss:$16 sps:$4 sm:$0xff]  }
 0xd23   : > { %10141 = vmatpush1.bf16.msra.mxu0 %v14707_v46  ;;  %10151 = vmatprep.subr.bf16.mxu1 %v14712_v20  ;;  %v14755_v46 = vld [vmem:[#allocation19 + $0x3e8] ss:$16 sps:$4 sm:$0xff]   ;;  %v14785_v20 = vld [vmem:[#allocation19 + $0x920] ss:$16 sps:$4 sm:$0xff]  }
 0xd24   : > { %12700 = vmatprep.subr.msk.bf16.mxu0 %vm8137_vm13, %v16308_v63  ;;  %v14721_v63 = vld [vmem:[#allocation19 + $0x26c] ss:$16 sps:$4 sm:$0xff]  }
 0xd25   : > { %10102 = vmatmul.mubr.bf16.vlgmr.msra.gmra.mrb[84].mxu1 %v16392_v6 }
 0xd26   : > { %10143 = vmatmul.mubr.bf16.vlgmr.msra.gmra.mrb[84].mxu0 %v16380_v13  ;;  %10152 = vmatpush1.bf16.msra.mxu1 %v14710_v1  ;;  %v14719_v13 = vld [vmem:[#allocation19 + $0x268] ss:$16 sps:$4 sm:$0xff]   ;;  %v14790_v1 = vld [vmem:[#allocation19 + $0x944] ss:$16 sps:$4 sm:$0xff]  }
 0xd27   : > { %10183 = vmatprep.mubr.bf16.mxu1 %v16384_v57  ;;  %10198 = vmatpush1.bf16.msra.mxu0 %v16311_v50  ;;  %v14722_v57 = vld [vmem:[#allocation19 + $0x288] ss:$16 sps:$4 sm:$0xff]   ;;  %v14727_v50 = vld [vmem:[#allocation19 + $0x2ac] ss:$16 sps:$4 sm:$0xff]  }
 0xd28   : > { %10153 = vmatprep.subr.bf16.mxu1 %v14715_v47  ;;  %10229 = vmatprep.mubr.bf16.mxu0 %v15438_v34  ;;  %v14788_v47 = vld [vmem:[#allocation19 + $0x940] ss:$16 sps:$4 sm:$0xff]  }
 0xd29   : > { %11052 = vmatprep.subr.bf16.mxu0 %v14760_v22  ;;  %v14808_v22 = vld [vmem:[#allocation19 + $0xa04] ss:$16 sps:$4 sm:$0xff]  }
 0xd2a   : > { %10154 = vmatpush1.bf16.msra.mxu1 %v14713_v54  ;;  %v14793_v54 = vld [vmem:[#allocation19 + $0x964] ss:$16 sps:$4 sm:$0xff]  }
 0xd2b   : > { %10155 = vmatprep.subr.bf16.mxu1 %v14718_v41  ;;  %v14791_v41 = vld [vmem:[#allocation19 + $0x960] ss:$16 sps:$4 sm:$0xff]  }
 0xd2e   : > { %10156 = vmatpush1.bf16.msra.mxu1 %v14716_v14  ;;  %12701 = vmatmul.mubr.msk.bf16.vlgmr.msra.gmra.mrb[88].mxu0 %vm8133_vm14, %v16401_v8  ;;  %v14796_v14 = vld [vmem:[#allocation19 + $0x984] ss:$16 sps:$4 sm:$0xff]  }
 0xd2f   : > { %10157 = vmatprep.subr.bf16.mxu1 %v14721_v63  ;;  %11053 = vmatpush1.bf16.msra.mxu0 %v14758_v2  ;;  %v14794_v63 = vld [vmem:[#allocation19 + $0x980] ss:$16 sps:$4 sm:$0xff]  }
 0xd30   : > { %11054 = vmatprep.subr.bf16.mxu0 %v14763_v19  ;;  %v14806_v2 = vld [vmem:[#allocation19 + $0xa00] ss:$16 sps:$4 sm:$0xff]   ;;  %v14811_v19 = vld [vmem:[#allocation19 + $0x80c] ss:$16 sps:$4 sm:$0xff]  }
 0xd32   : > { %10158 = vmatpush1.bf16.msra.mxu1 %v14719_v13 }
 0xd33   : > { %10159 = vmatprep.subr.bf16.mxu1 %v14724_v40  ;;  %11055 = vmatpush1.bf16.msra.mxu0 %v14761_v44  ;;  %v14799_v40 = vld [vmem:[#allocation19 + $0x9a4] ss:$16 sps:$4 sm:$0xff]   ;;  %v14818_v44 = vld [vmem:[#allocation19 + $0xa40] ss:$16 sps:$4 sm:$0xff]  }
 0xd34   : > { %11056 = vmatprep.subr.bf16.mxu0 %v14766_v56  ;;  %v14824_v56 = vld [vmem:[#allocation19 + $0xa60] ss:$16 sps:$4 sm:$0xff]  }
 0xd36   : > { %10160 = vmatpush1.bf16.msra.mxu1 %v14722_v57  ;;  %v14797_v57 = vld [vmem:[#allocation19 + $0x9a0] ss:$16 sps:$4 sm:$0xff]  }
 0xd37   : > { %10161 = vmatprep.subr.bf16.mxu1 %v14727_v50  ;;  %11057 = vmatpush1.bf16.msra.mxu0 %v14764_v17  ;;  %v14830_v17 = vld [vmem:[#allocation19 + $0xa80] ss:$16 sps:$4 sm:$0xff]  }
 0xd38   : > { %v16405_v9 = vpop.f32.mrb[72].mxu0  ;;  %11058 = vmatprep.subr.bf16.mxu0 %v14769_v3  ;;  %v14836_v3 = vld [vmem:[#allocation19 + $0xaa0] ss:$16 sps:$4 sm:$0xff]  }
 0xd39   : > { %v16407_v28 = vpop.f32.mrb[73].mxu0 }
 0xd3a   : > { %10162 = vmatpush1.bf16.msra.mxu1 %v14725_v31  ;;  %v9262_v11 = vpop.f32.mrb[74].mxu0 }
 0xd3b   : > { %10163 = vmatprep.subr.bf16.mxu1 %v14730_v35  ;;  %v9263_v12 = vpop.f32.mrb[75].mxu0  ;;  %11059 = vmatpush1.bf16.msra.mxu0 %v14767_v18  ;;  %v14802_v11 = vld [vmem:[#allocation19 + $0x9c4] ss:$16 sps:$4 sm:$0xff]   ;;  %v14842_v18 = vld [vmem:[#allocation19 + $0xac0] ss:$16 sps:$4 sm:$0xff]  }
 0xd3c   : > { %11060 = vmatprep.subr.bf16.mxu0 %v14772_v38  ;;  %v14805_v12 = vld [vmem:[#allocation19 + $0x9e4] ss:$16 sps:$4 sm:$0xff]   ;;  %v14848_v38 = vld [vmem:[#allocation19 + $0xae0] ss:$16 sps:$4 sm:$0xff]  }
 0xd3e   : > { %10164 = vmatpush1.bf16.msra.mxu1 %v14728_v43 }
 0xd3f   : > { %10165 = vmatprep.subr.bf16.mxu1 %v14733_v10  ;;  %11061 = vmatpush1.bf16.msra.mxu0 %v14770_v51  ;;  %v14800_v10 = vld [vmem:[#allocation19 + $0x9c0] ss:$16 sps:$4 sm:$0xff]  }
 0xd40   : > { %11062 = vmatprep.subr.bf16.mxu0 %v14775_v52  ;;  %v14854_v51 = vld [vmem:[#allocation19 + $0xb00] ss:$16 sps:$4 sm:$0xff]  }
 0xd41   : > { %v14860_v52 = vld [vmem:[#allocation19 + $0xb20] ss:$16 sps:$4 sm:$0xff]  }
 0xd42   : > { %10166 = vmatpush1.bf16.msra.mxu1 %v14731_v7  ;;  %v14814_v7 = vld [vmem:[#allocation19 + $0xa24] ss:$16 sps:$4 sm:$0xff]  }
 0xd43   : > { %10167 = vmatprep.subr.bf16.mxu1 %v14736_v0  ;;  %11063 = vmatpush1.bf16.msra.mxu0 %v14773_v48  ;;  %v14820_v0 = vld [vmem:[#allocation19 + $0xa44] ss:$16 sps:$4 sm:$0xff]   ;;  %v14866_v48 = vld [vmem:[#allocation19 + $0xb40] ss:$16 sps:$4 sm:$0xff]  }
 0xd44   : > { %11064 = vmatprep.subr.bf16.mxu0 %v14778_v49  ;;  %v14872_v49 = vld [vmem:[#allocation19 + $0xb60] ss:$16 sps:$4 sm:$0xff]  }
 0xd46   : > { %10168 = vmatpush1.bf16.msra.mxu1 %v14734_v5  ;;  %v14826_v5 = vld [vmem:[#allocation19 + $0xa64] ss:$16 sps:$4 sm:$0xff]  }
 0xd47   : > { %10169 = vmatprep.subr.bf16.mxu1 %v14739_v29  ;;  %11065 = vmatpush1.bf16.msra.mxu0 %v14776_v42  ;;  %v14832_v29 = vld [vmem:[#allocation19 + $0xa84] ss:$16 sps:$4 sm:$0xff]   ;;  %v14878_v42 = vld [vmem:[#allocation19 + $0xb80] ss:$16 sps:$4 sm:$0xff]  }
 0xd48   : > { %11066 = vmatprep.subr.bf16.mxu0 %v14781_v4  ;;  %v14886_v4 = vld [vmem:[#allocation19 + $0xba4] ss:$16 sps:$4 sm:$0xff]  }
 0xd4a   : > { %10170 = vmatpush1.bf16.msra.mxu1 %v14737_v36  ;;  %v14838_v36 = vld [vmem:[#allocation19 + $0xaa4] ss:$16 sps:$4 sm:$0xff]  }
 0xd4b   : > { %10171 = vmatprep.subr.bf16.mxu1 %v14742_v21  ;;  %11067 = vmatpush1.bf16.msra.mxu0 %v14779_v16  ;;  %v14844_v21 = vld [vmem:[#allocation19 + $0xac4] ss:$16 sps:$4 sm:$0xff]  }
 0xd4c   : > { %11068 = vmatprep.subr.bf16.mxu0 %v14784_v37 }
 0xd4e   : > { %10172 = vmatpush1.bf16.msra.mxu1 %v14740_v25  ;;  %v14850_v25 = vld [vmem:[#allocation19 + $0xae4] ss:$16 sps:$4 sm:$0xff]  }
 0xd4f   : > { %10173 = vmatprep.subr.bf16.mxu1 %v14745_v53  ;;  %11069 = vmatpush1.bf16.msra.mxu0 %v14782_v60  ;;  %v14856_v53 = vld [vmem:[#allocation19 + $0xb04] ss:$16 sps:$4 sm:$0xff]  }
 0xd50   : > { %11070 = vmatprep.subr.bf16.mxu0 %v14787_v15 }
 0xd52   : > { %10174 = vmatpush1.bf16.msra.mxu1 %v14743_v45  ;;  %v14862_v45 = vld [vmem:[#allocation19 + $0xb24] ss:$16 sps:$4 sm:$0xff]  }
 0xd53   : > { %10175 = vmatprep.subr.bf16.mxu1 %v14748_v32  ;;  %11071 = vmatpush1.bf16.msra.mxu0 %v14785_v20  ;;  %v14868_v32 = vld [vmem:[#allocation19 + $0xb44] ss:$16 sps:$4 sm:$0xff]  }
 0xd54   : > { %11072 = vmatprep.subr.bf16.mxu0 %v14790_v1 }
 0xd56   : > { %10176 = vmatpush1.bf16.msra.mxu1 %v14746_v30  ;;  %v14874_v30 = vld [vmem:[#allocation19 + $0xb64] ss:$16 sps:$4 sm:$0xff]  }
 0xd57   : > { %10177 = vmatprep.subr.bf16.mxu1 %v14751_v33  ;;  %11073 = vmatpush1.bf16.msra.mxu0 %v14788_v47  ;;  %v14880_v33 = vld [vmem:[#allocation19 + $0xb84] ss:$16 sps:$4 sm:$0xff]  }
 0xd58   : > { %11074 = vmatprep.subr.bf16.mxu0 %v14793_v54 }
 0xd5a   : > { %10178 = vmatpush1.bf16.msra.mxu1 %v14749_v55 }
 0xd5b   : > { %10179 = vmatprep.subr.bf16.mxu1 %v14754_v61  ;;  %11075 = vmatpush1.bf16.msra.mxu0 %v14791_v41  ;;  %v14884_v61 = vld [vmem:[#allocation19 + $0xba0] ss:$16 sps:$4 sm:$0xff]  }
 0xd5c   : > { %11076 = vmatprep.subr.bf16.mxu0 %v14796_v14  ;;  %v14890_v41 = vld [vmem:[#allocation19 + $0xbc0] ss:$16 sps:$4 sm:$0xff]   ;;  %v14892_v14 = vld [vmem:[#allocation19 + $0xbc4] ss:$16 sps:$4 sm:$0xff]  }
 0xd5e   : > { %10180 = vmatpush1.bf16.msra.mxu1 %v14752_v39 }
 0xd5f   : > { %10181 = vmatprep.subr.bf16.mxu1 %v14757_v62  ;;  %11077 = vmatpush1.bf16.msra.mxu0 %v14794_v63  ;;  %v14898_v63 = vld [vmem:[#allocation19 + $0xbe4] ss:$16 sps:$4 sm:$0xff]  }
 0xd60   : > { %11078 = vmatprep.subr.bf16.mxu0 %v14799_v40 }
 0xd62   : > { %10182 = vmatpush1.bf16.msra.mxu1 %v14755_v46 }
 0xd63   : > { %12702 = vmatprep.subr.msk.bf16.mxu1 %vm8137_vm13, %v16342_v58  ;;  %11079 = vmatpush1.bf16.msra.mxu0 %v14797_v57 }
 0xd64   : > { %11080 = vmatprep.subr.bf16.mxu0 %v14802_v11 }
 0xd65   : > { %10184 = vmatmul.mubr.bf16.vlgmr.msra.gmra.mrb[88].mxu1 %v16392_v6 }
 0xd66   : > { %10239 = vmatpush1.bf16.msra.mxu1 %v16345_v59  ;;  %10270 = vmatprep.mubr.bf16.mxu1 %v15438_v34 }
 0xd67   : > { %11081 = vmatpush1.bf16.msra.mxu0 %v14800_v10  ;;  %11093 = vmatprep.subr.bf16.mxu1 %v14808_v22 }
 0xd68   : > { %11082 = vmatprep.subr.bf16.mxu0 %v14805_v12 }
 0xd6d   : > { %12703 = vmatmul.mubr.msk.bf16.vlgmr.msra.gmra.mrb[92].mxu1 %vm8133_vm14, %v16401_v8 }
 0xd6e   : > { %11094 = vmatpush1.bf16.msra.mxu1 %v14806_v2 }
 0xd6f   : > { %11095 = vmatprep.subr.bf16.mxu1 %v14814_v7  ;;  %v14817_v7 = vld [vmem:[#allocation19 + $0x82c] ss:$16 sps:$4 sm:$0xff]  }
 0xd78   : > { %v9299_v58 = vpop.f32.mrb[76].mxu1  ;;  %v16416_v13 = vpop.f32.mrb[76].mxu0 }
 0xd79   : > { %v16419_v6 = vadd.f32 %v9299_v58, %v16405_v9  ;;  %v9301_v59 = vpop.f32.mrb[77].mxu1  ;;  %v16421_v34 = vpop.f32.mrb[77].mxu0  ;;  %v14803_v9 = vld [vmem:[#allocation19 + $0x9e0] ss:$16 sps:$4 sm:$0xff]  }
 0xd7a   : > { %v16424_v50 = vadd.f32 %v9301_v59, %v16407_v28  ;;  %v9303_v31 = vpop.f32.mrb[78].mxu1  ;;  %v9344_v35 = vpop.f32.mrb[78].mxu0  ;;  %11083 = vmatpush1.bf16.msra.mxu0 %v14803_v9  ;;  %v14812_v28 = vld [vmem:[#allocation19 + $0xa20] ss:$16 sps:$4 sm:$0xff]  }
 0xd7b   : > { %v9304_v43 = vpop.f32.mrb[79].mxu1  ;;  %v9345_v8 = vpop.f32.mrb[79].mxu0  ;;  %11134 = vmatprep.subr.bf16.mxu0 %v14811_v19  ;;  %11096 = vmatpush1.bf16.msra.mxu1 %v14812_v28  ;;  %v14896_v58 = vld [vmem:[#allocation19 + $0xbe0] ss:$16 sps:$4 sm:$0xff]   ;;  %v14809_v19 = vld [vmem:[#allocation19 + $0x808] ss:$16 sps:$4 sm:$0xff]  }
 0xd7c   : > { %11097 = vmatprep.subr.bf16.mxu1 %v14820_v0  ;;  %v14815_v0 = vld [vmem:[#allocation19 + $0x828] ss:$16 sps:$4 sm:$0xff]  }
 0xd7f   : > { %11098 = vmatpush1.bf16.msra.mxu1 %v14818_v44 }
 0xd80   : > { %11099 = vmatprep.subr.bf16.mxu1 %v14826_v5  ;;  %v14821_v5 = vld [vmem:[#allocation19 + $0x848] ss:$16 sps:$4 sm:$0xff]  }
 0xd83   : > { %11100 = vmatpush1.bf16.msra.mxu1 %v14824_v56  ;;  %v14823_v56 = vld [vmem:[#allocation19 + $0x84c] ss:$16 sps:$4 sm:$0xff]  }
 0xd84   : > { %11101 = vmatprep.subr.bf16.mxu1 %v14832_v29  ;;  %v14827_v29 = vld [vmem:[#allocation19 + $0x868] ss:$16 sps:$4 sm:$0xff]  }
 0xd87   : > { %11102 = vmatpush1.bf16.msra.mxu1 %v14830_v17  ;;  %v14829_v17 = vld [vmem:[#allocation19 + $0x86c] ss:$16 sps:$4 sm:$0xff]  }
 0xd88   : > { %11103 = vmatprep.subr.bf16.mxu1 %v14838_v36  ;;  %v14833_v36 = vld [vmem:[#allocation19 + $0x888] ss:$16 sps:$4 sm:$0xff]  }
 0xd8b   : > { %11104 = vmatpush1.bf16.msra.mxu1 %v14836_v3  ;;  %v14835_v3 = vld [vmem:[#allocation19 + $0x88c] ss:$16 sps:$4 sm:$0xff]  }
 0xd8c   : > { %11105 = vmatprep.subr.bf16.mxu1 %v14844_v21  ;;  %v14839_v21 = vld [vmem:[#allocation19 + $0x8a8] ss:$16 sps:$4 sm:$0xff]  }
 0xd8f   : > { %11106 = vmatpush1.bf16.msra.mxu1 %v14842_v18  ;;  %v14841_v18 = vld [vmem:[#allocation19 + $0x8ac] ss:$16 sps:$4 sm:$0xff]  }
 0xd90   : > { %11107 = vmatprep.subr.bf16.mxu1 %v14850_v25  ;;  %v14845_v25 = vld [vmem:[#allocation19 + $0x8c8] ss:$16 sps:$4 sm:$0xff]  }
 0xd93   : > { %11108 = vmatpush1.bf16.msra.mxu1 %v14848_v38  ;;  %v14847_v38 = vld [vmem:[#allocation19 + $0x8cc] ss:$16 sps:$4 sm:$0xff]  }
 0xd94   : > { %11109 = vmatprep.subr.bf16.mxu1 %v14856_v53  ;;  %v14851_v53 = vld [vmem:[#allocation19 + $0x8e8] ss:$16 sps:$4 sm:$0xff]  }
 0xd97   : > { %11110 = vmatpush1.bf16.msra.mxu1 %v14854_v51  ;;  %v14853_v51 = vld [vmem:[#allocation19 + $0x8ec] ss:$16 sps:$4 sm:$0xff]  }
 0xd98   : > { %11111 = vmatprep.subr.bf16.mxu1 %v14862_v45  ;;  %v14857_v45 = vld [vmem:[#allocation19 + $0x908] ss:$16 sps:$4 sm:$0xff]  }
 0xd9b   : > { %11112 = vmatpush1.bf16.msra.mxu1 %v14860_v52  ;;  %v14859_v52 = vld [vmem:[#allocation19 + $0x90c] ss:$16 sps:$4 sm:$0xff]  }
 0xd9c   : > { %11113 = vmatprep.subr.bf16.mxu1 %v14868_v32  ;;  %v14863_v32 = vld [vmem:[#allocation19 + $0x928] ss:$16 sps:$4 sm:$0xff]  }
 0xd9f   : > { %11114 = vmatpush1.bf16.msra.mxu1 %v14866_v48  ;;  %v14865_v48 = vld [vmem:[#allocation19 + $0x92c] ss:$16 sps:$4 sm:$0xff]  }
 0xda0   : > { %11115 = vmatprep.subr.bf16.mxu1 %v14874_v30  ;;  %v14869_v30 = vld [vmem:[#allocation19 + $0x948] ss:$16 sps:$4 sm:$0xff]  }
 0xda3   : > { %11116 = vmatpush1.bf16.msra.mxu1 %v14872_v49  ;;  %v14871_v49 = vld [vmem:[#allocation19 + $0x94c] ss:$16 sps:$4 sm:$0xff]  }
 0xda4   : > { %11117 = vmatprep.subr.bf16.mxu1 %v14880_v33  ;;  %v14875_v33 = vld [vmem:[#allocation19 + $0x968] ss:$16 sps:$4 sm:$0xff]  }
 0xda7   : > { %11118 = vmatpush1.bf16.msra.mxu1 %v14878_v42  ;;  %v14877_v42 = vld [vmem:[#allocation19 + $0x96c] ss:$16 sps:$4 sm:$0xff]  }
 0xda8   : > { %11119 = vmatprep.subr.bf16.mxu1 %v14886_v4  ;;  %v14883_v4 = vld [vmem:[#allocation19 + $0x98c] ss:$16 sps:$4 sm:$0xff]  }
 0xdab   : > { %11120 = vmatpush1.bf16.msra.mxu1 %v14884_v61  ;;  %v14887_v61 = vld [vmem:[#allocation19 + $0x9a8] ss:$16 sps:$4 sm:$0xff]  }
 0xdac   : > { %11121 = vmatprep.subr.bf16.mxu1 %v14892_v14 }
 0xdaf   : > { %11122 = vmatpush1.bf16.msra.mxu1 %v14890_v41 }
 0xdb0   : > { %11123 = vmatprep.subr.bf16.mxu1 %v14898_v63 }
 0xdb3   : > { %11124 = vmatpush1.bf16.msra.mxu1 %v14896_v58 }
 0xdb8   : > { %v9381_v55 = vpop.f32.mrb[80].mxu1  ;;  %v10062_v16 = vpop.f32.mrb[80].mxu0 }
 0xdb9   : > { %v9382_v37 = vadd.f32 %v9381_v55, %v16416_v13  ;;  %v9383_v39 = vpop.f32.mrb[81].mxu1  ;;  %v10063_v60 = vadd.f32 %v10062_v16, %v16419_v6  ;;  %v10064_v62 = vpop.f32.mrb[81].mxu0  ;;  %v14904_v13 = vld [vmem:[#allocation19 + $0xa0c] ss:$16 sps:$4 sm:$0xff]   ;;  %v14881_v55 = vld [vmem:[#allocation19 + $0x988] ss:$16 sps:$4 sm:$0xff]  }
 0xdba   : > { %v9384_v15 = vadd.f32 %v9383_v39, %v16421_v34  ;;  %v9385_v46 = vpop.f32.mrb[82].mxu1  ;;  %v10065_v20 = vadd.f32 %v10064_v62, %v16424_v50  ;;  %v10066_v1 = vpop.f32.mrb[82].mxu0  ;;  %11175 = vmatprep.subr.bf16.mxu1 %v14904_v13  ;;  %v14889_v16 = vld [vmem:[#allocation19 + $0x9ac] ss:$16 sps:$4 sm:$0xff]   ;;  %v14902_v13 = vld [vmem:[#allocation19 + $0xa08] ss:$16 sps:$4 sm:$0xff]  }
 0xdbb   : > { %v9386_v47 = vpop.f32.mrb[83].mxu1  ;;  %v10067_v54 = vpop.f32.mrb[83].mxu0  ;;  %v14895_v39 = vld [vmem:[#allocation19 + $0x9cc] ss:$16 sps:$4 sm:$0xff]   ;;  %v14893_v1 = vld [vmem:[#allocation19 + $0x9c8] ss:$16 sps:$4 sm:$0xff]  }
 0xdbc   : > { %v14901_v47 = vld [vmem:[#allocation19 + $0x9ec] ss:$16 sps:$4 sm:$0xff]   ;;  %v14899_v54 = vld [vmem:[#allocation19 + $0x9e8] ss:$16 sps:$4 sm:$0xff]  }
 0xdf8   : > { %v10103_v40 = vpop.f32.mrb[84].mxu1 }
 0xdf9   : > { %v16430_v6 = vadd.f32 %v10103_v40, %v10063_v60  ;;  %v10105_v59 = vpop.f32.mrb[85].mxu1  ;;  %v10144_v34 = vpop.f32.mrb[84].mxu0 }
 0xdfa   : > { %v16432_v57 = vadd.f32 %v10105_v59, %v10065_v20  ;;  %v16434_v50 = vadd.f32 %v10144_v34, %v9382_v37  ;;  %v10107_v31 = vpop.f32.mrb[86].mxu1  ;;  %v10146_v35 = vpop.f32.mrb[85].mxu0  ;;  %v14907_v34 = vld [vmem:[#allocation19 + $0xa2c] ss:$16 sps:$4 sm:$0xff]  }
 0xdfb   : > { %v16436_v43 = vadd.f32 %v10146_v35, %v9384_v15  ;;  %v10108_v8 = vpop.f32.mrb[87].mxu1  ;;  %v10148_v10 = vpop.f32.mrb[86].mxu0  ;;  %v14910_v31 = vld [vmem:[#allocation19 + $0xa4c] ss:$16 sps:$4 sm:$0xff]   ;;  %v14908_v35 = vld [vmem:[#allocation19 + $0xa48] ss:$16 sps:$4 sm:$0xff]  }
 0xdfc   : > { %v10149_v11 = vpop.f32.mrb[87].mxu0  ;;  %v14911_v8 = vld [vmem:[#allocation19 + $0xa68] ss:$16 sps:$4 sm:$0xff]   ;;  %v14916_v10 = vld [vmem:[#allocation19 + $0xa8c] ss:$16 sps:$4 sm:$0xff]  }
 0xdfd   : > { %v14914_v11 = vld [vmem:[#allocation19 + $0xa88] ss:$16 sps:$4 sm:$0xff]  }
 0xe01   : > { %v10231_v12 = vpop.f32.mrb[88].mxu0 }
 0xe02   : > { %v16438_v9 = vpack.c.bf16 %v10231_v12, %v10231_v12  ;;  %v10233_v2 = vpop.f32.mrb[89].mxu0  ;;  %v14919_v12 = vld [vmem:[#allocation19 + $0xaac] ss:$16 sps:$4 sm:$0xff]  }
 0xe03   : > { %v10280_v22 = vpack.c.bf16 %v10233_v2, %v10233_v2  ;;  %v10235_v28 = vpop.f32.mrb[90].mxu0  ;;  %v14917_v2 = vld [vmem:[#allocation19 + $0xaa8] ss:$16 sps:$4 sm:$0xff]  }
 0xe04   : > { %v10236_v44 = vpop.f32.mrb[91].mxu0  ;;  %v14923_v28 = vld [vmem:[#allocation19 + $0xae8] ss:$16 sps:$4 sm:$0xff]  }
 0xe05   : > { %11084 = vmatprep.mubr.bf16.mxu0 %v10280_v22  ;;  %v14926_v44 = vld [vmem:[#allocation19 + $0xb08] ss:$16 sps:$4 sm:$0xff]  }
 0xe06   : > { %11085 = vmatmul.mubr.bf16.vlgmr.msra.gmra.mrb[92].mxu0 %v16438_v9 }
 0xe07   : > { %11135 = vmatpush1.bf16.msra.mxu0 %v14809_v19  ;;  %11166 = vmatprep.mubr.bf16.mxu0 %v10280_v22  ;;  %v14920_v22 = vld [vmem:[#allocation19 + $0xac8] ss:$16 sps:$4 sm:$0xff]   ;;  %v14925_v19 = vld [vmem:[#allocation19 + $0xaec] ss:$16 sps:$4 sm:$0xff]  }
 0xe08   : > { %11136 = vmatprep.subr.bf16.mxu0 %v14817_v7  ;;  %v14928_v7 = vld [vmem:[#allocation19 + $0xb0c] ss:$16 sps:$4 sm:$0xff]  }
 0xe0b   : > { %11137 = vmatpush1.bf16.msra.mxu0 %v14815_v0  ;;  %v14931_v0 = vld [vmem:[#allocation19 + $0xb2c] ss:$16 sps:$4 sm:$0xff]  }
 0xe0c   : > { %11138 = vmatprep.subr.bf16.mxu0 %v14823_v56  ;;  %v14929_v56 = vld [vmem:[#allocation19 + $0xb28] ss:$16 sps:$4 sm:$0xff]  }
 0xe0f   : > { %11139 = vmatpush1.bf16.msra.mxu0 %v14821_v5  ;;  %v14934_v5 = vld [vmem:[#allocation19 + $0xb4c] ss:$16 sps:$4 sm:$0xff]  }
 0xe10   : > { %11140 = vmatprep.subr.bf16.mxu0 %v14829_v17  ;;  %v14932_v17 = vld [vmem:[#allocation19 + $0xb48] ss:$16 sps:$4 sm:$0xff]  }
 0xe13   : > { %11141 = vmatpush1.bf16.msra.mxu0 %v14827_v29  ;;  %v14937_v29 = vld [vmem:[#allocation19 + $0xb6c] ss:$16 sps:$4 sm:$0xff]  }
 0xe14   : > { %11142 = vmatprep.subr.bf16.mxu0 %v14835_v3  ;;  %v14935_v3 = vld [vmem:[#allocation19 + $0xb68] ss:$16 sps:$4 sm:$0xff]  }
 0xe17   : > { %11143 = vmatpush1.bf16.msra.mxu0 %v14833_v36  ;;  %v14940_v36 = vld [vmem:[#allocation19 + $0xb8c] ss:$16 sps:$4 sm:$0xff]  }
 0xe18   : > { %11144 = vmatprep.subr.bf16.mxu0 %v14841_v18  ;;  %v14938_v18 = vld [vmem:[#allocation19 + $0xb88] ss:$16 sps:$4 sm:$0xff]  }
 0xe1b   : > { %11145 = vmatpush1.bf16.msra.mxu0 %v14839_v21  ;;  %v14943_v21 = vld [vmem:[#allocation19 + $0xbac] ss:$16 sps:$4 sm:$0xff]  }
 0xe1c   : > { %11146 = vmatprep.subr.bf16.mxu0 %v14847_v38  ;;  %v14941_v38 = vld [vmem:[#allocation19 + $0xba8] ss:$16 sps:$4 sm:$0xff]  }
 0xe1f   : > { %11147 = vmatpush1.bf16.msra.mxu0 %v14845_v25  ;;  %v14946_v25 = vld [vmem:[#allocation19 + $0xbcc] ss:$16 sps:$4 sm:$0xff]  }
 0xe20   : > { %11148 = vmatprep.subr.bf16.mxu0 %v14853_v51  ;;  %v14944_v51 = vld [vmem:[#allocation19 + $0xbc8] ss:$16 sps:$4 sm:$0xff]  }
 0xe23   : > { %11149 = vmatpush1.bf16.msra.mxu0 %v14851_v53  ;;  %v14949_v53 = vld [vmem:[#allocation19 + $0xbec] ss:$16 sps:$4 sm:$0xff]  }
 0xe24   : > { %11150 = vmatprep.subr.bf16.mxu0 %v14859_v52  ;;  %v14947_v52 = vld [vmem:[#allocation19 + $0xbe8] ss:$16 sps:$4 sm:$0xff]  }
 0xe27   : > { %11151 = vmatpush1.bf16.msra.mxu0 %v14857_v45 }
 0xe28   : > { %11152 = vmatprep.subr.bf16.mxu0 %v14865_v48 }
 0xe2b   : > { %11153 = vmatpush1.bf16.msra.mxu0 %v14863_v32 }
 0xe2c   : > { %11154 = vmatprep.subr.bf16.mxu0 %v14871_v49 }
 0xe2f   : > { %11155 = vmatpush1.bf16.msra.mxu0 %v14869_v30  ;;  %v11220_v30 = vld [vmem:[#allocation21] ss:$8 sm:$0xf] }
 0xe30   : > { %11156 = vmatprep.subr.bf16.mxu0 %v14877_v42 }
 0xe33   : > { %11157 = vmatpush1.bf16.msra.mxu0 %v14875_v33 }
 0xe34   : > { %11158 = vmatprep.subr.bf16.mxu0 %v14883_v4  ;;  %v11225_v4 = vrot.slane %v11220_v30, %v16002_v23 }
 0xe37   : > { %11159 = vmatpush1.bf16.msra.mxu0 %v14881_v55 }
 0xe38   : > { %v10185_v37 = vpop.f32.mrb[88].mxu1  ;;  %11160 = vmatprep.subr.bf16.mxu0 %v14889_v16 }
 0xe39   : > { %v16442_v60 = vadd.f32 %v10185_v37, %v16434_v50  ;;  %v10187_v62 = vpop.f32.mrb[89].mxu1  ;;  %v14905_v50 = vld [vmem:[#allocation19 + $0xa28] ss:$16 sps:$4 sm:$0xff]   ;;  %v11229_v37 = vrot.slane %v11220_v30, %v16006_v26 }
 0xe3a   : > { %v16445_v15 = vadd.f32 %v10187_v62, %v16436_v43  ;;  %v10189_v46 = vpop.f32.mrb[90].mxu1  ;;  %v14913_v43 = vld [vmem:[#allocation19 + $0xa6c] ss:$16 sps:$4 sm:$0xff]  }
 0xe3b   : > { %11161 = vmatpush1.bf16.msra.mxu0 %v14887_v61  ;;  %v10190_v20 = vpop.f32.mrb[91].mxu1 }
 0xe3c   : > { %11162 = vmatprep.subr.bf16.mxu0 %v14895_v39  ;;  %v11259_v20 = vld [vmem:[#allocation21 + $0x1] ss:$8 sm:$0xf] }
 0xe3f   : > { %11163 = vmatpush1.bf16.msra.mxu0 %v14893_v1 }
 0xe40   : > { %v10272_v41 = vpop.f32.mrb[92].mxu1  ;;  %11164 = vmatprep.subr.bf16.mxu0 %v14901_v47 }
 0xe41   : > { %v10274_v14 = vpop.f32.mrb[93].mxu1  ;;  %v16447_v40 = vpack.c.bf16 %v10272_v41, %v10272_v41 }
 0xe42   : > { %v10282_v63 = vpack.c.bf16 %v10274_v14, %v10274_v14  ;;  %v10276_v58 = vpop.f32.mrb[94].mxu1 }
 0xe43   : > { %11165 = vmatpush1.bf16.msra.mxu0 %v14899_v54  ;;  %v10277_v59 = vpop.f32.mrb[95].mxu1  ;;  %v11264_v58 = vrot.slane %v11259_v20, %v16002_v23 }
 0xe44   : > { %11125 = vmatprep.mubr.bf16.mxu1 %v10282_v63  ;;  %v11268_v59 = vrot.slane %v11259_v20, %v16006_v26 }
 0xe45   : > { %11126 = vmatmul.mubr.bf16.vlgmr.msra.gmra.mrb[96].mxu1 %v16447_v40 }
 0xe46   : > { %11167 = vmatmul.mubr.bf16.vlgmr.msra.gmra.mrb[96].mxu0 %v16438_v9  ;;  %11176 = vmatpush1.bf16.msra.mxu1 %v14902_v13  ;;  %v14922_v9 = vld [vmem:[#allocation19 + $0xacc] ss:$16 sps:$4 sm:$0xff]  }
 0xe47   : > { %11177 = vmatprep.subr.bf16.mxu1 %v14907_v34  ;;  %11207 = vmatprep.mubr.bf16.mxu1 %v10282_v63  ;;  %v11286_v63 = vld [vmem:[#allocation21 + $0x2] ss:$8 sm:$0xf] }
 0xe4a   : > { %11178 = vmatpush1.bf16.msra.mxu1 %v14905_v50  ;;  %v11291_v50 = vrot.slane %v11286_v63, %v16002_v23  ;;  %v11233_v23 = vrot.slane %v11220_v30, %v16004_v24 }
 0xe4b   : > { %11179 = vmatprep.subr.bf16.mxu1 %v14910_v31  ;;  %v11295_v31 = vrot.slane %v11286_v63, %v16006_v26 }
 0xe4e   : > { %11180 = vmatpush1.bf16.msra.mxu1 %v14908_v35 }
 0xe4f   : > { %11181 = vmatprep.subr.bf16.mxu1 %v14913_v43 }
 0xe52   : > { %11182 = vmatpush1.bf16.msra.mxu1 %v14911_v8  ;;  %v11312_v8 = vld [vmem:[#allocation22] sm:$0xf] }
 0xe53   : > { %11183 = vmatprep.subr.bf16.mxu1 %v14916_v10 }
 0xe56   : > { %11184 = vmatpush1.bf16.msra.mxu1 %v14914_v11  ;;  %v11313_v11 = vld [vmem:[#allocation22 + $0x8] sm:$0xf] }
 0xe57   : > { %11185 = vmatprep.subr.bf16.mxu1 %v14919_v12 }
 0xe5a   : > { %11186 = vmatpush1.bf16.msra.mxu1 %v14917_v2 }
 0xe5b   : > { %11187 = vmatprep.subr.bf16.mxu1 %v14922_v9 }
 0xe5e   : > { %11188 = vmatpush1.bf16.msra.mxu1 %v14920_v22 }
 0xe5f   : > { %11189 = vmatprep.subr.bf16.mxu1 %v14925_v19 }
 0xe62   : > { %11190 = vmatpush1.bf16.msra.mxu1 %v14923_v28 }
 0xe63   : > { %11191 = vmatprep.subr.bf16.mxu1 %v14928_v7 }
 0xe66   : > { %11192 = vmatpush1.bf16.msra.mxu1 %v14926_v44 }
 0xe67   : > { %11193 = vmatprep.subr.bf16.mxu1 %v14931_v0 }
 0xe6a   : > { %11194 = vmatpush1.bf16.msra.mxu1 %v14929_v56  ;;  %v11237_v56 = vrot.slane %v11220_v30, %v16008_v27  ;;  %v11315_v30 = vld [vmem:[#allocation22 + $0x18] sm:$0xf] }
 0xe6b   : > { %11195 = vmatprep.subr.bf16.mxu1 %v14934_v5 }
 0xe6e   : > { %11196 = vmatpush1.bf16.msra.mxu1 %v14932_v17 }
 0xe6f   : > { %11197 = vmatprep.subr.bf16.mxu1 %v14937_v29 }
 0xe72   : > { %11198 = vmatpush1.bf16.msra.mxu1 %v14935_v3 }
 0xe73   : > { %11199 = vmatprep.subr.bf16.mxu1 %v14940_v36 }
 0xe76   : > { %11200 = vmatpush1.bf16.msra.mxu1 %v14938_v18 }
 0xe77   : > { %11201 = vmatprep.subr.bf16.mxu1 %v14943_v21  ;;  %v11272_v21 = vrot.slane %v11259_v20, %v16004_v24 }
 0xe7a   : > { %11202 = vmatpush1.bf16.msra.mxu1 %v14941_v38 }
 0xe7b   : > { %11203 = vmatprep.subr.bf16.mxu1 %v14946_v25  ;;  %v11276_v25 = vrot.slane %v11259_v20, %v16008_v27 }
 0xe7e   : > { %11204 = vmatpush1.bf16.msra.mxu1 %v14944_v51 }
 0xe7f   : > { %11205 = vmatprep.subr.bf16.mxu1 %v14949_v53  ;;  %v11299_v53 = vrot.slane %v11286_v63, %v16004_v24 }
 0xe82   : > { %11206 = vmatpush1.bf16.msra.mxu1 %v14947_v52 }
 0xe85   : > { %11208 = vmatmul.mubr.bf16.vlgmr.msra.gmra.mrb[100].mxu1 %v16447_v40 }
 0xed9   : > { %v11086_v45 = vpop.f32.mrb[92].mxu0 }
 0xeda   : > { %v11088_v48 = vpop.f32.mrb[93].mxu0 }
 0xedb   : > { %v11090_v32 = vpop.f32.mrb[94].mxu0 }
 0xedc   : > { %v11091_v49 = vpop.f32.mrb[95].mxu0 }
 0xedd   : > { %v11314_v49 = vld [vmem:[#allocation22 + $0x10] sm:$0xf] }
 0xf18   : > { %v11127_v42 = vpop.f32.mrb[96].mxu1 }
 0xf19   : > { %v11128_v33 = vadd.f32 %v11127_v42, %v11086_v45  ;;  %v11168_v55 = vpop.f32.mrb[96].mxu0  ;;  %v11129_v16 = vpop.f32.mrb[97].mxu1  ;;  %v11303_v45 = vrot.slane %v11286_v63, %v16008_v27 }
 0xf1a   : > { %v11130_v61 = vadd.f32 %v11129_v16, %v11088_v48  ;;  %v11170_v39 = vpop.f32.mrb[97].mxu0  ;;  %v11131_v62 = vpop.f32.mrb[98].mxu1 }
 0xf1b   : > { %v11216_v46 = vadd.f32 %v11128_v33, %v16430_v6  ;;  %v11172_v1 = vpop.f32.mrb[98].mxu0  ;;  %v11132_v47 = vpop.f32.mrb[99].mxu1 }
 0xf1c   : > { %v11217_v54 = vadd.f32 %v11130_v61, %v16432_v57  ;;  %v11173_v41 = vpop.f32.mrb[99].mxu0  ;;  %v11336_v47 = vld [vmem:[#allocation22 + $0x4] ss:$0 sm:$0xff] }
 0xf1d   : > { %v11242_v14 = vadd.f32 %v11225_v4, %v11216_v46 }
 0xf1e   : > { %v11243_v13 = vadd.f32 %v11229_v37, %v11217_v54 }
 0xf1f   : > { %vm11246_vm1 = vcmp.gt.f32.partialorder %v11242_v14, 0.0  ;;  %v11250_v40 = vmul.f32 0.2, %v11242_v14 }
 0xf20   : > { %vm11247_vm2 = vcmp.gt.f32.partialorder %v11243_v13, 0.0  ;;  %v11251_v34 = vmul.f32 0.2, %v11243_v13 }
 0xf21   : > { %v11254_v6 = vsel %vm11246_vm1, %v11242_v14, %v11250_v40 }
 0xf22   : > { %v11281_v35 = vmul.f32 %v11264_v58, %v11254_v6  ;;  %v11255_v43 = vsel %vm11247_vm2, %v11243_v13, %v11251_v34 }
 0xf23   : > { %v11282_v57 = vmul.f32 %v11268_v59, %v11255_v43 }
 0xf24   : > { %v11308_v10 = vadd.f32 %v11291_v50, %v11281_v35 }
 0xf25   : > { %v11309_v12 = vadd.f32 %v11295_v31, %v11282_v57 }
 0xf26   : > { %v11316_v2 = vmul.f32 %v11312_v8, %v11308_v10 }
 0xf27   : > { %v11317_v9 = vmul.f32 %v11313_v11, %v11309_v12 }
 0xf28   : > { %v11320_v22 = vsel %vm8137_vm13, %v11316_v2, 0.0 }
 0xf29   : > { %v11321_v19 = vsel %vm8137_vm13, %v11317_v9, 0.0 }
 0xf2a   : > { %v11322_v28 = vadd.f32 %v11321_v19, %v11320_v22 }
 0xf58   : > { %v11209_v7 = vpop.f32.mrb[100].mxu1 }
 0xf59   : > { %v11210_v44 = vadd.f32 %v11209_v7, %v11168_v55  ;;  %v11211_v0 = vpop.f32.mrb[101].mxu1 }
 0xf5a   : > { %v11212_v26 = vadd.f32 %v11211_v0, %v11170_v39  ;;  %v11213_v5 = vpop.f32.mrb[102].mxu1 }
 0xf5b   : > { %v11218_v17 = vadd.f32 %v11210_v44, %v16442_v60  ;;  %v11214_v29 = vpop.f32.mrb[103].mxu1 }
 0xf5c   : > { %v11219_v3 = vadd.f32 %v11212_v26, %v16445_v15 }
 0xf5d   : > { %v11244_v36 = vadd.f32 %v11233_v23, %v11218_v17 }
 0xf5e   : > { %v11245_v18 = vadd.f32 %v11237_v56, %v11219_v3 }
 0xf5f   : > { %vm11248_vm3 = vcmp.gt.f32.partialorder %v11244_v36, 0.0  ;;  %v11252_v38 = vmul.f32 0.2, %v11244_v36 }
 0xf60   : > { %vm11249_vm4 = vcmp.gt.f32.partialorder %v11245_v18, 0.0  ;;  %v11253_v51 = vmul.f32 0.2, %v11245_v18 }
 0xf61   : > { %v11256_v52 = vsel %vm11248_vm3, %v11244_v36, %v11252_v38 }
 0xf62   : > { %v11257_v48 = vsel %vm11249_vm4, %v11245_v18, %v11253_v51  ;;  %v11283_v60 = vmul.f32 %v11272_v21, %v11256_v52 }
 0xf63   : > { %v11284_v32 = vmul.f32 %v11276_v25, %v11257_v48 }
 0xf64   : > { %v11310_v15 = vadd.f32 %v11299_v53, %v11283_v60 }
 0xf65   : > { %v11311_v42 = vadd.f32 %v11303_v45, %v11284_v32 }
 0xf66   : > { %v11318_v33 = vmul.f32 %v11314_v49, %v11310_v15 }
 0xf67   : > { %v11319_v4 = vmul.f32 %v11315_v30, %v11311_v42 }
 0xf68   : > { %v11323_v55 = vsel %vm8137_vm13, %v11318_v33, 0.0 }
 0xf69   : > { %v11324_v16 = vadd.f32 %v11323_v55, %v11322_v28  ;;  %v11325_v61 = vsel %vm8137_vm13, %v11319_v4, 0.0 }
 0xf6b   : > { %v11326_v37 = vadd.f32 %v11325_v61, %v11324_v16 }
 0xf6d   : > { %11327 = vadd.xlane.f32.xlu0 %v11326_v37 }
 0xffa   : > { %v11328_v24 = vpop.xlane.xlu0 %11327 }
 0xffb   : > { %v11329_v39 = vsel %vm8137_vm13, %v11328_v24, 0.0 }
 0xffc   : > { %v11330_v27 = vrot.slane %v11329_v39, 4 }
 0xffe   : > { %v11331_v62 = vadd.f32 %v11330_v27, %v11329_v39 }
0x1000   : > { %v11332_v46 = vrot.slane %v11331_v62, 2 }
0x1002   : > { %v11333_v20 = vadd.f32 %v11332_v46, %v11331_v62 }
0x1004   : > { %v11334_v1 = vrot.slane %v11333_v20, 1 }
0x1006   : > { %v11335_v54 = vadd.f32 %v11334_v1, %v11333_v20 }
0x1008   : > { %v11337_v41 = vadd.f32 %v11336_v47, %v11335_v54 }
0x100a   : > { %v11338_v14 = vsub.f32 0.0, %v11337_v41  ;;  %v11344_v63 = vmul.f32 1.442695, %v11337_v41  ;;  %vm11349_vm5 = vcmp.ge.f32.partialorder %v11337_v41, 0.0 }
0x100c   : > { %v11339_v58 = vmul.f32 1.442695, %v11338_v14  ;;  %14950 = vpow2.f32 %v11344_v63 }
0x100e   : > { %14952 = vpow2.f32 %v11339_v58 }
0x1016   : > { %v14951_v13 = vpop.eup %14950 }
0x1017   : > { %v11346_v40 = vadd.f32 1.0, %v14951_v13 }
0x1018   : > { %v14953_v59 = vpop.eup %14952 }
0x1019   : > { %v11341_v34 = vadd.f32 1.0, %v14953_v59  ;;  %14954 = vrcp.f32 %v11346_v40 }
0x101b   : > { %14956 = vrcp.f32 %v11341_v34 }
0x1023   : > { %v14955_v50 = vpop.eup %14954 }
0x1024   : > { %v11348_v6 = vmul.f32 %v14955_v50, %v14951_v13 }
0x1025   : > { %v14957_v31 = vpop.eup %14956 }
0x1026   : > { %v11350_v35 = vsel %vm11349_vm5, %v14957_v31, %v11348_v6 }
0x1027   : > { %11353 = vperm.xlu0 %13140, %v11350_v35  }
0x10a6   : > { %v11354_v43 = vpop.permute.xlu0 %11353 }
0x10a7   : > { %11356 = vst [vmem:[%s664_s16] sm:$0xff] %v11354_v43 }
0x10a8 PF: > { %s16564_s29 = sld [smem:[#allocation33_spill]]  ;;  %p31_p5 = scmp.ge.s32.totalorder %s15831_s18, 4  }
0x10a9   : > { %s16565_s30 = smov %s15410_s15  ;;  %s16566_s15 = smov %s15842_s25 }
0x10aa   : > { %s16567_s16 = smov %s15831_s18  ;;  %33 = sbr.rel (!%p31_p5) target bundleno = 16 (0x10), region = 192 }
0x10b1   :  { %11376 = vsyncpa [#allocation3], 1 }
0x10b2   :  { %11378 = vsyncpa [#allocation3 + $0x1], 1 }
0x10b3   :  { %11379 = vsyncpa [#allocation5], 1 }
0x10b4   :  { %11380 = vsyncpa [#allocation8], 1 }
0x10b5   :  { %11381 = vsyncpa [#allocation11], 1 }
0x10b6   :  { %11382 = vsyncpa [#allocation14], 1 }
0x10b7   :  { %11383 = vsyncpa [#allocation17], 1 }
0x10b8   :  { %11384 = vsyncpa [#allocation20], 1 }
0x10b9   :  { %11385 = vsyncpa [#allocation23], 1 }

</bundles_post_ra>
